<compile_context>
chip_gen: v7x
topology: tpu7x:2x2x1
jax: 0.10.0
libtpu: 0.0.40
codegen_flags: <defaults>
</compile_context>

<pallas_src>
import jax
import jax.numpy as jnp
import numpy as np
from jax.experimental import pallas as pl
from jax.experimental.pallas import tpu as pltpu

N = 2                       # batch
H = W = 8
HW = H * W                  # 64
CIN = 256
CPOL = 128                  # policy conv output channels
POL_IN = CPOL * HW          # 8192
POL_OUT = 8 * 8 * 64        # 4096
VAL_HID = 256
BN_EPS = 1e-5


# ---- Kernel 1: fused [policy conv + BN + ReLU] and [value conv + BN + ReLU
# ----            + Linear + ReLU + Linear + Tanh] in one pallas_call --------
def heads_kernel(xp_ref, x3_ref, wp_ref, bp_ref, wv_ref, bv_ref,
                 w1_ref, b1_ref, w2_ref, b2_ref, p_ref, val_ref):
    # Policy conv (1x1) + folded BN + ReLU -> bf16 activation for the big GEMM
    p = jnp.dot(xp_ref[...], wp_ref[...],
                preferred_element_type=jnp.float32) + bp_ref[...]
    p_ref[...] = jnp.maximum(p, 0.0).astype(p_ref.dtype)        # (N*HW, CPOL)

    # Value conv (single output channel) + folded BN + ReLU, computed as a
    # broadcast multiply + lane reduction so the result is directly (N, HW).
    wv = wv_ref[...][None, :, :]                                # (1, 1, CIN)
    v = jnp.sum(x3_ref[...] * wv, axis=-1) + bv_ref[...]        # (N, HW)
    v = jnp.maximum(v, 0.0)

    # Value MLP: Linear(64, 256) + ReLU + Linear(256, 1) + Tanh
    h = jnp.dot(v, w1_ref[...], preferred_element_type=jnp.float32) + b1_ref[...]
    h = jnp.maximum(h, 0.0)
    o = jnp.dot(h, w2_ref[...], preferred_element_type=jnp.float32) + b2_ref[...]
    val_ref[...] = jnp.tanh(o)                                  # (N, 1)


def heads(x_pix, x3, wp, bp, wv, bv, w1, b1, w2, b2):
    return pl.pallas_call(
        heads_kernel,
        out_shape=(jax.ShapeDtypeStruct((N * HW, CPOL), jnp.bfloat16),
                   jax.ShapeDtypeStruct((N, 1), jnp.float32)),
    )(x_pix, x3, wp, bp, wv, bv, w1, b1, w2, b2)


# ---- Kernel 2: policy Linear (8192 -> 4096), tiled bf16 matmul -------------
TN = 1024   # output-column tile  -> 4 "parallel" j tiles (v7x megacore)
TK = 2048   # reduction tile      -> 4 k steps


def policy_linear_kernel(a_ref, b_ref, bias_ref, o_ref, acc_ref):
    k = pl.program_id(1)

    @pl.when(k == 0)
    def _():
        acc_ref[...] = jnp.zeros_like(acc_ref)

    acc_ref[...] += jnp.dot(a_ref[...], b_ref[...],
                            preferred_element_type=jnp.float32)

    @pl.when(k == pl.num_programs(1) - 1)
    def _():
        o_ref[...] = acc_ref[...] + bias_ref[...]


def policy_linear(a_bf16, w_bf16, bias):
    grid = (POL_OUT // TN, POL_IN // TK)    # (4, 4)
    return pl.pallas_call(
        policy_linear_kernel,
        out_shape=jax.ShapeDtypeStruct((N, POL_OUT), jnp.float32),
        grid_spec=pltpu.PrefetchScalarGridSpec(
            num_scalar_prefetch=0,
            grid=grid,
            in_specs=[
                pl.BlockSpec((N, TK), lambda j, k: (0, k)),     # bf16 activations
                pl.BlockSpec((TK, TN), lambda j, k: (k, j)),    # bf16 weight (4 MiB tile)
                pl.BlockSpec((1, TN), lambda j, k: (0, j)),     # f32 bias (k-invariant)
            ],
            out_specs=pl.BlockSpec((N, TN), lambda j, k: (0, j)),
            scratch_shapes=[pltpu.VMEM((N, TN), jnp.float32)],
        ),
        compiler_params=pltpu.CompilerParams(
            dimension_semantics=("parallel", "arbitrary"),
            vmem_limit_bytes=32 * 1024 * 1024),
    )(a_bf16, w_bf16, bias)


# ----------------------- Parameters (deterministic init) ---------------------
def init_params(seed=42):
    keys = jax.random.split(jax.random.PRNGKey(seed), 16)
    p = {}
    # value conv: Conv2d(256, 1, 1)
    p["wv_conv"] = jax.random.normal(keys[0], (1, CIN)) / np.sqrt(CIN)
    p["bv_conv"] = 0.1 * jax.random.normal(keys[1], (1,))
    # BatchNorm2d(1)
    p["v_gamma"] = 1.0 + 0.1 * jax.random.normal(keys[2], (1,))
    p["v_beta"] = 0.1 * jax.random.normal(keys[3], (1,))
    p["v_mean"] = 0.1 * jax.random.normal(keys[4], (1,))
    p["v_var"] = 0.5 + jax.random.uniform(keys[5], (1,))
    # value Linear(64, 256) and Linear(256, 1)   (PyTorch [out, in] layout)
    p["w1"] = jax.random.normal(keys[6], (VAL_HID, HW)) / np.sqrt(HW)
    p["b1"] = 0.1 * jax.random.normal(keys[7], (VAL_HID,))
    p["w2"] = jax.random.normal(keys[8], (1, VAL_HID)) / np.sqrt(VAL_HID)
    p["b2"] = 0.1 * jax.random.normal(keys[9], (1,))
    # policy conv: Conv2d(256, 128, 1)
    p["wp_conv"] = jax.random.normal(keys[10], (CPOL, CIN)) / np.sqrt(CIN)
    p["bp_conv"] = 0.1 * jax.random.normal(keys[11], (CPOL,))
    # BatchNorm2d(128)
    p["p_gamma"] = 1.0 + 0.1 * jax.random.normal(keys[12], (CPOL,))
    p["p_beta"] = 0.1 * jax.random.normal(keys[13], (CPOL,))
    p["p_mean"] = 0.1 * jax.random.normal(keys[14], (CPOL,))
    p["p_var"] = 0.5 + jax.random.uniform(keys[15], (CPOL,))
    # policy Linear(8192, 4096)  (PyTorch [out, in]; in-index = c*64 + h*8 + w)
    kq = jax.random.split(jax.random.PRNGKey(seed + 1), 2)
    p["wpol"] = jax.random.normal(kq[0], (POL_OUT, POL_IN)) / np.sqrt(POL_IN)
    p["bpol"] = 0.1 * jax.random.normal(kq[1], (POL_OUT,))
    return {k: v.astype(jnp.float32) for k, v in p.items()}


def fold_bn(w_oc_ic, b, gamma, beta, mean, var):
    """Fold eval-mode BN into a 1x1 conv: returns (Cin, Cout) weight, (1, Cout) bias."""
    g = gamma / jnp.sqrt(var + BN_EPS)
    w_eff = w_oc_ic.T * g[None, :]
    b_eff = (b - mean) * g + beta
    return w_eff, b_eff[None, :]


def prepare_params(p):
    """One-time parameter preparation: BN folding, kernel-layout permutation of
    the 128 MiB policy weight and its bf16 cast.  Runs OUTSIDE the jitted
    forward so none of this is recomputed per call."""
    wv, bv = fold_bn(p["wv_conv"], p["bv_conv"],
                     p["v_gamma"], p["v_beta"], p["v_mean"], p["v_var"])
    wp, bp = fold_bn(p["wp_conv"], p["bp_conv"],
                     p["p_gamma"], p["p_beta"], p["p_mean"], p["p_var"])
    # kernel flatten order of the policy activation is hw*CPOL + c, while
    # torch's Flatten order is c*HW + hw -> permute weight rows accordingly.
    wpol_kern = (p["wpol"].reshape(POL_OUT, CPOL, HW)
                 .transpose(2, 1, 0).reshape(POL_IN, POL_OUT))
    prep = {
        "wp": wp, "bp": bp,                        # (CIN, CPOL), (1, CPOL)
        "wv": wv.T, "bv": bv,                      # (1, CIN),   (1, 1)
        "w1": p["w1"].T, "b1": p["b1"][None, :],   # (HW, VAL_HID), (1, VAL_HID)
        "w2": p["w2"].T, "b2": p["b2"][None, :],   # (VAL_HID, 1),  (1, 1)
        "wpol": wpol_kern.astype(jnp.bfloat16),    # (POL_IN, POL_OUT) bf16
        "bpol": p["bpol"][None, :],                # (1, POL_OUT) f32
    }
    return jax.block_until_ready(prep)


# ------------------------------- Forward pass --------------------------------
@jax.jit
def outblock_pallas(x, prep):
    # x: (N, 256, 8, 8) NCHW -> pixel-major channel-last views.
    x3 = jnp.transpose(x, (0, 2, 3, 1)).reshape(N, HW, CIN)   # (N, HW, CIN)
    x_pix = x3.reshape(N * HW, CIN)                           # (N*HW, CIN)

    p_act, value = heads(x_pix, x3,
                         prep["wp"], prep["bp"], prep["wv"], prep["bv"],
                         prep["w1"], prep["b1"], prep["w2"], prep["b2"])

    # (N*HW, CPOL) -> (N, HW*CPOL): flat index = hw*CPOL + c, which matches
    # the row-permuted weight prepared once in prepare_params().
    p_flat = p_act.reshape(N, POL_IN)
    policy = policy_linear(p_flat, prep["wpol"], prep["bpol"])
    return value, policy


# ---------------------------- Pure-JAX reference -----------------------------
def outblock_reference(x, p):
    def bn_relu(y, gamma, beta, mean, var):
        y = (y - mean[None, :, None, None]) * (
            gamma[None, :, None, None] / jnp.sqrt(var[None, :, None, None] + BN_EPS))
        return jnp.maximum(y + beta[None, :, None, None], 0.0)

    v = jnp.einsum('nchw,oc->nohw', x, p["wv_conv"]) + p["bv_conv"][None, :, None, None]
    v = bn_relu(v, p["v_gamma"], p["v_beta"], p["v_mean"], p["v_var"])
    v = v.reshape(N, -1)
    v = jnp.maximum(v @ p["w1"].T + p["b1"], 0.0)
    value = jnp.tanh(v @ p["w2"].T + p["b2"])

    q = jnp.einsum('nchw,oc->nohw', x, p["wp_conv"]) + p["bp_conv"][None, :, None, None]
    q = bn_relu(q, p["p_gamma"], p["p_beta"], p["p_mean"], p["p_var"])
    q = q.reshape(N, -1)
    policy = q @ p["wpol"].T + p["bpol"]
    return value, policy


if __name__ == "__main__":
    x = jax.random.normal(jax.random.PRNGKey(0), (N, CIN, H, W), dtype=jnp.float32)
    params = init_params()
    prep = prepare_params(params)      # one-time prep, outside the hot path

    value, policy = outblock_pallas(x, prep)
    (value, policy) = jax.block_until_ready((value, policy))

    ref_value, ref_policy = outblock_reference(x, params)
    assert value.shape == (N, 1) and policy.shape == (N, POL_OUT)
    np.testing.assert_allclose(np.asarray(value), np.asarray(ref_value),
                               rtol=1e-2, atol=1e-2)
    # policy head uses a bf16 weight/activation stream with f32 accumulation
    np.testing.assert_allclose(np.asarray(policy), np.asarray(ref_policy),
                               rtol=2e-2, atol=2e-2)
    print("KERNEL_OK")
</pallas_src>

<mosaic_0001>
module attributes {stable_mosaic.version = 11 : i64} {
  func.func @heads_kernel(%arg0: memref<128x256xf32, #tpu.memory_space<vmem>>, %arg1: memref<2x64x256xf32, #tpu.memory_space<vmem>>, %arg2: memref<256x128xf32, #tpu.memory_space<vmem>>, %arg3: memref<1x128xf32, #tpu.memory_space<vmem>>, %arg4: memref<1x256xf32, #tpu.memory_space<vmem>>, %arg5: memref<1x1xf32, #tpu.memory_space<vmem>>, %arg6: memref<64x256xf32, #tpu.memory_space<vmem>>, %arg7: memref<1x256xf32, #tpu.memory_space<vmem>>, %arg8: memref<256x1xf32, #tpu.memory_space<vmem>>, %arg9: memref<1x1xf32, #tpu.memory_space<vmem>>, %arg10: memref<128x128xbf16, #tpu.memory_space<vmem>>, %arg11: memref<2x1xf32, #tpu.memory_space<vmem>>) attributes {dimension_semantics = [], scalar_prefetch = 0 : i64, scratch_operands = 0 : i64, tpu.core_type = #tpu.core_type<tc>} {
    %c0 = arith.constant 0 : index
    %c0_0 = arith.constant 0 : index
    %0 = vector.load %arg0[%c0, %c0_0] : memref<128x256xf32, #tpu.memory_space<vmem>>, vector<128x256xf32>
    %c0_1 = arith.constant 0 : index
    %c0_2 = arith.constant 0 : index
    %1 = vector.load %arg2[%c0_1, %c0_2] : memref<256x128xf32, #tpu.memory_space<vmem>>, vector<256x128xf32>
    %cst = arith.constant dense<0.000000e+00> : vector<128x128xf32>
    %2 = tpu.matmul %0, %1, %cst {dimension_numbers = #tpu.dot_dimension_numbers<[1], [0], [0], [1], [0, 0, 1, 1], [], []>} : vector<128x256xf32>, vector<256x128xf32>, vector<128x128xf32> -> vector<128x128xf32>
    %c0_3 = arith.constant 0 : index
    %c0_4 = arith.constant 0 : index
    %3 = vector.load %arg3[%c0_3, %c0_4] : memref<1x128xf32, #tpu.memory_space<vmem>>, vector<1x128xf32>
    %4 = vector.broadcast %3 : vector<1x128xf32> to vector<128x128xf32>
    %5 = arith.addf %2, %4 : vector<128x128xf32>
    %cst_5 = arith.constant 0.000000e+00 : f32
    %6 = vector.broadcast %cst_5 : f32 to vector<128x128xf32>
    %7 = arith.maximumf %5, %6 : vector<128x128xf32>
    %8 = arith.truncf %7 : vector<128x128xf32> to vector<128x128xbf16>
    %c0_6 = arith.constant 0 : index
    %c0_7 = arith.constant 0 : index
    %9 = vector.load %arg10[%c0_6, %c0_7] : memref<128x128xbf16, #tpu.memory_space<vmem>>, vector<128x128xbf16>
    tpu.vector_store %arg10[%c0_6, %c0_7], %8 {strides = array<i32>} : memref<128x128xbf16, #tpu.memory_space<vmem>>, vector<128x128xbf16>,
    %c0_8 = arith.constant 0 : index
    %c0_9 = arith.constant 0 : index
    %10 = vector.load %arg4[%c0_8, %c0_9] : memref<1x256xf32, #tpu.memory_space<vmem>>, vector<1x256xf32>
    %11 = vector.shape_cast %10 : vector<1x256xf32> to vector<1x1x256xf32>
    %c0_10 = arith.constant 0 : index
    %c0_11 = arith.constant 0 : index
    %c0_12 = arith.constant 0 : index
    %12 = vector.load %arg1[%c0_10, %c0_11, %c0_12] : memref<2x64x256xf32, #tpu.memory_space<vmem>>, vector<2x64x256xf32>
    %13 = vector.broadcast %11 : vector<1x1x256xf32> to vector<2x64x256xf32>
    %14 = arith.mulf %12, %13 : vector<2x64x256xf32>
    %cst_13 = arith.constant dense<0.000000e+00> : vector<2x64xf32>
    %15 = vector.multi_reduction <add>, %14, %cst_13 [2] : vector<2x64x256xf32> to vector<2x64xf32>
    %c0_14 = arith.constant 0 : index
    %c0_15 = arith.constant 0 : index
    %16 = vector.load %arg5[%c0_14, %c0_15] : memref<1x1xf32, #tpu.memory_space<vmem>>, vector<1x1xf32>
    %17 = vector.broadcast %16 : vector<1x1xf32> to vector<2x64xf32>
    %18 = arith.addf %15, %17 : vector<2x64xf32>
    %cst_16 = arith.constant 0.000000e+00 : f32
    %19 = vector.broadcast %cst_16 : f32 to vector<2x64xf32>
    %20 = arith.maximumf %18, %19 : vector<2x64xf32>
    %c0_17 = arith.constant 0 : index
    %c0_18 = arith.constant 0 : index
    %21 = vector.load %arg6[%c0_17, %c0_18] : memref<64x256xf32, #tpu.memory_space<vmem>>, vector<64x256xf32>
    %cst_19 = arith.constant dense<0.000000e+00> : vector<2x256xf32>
    %22 = tpu.matmul %20, %21, %cst_19 {dimension_numbers = #tpu.dot_dimension_numbers<[1], [0], [0], [1], [0, 0, 1, 1], [], []>} : vector<2x64xf32>, vector<64x256xf32>, vector<2x256xf32> -> vector<2x256xf32>
    %c0_20 = arith.constant 0 : index
    %c0_21 = arith.constant 0 : index
    %23 = vector.load %arg7[%c0_20, %c0_21] : memref<1x256xf32, #tpu.memory_space<vmem>>, vector<1x256xf32>
    %24 = vector.broadcast %23 : vector<1x256xf32> to vector<2x256xf32>
    %25 = arith.addf %22, %24 : vector<2x256xf32>
    %cst_22 = arith.constant 0.000000e+00 : f32
    %26 = vector.broadcast %cst_22 : f32 to vector<2x256xf32>
    %27 = arith.maximumf %25, %26 : vector<2x256xf32>
    %c0_23 = arith.constant 0 : index
    %c0_24 = arith.constant 0 : index
    %28 = vector.load %arg8[%c0_23, %c0_24] : memref<256x1xf32, #tpu.memory_space<vmem>>, vector<256x1xf32>
    %cst_25 = arith.constant dense<0.000000e+00> : vector<2x1xf32>
    %29 = tpu.matmul %27, %28, %cst_25 {dimension_numbers = #tpu.dot_dimension_numbers<[1], [0], [0], [1], [0, 0, 1, 1], [], []>} : vector<2x256xf32>, vector<256x1xf32>, vector<2x1xf32> -> vector<2x1xf32>
    %c0_26 = arith.constant 0 : index
    %c0_27 = arith.constant 0 : index
    %30 = vector.load %arg9[%c0_26, %c0_27] : memref<1x1xf32, #tpu.memory_space<vmem>>, vector<1x1xf32>
    %31 = vector.broadcast %30 : vector<1x1xf32> to vector<2x1xf32>
    %32 = arith.addf %29, %31 : vector<2x1xf32>
    %33 = math.tanh %32 : vector<2x1xf32>
    %c0_28 = arith.constant 0 : index
    %c0_29 = arith.constant 0 : index
    %34 = vector.load %arg11[%c0_28, %c0_29] : memref<2x1xf32, #tpu.memory_space<vmem>>, vector<2x1xf32>
    tpu.vector_store %arg11[%c0_28, %c0_29], %33 {strides = array<i32>} : memref<2x1xf32, #tpu.memory_space<vmem>>, vector<2x1xf32>,
    return
  }
}

module attributes {stable_mosaic.version = 11 : i64} {
  func.func @policy_linear_kernel(%arg0: i32, %arg1: i32, %arg2: memref<2x2048xbf16, #tpu.memory_space<vmem>>, %arg3: memref<2048x1024xbf16, #tpu.memory_space<vmem>>, %arg4: memref<1x1024xf32, #tpu.memory_space<vmem>>, %arg5: memref<2x1024xf32, #tpu.memory_space<vmem>>, %arg6: memref<2x1024xf32, #tpu.memory_space<vmem>>) attributes {dimension_semantics = [#tpu.dimension_semantics<parallel>, #tpu.dimension_semantics<arbitrary>], iteration_bounds = array<i64: 4, 4>, scalar_prefetch = 0 : i64, scratch_operands = 1 : i64, tpu.core_type = #tpu.core_type<tc>, window_params = [{transform_indices = @transform_0, window_bounds = array<i64: 2, 2048>}, {transform_indices = @transform_1, window_bounds = array<i64: 2048, 1024>}, {transform_indices = @transform_2, window_bounds = array<i64: 1, 1024>}, {transform_indices = @transform_3, window_bounds = array<i64: 2, 1024>}]} {
    %c0_i32 = arith.constant 0 : i32
    %0 = arith.cmpi eq, %arg1, %c0_i32 : i32
    %1 = arith.extui %0 : i1 to i32
    %c0_i32_0 = arith.constant 0 : i32
    %2 = arith.cmpi ne, %1, %c0_i32_0 : i32
    scf.if %2 {
      %cst_9 = arith.constant 0.000000e+00 : f32
      %12 = vector.broadcast %cst_9 : f32 to vector<2x1024xf32>
      %c0_10 = arith.constant 0 : index
      %c0_11 = arith.constant 0 : index
      %13 = vector.load %arg6[%c0_10, %c0_11] : memref<2x1024xf32, #tpu.memory_space<vmem>>, vector<2x1024xf32>
      tpu.vector_store %arg6[%c0_10, %c0_11], %12 {strides = array<i32>} : memref<2x1024xf32, #tpu.memory_space<vmem>>, vector<2x1024xf32>,
    } else {
    }
    %c0 = arith.constant 0 : index
    %c0_1 = arith.constant 0 : index
    %3 = vector.load %arg6[%c0, %c0_1] : memref<2x1024xf32, #tpu.memory_space<vmem>>, vector<2x1024xf32>
    %c0_2 = arith.constant 0 : index
    %c0_3 = arith.constant 0 : index
    %4 = vector.load %arg2[%c0_2, %c0_3] : memref<2x2048xbf16, #tpu.memory_space<vmem>>, vector<2x2048xbf16>
    %c0_4 = arith.constant 0 : index
    %c0_5 = arith.constant 0 : index
    %5 = vector.load %arg3[%c0_4, %c0_5] : memref<2048x1024xbf16, #tpu.memory_space<vmem>>, vector<2048x1024xbf16>
    %cst = arith.constant dense<0.000000e+00> : vector<2x1024xf32>
    %6 = tpu.matmul %4, %5, %cst {dimension_numbers = #tpu.dot_dimension_numbers<[1], [0], [0], [1], [0, 0, 1, 1], [], []>} : vector<2x2048xbf16>, vector<2048x1024xbf16>, vector<2x1024xf32> -> vector<2x1024xf32>
    %7 = arith.addf %3, %6 : vector<2x1024xf32>
    %c0_6 = arith.constant 0 : index
    %c0_7 = arith.constant 0 : index
    %8 = vector.load %arg6[%c0_6, %c0_7] : memref<2x1024xf32, #tpu.memory_space<vmem>>, vector<2x1024xf32>
    tpu.vector_store %arg6[%c0_6, %c0_7], %7 {strides = array<i32>} : memref<2x1024xf32, #tpu.memory_space<vmem>>, vector<2x1024xf32>,
    %c3_i32 = arith.constant 3 : i32
    %9 = arith.cmpi eq, %arg1, %c3_i32 : i32
    %10 = arith.extui %9 : i1 to i32
    %c0_i32_8 = arith.constant 0 : i32
    %11 = arith.cmpi ne, %10, %c0_i32_8 : i32
    scf.if %11 {
      %c0_9 = arith.constant 0 : index
      %c0_10 = arith.constant 0 : index
      %12 = vector.load %arg6[%c0_9, %c0_10] : memref<2x1024xf32, #tpu.memory_space<vmem>>, vector<2x1024xf32>
      %c0_11 = arith.constant 0 : index
      %c0_12 = arith.constant 0 : index
      %13 = vector.load %arg4[%c0_11, %c0_12] : memref<1x1024xf32, #tpu.memory_space<vmem>>, vector<1x1024xf32>
      %14 = vector.broadcast %13 : vector<1x1024xf32> to vector<2x1024xf32>
      %15 = arith.addf %12, %14 : vector<2x1024xf32>
      %c0_13 = arith.constant 0 : index
      %c0_14 = arith.constant 0 : index
      %16 = vector.load %arg5[%c0_13, %c0_14] : memref<2x1024xf32, #tpu.memory_space<vmem>>, vector<2x1024xf32>
      tpu.vector_store %arg5[%c0_13, %c0_14], %15 {strides = array<i32>} : memref<2x1024xf32, #tpu.memory_space<vmem>>, vector<2x1024xf32>,
    } else {
    }
    return
  }
  func.func @transform_0(%arg0: i32, %arg1: i32) -> (i32, i32) {
    %c0_i32 = arith.constant 0 : i32
    %c0_i32_0 = arith.constant 0 : i32
    return %c0_i32, %arg1 : i32, i32
  }
  func.func @transform_1(%arg0: i32, %arg1: i32) -> (i32, i32) {
    %c0_i32 = arith.constant 0 : i32
    return %arg1, %arg0 : i32, i32
  }
  func.func @transform_2(%arg0: i32, %arg1: i32) -> (i32, i32) {
    %c0_i32 = arith.constant 0 : i32
    %c0_i32_0 = arith.constant 0 : i32
    return %c0_i32, %arg0 : i32, i32
  }
  func.func @transform_3(%arg0: i32, %arg1: i32) -> (i32, i32) {
    %c0_i32 = arith.constant 0 : i32
    %c0_i32_0 = arith.constant 0 : i32
    return %c0_i32, %arg0 : i32, i32
  }
}

</mosaic_0001>

<bundles_post_ra>
// kernel: outblock_pallas.2
= control target key start
LH: loop header
LB: loop body
LE: loop exit
PB: predicated region body
PF: predicated region fallthrough
CT: control target
= control target key end

     0   :  { %s1816_s0 = inlined_call_operand.hbm [shape: f32[128,256], index: 0, kind: input, shape index: {}, may-alias: {0,1}]   ;;  %s1817_s1 = inlined_call_operand.hbm [shape: f32[2,64,256], index: 1, kind: input, shape index: {}, may-alias: {0,1}]   ;;  %s1818_s2 = inlined_call_operand.hbm [shape: f32[256,128], index: 2, kind: input, shape index: {}]   ;;  %s1819_s3 = inlined_call_operand.hbm [shape: f32[1,128], index: 3, kind: input, shape index: {}]   ;;  %s1820_s4 = inlined_call_operand.hbm [shape: f32[1,256], index: 4, kind: input, shape index: {}]   ;;  %s1821_s5 = inlined_call_operand.<no memory space> [shape: f32[1,1], index: 5, kind: input, shape index: {}]   ;;  %s1822_s6 = inlined_call_operand.hbm [shape: f32[64,256], index: 6, kind: input, shape index: {}]   ;;  %s1823_s7 = inlined_call_operand.hbm [shape: f32[1,256], index: 7, kind: input, shape index: {}]   ;;  %s1824_s8 = inlined_call_operand.vmem [shape: f32[256,1], index: 8, kind: input, shape index: {}]   ;;  %s1825_s10 = inlined_call_operand.vmem [shape: bf16[128,128], index: 10, kind: output, shape index: {0}]   ;;  %s1826_s11 = inlined_call_operand.vmem [shape: f32[2,1], index: 11, kind: output, shape index: {1}]   ;;  %s1827_s9 = inlined_call_operand.<no memory space> [shape: f32[1,1], index: 9, kind: input, shape index: {}]  }
   0x1   :  { %v17_v0 = vstv %s1821_s5  ;;  %v19_v1 = vstv %s1827_s9 }
   0x2   :  { %18 = vst [vmem:[#allocation2] sm:$0x1] %v17_v0  ;;  %20 = vst [vmem:[#allocation3] sm:$0x1] %v19_v1 }
   0x3   :  { %21 = vsyncpa [#allocation5], 0 }
   0x4   :  { %22 = vsyncpa [#allocation7], 0 }
   0x5   :  { %23 = vsyncpa [#allocation10], 0 }
   0x6   :  { %24 = vsyncpa [#allocation13], 0  ;;  %s1404_s21 = smov [#allocation6]   ;;  %s1405_s23 = smov [#allocation9]  }
   0x7   :  { %s42_s22 = sshll.u32 %s1404_s21, 4  ;;  %s67_s24 = sshll.u32 %s1405_s23, 4  ;;  %s43_s22 = int_to_ptr.vmem [resolvable:$true] %s42_s22  ;;  %s1483_s24 = int_to_ptr.vmem [resolvable:$true] %s67_s24 }
   0x8   :  { %s1242_s5 = scalar_lea.hbm %s1817_s1, 4096 }
   0x9   :  { %p1243_p0 = scmp.ne.s32.totalorder %s1817_s1, %s1242_s5  ;;  %p1246_p1 = scmp.lt.u32.totalorder %s1242_s5, %s1817_s1 }
   0xb   :  { %p1248_p2 = pnand %p1246_p1, %p1243_p0 }
   0xd   :  { %1251 = shalt.err (!%p1248_p2)
}
   0xe   :  { %s1252_s30 = scalar_lea.vmem %s43_s22, 4096  ;;  %p1257_p4 = scmp.lt.s32.totalorder %s43_s22, %s43_s22 }
   0xf   :  { %p1253_p3 = scmp.ne.s32.totalorder %s43_s22, %s1252_s30  ;;  %p1258_p5 = scmp.lt.s32.totalorder %s1252_s30, %s1252_s30 }
  0x11   :  { %p1259_p6 = por %p1258_p5, %p1257_p4 }
  0x13   :  { %p1260_p7 = pnand %p1259_p6, %p1253_p3 }
  0x15   :  { %1263 = shalt.err (!%p1260_p7)
}
  0x16   :  { %s1406_s12 = smov 256   ;;  %s1407_s13 = smov 16  }
  0x17   :  { %48 = dma.hbm_to_vmem [thread:$0]  %s1817_s1, 4096, %s43_s22, [#allocation7], %s1406_s12, %s1406_s12, %s1407_s13  }
  0x18   :  { %s1264_s18 = scalar_lea.hbm %s1819_s3, 16 }
  0x19   :  { %p1265_p8 = scmp.ne.s32.totalorder %s1819_s3, %s1264_s18  ;;  %p1268_p9 = scmp.lt.u32.totalorder %s1264_s18, %s1819_s3 }
  0x1b   :  { %p1270_p10 = pnand %p1268_p9, %p1265_p8 }
  0x1d   :  { %1273 = shalt.err (!%p1270_p10)
}
  0x1e   :  { %s1274_s25 = scalar_lea.vmem %s1483_s24, 16  ;;  %s1278_s1 = scalar_lea.vmem %s1483_s24, 32 }
  0x1f   :  { %p1275_p11 = scmp.ne.s32.totalorder %s1483_s24, %s1274_s25  ;;  %p1279_p12 = scmp.lt.s32.totalorder %s1483_s24, %s1483_s24 }
  0x20   :  { %p1280_p13 = scmp.lt.s32.totalorder %s1278_s1, %s1274_s25 }
  0x22   :  { %p1281_p0 = por %p1280_p13, %p1279_p12 }
  0x24   :  { %p1282_p1 = pnand %p1281_p0, %p1275_p11 }
  0x26   :  { %1285 = shalt.err (!%p1282_p1)
}
  0x27   :  { %70 = dma.hbm_to_vmem [thread:$0]  %s1819_s3, 16, %s1483_s24, [#allocation10]  }
  0x28   :  { %s1408_s5 = smov [#allocation12]   ;;  %s1409_s28 = smov [#allocation4]  }
  0x29   :  { %s88_s27 = sshll.u32 %s1408_s5, 4  ;;  %s30_s9 = sshll.u32 %s1409_s28, 4  ;;  %s89_s27 = int_to_ptr.vmem [resolvable:$true] %s88_s27  ;;  %s1518_s9 = int_to_ptr.vmem [resolvable:$true] %s30_s9 }
  0x2a   :  { %s1286_s14 = scalar_lea.hbm %s1822_s6, 2048 }
  0x2b   :  { %p1287_p2 = scmp.ne.s32.totalorder %s1822_s6, %s1286_s14  ;;  %p1290_p3 = scmp.lt.u32.totalorder %s1286_s14, %s1822_s6 }
  0x2d   :  { %p1292_p4 = pnand %p1290_p3, %p1287_p2 }
  0x2f   :  { %1295 = shalt.err (!%p1292_p4)
}
  0x30   :  { %s1296_s3 = scalar_lea.vmem %s89_s27, 2048  ;;  %p1301_p6 = scmp.lt.s32.totalorder %s89_s27, %s89_s27 }
  0x31   :  { %p1297_p5 = scmp.ne.s32.totalorder %s89_s27, %s1296_s3  ;;  %p1302_p7 = scmp.lt.s32.totalorder %s1296_s3, %s1296_s3 }
  0x33   :  { %p1303_p8 = por %p1302_p7, %p1301_p6 }
  0x35   :  { %p1304_p9 = pnand %p1303_p8, %p1297_p5 }
  0x37   :  { %1307 = shalt.err (!%p1304_p9)
}
  0x38   :  { %94 = dma.hbm_to_vmem [thread:$0]  %s1822_s6, 2048, %s89_s27, [#allocation13], %s1406_s12, %s1406_s12, %s1407_s13  }
  0x39   :  { %s1308_s23 = scalar_lea.hbm %s1816_s0, 4096 }
  0x3a   :  { %p1309_p10 = scmp.ne.s32.totalorder %s1816_s0, %s1308_s23  ;;  %p1312_p11 = scmp.lt.u32.totalorder %s1308_s23, %s1816_s0 }
  0x3c   :  { %p1314_p12 = pnand %p1312_p11, %p1309_p10 }
  0x3e   :  { %1317 = shalt.err (!%p1314_p12)
}
  0x3f   :  { %s1318_s5 = scalar_lea.vmem %s1518_s9, 4096  ;;  %p1323_p0 = scmp.lt.s32.totalorder %s1518_s9, %s1518_s9 }
  0x40   :  { %p1319_p13 = scmp.ne.s32.totalorder %s1518_s9, %s1318_s5  ;;  %p1324_p1 = scmp.lt.s32.totalorder %s1318_s5, %s1318_s5 }
  0x42   :  { %p1325_p2 = por %p1324_p1, %p1323_p0 }
  0x44   :  { %p1326_p3 = pnand %p1325_p2, %p1319_p13 }
  0x46   :  { %1329 = shalt.err (!%p1326_p3)
}
  0x47   :  { %36 = dma.hbm_to_vmem [thread:$0]  %s1816_s0, 4096, %s1518_s9, [#allocation5], %s1406_s12, %s1406_s12, %s1407_s13  }
  0x48   :  { %s1410_s28 = smov [#allocation8]   ;;  %s1330_s15 = scalar_lea.hbm %s1818_s2, 4096 }
  0x49   :  { %s54_s29 = sshll.u32 %s1410_s28, 4  ;;  %p1331_p4 = scmp.ne.s32.totalorder %s1818_s2, %s1330_s15  ;;  %s55_s29 = int_to_ptr.vmem [resolvable:$true] %s54_s29 }
  0x4a   :  { %p1334_p5 = scmp.lt.u32.totalorder %s1330_s15, %s1818_s2 }
  0x4c   :  { %p1336_p6 = pnand %p1334_p5, %p1331_p4 }
  0x4e   :  { %1339 = shalt.err (!%p1336_p6)
}
  0x4f   :  { %s1340_s24 = scalar_lea.vmem %s55_s29, 4096  ;;  %p1345_p8 = scmp.lt.s32.totalorder %s55_s29, %s55_s29 }
  0x50   :  { %p1341_p7 = scmp.ne.s32.totalorder %s55_s29, %s1340_s24  ;;  %p1346_p9 = scmp.lt.s32.totalorder %s1340_s24, %s1340_s24 }
  0x52   :  { %p1347_p10 = por %p1346_p9, %p1345_p8 }
  0x54   :  { %p1348_p11 = pnand %p1347_p10, %p1341_p7 }
  0x56   :  { %1351 = shalt.err (!%p1348_p11)
}
  0x57   :  { %s1411_s0 = smov 128   ;;  %s1412_s12 = smov 8  }
  0x58   :  { %60 = dma.hbm_to_vmem [thread:$0]  %s1818_s2, 4096, %s55_s29, [#allocation7], %s1411_s0, %s1411_s0, %s1412_s12  }
  0x59   :  { %s1413_s19 = smov [#allocation11]   ;;  %s1414_s21 = smov [#allocation14]  }
  0x5a   :  { %s77_s20 = sshll.u32 %s1413_s19, 4  ;;  %s101_s23 = sshll.u32 %s1414_s21, 4  ;;  %s78_s20 = int_to_ptr.vmem [resolvable:$true] %s77_s20  ;;  %s102_s23 = int_to_ptr.vmem [resolvable:$true] %s101_s23 }
  0x5b   :  { %s1352_s22 = scalar_lea.hbm %s1820_s4, 32 }
  0x5c   :  { %p1353_p12 = scmp.ne.s32.totalorder %s1820_s4, %s1352_s22  ;;  %p1356_p13 = scmp.lt.u32.totalorder %s1352_s22, %s1820_s4 }
  0x5e   :  { %p1358_p0 = pnand %p1356_p13, %p1353_p12 }
  0x60   :  { %1361 = shalt.err (!%p1358_p0)
}
  0x61   :  { %s1362_s2 = scalar_lea.vmem %s78_s20, 32  ;;  %p1367_p2 = scmp.lt.s32.totalorder %s78_s20, %s78_s20 }
  0x62   :  { %p1363_p1 = scmp.ne.s32.totalorder %s78_s20, %s1362_s2  ;;  %p1368_p3 = scmp.lt.s32.totalorder %s1362_s2, %s1362_s2 }
  0x64   :  { %p1369_p4 = por %p1368_p3, %p1367_p2 }
  0x66   :  { %p1370_p5 = pnand %p1369_p4, %p1363_p1 }
  0x68   :  { %1373 = shalt.err (!%p1370_p5)
}
  0x69   :  { %80 = dma.hbm_to_vmem [thread:$0]  %s1820_s4, 32, %s78_s20, [#allocation10]  }
  0x6a   :  { %s1374_s15 = scalar_lea.hbm %s1823_s7, 32 }
  0x6b   :  { %p1375_p6 = scmp.ne.s32.totalorder %s1823_s7, %s1374_s15  ;;  %p1378_p7 = scmp.lt.u32.totalorder %s1374_s15, %s1823_s7 }
  0x6d   :  { %p1380_p8 = pnand %p1378_p7, %p1375_p6 }
  0x6f   :  { %1383 = shalt.err (!%p1380_p8)
}
  0x70   :  { %s1384_s24 = scalar_lea.vmem %s102_s23, 32  ;;  %p1389_p10 = scmp.lt.s32.totalorder %s102_s23, %s102_s23 }
  0x71   :  { %p1385_p9 = scmp.ne.s32.totalorder %s102_s23, %s1384_s24  ;;  %p1390_p11 = scmp.lt.s32.totalorder %s1384_s24, %s1384_s24 }
  0x73   :  { %p1391_p12 = por %p1390_p11, %p1389_p10 }
  0x75   :  { %p1392_p13 = pnand %p1391_p12, %p1385_p9 }
  0x77   :  { %1395 = shalt.err (!%p1392_p13)
}
  0x78   :  { %104 = dma.hbm_to_vmem [thread:$0]  %s1823_s7, 32, %s102_s23, [#allocation13]  }
  0x79   :  { %1396 = dma.done.wait [#allocation5], 4096  }
  0x7a   :  { %1397 = vsyncadd [#allocation5], 4294963200 }
  0x7b   :  { %1398 = dma.done.wait [#allocation7], 8192  }
  0x7c   :  { %1399 = vsyncadd [#allocation7], 4294959104 }
  0x7d   :  { %1400 = dma.done.wait [#allocation10], 48  }
  0x7e   :  { %1401 = vsyncadd [#allocation10], 4294967248 }
  0x7f   :  { %1402 = dma.done.wait [#allocation13], 2080  }
  0x80   :  { %1403 = vsyncadd [#allocation13], 4294965216  ;;  %v476_v2 = vlaneseq  ;;  %v1415_v3 = vmov 0   ;;  %v442_v7 = vld [vmem:[#allocation11] sm:$0x3]  ;;  %v444_v9 = vld [vmem:[#allocation6 + $0x8] sm:$0xff] }
  0x81   :  { %1239 = vset.pattern.permute.xlu0 %v1415_v3  ;;  %v443_v8 = vld [vmem:[#allocation6] sm:$0xff]  ;;  %v445_v12 = vld [vmem:[#allocation6 + $0x10] sm:$0xff]  ;;  %v446_v13 = vld [vmem:[#allocation6 + $0x18] sm:$0xff]  ;;  %vm663_vm0 = vcmask 130112   ;;  %vm670_vm1 = vcmask 195712   ;;  %vm677_vm2 = vcmask 261312  }
  0x82   :  { %v1592_v4 = vshrl.u32 %v476_v2, 7  ;;  %v459_v14 = vld [vmem:[#allocation6 + $0x80] sm:$0xff]  ;;  %v460_v15 = vld [vmem:[#allocation6 + $0x88] sm:$0xff]  ;;  %v461_v20 = vld [vmem:[#allocation6 + $0x90] sm:$0xff]  ;;  %vm684_vm3 = vcmask 326912   ;;  %vm691_vm4 = vcmask 392512  }
  0x83   :  { %v462_v21 = vld [vmem:[#allocation6 + $0x98] sm:$0xff]  ;;  %v447_v24 = vld [vmem:[#allocation6 + $0x20] sm:$0xff]  ;;  %v448_v25 = vld [vmem:[#allocation6 + $0x28] sm:$0xff]  ;;  %vm698_vm5 = vcmask 458112   ;;  %vm705_vm6 = vcmask 523712   ;;  %vm746_vm7 = vcmask 1041409  }
  0x84   :  { %v478_v5 = vsub.s32 0, %v1592_v4  ;;  %v482_v6 = vsub.s32 1, %v1592_v4  ;;  %v463_v29 = vld [vmem:[#allocation6 + $0xa0] sm:$0xff]  ;;  %v464_v30 = vld [vmem:[#allocation6 + $0xa8] sm:$0xff]  ;;  %v449_v36 = vld [vmem:[#allocation6 + $0x30] sm:$0xff]  ;;  %vm748_vm8 = vcmask 523264  }
  0x85   :  { %v450_v37 = vld [vmem:[#allocation6 + $0x38] sm:$0xff]  ;;  %v465_v40 = vld [vmem:[#allocation6 + $0xb0] sm:$0xff]  ;;  %v451_v46 = vld [vmem:[#allocation6 + $0x40] sm:$0xff]  ;;  %vm934_vm9 = vcmask 1024  }
  0x86   :  { %v1598_v10 = vrot.slane %v442_v7, %v478_v5  ;;  %v1602_v11 = vrot.slane %v442_v7, %v482_v6  ;;  %v466_v41 = vld [vmem:[#allocation6 + $0xb8] sm:$0xff]  ;;  %v452_v47 = vld [vmem:[#allocation6 + $0x48] sm:$0xff]  ;;  %v467_v50 = vld [vmem:[#allocation6 + $0xc0] sm:$0xff] }
  0x87   :  { %v468_v51 = vld [vmem:[#allocation6 + $0xc8] sm:$0xff]  ;;  %v453_v56 = vld [vmem:[#allocation6 + $0x50] sm:$0xff]  ;;  %v454_v57 = vld [vmem:[#allocation6 + $0x58] sm:$0xff] }
  0x88   :  { %v486_v16 = vmul.f32 %v1598_v10, %v443_v8  ;;  %v487_v17 = vmul.f32 %v1602_v11, %v444_v9  ;;  %v488_v18 = vmul.f32 %v1598_v10, %v445_v12  ;;  %v489_v19 = vmul.f32 %v1602_v11, %v446_v13  ;;  %v469_v60 = vld [vmem:[#allocation6 + $0xd0] sm:$0xff]  ;;  %v470_v61 = vld [vmem:[#allocation6 + $0xd8] sm:$0xff]  ;;  %v455_v3 = vld [vmem:[#allocation6 + $0x60] sm:$0xff] }
  0x89   :  { %v502_v22 = vmul.f32 %v1598_v10, %v459_v14  ;;  %v503_v23 = vmul.f32 %v1602_v11, %v460_v15  ;;  %v504_v27 = vmul.f32 %v1598_v10, %v461_v20  ;;  %v505_v28 = vmul.f32 %v1602_v11, %v462_v21  ;;  %v456_v7 = vld [vmem:[#allocation6 + $0x68] sm:$0xff]  ;;  %v471_v12 = vld [vmem:[#allocation6 + $0xe0] sm:$0xff] }
  0x8a   :  { %v518_v26 = vadd.f32 %v487_v17, %v486_v16  ;;  %v521_v32 = vadd.f32 %v489_v19, %v488_v18  ;;  %v490_v33 = vmul.f32 %v1598_v10, %v447_v24  ;;  %v491_v34 = vmul.f32 %v1602_v11, %v448_v25  ;;  %v472_v13 = vld [vmem:[#allocation6 + $0xe8] sm:$0xff]  ;;  %v457_v18 = vld [vmem:[#allocation6 + $0x70] sm:$0xff]  ;;  %v458_v19 = vld [vmem:[#allocation6 + $0x78] sm:$0xff] }
  0x8b   :  { %v542_v31 = vadd.f32 %v503_v23, %v502_v22  ;;  %v545_v35 = vadd.f32 %v505_v28, %v504_v27  ;;  %v506_v38 = vmul.f32 %v1598_v10, %v463_v29  ;;  %v507_v39 = vmul.f32 %v1602_v11, %v464_v30  ;;  %v473_v22 = vld [vmem:[#allocation6 + $0xf0] sm:$0xff]  ;;  %v474_v23 = vld [vmem:[#allocation6 + $0xf8] sm:$0xff] }
  0x8c   :  { %519 = vadd.xlane.f32.xlu0 %v518_v26  ;;  %v524_v42 = vadd.f32 %v491_v34, %v490_v33  ;;  %v492_v43 = vmul.f32 %v1598_v10, %v449_v36  ;;  %v493_v44 = vmul.f32 %v1602_v11, %v450_v37  ;;  %v508_v48 = vmul.f32 %v1598_v10, %v465_v40  ;;  %v611_v33 = vld [vmem:[#allocation12 + $0x18] sm:$0xff]  ;;  %v608_v34 = vld [vmem:[#allocation12] sm:$0xff]  ;;  %v610_v36 = vld [vmem:[#allocation12 + $0x10] sm:$0xff] }
  0x8d   :  { %543 = vadd.xlane.f32.xlu1 %v542_v31  ;;  %v548_v45 = vadd.f32 %v507_v39, %v506_v38  ;;  %v509_v49 = vmul.f32 %v1602_v11, %v466_v41  ;;  %v494_v53 = vmul.f32 %v1598_v10, %v451_v46  ;;  %v495_v54 = vmul.f32 %v1602_v11, %v452_v47  ;;  %v965_v38 = vld [vmem:[#allocation2] ss:$0 sm:$0xff]  ;;  %v613_v39 = vld [vmem:[#allocation12 + $0x28] sm:$0xff]  ;;  %v614_v41 = vld [vmem:[#allocation12 + $0x30] sm:$0xff] }
  0x8e   :  { %v527_v52 = vadd.f32 %v493_v44, %v492_v43  ;;  %v510_v58 = vmul.f32 %v1598_v10, %v467_v50  ;;  %v511_v59 = vmul.f32 %v1602_v11, %v468_v51  ;;  %v496_v63 = vmul.f32 %v1598_v10, %v453_v56  ;;  %v615_v40 = vld [vmem:[#allocation12 + $0x38] sm:$0xff]  ;;  %v616_v47 = vld [vmem:[#allocation12 + $0x40] sm:$0xff] }
  0x8f   :  { %v551_v55 = vadd.f32 %v509_v49, %v508_v48  ;;  %v530_v62 = vadd.f32 %v495_v54, %v494_v53  ;;  %v497_v0 = vmul.f32 %v1602_v11, %v454_v57  ;;  %v512_v8 = vmul.f32 %v1598_v10, %v469_v60  ;;  %v619_v43 = vld [vmem:[#allocation12 + $0x58] sm:$0xff]  ;;  %v618_v48 = vld [vmem:[#allocation12 + $0x50] sm:$0xff]  ;;  %v621_v49 = vld [vmem:[#allocation12 + $0x68] sm:$0xff] }
  0x90   :  { %522 = vadd.xlane.f32.xlu0 %v521_v32  ;;  %v554_v1 = vadd.f32 %v511_v59, %v510_v58  ;;  %v513_v9 = vmul.f32 %v1602_v11, %v470_v61  ;;  %v498_v15 = vmul.f32 %v1598_v10, %v455_v3  ;;  %v499_v16 = vmul.f32 %v1602_v11, %v456_v7  ;;  %v609_v32 = vld [vmem:[#allocation12 + $0x8] sm:$0xff]  ;;  %v623_v50 = vld [vmem:[#allocation12 + $0x78] sm:$0xff]  ;;  %v620_v53 = vld [vmem:[#allocation12 + $0x60] sm:$0xff] }
  0x91   :  { %546 = vadd.xlane.f32.xlu1 %v545_v35  ;;  %v533_v14 = vadd.f32 %v497_v0, %v496_v63  ;;  %v514_v20 = vmul.f32 %v1598_v10, %v471_v12  ;;  %v515_v21 = vmul.f32 %v1602_v11, %v472_v13  ;;  %v500_v25 = vmul.f32 %v1598_v10, %v457_v18  ;;  %v622_v54 = vld [vmem:[#allocation12 + $0x70] sm:$0xff]  ;;  %v178_v56 = vld [vmem:[#allocation8 + $0x80] sm:$0xff]  ;;  %v179_v57 = vld [vmem:[#allocation8 + $0x88] sm:$0xff] }
  0x92   :  { %v557_v17 = vadd.f32 %v513_v9, %v512_v8  ;;  %v536_v24 = vadd.f32 %v499_v16, %v498_v15  ;;  %v501_v26 = vmul.f32 %v1602_v11, %v458_v19  ;;  %v516_v28 = vmul.f32 %v1598_v10, %v473_v22  ;;  %v612_v10 = vld [vmem:[#allocation12 + $0x20] sm:$0xff]  ;;  %v180_v61 = vld [vmem:[#allocation8 + $0x90] sm:$0xff]  ;;  %v165_v3 = vld [vmem:[#allocation8 + $0x18] sm:$0xff] }
  0x93   :  { %v560_v27 = vadd.f32 %v515_v21, %v514_v20  ;;  %v517_v29 = vmul.f32 %v1602_v11, %v474_v23  ;;  %v1178_v35 = vpack.c.bf16 %v611_v33, %v609_v32  ;;  %v1180_v37 = vpack.c.bf16 %v610_v36, %v608_v34  ;;  %v162_v58 = vld [vmem:[#allocation8] sm:$0xff]  ;;  %v163_v60 = vld [vmem:[#allocation8 + $0x8] sm:$0xff]  ;;  %v184_v15 = vld [vmem:[#allocation8 + $0xb0] sm:$0xff] }
  0x94   :  { %525 = vadd.xlane.f32.xlu0 %v524_v42  ;;  %v539_v30 = vadd.f32 %v501_v26, %v500_v25  ;;  %v1182_v11 = vpack.c.bf16 %v615_v40, %v613_v39  ;;  %v617_v42 = vld [vmem:[#allocation12 + $0x48] sm:$0xff]  ;;  %v1416_v44 = vmov 0.0   ;;  %v1188_v51 = vpack.c.bf16 %v618_v48, %v616_v47  ;;  %v182_v7 = vld [vmem:[#allocation8 + $0xa0] sm:$0xff]  ;;  %v185_v16 = vld [vmem:[#allocation8 + $0xb8] sm:$0xff] }
  0x95   :  { %549 = vadd.xlane.f32.xlu1 %v548_v45  ;;  %v563_v31 = vadd.f32 %v517_v29, %v516_v28  ;;  %1179 = vmatprep.subr.bf16.mxu1 %v1178_v35  ;;  %v1184_v45 = vpack.c.bf16 %v614_v41, %v612_v10  ;;  %v1186_v46 = vpack.c.bf16 %v619_v43, %v617_v42  ;;  %v183_v8 = vld [vmem:[#allocation8 + $0xa8] sm:$0xff]  ;;  %v166_v13 = vld [vmem:[#allocation8 + $0x20] sm:$0xff]  ;;  %v168_v19 = vld [vmem:[#allocation8 + $0x30] sm:$0xff] }
  0x96   :  { %1181 = vmatpush1.bf16.msra.mxu1 %v1180_v37  ;;  %815 = vmatprep.mubr.f32.mxu1 %v1416_v44  ;;  %v1146_v59 = vpack.c.bf16 %v179_v57, %v178_v56  ;;  %v1148_v63 = vpack.c.bf16 %v163_v60, %v162_v58  ;;  %v1154_v12 = vpack.c.bf16 %v183_v8, %v182_v7  ;;  %v169_v20 = vld [vmem:[#allocation8 + $0x38] sm:$0xff]  ;;  %v186_v21 = vld [vmem:[#allocation8 + $0xc0] sm:$0xff]  ;;  %v187_v22 = vld [vmem:[#allocation8 + $0xc8] sm:$0xff] }
  0x97   :  { %1183 = vmatprep.subr.bf16.mxu1 %v1182_v11  ;;  %v1158_v18 = vpack.c.bf16 %v185_v16, %v184_v15  ;;  %v131_v23 = vld [vmem:[#allocation4 + $0x8] sm:$0xff]  ;;  %v1162_v25 = vpack.c.bf16 %v187_v22, %v186_v21  ;;  %v170_v26 = vld [vmem:[#allocation8 + $0x40] sm:$0xff]  ;;  %v188_v28 = vld [vmem:[#allocation8 + $0xd0] sm:$0xff] }
  0x98   :  { %528 = vadd.xlane.f32.xlu0 %v527_v52  ;;  %v1190_v52 = vpack.c.bf16 %v623_v50, %v621_v49  ;;  %1147 = vmatprep.subr.bf16.mxu0 %v1146_v59  ;;  %v189_v29 = vld [vmem:[#allocation8 + $0xd8] sm:$0xff]  ;;  %v172_v35 = vld [vmem:[#allocation8 + $0x50] sm:$0xff]  ;;  %v190_v37 = vld [vmem:[#allocation8 + $0xe0] sm:$0xff] }
  0x99   :  { %552 = vadd.xlane.f32.xlu1 %v551_v55  ;;  %v1192_v55 = vpack.c.bf16 %v622_v54, %v620_v53  ;;  %1149 = vmatpush3.bf16.msra.mxu0 %v1148_v63  ;;  %v1166_v34 = vpack.c.bf16 %v189_v29, %v188_v28  ;;  %v173_v36 = vld [vmem:[#allocation8 + $0x58] sm:$0xff]  ;;  %v174_v10 = vld [vmem:[#allocation8 + $0x60] sm:$0xff]  ;;  %v175_v11 = vld [vmem:[#allocation8 + $0x68] sm:$0xff]  ;;  %v653_v28 = vand.u32 127, %v476_v2 }
  0x9a   :  { %1185 = vmatpush1.bf16.msra.mxu1 %v1184_v45  ;;  %265 = vmatprep.mubr.f32.mxu0 %v131_v23  ;;  %v1168_v39 = vpack.c.bf16 %v173_v36, %v172_v35  ;;  %v192_v41 = vld [vmem:[#allocation8 + $0xf0] sm:$0xff]  ;;  %v193_v42 = vld [vmem:[#allocation8 + $0xf8] sm:$0xff]  ;;  %v1172_v43 = vpack.c.bf16 %v175_v11, %v174_v10  ;;  %v130_v48 = vld [vmem:[#allocation4] sm:$0xff] }
  0x9b   :  { %1187 = vmatprep.subr.bf16.mxu1 %v1186_v46  ;;  %v1174_v44 = vpack.c.bf16 %v193_v42, %v192_v41  ;;  %v176_v45 = vld [vmem:[#allocation8 + $0x70] sm:$0xff]  ;;  %v177_v46 = vld [vmem:[#allocation8 + $0x78] sm:$0xff]  ;;  %v138_v56 = vld [vmem:[#allocation4 + $0x40] sm:$0xff]  ;;  %v686_v35 = vadd.s32 4294967256, %v653_v28  ;;  %v693_v36 = vadd.s32 4294967248, %v653_v28 }
  0x9c   :  { %531 = vadd.xlane.f32.xlu0 %v530_v62  ;;  %v181_v62 = vld [vmem:[#allocation8 + $0x98] sm:$0xff]  ;;  %v1176_v47 = vpack.c.bf16 %v177_v46, %v176_v45  ;;  %v132_v50 = vld [vmem:[#allocation4 + $0x10] sm:$0xff]  ;;  %v143_v59 = vld [vmem:[#allocation4 + $0x68] sm:$0xff] }
  0x9d   :  { %555 = vadd.xlane.f32.xlu1 %v554_v1  ;;  %v1150_v0 = vpack.c.bf16 %v181_v62, %v180_v61  ;;  %v164_v1 = vld [vmem:[#allocation8 + $0x10] sm:$0xff]  ;;  %v133_v49 = vld [vmem:[#allocation4 + $0x18] sm:$0xff]  ;;  %v142_v60 = vld [vmem:[#allocation4 + $0x60] sm:$0xff]  ;;  %v1649_v42 = vsub.s32 %v686_v35, %v1592_v4  ;;  %v1652_v46 = vsub.s32 %v693_v36, %v1592_v4 }
  0x9e   :  { %1189 = vmatpush1.bf16.msra.mxu1 %v1188_v51  ;;  %v1152_v9 = vpack.c.bf16 %v165_v3, %v164_v1  ;;  %v135_v51 = vld [vmem:[#allocation4 + $0x28] sm:$0xff]  ;;  %v137_v53 = vld [vmem:[#allocation4 + $0x38] sm:$0xff]  ;;  %v136_v54 = vld [vmem:[#allocation4 + $0x30] sm:$0xff] }
  0x9f   :  { %1191 = vmatprep.subr.bf16.mxu1 %v1190_v52  ;;  %1151 = vmatprep.subr.bf16.mxu0 %v1150_v0  ;;  %v134_v52 = vld [vmem:[#allocation4 + $0x20] sm:$0xff]  ;;  %v141_v57 = vld [vmem:[#allocation4 + $0x58] sm:$0xff]  ;;  %v140_v58 = vld [vmem:[#allocation4 + $0x50] sm:$0xff] }
  0xa0   :  { %534 = vadd.xlane.f32.xlu0 %v533_v14  ;;  %v167_v14 = vld [vmem:[#allocation8 + $0x28] sm:$0xff]  ;;  %1153 = vmatpush3.bf16.msra.mxu0 %v1152_v9  ;;  %v145_v61 = vld [vmem:[#allocation4 + $0x78] sm:$0xff]  ;;  %v144_v62 = vld [vmem:[#allocation4 + $0x70] sm:$0xff] }
  0xa1   :  { %558 = vadd.xlane.f32.xlu1 %v557_v17  ;;  %v1156_v17 = vpack.c.bf16 %v167_v14, %v166_v13  ;;  %1155 = vmatprep.subr.bf16.mxu0 %v1154_v12  ;;  %v147_v63 = vld [vmem:[#allocation4 + $0x88] sm:$0xff]  ;;  %v146_v0 = vld [vmem:[#allocation4 + $0x80] sm:$0xff]  ;;  %v149_v1 = vld [vmem:[#allocation4 + $0x98] sm:$0xff] }
  0xa2   :  { %1193 = vmatpush1.bf16.msra.mxu1 %v1192_v55  ;;  %v139_v55 = vld [vmem:[#allocation4 + $0x48] sm:$0xff]  ;;  %v148_v3 = vld [vmem:[#allocation4 + $0x90] sm:$0xff]  ;;  %v150_v12 = vld [vmem:[#allocation4 + $0xa0] sm:$0xff] }
  0xa3   :  { %v151_v7 = vld [vmem:[#allocation4 + $0xa8] sm:$0xff]  ;;  %v153_v13 = vld [vmem:[#allocation4 + $0xb8] sm:$0xff]  ;;  %v152_v16 = vld [vmem:[#allocation4 + $0xb0] sm:$0xff] }
  0xa4   :  { %537 = vadd.xlane.f32.xlu0 %v536_v24  ;;  %1157 = vmatpush3.bf16.msra.mxu0 %v1156_v17  ;;  %v1160_v24 = vpack.c.bf16 %v169_v20, %v168_v19  ;;  %v155_v17 = vld [vmem:[#allocation4 + $0xc8] sm:$0xff]  ;;  %v154_v19 = vld [vmem:[#allocation4 + $0xc0] sm:$0xff]  ;;  %v157_v20 = vld [vmem:[#allocation4 + $0xd8] sm:$0xff] }
  0xa5   :  { %561 = vadd.xlane.f32.xlu1 %v560_v27  ;;  %1159 = vmatprep.subr.bf16.mxu0 %v1158_v18  ;;  %v171_v27 = vld [vmem:[#allocation8 + $0x48] sm:$0xff] }
  0xa6   :  { %v1164_v32 = vpack.c.bf16 %v171_v27, %v170_v26 }
  0xa8   :  { %540 = vadd.xlane.f32.xlu0 %v539_v30  ;;  %v840_v30 = vld [vmem:[%s1824_s8 + $0x80] sm:$0xff]  ;;  %1161 = vmatpush3.bf16.msra.mxu0 %v1160_v24 }
  0xa9   :  { %564 = vadd.xlane.f32.xlu1 %v563_v31  ;;  %v841_v31 = vld [vmem:[%s1824_s8 + $0x88] sm:$0xff]  ;;  %1163 = vmatprep.subr.bf16.mxu0 %v1162_v25 }
  0xaa   :  { %v1194_v33 = vpack.c.bf16 %v841_v31, %v840_v30  ;;  %v658_v30 = vadd.s32 4294967288, %v653_v28  ;;  %v665_v31 = vadd.s32 4294967280, %v653_v28 }
  0xac   :  { %1195 = vmatprep.subr.bf16.mxu1 %v1194_v33  ;;  %1165 = vmatpush3.bf16.msra.mxu0 %v1164_v32  ;;  %v672_v33 = vadd.s32 4294967272, %v653_v28  ;;  %v668_v10 = vsub.s32 %v665_v31, %v1592_v4 }
  0xad   :  { %1167 = vmatprep.subr.bf16.mxu0 %v1166_v34  ;;  %v679_v34 = vadd.s32 4294967264, %v653_v28 }
  0xae   :  { %v675_v2 = vsub.s32 %v672_v33, %v1592_v4 }
  0xaf   :  { %v682_v41 = vsub.s32 %v679_v34, %v1592_v4 }
  0xb0   :  { %1169 = vmatpush3.bf16.msra.mxu0 %v1168_v39  ;;  %v656_v39 = vsub.s32 %v653_v28, %v1592_v4 }
  0xbe   :  { %573 = vperm.xlu0 %1239, %v965_v38   ;;  %v191_v38 = vld [vmem:[#allocation8 + $0xe8] sm:$0xff] }
  0xbf   :  { %v1170_v40 = vpack.c.bf16 %v191_v38, %v190_v37  ;;  %v700_v37 = vadd.s32 4294967240, %v653_v28 }
  0xc1   :  { %1171 = vmatprep.subr.bf16.mxu0 %v1170_v40  ;;  %v661_v40 = vsub.s32 %v658_v30, %v1592_v4 }
  0xc2   :  { %1173 = vmatpush3.bf16.msra.mxu0 %v1172_v43 }
  0xc3   :  { %1175 = vmatprep.subr.bf16.mxu0 %v1174_v44 }
  0xc6   :  { %1177 = vmatpush3.bf16.msra.mxu0 %v1176_v47 }
  0xc9   :  { %266 = vmatmul.mubr.f32.vlgmr.msra.gmra.mrb[0].mxu0 %v130_v48  ;;  %v1655_v48 = vsub.s32 %v700_v37, %v1592_v4 }
  0xca   :  { %270 = vmatprep.mubr.f32.mxu0 %v133_v49 }
  0xcd   :  { %271 = vmatmul.mubr.f32.gmra.mrb[2].mxu0 %v132_v50 }
  0xce   :  { %275 = vmatprep.mubr.f32.mxu0 %v135_v51 }
  0xd1   :  { %276 = vmatmul.mubr.f32.gmra.mrb[4].mxu0 %v134_v52 }
  0xd2   :  { %280 = vmatprep.mubr.f32.mxu0 %v137_v53 }
  0xd5   :  { %281 = vmatmul.mubr.f32.gmra.mrb[6].mxu0 %v136_v54 }
  0xd6   :  { %285 = vmatprep.mubr.f32.mxu0 %v139_v55 }
  0xd9   :  { %286 = vmatmul.mubr.f32.gmra.mrb[8].mxu0 %v138_v56 }
  0xda   :  { %290 = vmatprep.mubr.f32.mxu0 %v141_v57 }
  0xdd   :  { %291 = vmatmul.mubr.f32.gmra.mrb[10].mxu0 %v140_v58 }
  0xde   :  { %295 = vmatprep.mubr.f32.mxu0 %v143_v59 }
  0xe1   :  { %296 = vmatmul.mubr.f32.gmra.mrb[12].mxu0 %v142_v60 }
  0xe2   :  { %300 = vmatprep.mubr.f32.mxu0 %v145_v61 }
  0xe5   :  { %301 = vmatmul.mubr.f32.gmra.mrb[14].mxu0 %v144_v62 }
  0xe6   :  { %305 = vmatprep.mubr.f32.mxu0 %v147_v63 }
  0xe9   :  { %306 = vmatmul.mubr.f32.gmra.mrb[16].mxu0 %v146_v0 }
  0xea   :  { %310 = vmatprep.mubr.f32.mxu0 %v149_v1 }
  0xed   :  { %311 = vmatmul.mubr.f32.gmra.mrb[18].mxu0 %v148_v3 }
  0xee   :  { %315 = vmatprep.mubr.f32.mxu0 %v151_v7 }
  0xf1   :  { %316 = vmatmul.mubr.f32.gmra.mrb[20].mxu0 %v150_v12 }
  0xf2   :  { %320 = vmatprep.mubr.f32.mxu0 %v153_v13 }
  0xf5   :  { %321 = vmatmul.mubr.f32.gmra.mrb[22].mxu0 %v152_v16 }
  0xf6   :  { %325 = vmatprep.mubr.f32.mxu0 %v155_v17 }
  0xf9   :  { %326 = vmatmul.mubr.f32.gmra.mrb[24].mxu0 %v154_v19 }
  0xfa   :  { %330 = vmatprep.mubr.f32.mxu0 %v157_v20 }
 0x119   :  { %v520_v8 = vpop.xlane.xlu0 %519 }
 0x11a   :  { %v544_v9 = vpop.xlane.xlu1 %543 }
 0x11d   :  { %v523_v14 = vpop.xlane.xlu0 %522 }
 0x11e   :  { %v547_v15 = vpop.xlane.xlu1 %546 }
 0x121   :  { %v526_v18 = vpop.xlane.xlu0 %525 }
 0x122   :  { %v550_v21 = vpop.xlane.xlu1 %549 }
 0x125   :  { %v529_v22 = vpop.xlane.xlu0 %528 }
 0x126   :  { %v553_v24 = vpop.xlane.xlu1 %552 }
 0x129   :  { %v532_v23 = vpop.xlane.xlu0 %531 }
 0x12a   :  { %v556_v26 = vpop.xlane.xlu1 %555 }
 0x12d   :  { %v535_v25 = vpop.xlane.xlu0 %534 }
 0x12e   :  { %v559_v29 = vpop.xlane.xlu1 %558 }
 0x131   :  { %v538_v27 = vpop.xlane.xlu0 %537 }
 0x132   :  { %v562_v38 = vpop.xlane.xlu1 %561 }
 0x135   :  { %v541_v32 = vpop.xlane.xlu0 %540 }
 0x136   :  { %v565_v55 = vpop.xlane.xlu1 %564 }
 0x13d   :  { %v574_v11 = vpop.permute.xlu0 %573 }
 0x13e   :  { %v576_v43 = vadd.f32 %v574_v11, %v520_v8  ;;  %v577_v44 = vadd.f32 %v574_v11, %v523_v14  ;;  %v578_v45 = vadd.f32 %v574_v11, %v526_v18  ;;  %v579_v47 = vadd.f32 %v574_v11, %v529_v22 }
 0x13f   :  { %v584_v49 = vadd.f32 %v574_v11, %v544_v9  ;;  %v585_v50 = vadd.f32 %v574_v11, %v547_v15  ;;  %v586_v51 = vadd.f32 %v574_v11, %v550_v21  ;;  %v580_v52 = vadd.f32 %v574_v11, %v532_v23 }
 0x140   :  { %v581_v53 = vadd.f32 %v574_v11, %v535_v25  ;;  %v582_v54 = vadd.f32 %v574_v11, %v538_v27  ;;  %v587_v56 = vadd.f32 %v574_v11, %v553_v24  ;;  %v592_v57 = vmax.f32 %v576_v43, 0.0 }
 0x141   :  { %v593_v58 = vmax.f32 %v577_v44, 0.0  ;;  %v594_v59 = vmax.f32 %v578_v45, 0.0  ;;  %v583_v60 = vadd.f32 %v574_v11, %v541_v32  ;;  %v588_v61 = vadd.f32 %v574_v11, %v556_v26  ;;  %v842_v45 = vld [vmem:[%s1824_s8 + $0x90] sm:$0xff] }
 0x142   :  { %v589_v62 = vadd.f32 %v574_v11, %v559_v29  ;;  %v595_v63 = vmax.f32 %v579_v47, 0.0  ;;  %v590_v0 = vadd.f32 %v574_v11, %v562_v38  ;;  %v600_v1 = vmax.f32 %v584_v49, 0.0 }
 0x143   :  { %v601_v3 = vmax.f32 %v585_v50, 0.0  ;;  %v602_v7 = vmax.f32 %v586_v51, 0.0  ;;  %v591_v8 = vadd.f32 %v574_v11, %v565_v55  ;;  %v596_v9 = vmax.f32 %v580_v52, 0.0  ;;  %v824_v11 = vld [vmem:[%s1824_s8] sm:$0xff]  ;;  %v827_v55 = vld [vmem:[%s1824_s8 + $0x18] sm:$0xff] }
 0x144   :  { %v597_v12 = vmax.f32 %v581_v53, 0.0  ;;  %v598_v13 = vmax.f32 %v582_v54, 0.0  ;;  %v603_v14 = vmax.f32 %v587_v56, 0.0  ;;  %v657_v15 = vrot.slane %v592_v57, %v656_v39  ;;  %v826_v54 = vld [vmem:[%s1824_s8 + $0x10] sm:$0xff]  ;;  %v845_v57 = vld [vmem:[%s1824_s8 + $0xa8] sm:$0xff] }
 0x145   :  { %v662_v16 = vrot.slane %v593_v58, %v661_v40  ;;  %v669_v17 = vrot.slane %v594_v59, %v668_v10  ;;  %v599_v18 = vmax.f32 %v583_v60, 0.0  ;;  %v604_v19 = vmax.f32 %v588_v61, 0.0  ;;  %v828_v60 = vld [vmem:[%s1824_s8 + $0x20] sm:$0xff]  ;;  %v829_v61 = vld [vmem:[%s1824_s8 + $0x28] sm:$0xff] }
 0x146   :  { %v605_v20 = vmax.f32 %v589_v62, 0.0  ;;  %v676_v21 = vrot.slane %v595_v63, %v675_v2  ;;  %v710_v23 = vrot.slane %v600_v1, %v656_v39  ;;  %v714_v24 = vrot.slane %v601_v3, %v661_v40  ;;  %v846_v62 = vld [vmem:[%s1824_s8 + $0xb0] sm:$0xff]  ;;  %v847_v63 = vld [vmem:[%s1824_s8 + $0xb8] sm:$0xff] }
 0x147   :  { %v664_v22 = vsel %vm663_vm0, %v662_v16, %v657_v15  ;;  %v719_v25 = vrot.slane %v602_v7, %v668_v10  ;;  %v606_v26 = vmax.f32 %v590_v0, 0.0  ;;  %v607_v27 = vmax.f32 %v591_v8, 0.0  ;;  %v830_v3 = vld [vmem:[%s1824_s8 + $0x30] sm:$0xff]  ;;  %v831_v7 = vld [vmem:[%s1824_s8 + $0x38] sm:$0xff]  ;;  %v848_v8 = vld [vmem:[%s1824_s8 + $0xc0] sm:$0xff] }
 0x148   :  { %v671_v28 = vsel %vm670_vm1, %v669_v17, %v664_v22  ;;  %v683_v29 = vrot.slane %v596_v9, %v682_v41  ;;  %v690_v31 = vrot.slane %v597_v12, %v1649_v42  ;;  %v715_v32 = vsel %vm663_vm0, %v714_v24, %v710_v23  ;;  %v849_v9 = vld [vmem:[%s1824_s8 + $0xc8] sm:$0xff]  ;;  %v850_v16 = vld [vmem:[%s1824_s8 + $0xd0] sm:$0xff]  ;;  %v851_v17 = vld [vmem:[%s1824_s8 + $0xd8] sm:$0xff] }
 0x149   :  { %v678_v30 = vsel %vm677_vm2, %v676_v21, %v671_v28  ;;  %v724_v33 = vrot.slane %v603_v14, %v675_v2  ;;  %v697_v35 = vrot.slane %v598_v13, %v1652_v46  ;;  %v720_v36 = vsel %vm670_vm1, %v719_v25, %v715_v32  ;;  %v825_v2 = vld [vmem:[%s1824_s8 + $0x8] sm:$0xff]  ;;  %v832_v14 = vld [vmem:[%s1824_s8 + $0x40] sm:$0xff]  ;;  %v835_v21 = vld [vmem:[%s1824_s8 + $0x58] sm:$0xff] }
 0x14a   :  { %v685_v34 = vsel %vm684_vm3, %v683_v29, %v678_v30  ;;  %v729_v37 = vrot.slane %v604_v19, %v682_v41  ;;  %v704_v39 = vrot.slane %v599_v18, %v1655_v48  ;;  %v734_v10 = vrot.slane %v605_v20, %v1649_v42  ;;  %v843_v42 = vld [vmem:[%s1824_s8 + $0x98] sm:$0xff]  ;;  %v833_v15 = vld [vmem:[%s1824_s8 + $0x48] sm:$0xff]  ;;  %v834_v20 = vld [vmem:[%s1824_s8 + $0x50] sm:$0xff] }
 0x14b   :  { %v692_v38 = vsel %vm691_vm4, %v690_v31, %v685_v34  ;;  %v725_v40 = vsel %vm677_vm2, %v724_v33, %v720_v36  ;;  %v739_v44 = vrot.slane %v606_v26, %v1652_v46  ;;  %v744_v50 = vrot.slane %v607_v27, %v1655_v48  ;;  %v844_v48 = vld [vmem:[%s1824_s8 + $0xa0] sm:$0xff]  ;;  %v853_v23 = vld [vmem:[%s1824_s8 + $0xe8] sm:$0xff]  ;;  %v156_v29 = vld [vmem:[#allocation4 + $0xd0] sm:$0xff] }
 0x14c   :  { %v699_v43 = vsel %vm698_vm5, %v697_v35, %v692_v38  ;;  %v730_v41 = vsel %vm684_vm3, %v729_v37, %v725_v40  ;;  %v1196_v52 = vpack.c.bf16 %v825_v2, %v824_v11  ;;  %v1198_v53 = vpack.c.bf16 %v843_v42, %v842_v45  ;;  %v852_v22 = vld [vmem:[%s1824_s8 + $0xe0] sm:$0xff]  ;;  %v837_v27 = vld [vmem:[%s1824_s8 + $0x68] sm:$0xff]  ;;  %v854_v30 = vld [vmem:[%s1824_s8 + $0xf0] sm:$0xff]  ;;  %331 = vmatmul.mubr.f32.gmra.mrb[26].mxu0 %v156_v29 }
 0x14d   :  { %v706_v47 = vsel %vm705_vm6, %v704_v39, %v699_v43  ;;  %v735_v49 = vsel %vm691_vm4, %v734_v10, %v730_v41  ;;  %v1200_v58 = vpack.c.bf16 %v827_v55, %v826_v54  ;;  %v1202_v59 = vpack.c.bf16 %v845_v57, %v844_v48  ;;  %v836_v26 = vld [vmem:[%s1824_s8 + $0x60] sm:$0xff]  ;;  %v855_v31 = vld [vmem:[%s1824_s8 + $0xf8] sm:$0xff]  ;;  %v838_v33 = vld [vmem:[%s1824_s8 + $0x70] sm:$0xff] }
 0x14e   :  { %v740_v51 = vsel %vm698_vm5, %v739_v44, %v735_v49  ;;  %v1204_v0 = vpack.c.bf16 %v829_v61, %v828_v60  ;;  %v1206_v1 = vpack.c.bf16 %v847_v63, %v846_v62  ;;  %v1208_v12 = vpack.c.bf16 %v831_v7, %v830_v3  ;;  %v839_v34 = vld [vmem:[%s1824_s8 + $0x78] sm:$0xff]  ;;  %v159_v35 = vld [vmem:[#allocation4 + $0xe8] sm:$0xff]  ;;  %v158_v37 = vld [vmem:[#allocation4 + $0xe0] sm:$0xff] }
 0x14f   :  { %v745_v46 = vsel %vm705_vm6, %v744_v50, %v740_v51  ;;  %v1210_v13 = vpack.c.bf16 %v849_v9, %v848_v8  ;;  %v1212_v18 = vpack.c.bf16 %v833_v15, %v832_v14  ;;  %v1214_v19 = vpack.c.bf16 %v851_v17, %v850_v16  ;;  %335 = vmatprep.mubr.f32.mxu0 %v159_v35  ;;  %v161_v38 = vld [vmem:[#allocation4 + $0xf8] sm:$0xff]  ;;  %v160_v39 = vld [vmem:[#allocation4 + $0xf0] sm:$0xff]  ;;  %v1767_v10 = vld [vmem:[#allocation9] ss:$0 sm:$0xff] }
 0x150   :  { %v747_v56 = vsel %vm746_vm7, %v745_v46, %v706_v47  ;;  %v1216_v24 = vpack.c.bf16 %v835_v21, %v834_v20  ;;  %v1218_v25 = vpack.c.bf16 %v853_v23, %v852_v22  ;;  %v1220_v28 = vpack.c.bf16 %v837_v27, %v836_v26  ;;  %336 = vmatmul.mubr.f32.gmra.mrb[28].mxu0 %v158_v37 }
 0x151   :  { %966 = vmatmul.mubr.msk.f32.vlgmr.msra.gmra.mrb[0].mxu1 %vm748_vm8, %v747_v56  ;;  %v1222_v32 = vpack.c.bf16 %v855_v31, %v854_v30  ;;  %v1224_v36 = vpack.c.bf16 %v839_v34, %v838_v33  ;;  %340 = vmatprep.mubr.f32.mxu0 %v161_v38 }
 0x152   :  { %1197 = vmatpush3.bf16.msra.mxu1 %v1196_v52 }
 0x153   :  { %1199 = vmatprep.subr.bf16.mxu1 %v1198_v53 }
 0x154   :  { %341 = vmatmul.mubr.f32.gmra.mrb[30].mxu0 %v160_v39 }
 0x156   :  { %1201 = vmatpush3.bf16.msra.mxu1 %v1200_v58 }
 0x157   :  { %1203 = vmatprep.subr.bf16.mxu1 %v1202_v59 }
 0x15a   :  { %1205 = vmatpush3.bf16.msra.mxu1 %v1204_v0 }
 0x15b   :  { %1207 = vmatprep.subr.bf16.mxu1 %v1206_v1 }
 0x15e   :  { %1209 = vmatpush3.bf16.msra.mxu1 %v1208_v12 }
 0x15f   :  { %1211 = vmatprep.subr.bf16.mxu1 %v1210_v13 }
 0x162   :  { %1213 = vmatpush3.bf16.msra.mxu1 %v1212_v18 }
 0x163   :  { %1215 = vmatprep.subr.bf16.mxu1 %v1214_v19 }
 0x166   :  { %1217 = vmatpush3.bf16.msra.mxu1 %v1216_v24 }
 0x167   :  { %1219 = vmatprep.subr.bf16.mxu1 %v1218_v25 }
 0x16a   :  { %1221 = vmatpush3.bf16.msra.mxu1 %v1220_v28 }
 0x16b   :  { %1223 = vmatprep.subr.bf16.mxu1 %v1222_v32 }
 0x16e   :  { %1225 = vmatpush3.bf16.msra.mxu1 %v1224_v36 }
 0x19c   :  { %v1063_v40 = vpop.f32.mrb[0].mxu0 }
 0x19d   :  { %v1064_v11 = vpop.f32.mrb[1].mxu0 }
 0x19e   :  { %v1065_v2 = vadd.f32 %v1064_v11, %v1063_v40 }
 0x1a0   :  { %v268_v43 = vadd.f32 %v1065_v2, %v1767_v10  ;;  %v1066_v41 = vpop.f32.mrb[2].mxu0 }
 0x1a1   :  { %v1067_v44 = vpop.f32.mrb[3].mxu0 }
 0x1a2   :  { %v1068_v45 = vadd.f32 %v1067_v44, %v1066_v41  ;;  %v346_v42 = vmax.f32 %v268_v43, 0.0 }
 0x1a4   :  { %v273_v47 = vadd.f32 %v1068_v45, %v1767_v10  ;;  %v1069_v49 = vpop.f32.mrb[4].mxu0 }
 0x1a5   :  { %v1070_v50 = vpop.f32.mrb[5].mxu0 }
 0x1a6   :  { %v347_v51 = vmax.f32 %v273_v47, 0.0  ;;  %v1071_v52 = vadd.f32 %v1070_v50, %v1069_v49  ;;  %v624_v49 = vld [vmem:[#allocation14] sm:$0x3] }
 0x1a7   :  { %v629_v50 = vrot.slane %v624_v49, %v478_v5 }
 0x1a8   :  { %v987_v46 = vpack.c.bf16 %v347_v51, %v346_v42  ;;  %v278_v53 = vadd.f32 %v1071_v52, %v1767_v10  ;;  %v1072_v54 = vpop.f32.mrb[6].mxu0  ;;  %v633_v51 = vrot.slane %v624_v49, %v482_v6 }
 0x1a9   :  { %v1073_v55 = vpop.f32.mrb[7].mxu0 }
 0x1aa   :  { %988 = vst [vmem:[%s1825_s10] sm:$0xff] %v987_v46   ;;  %v1074_v56 = vadd.f32 %v1073_v55, %v1072_v54  ;;  %v348_v48 = vmax.f32 %v278_v53, 0.0 }
 0x1ac   :  { %v283_v57 = vadd.f32 %v1074_v56, %v1767_v10  ;;  %v1075_v58 = vpop.f32.mrb[8].mxu0 }
 0x1ad   :  { %v1076_v59 = vpop.f32.mrb[9].mxu0 }
 0x1ae   :  { %v349_v60 = vmax.f32 %v283_v57, 0.0  ;;  %v1077_v61 = vadd.f32 %v1076_v59, %v1075_v58 }
 0x1b0   :  { %v992_v62 = vpack.c.bf16 %v349_v60, %v348_v48  ;;  %v288_v63 = vadd.f32 %v1077_v61, %v1767_v10  ;;  %v1078_v0 = vpop.f32.mrb[10].mxu0 }
 0x1b1   :  { %v1079_v1 = vpop.f32.mrb[11].mxu0 }
 0x1b2   :  { %1024 = vst [vmem:[%s1825_s10 + $0x8] sm:$0xff] %v992_v62   ;;  %v1080_v3 = vadd.f32 %v1079_v1, %v1078_v0  ;;  %v350_v7 = vmax.f32 %v288_v63, 0.0 }
 0x1b4   :  { %v293_v8 = vadd.f32 %v1080_v3, %v1767_v10  ;;  %v1081_v9 = vpop.f32.mrb[12].mxu0 }
 0x1b5   :  { %v1082_v12 = vpop.f32.mrb[13].mxu0 }
 0x1b6   :  { %v351_v13 = vmax.f32 %v293_v8, 0.0  ;;  %v1083_v14 = vadd.f32 %v1082_v12, %v1081_v9 }
 0x1b8   :  { %v997_v15 = vpack.c.bf16 %v351_v13, %v350_v7  ;;  %v298_v16 = vadd.f32 %v1083_v14, %v1767_v10  ;;  %v1084_v17 = vpop.f32.mrb[14].mxu0 }
 0x1b9   :  { %v1085_v18 = vpop.f32.mrb[15].mxu0 }
 0x1ba   :  { %1025 = vst [vmem:[%s1825_s10 + $0x10] sm:$0xff] %v997_v15   ;;  %v1086_v19 = vadd.f32 %v1085_v18, %v1084_v17  ;;  %v352_v20 = vmax.f32 %v298_v16, 0.0  ;;  %v967_v15 = vld [vmem:[#allocation3] ss:$0 sm:$0xff] }
 0x1bc   :  { %v303_v21 = vadd.f32 %v1086_v19, %v1767_v10  ;;  %v1087_v22 = vpop.f32.mrb[16].mxu0 }
 0x1bd   :  { %v1088_v23 = vpop.f32.mrb[17].mxu0 }
 0x1be   :  { %v353_v24 = vmax.f32 %v303_v21, 0.0  ;;  %v1089_v25 = vadd.f32 %v1088_v23, %v1087_v22 }
 0x1c0   :  { %v1002_v26 = vpack.c.bf16 %v353_v24, %v352_v20  ;;  %v308_v27 = vadd.f32 %v1089_v25, %v1767_v10  ;;  %v1090_v28 = vpop.f32.mrb[18].mxu0 }
 0x1c1   :  { %v1091_v29 = vpop.f32.mrb[19].mxu0 }
 0x1c2   :  { %1026 = vst [vmem:[%s1825_s10 + $0x18] sm:$0xff] %v1002_v26   ;;  %v1092_v30 = vadd.f32 %v1091_v29, %v1090_v28  ;;  %v354_v31 = vmax.f32 %v308_v27, 0.0 }
 0x1c4   :  { %v313_v32 = vadd.f32 %v1092_v30, %v1767_v10  ;;  %v1093_v33 = vpop.f32.mrb[20].mxu0 }
 0x1c5   :  { %v1094_v34 = vpop.f32.mrb[21].mxu0 }
 0x1c6   :  { %v355_v35 = vmax.f32 %v313_v32, 0.0  ;;  %v1095_v36 = vadd.f32 %v1094_v34, %v1093_v33 }
 0x1c8   :  { %v1007_v37 = vpack.c.bf16 %v355_v35, %v354_v31  ;;  %v318_v38 = vadd.f32 %v1095_v36, %v1767_v10  ;;  %v1096_v39 = vpop.f32.mrb[22].mxu0 }
 0x1c9   :  { %v1097_v40 = vpop.f32.mrb[23].mxu0 }
 0x1ca   :  { %1027 = vst [vmem:[%s1825_s10 + $0x20] sm:$0xff] %v1007_v37   ;;  %v1098_v11 = vadd.f32 %v1097_v40, %v1096_v39  ;;  %v356_v2 = vmax.f32 %v318_v38, 0.0 }
 0x1cc   :  { %v323_v43 = vadd.f32 %v1098_v11, %v1767_v10  ;;  %v1099_v41 = vpop.f32.mrb[24].mxu0 }
 0x1cd   :  { %v1100_v44 = vpop.f32.mrb[25].mxu0 }
 0x1ce   :  { %v357_v45 = vmax.f32 %v323_v43, 0.0  ;;  %v1101_v42 = vadd.f32 %v1100_v44, %v1099_v41 }
 0x1d0   :  { %v1012_v47 = vpack.c.bf16 %v357_v45, %v356_v2  ;;  %v328_v48 = vadd.f32 %v1101_v42, %v1767_v10 }
 0x1d2   :  { %1028 = vst [vmem:[%s1825_s10 + $0x28] sm:$0xff] %v1012_v47   ;;  %v358_v60 = vmax.f32 %v328_v48, 0.0 }
 0x21f   :  { %v1102_v57 = vpop.f32.mrb[26].mxu0 }
 0x220   :  { %v1103_v58 = vpop.f32.mrb[27].mxu0 }
 0x221   :  { %v1104_v59 = vadd.f32 %v1103_v58, %v1102_v57 }
 0x223   :  { %v333_v61 = vadd.f32 %v1104_v59, %v1767_v10  ;;  %v1105_v5 = vpop.f32.mrb[28].mxu0 }
 0x224   :  { %v817_v52 = vpop.f32.mrb[0].mxu1  ;;  %v1106_v62 = vpop.f32.mrb[29].mxu0 }
 0x225   :  { %v818_v46 = vadd.f32 %v817_v52, %v629_v50  ;;  %v819_v53 = vpop.f32.mrb[1].mxu1  ;;  %v359_v4 = vmax.f32 %v333_v61, 0.0  ;;  %v1107_v6 = vadd.f32 %v1106_v62, %v1105_v5 }
 0x226   :  { %v820_v54 = vadd.f32 %v819_v53, %v633_v51 }
 0x227   :  { %v822_v56 = vmax.f32 %v818_v46, 0.0  ;;  %v1017_v63 = vpack.c.bf16 %v359_v4, %v358_v60  ;;  %v338_v0 = vadd.f32 %v1107_v6, %v1767_v10  ;;  %v1108_v1 = vpop.f32.mrb[30].mxu0 }
 0x228   :  { %v823_v55 = vmax.f32 %v820_v54, 0.0  ;;  %v1109_v3 = vpop.f32.mrb[31].mxu0 }
 0x229   :  { %1029 = vst [vmem:[%s1825_s10 + $0x30] sm:$0xff] %v1017_v63   ;;  %v1110_v7 = vadd.f32 %v1109_v3, %v1108_v1  ;;  %v360_v8 = vmax.f32 %v338_v0, 0.0 }
 0x22a   :  { %927 = vmatprep.mubr.f32.mxu1 %v823_v55 }
 0x22b   :  { %928 = vmatmul.mubr.f32.vlgmr.msra.gmra.mrb[2].mxu1 %v822_v56  ;;  %v343_v9 = vadd.f32 %v1110_v7, %v1767_v10 }
 0x22d   :  { %v361_v12 = vmax.f32 %v343_v9, 0.0 }
 0x22f   :  { %v1022_v13 = vpack.c.bf16 %v361_v12, %v360_v8 }
 0x231   :  { %1030 = vst [vmem:[%s1825_s10 + $0x38] sm:$0xff] %v1022_v13  }
 0x2fe   :  { %v1143_v14 = vpop.f32.mrb[2].mxu1 }
 0x2ff   :  { %v1144_v16 = vpop.f32.mrb[3].mxu1 }
 0x300   :  { %v1145_v17 = vadd.f32 %v1144_v16, %v1143_v14 }
 0x302   :  { %v930_v18 = vadd.f32 %v1145_v17, %v967_v15 }
 0x304   :  { %1240 = vtanh.f32 %v930_v18 }
 0x30e   :  { %v1241_v19 = vpop.eup %1240 }
 0x30f   :  { %935 = vst.msk [vmem:[%s1826_s11] sm:$0x3] %vm934_vm9, %v1241_v19 }
 0x310   :  { %944 = vsyncpa [#allocation5], 1 }
 0x311   :  { %945 = vsyncpa [#allocation7], 1 }
 0x312   :  { %946 = vsyncpa [#allocation10], 1 }
 0x313   :  { %947 = vsyncpa [#allocation13], 1 }

// kernel: outblock_pallas.3
= control target key start
LH: loop header
LB: loop body
LE: loop exit
PB: predicated region body
PF: predicated region fallthrough
CT: control target
= control target key end

     0   :  { %s11117_s0 = inlined_call_operand.vmem [shape: bf16[2,8192], index: 0, kind: input, shape index: {}]   ;;  %s11118_s1 = inlined_call_operand.hbm [shape: bf16[8192,4096], index: 1, kind: input, shape index: {}]   ;;  %s11119_s2 = inlined_call_operand.hbm [shape: f32[1,4096], index: 2, kind: input, shape index: {}]   ;;  %s11120_s3 = inlined_call_operand.hbm [shape: f32[2,4096], index: 3, kind: output, shape index: {}]  }
   0x1   :  { %11128 = sst [smem:[#allocation14_spill]] %s11118_s1 }
   0x2   :  { %8 = vsyncpa [#allocation4], 0 }
   0x3   :  { %10 = vsyncpa [#allocation4 + $0x1], 0 }
   0x4   :  { %11 = vsyncpa [#allocation7], 0 }
   0x5   :  { %13 = vsyncpa [#allocation7 + $0x1], 0 }
   0x6   :  { %14 = vsyncpa [#allocation5], 0 }
   0x7   :  { %16 = vsyncpa [#allocation5 + $0x1], 0  ;;  %s9603_s12 = smov 0   ;;  %s9605_s13 = smov 0  }
   0x8   :  { %s9607_s14 = smov 0   ;;  %s9609_s15 = smov 0  }
   0x9   :  { %s9611_s16 = smov 0   ;;  %s9613_s17 = smov 0  }
   0xa   :  { %s9615_s18 = smov 0   ;;  %s9617_s19 = smov 0  }
   0xb   :  { %s9619_s20 = smov 0   ;;  %s9621_s21 = smov 0  }
   0xc   :  { %s9623_s22 = smov 0  }
   0xd LB: > { %s31_s23 = sadd.s32 1, %s9564_s20  ;;  %p76_p1 = scmp.ne.s32.totalorder %s9552_s17, %s9548_s16  ;;  %s9572_s22 = sphi %s9623_s22, %s22_s22   ;;  %s9568_s21 = sphi %s9621_s21, %s11158_s21   ;;  %s9564_s20 = sphi %s9619_s20, %s11157_s20   ;;  %s9560_s19 = sphi %s9617_s19, %s11156_s19   ;;  %s9556_s18 = sphi %s9615_s18, %s11155_s18   ;;  %s9552_s17 = sphi %s9613_s17, %s11154_s17   ;;  %s9548_s16 = sphi %s9611_s16, %s11153_s16   ;;  %s9544_s15 = sphi %s9609_s15, %s11152_s15   ;;  %s9540_s14 = sphi %s9607_s14, %s11151_s14   ;;  %s9536_s13 = sphi %s9605_s13, %s11150_s13   ;;  %s9532_s12 = sphi %s9603_s12, %s11149_s12  }
   0xe   : > { %p9659_p0 = scmp.ge.s32.totalorder %s31_s23, 4  ;;  %p11122_p2 = scmp.eq.s32.totalorder %s9572_s22, 0 }
   0xf   : > { %s69_s25 = sadd.s32 1, %s9552_s17  ;;  %p11121_p4 = scmp.lt.s32.totalorder %s9572_s22, 16 }
  0x10   : > { %s11160_s23 = smov (%p9659_p0, %s31_s23), 0  ;;  %p78_p3 = por %p11122_p2, %p76_p1 }
  0x11   : > { %11130 = sst [smem:[#allocation12_spill]] %s11160_s23  ;;  %s166_s26 = sand.u32 1, %s9552_s17  }
  0x12   : > { %s8112_s27 = sshll.u32 %s166_s26, 13  ;;  %s8114_s28 = sshll.u32 %s9568_s21, 3 }
  0x13   : > { %s9156_s29 = sshll.u32 %s9564_s20, 13  ;;  %s170_s30 = scalar_lea.vmem [#allocation3], %s8112_s27 }
  0x14   : > { %s180_s4 = sshll.u32 %s170_s30, 4  ;;  %s177_s5 = sadd.s32 %s9156_s29, %s8114_s28  ;;  %s9677_s4 = int_to_ptr.vmem [resolvable:$true] %s180_s4 }
  0x15   : > { %s8116_s6 = sshll.u32 %s177_s5, 6  ;;  %p9681_p5 = pnand %p11121_p4, %p78_p3 }
  0x16   : > { %s11132_s1 = sld [smem:[#allocation14_spill]]  ;;  %s9691_s11 = scalar_lea.sflag [#allocation4], %s166_s26 }
  0x17   : > { %p9388_p8 = pneg %p9681_p5 }
  0x1c   : > { %s9688_s10 = scalar_lea.hbm %s11132_s1, %s8116_s6  ;;  %s9391_s30 = scalar_lea.hbm %s11132_s1, 2097152 }
  0x1d   : > { %s9386_s27 = scalar_lea.hbm %s9688_s10, 131072  ;;  %p9392_p11 = scmp.lt.u32.totalorder %s9688_s10, %s11132_s1 }
  0x1e   : > { %p9387_p7 = scmp.ne.s32.totalorder %s9688_s10, %s9386_s27  ;;  %p9393_p12 = scmp.lt.u32.totalorder %s9391_s30, %s9386_s27 }
  0x1f   : > { %p9395_p1 = scmp.lt.u32.totalorder %s9386_s27, %s9688_s10 }
  0x20   : > { %p9389_p9 = pnand %p9388_p8, %p9387_p7  ;;  %p9394_p13 = por %p9393_p12, %p9392_p11 }
  0x22   : > { %p9390_p10 = pneg %p9389_p9  ;;  %p9396_p3 = por %p9395_p1, %p9394_p13 }
  0x24   : > { %p9397_p4 = pnand %p9396_p3, %p9390_p10 }
  0x26   : > { %9400 = shalt.err (!%p9397_p4)
}
  0x27   : > { %s9401_s26 = scalar_lea.vmem %s9677_s4, 131072  ;;  %s9574_s8 = smov [#allocation3]  }
  0x28   : > { %p9402_p7 = scmp.ne.s32.totalorder %s9677_s4, %s9401_s26  ;;  %s9406_s9 = sshll.u32 %s9574_s8, 4  ;;  %s9407_s9 = int_to_ptr.vmem [resolvable:$false] %s9406_s9 }
  0x29   : > { %s9408_s28 = scalar_lea.vmem %s9407_s9, 262144  ;;  %p9409_p6 = scmp.lt.s32.totalorder %s9677_s4, %s9407_s9 }
  0x2a   : > { %p9404_p9 = pnand %p9402_p7, %p9388_p8  ;;  %p9410_p11 = scmp.lt.s32.totalorder %s9408_s28, %s9401_s26 }
  0x2c   : > { %p9405_p2 = pneg %p9404_p9  ;;  %p9411_p12 = por %p9410_p11, %p9409_p6 }
  0x2e   : > { %p9412_p13 = pnand %p9411_p12, %p9405_p2 }
  0x30   : > { %9415 = shalt.err (!%p9412_p13)
}
  0x31   : > { %s9575_s27 = smov 2048   ;;  %s9576_s29 = smov 512  }
  0x32   : > { %s9577_s30 = smov 32   ;;  %p207_p2 = scmp.lt.s32.totalorder %s9572_s22, 17 }
  0x33   : > { %9280 = dma.hbm_to_vmem [thread:$0]  (!%p9681_p5), %s9688_s10, 131072, %s9677_s4, %s9691_s11, %s9575_s27, %s9576_s29, %s9577_s30  }
  0x34   : > { %p11133_p4 = scmp.ge.s32.totalorder %s9572_s22, 1  ;;  %s64_s6 = ssub.s32 %s9564_s20, %s11160_s23 }
  0x35   : > { %s8108_s26 = sadd.s32 4294967295, %s9572_s22   ;;  %s34_s8 = sadd.s32 1, %s9568_s21 }
  0x36   : > { %p9722_p6 = pnand %p11133_p4, %p207_p2  ;;  %p82_p8 = scmp.ne.s32.totalorder %s9548_s16, %s9544_s15 }
  0x37   : > { %s11162_s8 = smov (!%p9659_p0, %s34_s8), %s9568_s21  ;;  %s8109_s7 = sadd.s32 4294967294, %s9572_s22  }
  0x38   : > { %p83_p5 = scmp.eq.s32.totalorder %s8108_s26, 0  ;;  %p36_p10 = scmp.ge.s32.totalorder %s11162_s8, 4 }
  0x39   : > { %s95_s4 = sadd.s32 1, %s9540_s14  ;;  %p108_p3 = scmp.ne.s32.totalorder %s9536_s13, %s9532_s12 }
  0x3a   : > { %p9737_p1 = por %p83_p5, %p82_p8  ;;  %s11164_s8 = smov (%p36_p10, %s11162_s8), 0 }
  0x3b   : > { %11136 = sst [smem:[#allocation13_spill]] %s11164_s8  ;;  %p102_p0 = scmp.ne.s32.totalorder %s9540_s14, %s9536_s13 }
  0x3c   : > { %s11135_s10 = scalar_select %p9737_p1, 1, 0 }
  0x3d   : > { %p9750_p7 = por %p108_p3, %p83_p5  ;;  %s65_s24 = ssub.s32 %s9568_s21, %s11164_s8 }
  0x3e   : > { %p132_p9 = scmp.eq.s32.totalorder %s8108_s26, 15  ;;  %s66_s11 = sor.u32 %s65_s24, %s64_s6 }
  0x3f   : > { %s11137_s15 = scalar_select %p9750_p7, 1, 0 }
  0x40   : > { %p93_p11 = scmp.eq.s32.totalorder %s65_s24, 0  ;;  %p67_p12 = scmp.eq.s32.totalorder %s66_s11, 0 }
  0x41   : > { %p9756_p13 = por %p132_p9, %p102_p0  ;;  %p138_p2 = scmp.eq.s32.totalorder %s8109_s7, 15 }
  0x42   : > { %s9761_s28 = scalar_select %p93_p11, %s9540_s14, %s95_s4  }
  0x43   : > { %s11138_s9 = scalar_select %p9756_p13, 1, 0 }
  0x44   : > { %s9766_s27 = scalar_select %p67_p12, %s9552_s17, %s69_s25  }
  0x45   : > { %s190_s29 = sand.u32 1, %s9540_s14   ;;  %p11139_p4 = scmp.eq.s32.totalorder %s9572_s22, 0 }
  0x46   : > { %s8117_s30 = sshll.u32 %s190_s29, 3  ;;  %p9774_p5 = por %p138_p2, %p108_p3 }
  0x47   : > { %p104_p8 = por %p102_p0, %p11139_p4  ;;  %s9157_s26 = sshll.u32 %s9568_s21, 7 }
  0x48   : > { %s11140_s6 = scalar_select %p9774_p5, 1, 0 }
  0x49   : > { %s194_s24 = scalar_lea.vmem [#allocation6], %s8117_s30  ;;  %s9782_s4 = scalar_lea.hbm %s11119_s2, %s9157_s26 }
  0x4a   : > { %s202_s11 = sshll.u32 %s194_s24, 4  ;;  %p11141_p10 = scmp.lt.s32.totalorder %s9572_s22, 16  ;;  %s9784_s11 = int_to_ptr.vmem [resolvable:$true] %s202_s11 }
  0x4b   : > { %s191_s7 = scalar_lea.sflag [#allocation7], %s190_s29  ;;  %s9416_s30 = scalar_lea.hbm %s9782_s4, 128 }
  0x4c   : > { %p9788_p0 = pnand %p11141_p10, %p104_p8  ;;  %p9417_p3 = scmp.ne.s32.totalorder %s9782_s4, %s9416_s30 }
  0x4d   : > { %s9421_s26 = scalar_lea.hbm %s11119_s2, 512  ;;  %p9422_p2 = scmp.lt.u32.totalorder %s9782_s4, %s11119_s2 }
  0x4e   : > { %p9418_p9 = pneg %p9788_p0  ;;  %p9423_p4 = scmp.lt.u32.totalorder %s9421_s26, %s9416_s30 }
  0x4f   : > { %p9425_p10 = scmp.lt.u32.totalorder %s9416_s30, %s9782_s4 }
  0x50   : > { %p9419_p11 = pnand %p9418_p9, %p9417_p3  ;;  %p9424_p8 = por %p9423_p4, %p9422_p2 }
  0x52   : > { %p9420_p12 = pneg %p9419_p11  ;;  %p9426_p5 = por %p9425_p10, %p9424_p8 }
  0x54   : > { %p9427_p13 = pnand %p9426_p5, %p9420_p12 }
  0x56   : > { %9430 = shalt.err (!%p9427_p13)
}
  0x57   : > { %s9431_s29 = scalar_lea.vmem %s9784_s11, 128  ;;  %s9578_s1 = smov [#allocation6]  }
  0x58   : > { %p9432_p3 = scmp.ne.s32.totalorder %s9784_s11, %s9431_s29  ;;  %s9436_s8 = sshll.u32 %s9578_s1, 4  ;;  %s9437_s8 = int_to_ptr.vmem [resolvable:$false] %s9436_s8 }
  0x59   : > { %s9438_s23 = scalar_lea.vmem %s9437_s8, 256  ;;  %p9439_p1 = scmp.lt.s32.totalorder %s9784_s11, %s9437_s8 }
  0x5a   : > { %p9434_p11 = pnand %p9432_p3, %p9418_p9  ;;  %p9440_p2 = scmp.lt.s32.totalorder %s9438_s23, %s9431_s29 }
  0x5c   : > { %p9435_p7 = pneg %p9434_p11  ;;  %p9441_p4 = por %p9440_p2, %p9439_p1 }
  0x5e   : > { %p9442_p8 = pnand %p9441_p4, %p9435_p7 }
  0x60   : > { %9445 = shalt.err (!%p9442_p8)
}
  0x61   : > { %9283 = dma.hbm_to_vmem [thread:$0]  (!%p9788_p0), %s9782_s4, 128, %s9784_s11, %s191_s7  }
  0x62   : > { %211 = sbr.rel (%p9722_p6) target bundleno = 1406 (0x57e), region = 32  ;;  %s213_s30 = sand.u32 (!%p9722_p6), 1, %s9548_s16  }
  0x63   : > { %s8121_s26 = sshll.u32 (!%p9722_p6), %s213_s30, 13  ;;  %s214_s24 = scalar_lea.sflag (!%p9722_p6), [#allocation4], %s213_s30 }
  0x64   : > { %s9820_s1 = scalar_lea.vmem (!%p9722_p6), [#allocation3], %s8121_s26  ;;  %p11143_p13 = scmp.ne.s32.totalorder (!%p9722_p6), %s11135_s10, 0 }
  0x69   : > { %9519 = dma.done.wait (%p11143_p13), %s214_s24, 131072  }
  0x6a   : > { %9521 = vsyncadd (%p11143_p13), %s214_s24, 4294836224  ;;  %s9827_s25 = sand.u32 1, %s9536_s13   ;;  %p11144_p6 = scmp.ne.s32.totalorder %s11137_s15, 0 }
  0x6b   : > { %s8122_s5 = sshll.u32 %s9827_s25, 3  ;;  %s223_s11 = scalar_lea.sflag [#allocation7], %s9827_s25 }
  0x6c   : > { %s9831_s4 = scalar_lea.vmem [#allocation6], %s8122_s5 }
  0x6d   : > { %9523 = dma.done.wait (%p11144_p6), %s223_s11, 128  }
  0x6e   : > { %9525 = vsyncadd (%p11144_p6), %s223_s11, 4294967168  ;;  %s8123_s7 = sshll.u32 %s9827_s25, 4  ;;  %s8124_s10 = sshll.u32 %s9556_s18, 4 }
  0x6f   : > { %p259_p1 = scmp.lt.s32.totalorder %s8124_s10, 63  ;;  %s9844_s30 = scalar_lea.vmem [#allocation8], %s8123_s7 }
  0x70   : > { %p8125_p7 = scmp.ne.s32.totalorder %s9556_s18, 0 }
  0x71   : > { %s11166_s10 = smov (!%p259_p1, %s8124_s10), 63  ;;  %v9579_v0 = vmov (!%p8125_p7), 0.0  }
  0x72   : > { %s9842_s23 = scalar_lea.vmem %s11117_s0, %s11166_s10  ;;  %270 = sbr.rel (%p8125_p7) target bundleno = 121 (0x79), region = 44  ;;  %271 = vst [vmem:[#allocation2] sm:$0xff] (!%p8125_p7), %v9579_v0  ;;  %272 = vst [vmem:[#allocation2 + $0x8] sm:$0xff] (!%p8125_p7), %v9579_v0 }
  0x79 PF: > { %v277_v1 = vld [vmem:[%s9820_s1] sm:$0xff]  ;;  %v278_v3 = vld [vmem:[%s9820_s1 + $0x8] sm:$0xff]  ;;  %v9580_v33 = vmov 1966171168   ;;  %v1307_v35 = vlaneseq  ;;  %v9881_v60 = vld [vmem:[%s9842_s23] sm:$0xff]  ;;  %p9150_p5 = scmp.ne.s32.totalorder %s9556_s18, 3 }
  0x7a   : > { %v281_v2 = vld [vmem:[%s9820_s1 + $0x20] sm:$0xff]  ;;  %v282_v5 = vld [vmem:[%s9820_s1 + $0x28] sm:$0xff]  ;;  %v1305_v34 = vunpack.c.l.s4 %v9580_v33 }
  0x7b   : > { %v8127_v4 = vcombine.high %v277_v1, %v281_v2  ;;  %v8126_v6 = vcombine.low %v277_v1, %v281_v2  ;;  %v285_v7 = vld [vmem:[%s9820_s1 + $0x40] sm:$0xff]  ;;  %v8129_v9 = vcombine.high %v278_v3, %v282_v5  ;;  %v8128_v10 = vcombine.low %v278_v3, %v282_v5  ;;  %v286_v12 = vld [vmem:[%s9820_s1 + $0x48] sm:$0xff] }
  0x7c   : > { %v289_v8 = vld [vmem:[%s9820_s1 + $0x60] sm:$0xff]  ;;  %v290_v13 = vld [vmem:[%s9820_s1 + $0x68] sm:$0xff]  ;;  %v1306_v44 = vunpack.c.0.s8 %v1305_v34  ;;  %v9869_v45 = vshrl.u32 %v1307_v35, 7 }
  0x7d   : > { %v8135_v11 = vcombine.high %v285_v7, %v289_v8  ;;  %v293_v14 = vld [vmem:[%s9820_s1 + $0x80] sm:$0xff]  ;;  %6537 = vmatprep.subr.bf16.mxu0 %v8127_v4  ;;  %v8137_v15 = vcombine.high %v286_v12, %v290_v13  ;;  %v294_v17 = vld [vmem:[%s9820_s1 + $0x88] sm:$0xff]  ;;  %6865 = vmatprep.subr.bf16.mxu1 %v8129_v9  ;;  %v8134_v19 = vcombine.low %v285_v7, %v289_v8 }
  0x7e   : > { %v297_v16 = vld [vmem:[%s9820_s1 + $0xa0] sm:$0xff]  ;;  %v298_v18 = vld [vmem:[%s9820_s1 + $0xa8] sm:$0xff]  ;;  %6538 = vmatpush1.bf16.msra.mxu0 %v8126_v6  ;;  %6866 = vmatpush1.bf16.msra.mxu1 %v8128_v10  ;;  %v8136_v20 = vcombine.low %v286_v12, %v290_v13  ;;  %v9876_v54 = vsub.s32 %v1306_v44, %v9869_v45 }
  0x7f   : > { %6539 = vmatprep.subr.bf16.mxu0 %v8135_v11  ;;  %v8143_v21 = vcombine.high %v293_v14, %v297_v16  ;;  %6867 = vmatprep.subr.bf16.mxu1 %v8137_v15  ;;  %v8145_v22 = vcombine.high %v294_v17, %v298_v18  ;;  %v301_v23 = vld [vmem:[%s9820_s1 + $0xc0] sm:$0xff]  ;;  %v302_v25 = vld [vmem:[%s9820_s1 + $0xc8] sm:$0xff]  ;;  %v8142_v27 = vcombine.low %v293_v14, %v297_v16 }
  0x80   : > { %v305_v24 = vld [vmem:[%s9820_s1 + $0xe0] sm:$0xff]  ;;  %v306_v26 = vld [vmem:[%s9820_s1 + $0xe8] sm:$0xff]  ;;  %v8144_v28 = vcombine.low %v294_v17, %v298_v18  ;;  %v9887_v0 = vrot.slane %v9881_v60, %v9876_v54 }
  0x81   : > { %v8151_v29 = vcombine.high %v301_v23, %v305_v24  ;;  %v8153_v30 = vcombine.high %v302_v25, %v306_v26  ;;  %v309_v31 = vld [vmem:[%s9820_s1 + $0x100] sm:$0xff]  ;;  %v310_v36 = vld [vmem:[%s9820_s1 + $0x108] sm:$0xff]  ;;  %v8150_v38 = vcombine.low %v301_v23, %v305_v24  ;;  %v8152_v39 = vcombine.low %v302_v25, %v306_v26 }
  0x82   : > { %6540 = vmatpush1.bf16.msra.mxu0 %v8134_v19  ;;  %6868 = vmatpush1.bf16.msra.mxu1 %v8136_v20  ;;  %v313_v32 = vld [vmem:[%s9820_s1 + $0x120] sm:$0xff]  ;;  %v314_v37 = vld [vmem:[%s9820_s1 + $0x128] sm:$0xff]  ;;  %v1318_v4 = vcombine.high %v9887_v0, %v9887_v0 }
  0x83   : > { %6541 = vmatprep.subr.bf16.mxu0 %v8143_v21  ;;  %6869 = vmatprep.subr.bf16.mxu1 %v8145_v22  ;;  %v8159_v40 = vcombine.high %v309_v31, %v313_v32  ;;  %v8161_v41 = vcombine.high %v310_v36, %v314_v37  ;;  %v317_v42 = vld [vmem:[%s9820_s1 + $0x140] sm:$0xff]  ;;  %v318_v46 = vld [vmem:[%s9820_s1 + $0x148] sm:$0xff]  ;;  %v8158_v48 = vcombine.low %v309_v31, %v313_v32 }
  0x84   : > { %v321_v43 = vld [vmem:[%s9820_s1 + $0x160] sm:$0xff]  ;;  %v322_v47 = vld [vmem:[%s9820_s1 + $0x168] sm:$0xff]  ;;  %v8160_v49 = vcombine.low %v310_v36, %v314_v37  ;;  %v9896_v10 = vrot.slane %v1318_v4, %v9876_v54 }
  0x85   : > { %v8167_v50 = vcombine.high %v317_v42, %v321_v43  ;;  %v8169_v51 = vcombine.high %v318_v46, %v322_v47  ;;  %v325_v52 = vld [vmem:[%s9820_s1 + $0x180] sm:$0xff]  ;;  %v326_v55 = vld [vmem:[%s9820_s1 + $0x188] sm:$0xff]  ;;  %v8166_v57 = vcombine.low %v317_v42, %v321_v43  ;;  %v8168_v58 = vcombine.low %v318_v46, %v322_v47 }
  0x86   : > { %6542 = vmatpush1.bf16.msra.mxu0 %v8142_v27  ;;  %6870 = vmatpush1.bf16.msra.mxu1 %v8144_v28  ;;  %v329_v53 = vld [vmem:[%s9820_s1 + $0x1a0] sm:$0xff]  ;;  %v330_v56 = vld [vmem:[%s9820_s1 + $0x1a8] sm:$0xff] }
  0x87   : > { %6543 = vmatprep.subr.bf16.mxu0 %v8151_v29  ;;  %6871 = vmatprep.subr.bf16.mxu1 %v8153_v30  ;;  %v8175_v59 = vcombine.high %v325_v52, %v329_v53  ;;  %v8177_v61 = vcombine.high %v326_v55, %v330_v56  ;;  %v333_v62 = vld [vmem:[%s9820_s1 + $0x1c0] sm:$0xff]  ;;  %v334_v1 = vld [vmem:[%s9820_s1 + $0x1c8] sm:$0xff]  ;;  %v8174_v3 = vcombine.low %v325_v52, %v329_v53 }
  0x88   : > { %v337_v63 = vld [vmem:[%s9820_s1 + $0x1e0] sm:$0xff]  ;;  %v338_v2 = vld [vmem:[%s9820_s1 + $0x1e8] sm:$0xff]  ;;  %v8176_v5 = vcombine.low %v326_v55, %v330_v56  ;;  %6569 = vmatprep.mubr.bf16.mxu0 %v9896_v10  ;;  %6897 = vmatprep.mubr.bf16.mxu1 %v9896_v10 }
  0x89   : > { %v8183_v6 = vcombine.high %v333_v62, %v337_v63  ;;  %v8185_v7 = vcombine.high %v334_v1, %v338_v2  ;;  %v341_v8 = vld [vmem:[%s9820_s1 + $0x200] sm:$0xff]  ;;  %v342_v11 = vld [vmem:[%s9820_s1 + $0x208] sm:$0xff]  ;;  %v8182_v13 = vcombine.low %v333_v62, %v337_v63  ;;  %v8184_v14 = vcombine.low %v334_v1, %v338_v2 }
  0x8a   : > { %6544 = vmatpush1.bf16.msra.mxu0 %v8150_v38  ;;  %6872 = vmatpush1.bf16.msra.mxu1 %v8152_v39  ;;  %v345_v9 = vld [vmem:[%s9820_s1 + $0x220] sm:$0xff]  ;;  %v346_v12 = vld [vmem:[%s9820_s1 + $0x228] sm:$0xff] }
  0x8b   : > { %6545 = vmatprep.subr.bf16.mxu0 %v8159_v40  ;;  %6873 = vmatprep.subr.bf16.mxu1 %v8161_v41  ;;  %v8191_v15 = vcombine.high %v341_v8, %v345_v9  ;;  %v8193_v16 = vcombine.high %v342_v11, %v346_v12  ;;  %v349_v17 = vld [vmem:[%s9820_s1 + $0x240] sm:$0xff]  ;;  %v350_v19 = vld [vmem:[%s9820_s1 + $0x248] sm:$0xff]  ;;  %v8190_v21 = vcombine.low %v341_v8, %v345_v9 }
  0x8c   : > { %v353_v18 = vld [vmem:[%s9820_s1 + $0x260] sm:$0xff]  ;;  %v354_v20 = vld [vmem:[%s9820_s1 + $0x268] sm:$0xff]  ;;  %v8192_v22 = vcombine.low %v342_v11, %v346_v12 }
  0x8d   : > { %v8199_v23 = vcombine.high %v349_v17, %v353_v18  ;;  %v8201_v24 = vcombine.high %v350_v19, %v354_v20  ;;  %v357_v25 = vld [vmem:[%s9820_s1 + $0x280] sm:$0xff]  ;;  %v358_v27 = vld [vmem:[%s9820_s1 + $0x288] sm:$0xff]  ;;  %v8198_v29 = vcombine.low %v349_v17, %v353_v18  ;;  %v8200_v30 = vcombine.low %v350_v19, %v354_v20 }
  0x8e   : > { %6546 = vmatpush1.bf16.msra.mxu0 %v8158_v48  ;;  %6874 = vmatpush1.bf16.msra.mxu1 %v8160_v49  ;;  %v361_v26 = vld [vmem:[%s9820_s1 + $0x2a0] sm:$0xff]  ;;  %v362_v28 = vld [vmem:[%s9820_s1 + $0x2a8] sm:$0xff] }
  0x8f   : > { %6547 = vmatprep.subr.bf16.mxu0 %v8167_v50  ;;  %6875 = vmatprep.subr.bf16.mxu1 %v8169_v51  ;;  %v8207_v31 = vcombine.high %v357_v25, %v361_v26  ;;  %v8209_v32 = vcombine.high %v358_v27, %v362_v28  ;;  %v365_v33 = vld [vmem:[%s9820_s1 + $0x2c0] sm:$0xff]  ;;  %v366_v35 = vld [vmem:[%s9820_s1 + $0x2c8] sm:$0xff]  ;;  %v8206_v37 = vcombine.low %v357_v25, %v361_v26 }
  0x90   : > { %v369_v34 = vld [vmem:[%s9820_s1 + $0x2e0] sm:$0xff]  ;;  %v370_v36 = vld [vmem:[%s9820_s1 + $0x2e8] sm:$0xff]  ;;  %v8208_v38 = vcombine.low %v358_v27, %v362_v28 }
  0x91   : > { %v8215_v39 = vcombine.high %v365_v33, %v369_v34  ;;  %v8217_v40 = vcombine.high %v366_v35, %v370_v36  ;;  %v373_v41 = vld [vmem:[%s9820_s1 + $0x300] sm:$0xff]  ;;  %v374_v43 = vld [vmem:[%s9820_s1 + $0x308] sm:$0xff]  ;;  %v8214_v46 = vcombine.low %v365_v33, %v369_v34  ;;  %v8216_v47 = vcombine.low %v366_v35, %v370_v36 }
  0x92   : > { %6548 = vmatpush1.bf16.msra.mxu0 %v8166_v57  ;;  %6876 = vmatpush1.bf16.msra.mxu1 %v8168_v58  ;;  %v377_v42 = vld [vmem:[%s9820_s1 + $0x320] sm:$0xff]  ;;  %v378_v44 = vld [vmem:[%s9820_s1 + $0x328] sm:$0xff]  ;;  %v9946_v33 = vcombine.high %v9896_v10, %v9896_v10 }
  0x93   : > { %6549 = vmatprep.subr.bf16.mxu0 %v8175_v59  ;;  %6877 = vmatprep.subr.bf16.mxu1 %v8177_v61  ;;  %v8223_v48 = vcombine.high %v373_v41, %v377_v42  ;;  %v8225_v49 = vcombine.high %v374_v43, %v378_v44  ;;  %v381_v50 = vld [vmem:[%s9820_s1 + $0x340] sm:$0xff]  ;;  %v382_v52 = vld [vmem:[%s9820_s1 + $0x348] sm:$0xff]  ;;  %v8222_v55 = vcombine.low %v373_v41, %v377_v42 }
  0x94   : > { %v385_v51 = vld [vmem:[%s9820_s1 + $0x360] sm:$0xff]  ;;  %v386_v53 = vld [vmem:[%s9820_s1 + $0x368] sm:$0xff]  ;;  %v8224_v56 = vcombine.low %v374_v43, %v378_v44 }
  0x95   : > { %v8231_v57 = vcombine.high %v381_v50, %v385_v51  ;;  %v8233_v58 = vcombine.high %v382_v52, %v386_v53  ;;  %v389_v59 = vld [vmem:[%s9820_s1 + $0x380] sm:$0xff]  ;;  %v390_v62 = vld [vmem:[%s9820_s1 + $0x388] sm:$0xff]  ;;  %v8230_v1 = vcombine.low %v381_v50, %v385_v51  ;;  %v8232_v2 = vcombine.low %v382_v52, %v386_v53 }
  0x96   : > { %6550 = vmatpush1.bf16.msra.mxu0 %v8174_v3  ;;  %6878 = vmatpush1.bf16.msra.mxu1 %v8176_v5  ;;  %v393_v61 = vld [vmem:[%s9820_s1 + $0x3a0] sm:$0xff]  ;;  %v394_v63 = vld [vmem:[%s9820_s1 + $0x3a8] sm:$0xff] }
  0x97   : > { %6551 = vmatprep.subr.bf16.mxu0 %v8183_v6  ;;  %6879 = vmatprep.subr.bf16.mxu1 %v8185_v7  ;;  %v8239_v3 = vcombine.high %v389_v59, %v393_v61  ;;  %v8241_v4 = vcombine.high %v390_v62, %v394_v63  ;;  %v397_v5 = vld [vmem:[%s9820_s1 + $0x3c0] sm:$0xff]  ;;  %v398_v7 = vld [vmem:[%s9820_s1 + $0x3c8] sm:$0xff]  ;;  %v8238_v9 = vcombine.low %v389_v59, %v393_v61 }
  0x98   : > { %v401_v6 = vld [vmem:[%s9820_s1 + $0x3e0] sm:$0xff]  ;;  %v402_v8 = vld [vmem:[%s9820_s1 + $0x3e8] sm:$0xff]  ;;  %v8240_v11 = vcombine.low %v390_v62, %v394_v63 }
  0x99   : > { %v8247_v12 = vcombine.high %v397_v5, %v401_v6  ;;  %v410_v17 = vld [vmem:[%s9820_s1 + $0x428] sm:$0xff]  ;;  %v8246_v18 = vcombine.low %v397_v5, %v401_v6  ;;  %v8248_v19 = vcombine.low %v398_v7, %v402_v8 }
  0x9a   : > { %6552 = vmatpush1.bf16.msra.mxu0 %v8182_v13  ;;  %6880 = vmatpush1.bf16.msra.mxu1 %v8184_v14  ;;  %v8249_v13 = vcombine.high %v398_v7, %v402_v8  ;;  %v405_v14 = vld [vmem:[%s9820_s1 + $0x400] sm:$0xff]  ;;  %v414_v25 = vld [vmem:[%s9820_s1 + $0x448] sm:$0xff] }
  0x9b   : > { %6553 = vmatprep.subr.bf16.mxu0 %v8191_v15  ;;  %6881 = vmatprep.subr.bf16.mxu1 %v8193_v16  ;;  %v409_v15 = vld [vmem:[%s9820_s1 + $0x420] sm:$0xff]  ;;  %v406_v16 = vld [vmem:[%s9820_s1 + $0x408] sm:$0xff] }
  0x9c   : > { %v8255_v20 = vcombine.high %v405_v14, %v409_v15  ;;  %v418_v26 = vld [vmem:[%s9820_s1 + $0x468] sm:$0xff]  ;;  %v8254_v27 = vcombine.low %v405_v14, %v409_v15  ;;  %v8256_v28 = vcombine.low %v406_v16, %v410_v17 }
  0x9d   : > { %v426_v34 = vld [vmem:[%s9820_s1 + $0x4a8] sm:$0xff]  ;;  %v8264_v36 = vcombine.low %v414_v25, %v418_v26 }
  0x9e   : > { %6554 = vmatpush1.bf16.msra.mxu0 %v8190_v21  ;;  %6882 = vmatpush1.bf16.msra.mxu1 %v8192_v22  ;;  %v8257_v21 = vcombine.high %v406_v16, %v410_v17  ;;  %v413_v22 = vld [vmem:[%s9820_s1 + $0x440] sm:$0xff]  ;;  %v430_v41 = vld [vmem:[%s9820_s1 + $0x4c8] sm:$0xff] }
  0x9f   : > { %6555 = vmatprep.subr.bf16.mxu0 %v8199_v23  ;;  %6883 = vmatprep.subr.bf16.mxu1 %v8201_v24  ;;  %v417_v23 = vld [vmem:[%s9820_s1 + $0x460] sm:$0xff]  ;;  %v9938_v24 = vrot.slane %v9887_v0, %v9876_v54  ;;  %v422_v0 = vld [vmem:[%s9820_s1 + $0x488] sm:$0xff] }
  0xa0   : > { %v8262_v35 = vcombine.low %v413_v22, %v417_v23  ;;  %v434_v42 = vld [vmem:[%s9820_s1 + $0x4e8] sm:$0xff]  ;;  %v8272_v44 = vcombine.low %v422_v0, %v426_v34 }
  0xa1   : > { %v438_v50 = vld [vmem:[%s9820_s1 + $0x508] sm:$0xff]  ;;  %v8280_v53 = vcombine.low %v430_v41, %v434_v42 }
  0xa2   : > { %6556 = vmatpush1.bf16.msra.mxu0 %v8198_v29  ;;  %6884 = vmatpush1.bf16.msra.mxu1 %v8200_v30  ;;  %v8263_v29 = vcombine.high %v413_v22, %v417_v23  ;;  %v8265_v30 = vcombine.high %v414_v25, %v418_v26  ;;  %v442_v51 = vld [vmem:[%s9820_s1 + $0x528] sm:$0xff] }
  0xa3   : > { %6557 = vmatprep.subr.bf16.mxu0 %v8207_v31  ;;  %6885 = vmatprep.subr.bf16.mxu1 %v8209_v32  ;;  %v421_v31 = vld [vmem:[%s9820_s1 + $0x480] sm:$0xff]  ;;  %v446_v59 = vld [vmem:[%s9820_s1 + $0x548] sm:$0xff]  ;;  %v8288_v63 = vcombine.low %v438_v50, %v442_v51 }
  0xa4   : > { %v425_v32 = vld [vmem:[%s9820_s1 + $0x4a0] sm:$0xff]  ;;  %v450_v61 = vld [vmem:[%s9820_s1 + $0x568] sm:$0xff] }
  0xa5   : > { %v8270_v43 = vcombine.low %v421_v31, %v425_v32  ;;  %v454_v5 = vld [vmem:[%s9820_s1 + $0x588] sm:$0xff]  ;;  %v8296_v8 = vcombine.low %v446_v59, %v450_v61 }
  0xa6   : > { %6558 = vmatpush1.bf16.msra.mxu0 %v8206_v37  ;;  %6886 = vmatpush1.bf16.msra.mxu1 %v8208_v38  ;;  %v8271_v37 = vcombine.high %v421_v31, %v425_v32  ;;  %v8273_v38 = vcombine.high %v422_v0, %v426_v34  ;;  %v458_v6 = vld [vmem:[%s9820_s1 + $0x5a8] sm:$0xff] }
  0xa7   : > { %6559 = vmatprep.subr.bf16.mxu0 %v8215_v39  ;;  %6887 = vmatprep.subr.bf16.mxu1 %v8217_v40  ;;  %v429_v39 = vld [vmem:[%s9820_s1 + $0x4c0] sm:$0xff]  ;;  %v462_v14 = vld [vmem:[%s9820_s1 + $0x5c8] sm:$0xff]  ;;  %v8304_v17 = vcombine.low %v454_v5, %v458_v6 }
  0xa8   : > { %v433_v40 = vld [vmem:[%s9820_s1 + $0x4e0] sm:$0xff]  ;;  %v466_v15 = vld [vmem:[%s9820_s1 + $0x5e8] sm:$0xff] }
  0xa9   : > { %v8278_v52 = vcombine.low %v429_v39, %v433_v40  ;;  %v470_v22 = vld [vmem:[%s9820_s1 + $0x608] sm:$0xff]  ;;  %v8312_v26 = vcombine.low %v462_v14, %v466_v15 }
  0xaa   : > { %6560 = vmatpush1.bf16.msra.mxu0 %v8214_v46  ;;  %6888 = vmatpush1.bf16.msra.mxu1 %v8216_v47  ;;  %v8279_v46 = vcombine.high %v429_v39, %v433_v40  ;;  %v8281_v47 = vcombine.high %v430_v41, %v434_v42  ;;  %v474_v23 = vld [vmem:[%s9820_s1 + $0x628] sm:$0xff] }
  0xab   : > { %6561 = vmatprep.subr.bf16.mxu0 %v8223_v48  ;;  %6889 = vmatprep.subr.bf16.mxu1 %v8225_v49  ;;  %v437_v48 = vld [vmem:[%s9820_s1 + $0x500] sm:$0xff]  ;;  %v478_v31 = vld [vmem:[%s9820_s1 + $0x648] sm:$0xff]  ;;  %v8320_v34 = vcombine.low %v470_v22, %v474_v23 }
  0xac   : > { %v441_v49 = vld [vmem:[%s9820_s1 + $0x520] sm:$0xff]  ;;  %v482_v32 = vld [vmem:[%s9820_s1 + $0x668] sm:$0xff] }
  0xad   : > { %v8286_v62 = vcombine.low %v437_v48, %v441_v49  ;;  %v486_v39 = vld [vmem:[%s9820_s1 + $0x688] sm:$0xff]  ;;  %v8328_v42 = vcombine.low %v478_v31, %v482_v32 }
  0xae   : > { %6562 = vmatpush1.bf16.msra.mxu0 %v8222_v55  ;;  %6890 = vmatpush1.bf16.msra.mxu1 %v8224_v56  ;;  %v8287_v55 = vcombine.high %v437_v48, %v441_v49  ;;  %v8289_v56 = vcombine.high %v438_v50, %v442_v51  ;;  %v490_v40 = vld [vmem:[%s9820_s1 + $0x6a8] sm:$0xff] }
  0xaf   : > { %6563 = vmatprep.subr.bf16.mxu0 %v8231_v57  ;;  %6891 = vmatprep.subr.bf16.mxu1 %v8233_v58  ;;  %v445_v57 = vld [vmem:[%s9820_s1 + $0x540] sm:$0xff]  ;;  %v494_v48 = vld [vmem:[%s9820_s1 + $0x6c8] sm:$0xff]  ;;  %v8336_v51 = vcombine.low %v486_v39, %v490_v40 }
  0xb0   : > { %v449_v58 = vld [vmem:[%s9820_s1 + $0x560] sm:$0xff]  ;;  %v498_v49 = vld [vmem:[%s9820_s1 + $0x6e8] sm:$0xff] }
  0xb1   : > { %v8294_v7 = vcombine.low %v445_v57, %v449_v58 }
  0xb2   : > { %6564 = vmatpush1.bf16.msra.mxu0 %v8230_v1  ;;  %6892 = vmatpush1.bf16.msra.mxu1 %v8232_v2  ;;  %v8295_v1 = vcombine.high %v445_v57, %v449_v58  ;;  %v8297_v2 = vcombine.high %v446_v59, %v450_v61  ;;  %v502_v57 = vld [vmem:[%s9820_s1 + $0x708] sm:$0xff]  ;;  %v8344_v61 = vcombine.low %v494_v48, %v498_v49 }
  0xb3   : > { %6565 = vmatprep.subr.bf16.mxu0 %v8239_v3  ;;  %6893 = vmatprep.subr.bf16.mxu1 %v8241_v4  ;;  %v453_v3 = vld [vmem:[%s9820_s1 + $0x580] sm:$0xff]  ;;  %v506_v58 = vld [vmem:[%s9820_s1 + $0x728] sm:$0xff] }
  0xb4   : > { %v457_v4 = vld [vmem:[%s9820_s1 + $0x5a0] sm:$0xff] }
  0xb5   : > { %v8302_v16 = vcombine.low %v453_v3, %v457_v4 }
  0xb6   : > { %6566 = vmatpush1.bf16.msra.mxu0 %v8238_v9  ;;  %6894 = vmatpush1.bf16.msra.mxu1 %v8240_v11  ;;  %v8303_v9 = vcombine.high %v453_v3, %v457_v4  ;;  %v8305_v11 = vcombine.high %v454_v5, %v458_v6  ;;  %v510_v3 = vld [vmem:[%s9820_s1 + $0x748] sm:$0xff]  ;;  %v8352_v6 = vcombine.low %v502_v57, %v506_v58 }
  0xb7   : > { %6567 = vmatprep.subr.bf16.mxu0 %v8247_v12  ;;  %6895 = vmatprep.subr.bf16.mxu1 %v8249_v13  ;;  %v461_v12 = vld [vmem:[%s9820_s1 + $0x5c0] sm:$0xff]  ;;  %v514_v4 = vld [vmem:[%s9820_s1 + $0x768] sm:$0xff] }
  0xb8   : > { %v465_v13 = vld [vmem:[%s9820_s1 + $0x5e0] sm:$0xff] }
  0xb9   : > { %v8310_v25 = vcombine.low %v461_v12, %v465_v13 }
  0xba   : > { %6568 = vmatpush1.bf16.msra.mxu0 %v8246_v18  ;;  %6896 = vmatpush1.bf16.msra.mxu1 %v8248_v19  ;;  %v8311_v18 = vcombine.high %v461_v12, %v465_v13  ;;  %v8313_v19 = vcombine.high %v462_v14, %v466_v15  ;;  %v518_v12 = vld [vmem:[%s9820_s1 + $0x788] sm:$0xff]  ;;  %v8360_v15 = vcombine.low %v510_v3, %v514_v4 }
  0xbb   : > { %6578 = vmatprep.subr.bf16.mxu0 %v8255_v20  ;;  %6906 = vmatprep.subr.bf16.mxu1 %v8257_v21  ;;  %v469_v20 = vld [vmem:[%s9820_s1 + $0x600] sm:$0xff]  ;;  %v522_v13 = vld [vmem:[%s9820_s1 + $0x7a8] sm:$0xff] }
  0xbc   : > { %v473_v21 = vld [vmem:[%s9820_s1 + $0x620] sm:$0xff] }
  0xbd   : > { %6570 = vmatmul.mubr.bf16.vlgmr.msra.gmra.mrb[0].mxu0 %v9938_v24  ;;  %6898 = vmatmul.mubr.bf16.vlgmr.msra.gmra.mrb[0].mxu1 %v9938_v24  ;;  %v8318_v0 = vcombine.low %v469_v20, %v473_v21 }
  0xbe   : > { %6579 = vmatpush1.bf16.msra.mxu0 %v8254_v27  ;;  %6907 = vmatpush1.bf16.msra.mxu1 %v8256_v28  ;;  %v8319_v27 = vcombine.high %v469_v20, %v473_v21  ;;  %v8321_v28 = vcombine.high %v470_v22, %v474_v23  ;;  %v1303_v20 = vcombine.high %v9881_v60, %v9881_v60  ;;  %v526_v21 = vld [vmem:[%s9820_s1 + $0x7c8] sm:$0xff] }
  0xbf   : > { %6580 = vmatprep.subr.bf16.mxu0 %v8263_v29  ;;  %6908 = vmatprep.subr.bf16.mxu1 %v8265_v30  ;;  %v477_v29 = vld [vmem:[%s9820_s1 + $0x640] sm:$0xff]  ;;  %v530_v22 = vld [vmem:[%s9820_s1 + $0x7e8] sm:$0xff] }
  0xc0   : > { %6610 = vmatprep.mubr.bf16.mxu0 %v9946_v33  ;;  %6938 = vmatprep.mubr.bf16.mxu1 %v9946_v33  ;;  %v481_v30 = vld [vmem:[%s9820_s1 + $0x660] sm:$0xff]  ;;  %v534_v60 = vld [vmem:[%s9820_s1 + $0x808] sm:$0xff] }
  0xc1   : > { %v8326_v41 = vcombine.low %v477_v29, %v481_v30 }
  0xc2   : > { %6581 = vmatpush1.bf16.msra.mxu0 %v8262_v35  ;;  %6909 = vmatpush1.bf16.msra.mxu1 %v8264_v36  ;;  %v8327_v35 = vcombine.high %v477_v29, %v481_v30  ;;  %v8329_v36 = vcombine.high %v478_v31, %v482_v32  ;;  %v537_v29 = vld [vmem:[%s9820_s1 + $0x820] sm:$0xff]  ;;  %v10011_v30 = vrot.slane %v1303_v20, %v9876_v54  ;;  %v538_v31 = vld [vmem:[%s9820_s1 + $0x828] sm:$0xff] }
  0xc3   : > { %6582 = vmatprep.subr.bf16.mxu0 %v8271_v37  ;;  %6910 = vmatprep.subr.bf16.mxu1 %v8273_v38  ;;  %v485_v37 = vld [vmem:[%s9820_s1 + $0x680] sm:$0xff] }
  0xc4   : > { %v489_v38 = vld [vmem:[%s9820_s1 + $0x6a0] sm:$0xff] }
  0xc5   : > { %v8334_v50 = vcombine.low %v485_v37, %v489_v38  ;;  %v581_v20 = vld [vmem:[%s9820_s1 + $0x980] sm:$0xff] }
  0xc6   : > { %6583 = vmatpush1.bf16.msra.mxu0 %v8270_v43  ;;  %6911 = vmatpush1.bf16.msra.mxu1 %v8272_v44  ;;  %v8335_v43 = vcombine.high %v485_v37, %v489_v38  ;;  %v8337_v44 = vcombine.high %v486_v39, %v490_v40  ;;  %v545_v37 = vld [vmem:[%s9820_s1 + $0x860] sm:$0xff]  ;;  %v1319_v38 = vcombine.high %v10011_v30, %v10011_v30  ;;  %v542_v40 = vld [vmem:[%s9820_s1 + $0x848] sm:$0xff] }
  0xc7   : > { %6584 = vmatprep.subr.bf16.mxu0 %v8279_v46  ;;  %6912 = vmatprep.subr.bf16.mxu1 %v8281_v47  ;;  %v493_v46 = vld [vmem:[%s9820_s1 + $0x6c0] sm:$0xff]  ;;  %v10021_v39 = vcombine.high %v9938_v24, %v9938_v24 }
  0xc8   : > { %v497_v47 = vld [vmem:[%s9820_s1 + $0x6e0] sm:$0xff] }
  0xc9   : > { %v8342_v59 = vcombine.low %v493_v46, %v497_v47 }
  0xca   : > { %6585 = vmatpush1.bf16.msra.mxu0 %v8278_v52  ;;  %6913 = vmatpush1.bf16.msra.mxu1 %v8280_v53  ;;  %v8343_v52 = vcombine.high %v493_v46, %v497_v47  ;;  %v8345_v53 = vcombine.high %v494_v48, %v498_v49  ;;  %v549_v47 = vld [vmem:[%s9820_s1 + $0x880] sm:$0xff]  ;;  %v10028_v49 = vrot.slane %v1319_v38, %v9876_v54 }
  0xcb   : > { %6586 = vmatprep.subr.bf16.mxu0 %v8287_v55  ;;  %6914 = vmatprep.subr.bf16.mxu1 %v8289_v56  ;;  %v501_v55 = vld [vmem:[%s9820_s1 + $0x700] sm:$0xff] }
  0xcc   : > { %v505_v56 = vld [vmem:[%s9820_s1 + $0x720] sm:$0xff] }
  0xcd   : > { %v8350_v5 = vcombine.low %v501_v55, %v505_v56  ;;  %v553_v48 = vld [vmem:[%s9820_s1 + $0x8a0] sm:$0xff] }
  0xce   : > { %6587 = vmatpush1.bf16.msra.mxu0 %v8286_v62  ;;  %6915 = vmatpush1.bf16.msra.mxu1 %v8288_v63  ;;  %v8351_v62 = vcombine.high %v501_v55, %v505_v56  ;;  %v8353_v63 = vcombine.high %v502_v57, %v506_v58  ;;  %v8399_v55 = vcombine.high %v549_v47, %v553_v48  ;;  %v557_v57 = vld [vmem:[%s9820_s1 + $0x8c0] sm:$0xff] }
  0xcf   : > { %6588 = vmatprep.subr.bf16.mxu0 %v8295_v1  ;;  %6916 = vmatprep.subr.bf16.mxu1 %v8297_v2  ;;  %v509_v1 = vld [vmem:[%s9820_s1 + $0x740] sm:$0xff] }
  0xd0   : > { %v513_v2 = vld [vmem:[%s9820_s1 + $0x760] sm:$0xff] }
  0xd1   : > { %v8358_v14 = vcombine.low %v509_v1, %v513_v2  ;;  %v561_v58 = vld [vmem:[%s9820_s1 + $0x8e0] sm:$0xff] }
  0xd2   : > { %6589 = vmatpush1.bf16.msra.mxu0 %v8294_v7  ;;  %6917 = vmatpush1.bf16.msra.mxu1 %v8296_v8  ;;  %v8359_v7 = vcombine.high %v509_v1, %v513_v2  ;;  %v8361_v8 = vcombine.high %v510_v3, %v514_v4  ;;  %v8407_v1 = vcombine.high %v557_v57, %v561_v58  ;;  %v565_v3 = vld [vmem:[%s9820_s1 + $0x900] sm:$0xff] }
  0xd3   : > { %6590 = vmatprep.subr.bf16.mxu0 %v8303_v9  ;;  %6918 = vmatprep.subr.bf16.mxu1 %v8305_v11  ;;  %v517_v9 = vld [vmem:[%s9820_s1 + $0x780] sm:$0xff] }
  0xd4   : > { %v521_v11 = vld [vmem:[%s9820_s1 + $0x7a0] sm:$0xff] }
  0xd5   : > { %v8366_v23 = vcombine.low %v517_v9, %v521_v11  ;;  %v569_v4 = vld [vmem:[%s9820_s1 + $0x920] sm:$0xff] }
  0xd6   : > { %6591 = vmatpush1.bf16.msra.mxu0 %v8302_v16  ;;  %6919 = vmatpush1.bf16.msra.mxu1 %v8304_v17  ;;  %v8367_v16 = vcombine.high %v517_v9, %v521_v11  ;;  %v8369_v17 = vcombine.high %v518_v12, %v522_v13  ;;  %v8415_v9 = vcombine.high %v565_v3, %v569_v4  ;;  %v601_v38 = vld [vmem:[%s9820_s1 + $0xa20] sm:$0xff] }
  0xd7   : > { %6592 = vmatprep.subr.bf16.mxu0 %v8311_v18  ;;  %6920 = vmatprep.subr.bf16.mxu1 %v8313_v19  ;;  %v525_v18 = vld [vmem:[%s9820_s1 + $0x7c0] sm:$0xff] }
  0xd8   : > { %v529_v19 = vld [vmem:[%s9820_s1 + $0x7e0] sm:$0xff] }
  0xd9   : > { %v8374_v32 = vcombine.low %v525_v18, %v529_v19 }
  0xda   : > { %6593 = vmatpush1.bf16.msra.mxu0 %v8310_v25  ;;  %6921 = vmatpush1.bf16.msra.mxu1 %v8312_v26  ;;  %v8368_v25 = vcombine.low %v518_v12, %v522_v13  ;;  %v8375_v26 = vcombine.high %v525_v18, %v529_v19  ;;  %v573_v12 = vld [vmem:[%s9820_s1 + $0x940] sm:$0xff] }
  0xdb   : > { %6594 = vmatprep.subr.bf16.mxu0 %v8319_v27  ;;  %6922 = vmatprep.subr.bf16.mxu1 %v8321_v28  ;;  %v8377_v27 = vcombine.high %v526_v21, %v530_v22  ;;  %v533_v28 = vld [vmem:[%s9820_s1 + $0x800] sm:$0xff] }
  0xdc   : > { %v577_v13 = vld [vmem:[%s9820_s1 + $0x960] sm:$0xff] }
  0xdd   : > { %v8423_v18 = vcombine.high %v573_v12, %v577_v13 }
  0xde   : > { %6595 = vmatpush1.bf16.msra.mxu0 %v8318_v0  ;;  %6923 = vmatpush1.bf16.msra.mxu1 %v8320_v34  ;;  %v8376_v0 = vcombine.low %v526_v21, %v530_v22  ;;  %v8383_v34 = vcombine.high %v533_v28, %v537_v29  ;;  %v585_v21 = vld [vmem:[%s9820_s1 + $0x9a0] sm:$0xff]  ;;  %v582_v22 = vld [vmem:[%s9820_s1 + $0x988] sm:$0xff] }
  0xdf   : > { %6596 = vmatprep.subr.bf16.mxu0 %v8327_v35  ;;  %6924 = vmatprep.subr.bf16.mxu1 %v8329_v36  ;;  %v8385_v35 = vcombine.high %v534_v60, %v538_v31  ;;  %v541_v36 = vld [vmem:[%s9820_s1 + $0x840] sm:$0xff] }
  0xe2   : > { %6597 = vmatpush1.bf16.msra.mxu0 %v8326_v41  ;;  %6925 = vmatpush1.bf16.msra.mxu1 %v8328_v42  ;;  %v546_v41 = vld [vmem:[%s9820_s1 + $0x868] sm:$0xff]  ;;  %v8382_v42 = vcombine.low %v533_v28, %v537_v29  ;;  %v589_v29 = vld [vmem:[%s9820_s1 + $0x9c0] sm:$0xff] }
  0xe3   : > { %6598 = vmatprep.subr.bf16.mxu0 %v8335_v43  ;;  %6926 = vmatprep.subr.bf16.mxu1 %v8337_v44  ;;  %v8384_v43 = vcombine.low %v534_v60, %v538_v31  ;;  %v8391_v44 = vcombine.high %v541_v36, %v545_v37  ;;  %v8393_v46 = vcombine.high %v542_v40, %v546_v41  ;;  %v593_v60 = vld [vmem:[%s9820_s1 + $0x9e0] sm:$0xff]  ;;  %v590_v31 = vld [vmem:[%s9820_s1 + $0x9c8] sm:$0xff] }
  0xe6   : > { %6599 = vmatpush1.bf16.msra.mxu0 %v8334_v50  ;;  %6927 = vmatpush1.bf16.msra.mxu1 %v8336_v51  ;;  %v550_v50 = vld [vmem:[%s9820_s1 + $0x888] sm:$0xff] }
  0xe7   : > { %6600 = vmatprep.subr.bf16.mxu0 %v8343_v52  ;;  %6928 = vmatprep.subr.bf16.mxu1 %v8345_v53  ;;  %v554_v51 = vld [vmem:[%s9820_s1 + $0x8a8] sm:$0xff]  ;;  %v8390_v52 = vcombine.low %v541_v36, %v545_v37  ;;  %v8392_v53 = vcombine.low %v542_v40, %v546_v41  ;;  %v597_v37 = vld [vmem:[%s9820_s1 + $0xa00] sm:$0xff] }
  0xe8   : > { %v8401_v56 = vcombine.high %v550_v50, %v554_v51  ;;  %v598_v40 = vld [vmem:[%s9820_s1 + $0xa08] sm:$0xff] }
  0xe9   : > { %v602_v41 = vld [vmem:[%s9820_s1 + $0xa28] sm:$0xff] }
  0xea   : > { %6601 = vmatpush1.bf16.msra.mxu0 %v8342_v59  ;;  %6929 = vmatpush1.bf16.msra.mxu1 %v8344_v61  ;;  %v558_v59 = vld [vmem:[%s9820_s1 + $0x8c8] sm:$0xff] }
  0xeb   : > { %6602 = vmatprep.subr.bf16.mxu0 %v8351_v62  ;;  %6930 = vmatprep.subr.bf16.mxu1 %v8353_v63  ;;  %v562_v61 = vld [vmem:[%s9820_s1 + $0x8e8] sm:$0xff]  ;;  %v8398_v62 = vcombine.low %v549_v47, %v553_v48  ;;  %v8400_v63 = vcombine.low %v550_v50, %v554_v51  ;;  %v605_v47 = vld [vmem:[%s9820_s1 + $0xa40] sm:$0xff] }
  0xec   : > { %v8409_v2 = vcombine.high %v558_v59, %v562_v61  ;;  %v609_v48 = vld [vmem:[%s9820_s1 + $0xa60] sm:$0xff]  ;;  %v606_v50 = vld [vmem:[%s9820_s1 + $0xa48] sm:$0xff] }
  0xed   : > { %v610_v51 = vld [vmem:[%s9820_s1 + $0xa68] sm:$0xff] }
  0xee   : > { %6603 = vmatpush1.bf16.msra.mxu0 %v8350_v5  ;;  %6931 = vmatpush1.bf16.msra.mxu1 %v8352_v6  ;;  %v566_v5 = vld [vmem:[%s9820_s1 + $0x908] sm:$0xff] }
  0xef   : > { %6604 = vmatprep.subr.bf16.mxu0 %v8359_v7  ;;  %6932 = vmatprep.subr.bf16.mxu1 %v8361_v8  ;;  %v570_v6 = vld [vmem:[%s9820_s1 + $0x928] sm:$0xff]  ;;  %v8406_v7 = vcombine.low %v557_v57, %v561_v58  ;;  %v8408_v8 = vcombine.low %v558_v59, %v562_v61  ;;  %v613_v57 = vld [vmem:[%s9820_s1 + $0xa80] sm:$0xff] }
  0xf0   : > { %v8417_v11 = vcombine.high %v566_v5, %v570_v6  ;;  %v617_v58 = vld [vmem:[%s9820_s1 + $0xaa0] sm:$0xff]  ;;  %v614_v59 = vld [vmem:[%s9820_s1 + $0xa88] sm:$0xff] }
  0xf1   : > { %v618_v61 = vld [vmem:[%s9820_s1 + $0xaa8] sm:$0xff] }
  0xf2   : > { %6605 = vmatpush1.bf16.msra.mxu0 %v8358_v14  ;;  %6933 = vmatpush1.bf16.msra.mxu1 %v8360_v15  ;;  %v574_v14 = vld [vmem:[%s9820_s1 + $0x948] sm:$0xff] }
  0xf3   : > { %6606 = vmatprep.subr.bf16.mxu0 %v8367_v16  ;;  %6934 = vmatprep.subr.bf16.mxu1 %v8369_v17  ;;  %v578_v15 = vld [vmem:[%s9820_s1 + $0x968] sm:$0xff]  ;;  %v8414_v16 = vcombine.low %v565_v3, %v569_v4  ;;  %v8416_v17 = vcombine.low %v566_v5, %v570_v6  ;;  %v621_v3 = vld [vmem:[%s9820_s1 + $0xac0] sm:$0xff] }
  0xf4   : > { %v8425_v19 = vcombine.high %v574_v14, %v578_v15  ;;  %v625_v4 = vld [vmem:[%s9820_s1 + $0xae0] sm:$0xff]  ;;  %v622_v5 = vld [vmem:[%s9820_s1 + $0xac8] sm:$0xff] }
  0xf5   : > { %v626_v6 = vld [vmem:[%s9820_s1 + $0xae8] sm:$0xff] }
  0xf6   : > { %6607 = vmatpush1.bf16.msra.mxu0 %v8366_v23  ;;  %6935 = vmatpush1.bf16.msra.mxu1 %v8368_v25  ;;  %v586_v23 = vld [vmem:[%s9820_s1 + $0x9a8] sm:$0xff]  ;;  %v8422_v25 = vcombine.low %v573_v12, %v577_v13  ;;  %v629_v12 = vld [vmem:[%s9820_s1 + $0xb00] sm:$0xff] }
  0xf7   : > { %6608 = vmatprep.subr.bf16.mxu0 %v8375_v26  ;;  %6936 = vmatprep.subr.bf16.mxu1 %v8377_v27  ;;  %v8424_v26 = vcombine.low %v574_v14, %v578_v15  ;;  %v8431_v27 = vcombine.high %v581_v20, %v585_v21  ;;  %v8433_v28 = vcombine.high %v582_v22, %v586_v23  ;;  %v633_v13 = vld [vmem:[%s9820_s1 + $0xb20] sm:$0xff]  ;;  %v630_v14 = vld [vmem:[%s9820_s1 + $0xb08] sm:$0xff] }
  0xf8   : > { %v634_v15 = vld [vmem:[%s9820_s1 + $0xb28] sm:$0xff] }
  0xfa   : > { %6609 = vmatpush1.bf16.msra.mxu0 %v8374_v32  ;;  %6937 = vmatpush1.bf16.msra.mxu1 %v8376_v0  ;;  %v594_v32 = vld [vmem:[%s9820_s1 + $0x9e8] sm:$0xff]  ;;  %v8430_v0 = vcombine.low %v581_v20, %v585_v21  ;;  %v637_v20 = vld [vmem:[%s9820_s1 + $0xb40] sm:$0xff] }
  0xfb   : > { %6619 = vmatprep.subr.bf16.mxu0 %v8383_v34  ;;  %6947 = vmatprep.subr.bf16.mxu1 %v8385_v35  ;;  %v8432_v34 = vcombine.low %v582_v22, %v586_v23  ;;  %v8439_v35 = vcombine.high %v589_v29, %v593_v60  ;;  %v8441_v36 = vcombine.high %v590_v31, %v594_v32  ;;  %v641_v21 = vld [vmem:[%s9820_s1 + $0xb60] sm:$0xff]  ;;  %v638_v22 = vld [vmem:[%s9820_s1 + $0xb48] sm:$0xff] }
  0xfc   : > { %v642_v23 = vld [vmem:[%s9820_s1 + $0xb68] sm:$0xff] }
  0xfd   : > { %6611 = vmatmul.mubr.bf16.vlgmr.msra.gmra.mrb[0].mxu0 %v10021_v39  ;;  %6939 = vmatmul.mubr.bf16.vlgmr.msra.gmra.mrb[0].mxu1 %v10021_v39 }
  0xfe   : > { %6620 = vmatpush1.bf16.msra.mxu0 %v8382_v42  ;;  %6948 = vmatpush1.bf16.msra.mxu1 %v8384_v43  ;;  %v8438_v42 = vcombine.low %v589_v29, %v593_v60  ;;  %v8440_v43 = vcombine.low %v590_v31, %v594_v32  ;;  %v645_v29 = vld [vmem:[%s9820_s1 + $0xb80] sm:$0xff]  ;;  %v646_v31 = vld [vmem:[%s9820_s1 + $0xb88] sm:$0xff] }
  0xff   : > { %6621 = vmatprep.subr.bf16.mxu0 %v8391_v44  ;;  %6949 = vmatprep.subr.bf16.mxu1 %v8393_v46  ;;  %v8447_v44 = vcombine.high %v597_v37, %v601_v38  ;;  %v8449_v46 = vcombine.high %v598_v40, %v602_v41  ;;  %v649_v60 = vld [vmem:[%s9820_s1 + $0xba0] sm:$0xff]  ;;  %v650_v32 = vld [vmem:[%s9820_s1 + $0xba8] sm:$0xff] }
 0x100   : > { %6651 = vmatprep.mubr.bf16.mxu0 %v10028_v49  ;;  %6979 = vmatprep.mubr.bf16.mxu1 %v10028_v49 }
 0x102   : > { %6622 = vmatpush1.bf16.msra.mxu0 %v8390_v52  ;;  %6950 = vmatpush1.bf16.msra.mxu1 %v8392_v53  ;;  %v8446_v52 = vcombine.low %v597_v37, %v601_v38  ;;  %v8448_v53 = vcombine.low %v598_v40, %v602_v41  ;;  %v653_v37 = vld [vmem:[%s9820_s1 + $0xbc0] sm:$0xff]  ;;  %v654_v40 = vld [vmem:[%s9820_s1 + $0xbc8] sm:$0xff] }
 0x103   : > { %6623 = vmatprep.subr.bf16.mxu0 %v8399_v55  ;;  %6951 = vmatprep.subr.bf16.mxu1 %v8401_v56  ;;  %v8455_v55 = vcombine.high %v605_v47, %v609_v48  ;;  %v8457_v56 = vcombine.high %v606_v50, %v610_v51  ;;  %v657_v38 = vld [vmem:[%s9820_s1 + $0xbe0] sm:$0xff]  ;;  %v658_v41 = vld [vmem:[%s9820_s1 + $0xbe8] sm:$0xff] }
 0x106   : > { %6624 = vmatpush1.bf16.msra.mxu0 %v8398_v62  ;;  %6952 = vmatpush1.bf16.msra.mxu1 %v8400_v63  ;;  %v8454_v62 = vcombine.low %v605_v47, %v609_v48  ;;  %v8456_v63 = vcombine.low %v606_v50, %v610_v51  ;;  %v661_v47 = vld [vmem:[%s9820_s1 + $0xc00] sm:$0xff]  ;;  %v662_v50 = vld [vmem:[%s9820_s1 + $0xc08] sm:$0xff] }
 0x107   : > { %6625 = vmatprep.subr.bf16.mxu0 %v8407_v1  ;;  %6953 = vmatprep.subr.bf16.mxu1 %v8409_v2  ;;  %v8463_v1 = vcombine.high %v613_v57, %v617_v58  ;;  %v8465_v2 = vcombine.high %v614_v59, %v618_v61  ;;  %v665_v48 = vld [vmem:[%s9820_s1 + $0xc20] sm:$0xff]  ;;  %v666_v51 = vld [vmem:[%s9820_s1 + $0xc28] sm:$0xff] }
 0x10a   : > { %6626 = vmatpush1.bf16.msra.mxu0 %v8406_v7  ;;  %6954 = vmatpush1.bf16.msra.mxu1 %v8408_v8  ;;  %v8462_v7 = vcombine.low %v613_v57, %v617_v58  ;;  %v8464_v8 = vcombine.low %v614_v59, %v618_v61  ;;  %v669_v57 = vld [vmem:[%s9820_s1 + $0xc40] sm:$0xff]  ;;  %v10096_v59 = vrot.slane %v10011_v30, %v9876_v54  ;;  %v670_v61 = vld [vmem:[%s9820_s1 + $0xc48] sm:$0xff] }
 0x10b   : > { %6627 = vmatprep.subr.bf16.mxu0 %v8415_v9  ;;  %6955 = vmatprep.subr.bf16.mxu1 %v8417_v11  ;;  %v8471_v9 = vcombine.high %v621_v3, %v625_v4  ;;  %v8473_v11 = vcombine.high %v622_v5, %v626_v6  ;;  %v673_v58 = vld [vmem:[%s9820_s1 + $0xc60] sm:$0xff]  ;;  %v678_v30 = vld [vmem:[%s9820_s1 + $0xc88] sm:$0xff] }
 0x10e   : > { %6628 = vmatpush1.bf16.msra.mxu0 %v8414_v16  ;;  %6956 = vmatpush1.bf16.msra.mxu1 %v8416_v17  ;;  %v8470_v16 = vcombine.low %v621_v3, %v625_v4  ;;  %v8472_v17 = vcombine.low %v622_v5, %v626_v6  ;;  %v677_v4 = vld [vmem:[%s9820_s1 + $0xc80] sm:$0xff]  ;;  %v10104_v6 = vcombine.high %v10028_v49, %v10028_v49 }
 0x10f   : > { %6629 = vmatprep.subr.bf16.mxu0 %v8423_v18  ;;  %6957 = vmatprep.subr.bf16.mxu1 %v8425_v19  ;;  %v8479_v18 = vcombine.high %v629_v12, %v633_v13  ;;  %v8481_v19 = vcombine.high %v630_v14, %v634_v15  ;;  %v681_v5 = vld [vmem:[%s9820_s1 + $0xca0] sm:$0xff] }
 0x112   : > { %6630 = vmatpush1.bf16.msra.mxu0 %v8422_v25  ;;  %6958 = vmatpush1.bf16.msra.mxu1 %v8424_v26  ;;  %v8478_v25 = vcombine.low %v629_v12, %v633_v13  ;;  %v8480_v26 = vcombine.low %v630_v14, %v634_v15  ;;  %v685_v13 = vld [vmem:[%s9820_s1 + $0xcc0] sm:$0xff]  ;;  %v686_v15 = vld [vmem:[%s9820_s1 + $0xcc8] sm:$0xff] }
 0x113   : > { %6631 = vmatprep.subr.bf16.mxu0 %v8431_v27  ;;  %6959 = vmatprep.subr.bf16.mxu1 %v8433_v28  ;;  %v8487_v27 = vcombine.high %v637_v20, %v641_v21  ;;  %v8489_v28 = vcombine.high %v638_v22, %v642_v23  ;;  %v689_v14 = vld [vmem:[%s9820_s1 + $0xce0] sm:$0xff] }
 0x116   : > { %6632 = vmatpush1.bf16.msra.mxu0 %v8430_v0  ;;  %6960 = vmatpush1.bf16.msra.mxu1 %v8432_v34  ;;  %v8486_v0 = vcombine.low %v637_v20, %v641_v21  ;;  %v8488_v34 = vcombine.low %v638_v22, %v642_v23  ;;  %v693_v21 = vld [vmem:[%s9820_s1 + $0xd00] sm:$0xff]  ;;  %v694_v23 = vld [vmem:[%s9820_s1 + $0xd08] sm:$0xff] }
 0x117   : > { %6633 = vmatprep.subr.bf16.mxu0 %v8439_v35  ;;  %6961 = vmatprep.subr.bf16.mxu1 %v8441_v36  ;;  %v8495_v35 = vcombine.high %v645_v29, %v649_v60  ;;  %v8497_v36 = vcombine.high %v646_v31, %v650_v32  ;;  %v697_v22 = vld [vmem:[%s9820_s1 + $0xd20] sm:$0xff] }
 0x11a   : > { %6634 = vmatpush1.bf16.msra.mxu0 %v8438_v42  ;;  %6962 = vmatpush1.bf16.msra.mxu1 %v8440_v43  ;;  %v8494_v42 = vcombine.low %v645_v29, %v649_v60  ;;  %v8496_v43 = vcombine.low %v646_v31, %v650_v32  ;;  %v701_v60 = vld [vmem:[%s9820_s1 + $0xd40] sm:$0xff]  ;;  %v702_v32 = vld [vmem:[%s9820_s1 + $0xd48] sm:$0xff] }
 0x11b   : > { %6635 = vmatprep.subr.bf16.mxu0 %v8447_v44  ;;  %6963 = vmatprep.subr.bf16.mxu1 %v8449_v46  ;;  %v8503_v44 = vcombine.high %v653_v37, %v657_v38  ;;  %v8505_v46 = vcombine.high %v654_v40, %v658_v41  ;;  %v705_v31 = vld [vmem:[%s9820_s1 + $0xd60] sm:$0xff] }
 0x11e   : > { %6636 = vmatpush1.bf16.msra.mxu0 %v8446_v52  ;;  %6964 = vmatpush1.bf16.msra.mxu1 %v8448_v53  ;;  %v8502_v52 = vcombine.low %v653_v37, %v657_v38  ;;  %v8504_v53 = vcombine.low %v654_v40, %v658_v41  ;;  %v709_v38 = vld [vmem:[%s9820_s1 + $0xd80] sm:$0xff]  ;;  %v710_v41 = vld [vmem:[%s9820_s1 + $0xd88] sm:$0xff] }
 0x11f   : > { %6637 = vmatprep.subr.bf16.mxu0 %v8455_v55  ;;  %6965 = vmatprep.subr.bf16.mxu1 %v8457_v56  ;;  %v8511_v55 = vcombine.high %v661_v47, %v665_v48  ;;  %v8513_v56 = vcombine.high %v662_v50, %v666_v51  ;;  %v713_v40 = vld [vmem:[%s9820_s1 + $0xda0] sm:$0xff] }
 0x122   : > { %6638 = vmatpush1.bf16.msra.mxu0 %v8454_v62  ;;  %6966 = vmatpush1.bf16.msra.mxu1 %v8456_v63  ;;  %v674_v62 = vld [vmem:[%s9820_s1 + $0xc68] sm:$0xff]  ;;  %v8510_v63 = vcombine.low %v661_v47, %v665_v48  ;;  %v717_v48 = vld [vmem:[%s9820_s1 + $0xdc0] sm:$0xff] }
 0x123   : > { %6639 = vmatprep.subr.bf16.mxu0 %v8463_v1  ;;  %6967 = vmatprep.subr.bf16.mxu1 %v8465_v2  ;;  %v8512_v1 = vcombine.low %v662_v50, %v666_v51  ;;  %v8519_v2 = vcombine.high %v669_v57, %v673_v58  ;;  %v8521_v3 = vcombine.high %v670_v61, %v674_v62  ;;  %v721_v50 = vld [vmem:[%s9820_s1 + $0xde0] sm:$0xff]  ;;  %v718_v51 = vld [vmem:[%s9820_s1 + $0xdc8] sm:$0xff] }
 0x126   : > { %6640 = vmatpush1.bf16.msra.mxu0 %v8462_v7  ;;  %6968 = vmatpush1.bf16.msra.mxu1 %v8464_v8  ;;  %v682_v7 = vld [vmem:[%s9820_s1 + $0xca8] sm:$0xff]  ;;  %v8518_v8 = vcombine.low %v669_v57, %v673_v58  ;;  %v725_v58 = vld [vmem:[%s9820_s1 + $0xe00] sm:$0xff] }
 0x127   : > { %6641 = vmatprep.subr.bf16.mxu0 %v8471_v9  ;;  %6969 = vmatprep.subr.bf16.mxu1 %v8473_v11  ;;  %v8520_v9 = vcombine.low %v670_v61, %v674_v62  ;;  %v8527_v11 = vcombine.high %v677_v4, %v681_v5  ;;  %v8529_v12 = vcombine.high %v678_v30, %v682_v7  ;;  %v729_v61 = vld [vmem:[%s9820_s1 + $0xe20] sm:$0xff]  ;;  %v726_v62 = vld [vmem:[%s9820_s1 + $0xe08] sm:$0xff] }
 0x12a   : > { %6642 = vmatpush1.bf16.msra.mxu0 %v8470_v16  ;;  %6970 = vmatpush1.bf16.msra.mxu1 %v8472_v17  ;;  %v690_v16 = vld [vmem:[%s9820_s1 + $0xce8] sm:$0xff]  ;;  %v8526_v17 = vcombine.low %v677_v4, %v681_v5  ;;  %v733_v5 = vld [vmem:[%s9820_s1 + $0xe40] sm:$0xff] }
 0x12b   : > { %6643 = vmatprep.subr.bf16.mxu0 %v8479_v18  ;;  %6971 = vmatprep.subr.bf16.mxu1 %v8481_v19  ;;  %v8528_v18 = vcombine.low %v678_v30, %v682_v7  ;;  %v8535_v19 = vcombine.high %v685_v13, %v689_v14  ;;  %v8537_v20 = vcombine.high %v686_v15, %v690_v16  ;;  %v737_v30 = vld [vmem:[%s9820_s1 + $0xe60] sm:$0xff]  ;;  %v734_v7 = vld [vmem:[%s9820_s1 + $0xe48] sm:$0xff] }
 0x12e   : > { %6644 = vmatpush1.bf16.msra.mxu0 %v8478_v25  ;;  %6972 = vmatpush1.bf16.msra.mxu1 %v8480_v26  ;;  %v698_v25 = vld [vmem:[%s9820_s1 + $0xd28] sm:$0xff]  ;;  %v8534_v26 = vcombine.low %v685_v13, %v689_v14  ;;  %v741_v14 = vld [vmem:[%s9820_s1 + $0xe80] sm:$0xff] }
 0x12f   : > { %6645 = vmatprep.subr.bf16.mxu0 %v8487_v27  ;;  %6973 = vmatprep.subr.bf16.mxu1 %v8489_v28  ;;  %v8536_v27 = vcombine.low %v686_v15, %v690_v16  ;;  %v8543_v28 = vcombine.high %v693_v21, %v697_v22  ;;  %v8545_v29 = vcombine.high %v694_v23, %v698_v25  ;;  %v745_v15 = vld [vmem:[%s9820_s1 + $0xea0] sm:$0xff]  ;;  %v742_v16 = vld [vmem:[%s9820_s1 + $0xe88] sm:$0xff] }
 0x132   : > { %6646 = vmatpush1.bf16.msra.mxu0 %v8486_v0  ;;  %6974 = vmatpush1.bf16.msra.mxu1 %v8488_v34  ;;  %v706_v0 = vld [vmem:[%s9820_s1 + $0xd68] sm:$0xff]  ;;  %v8542_v34 = vcombine.low %v693_v21, %v697_v22  ;;  %v749_v22 = vld [vmem:[%s9820_s1 + $0xec0] sm:$0xff] }
 0x133   : > { %6647 = vmatprep.subr.bf16.mxu0 %v8495_v35  ;;  %6975 = vmatprep.subr.bf16.mxu1 %v8497_v36  ;;  %v8544_v35 = vcombine.low %v694_v23, %v698_v25  ;;  %v8551_v36 = vcombine.high %v701_v60, %v705_v31  ;;  %v8553_v37 = vcombine.high %v702_v32, %v706_v0  ;;  %v753_v23 = vld [vmem:[%s9820_s1 + $0xee0] sm:$0xff]  ;;  %v750_v25 = vld [vmem:[%s9820_s1 + $0xec8] sm:$0xff] }
 0x136   : > { %6648 = vmatpush1.bf16.msra.mxu0 %v8494_v42  ;;  %6976 = vmatpush1.bf16.msra.mxu1 %v8496_v43  ;;  %v714_v42 = vld [vmem:[%s9820_s1 + $0xda8] sm:$0xff]  ;;  %v8550_v43 = vcombine.low %v701_v60, %v705_v31  ;;  %v757_v31 = vld [vmem:[%s9820_s1 + $0xf00] sm:$0xff] }
 0x137   : > { %6649 = vmatprep.subr.bf16.mxu0 %v8503_v44  ;;  %6977 = vmatprep.subr.bf16.mxu1 %v8505_v46  ;;  %v8552_v44 = vcombine.low %v702_v32, %v706_v0  ;;  %v8559_v46 = vcombine.high %v709_v38, %v713_v40  ;;  %v8561_v47 = vcombine.high %v710_v41, %v714_v42  ;;  %v761_v32 = vld [vmem:[%s9820_s1 + $0xf20] sm:$0xff]  ;;  %v758_v0 = vld [vmem:[%s9820_s1 + $0xf08] sm:$0xff] }
 0x13a   : > { %6650 = vmatpush1.bf16.msra.mxu0 %v8502_v52  ;;  %6978 = vmatpush1.bf16.msra.mxu1 %v8504_v53  ;;  %v722_v52 = vld [vmem:[%s9820_s1 + $0xde8] sm:$0xff]  ;;  %v8558_v53 = vcombine.low %v709_v38, %v713_v40  ;;  %v765_v40 = vld [vmem:[%s9820_s1 + $0xf40] sm:$0xff] }
 0x13b   : > { %6660 = vmatprep.subr.bf16.mxu0 %v8511_v55  ;;  %6988 = vmatprep.subr.bf16.mxu1 %v8513_v56  ;;  %v8560_v55 = vcombine.low %v710_v41, %v714_v42  ;;  %v8567_v56 = vcombine.high %v717_v48, %v721_v50  ;;  %v8569_v57 = vcombine.high %v718_v51, %v722_v52  ;;  %v769_v41 = vld [vmem:[%s9820_s1 + $0xf60] sm:$0xff]  ;;  %v766_v42 = vld [vmem:[%s9820_s1 + $0xf48] sm:$0xff] }
 0x13d   : > { %6652 = vmatmul.mubr.bf16.vlgmr.msra.gmra.mrb[0].mxu0 %v10096_v59  ;;  %6980 = vmatmul.mubr.bf16.vlgmr.msra.gmra.mrb[0].mxu1 %v10096_v59 }
 0x13e   : > { %6661 = vmatpush1.bf16.msra.mxu0 %v8510_v63  ;;  %6989 = vmatpush1.bf16.msra.mxu1 %v8512_v1  ;;  %v730_v63 = vld [vmem:[%s9820_s1 + $0xe28] sm:$0xff]  ;;  %v8566_v1 = vcombine.low %v717_v48, %v721_v50  ;;  %v773_v50 = vld [vmem:[%s9820_s1 + $0xf80] sm:$0xff] }
 0x13f   : > { %6662 = vmatprep.subr.bf16.mxu0 %v8519_v2  ;;  %6990 = vmatprep.subr.bf16.mxu1 %v8521_v3  ;;  %v8568_v2 = vcombine.low %v718_v51, %v722_v52  ;;  %v8575_v3 = vcombine.high %v725_v58, %v729_v61  ;;  %v8577_v4 = vcombine.high %v726_v62, %v730_v63  ;;  %v777_v51 = vld [vmem:[%s9820_s1 + $0xfa0] sm:$0xff]  ;;  %v774_v52 = vld [vmem:[%s9820_s1 + $0xf88] sm:$0xff] }
 0x140   : > { %6692 = vmatprep.mubr.bf16.mxu0 %v10104_v6  ;;  %7020 = vmatprep.mubr.bf16.mxu1 %v10104_v6 }
 0x142   : > { %6663 = vmatpush1.bf16.msra.mxu0 %v8518_v8  ;;  %6991 = vmatpush1.bf16.msra.mxu1 %v8520_v9  ;;  %v738_v8 = vld [vmem:[%s9820_s1 + $0xe68] sm:$0xff]  ;;  %v8574_v9 = vcombine.low %v725_v58, %v729_v61  ;;  %v781_v61 = vld [vmem:[%s9820_s1 + $0xfc0] sm:$0xff] }
 0x143   : > { %6664 = vmatprep.subr.bf16.mxu0 %v8527_v11  ;;  %6992 = vmatprep.subr.bf16.mxu1 %v8529_v12  ;;  %v8576_v11 = vcombine.low %v726_v62, %v730_v63  ;;  %v8583_v12 = vcombine.high %v733_v5, %v737_v30  ;;  %v8585_v13 = vcombine.high %v734_v7, %v738_v8  ;;  %v785_v62 = vld [vmem:[%s9820_s1 + $0xfe0] sm:$0xff]  ;;  %v782_v63 = vld [vmem:[%s9820_s1 + $0xfc8] sm:$0xff] }
 0x146   : > { %6665 = vmatpush1.bf16.msra.mxu0 %v8526_v17  ;;  %6993 = vmatpush1.bf16.msra.mxu1 %v8528_v18  ;;  %v746_v17 = vld [vmem:[%s9820_s1 + $0xea8] sm:$0xff]  ;;  %v8582_v18 = vcombine.low %v733_v5, %v737_v30  ;;  %v8631_v5 = vcombine.high %v781_v61, %v785_v62 }
 0x147   : > { %6666 = vmatprep.subr.bf16.mxu0 %v8535_v19  ;;  %6994 = vmatprep.subr.bf16.mxu1 %v8537_v20  ;;  %v8584_v19 = vcombine.low %v734_v7, %v738_v8  ;;  %v8591_v20 = vcombine.high %v741_v14, %v745_v15  ;;  %v8593_v21 = vcombine.high %v742_v16, %v746_v17  ;;  %v789_v7 = vld [vmem:[%s9820_s1 + $0x1000] sm:$0xff] }
 0x148   : > { %v793_v8 = vld [vmem:[%s9820_s1 + $0x1020] sm:$0xff] }
 0x14a   : > { %6667 = vmatpush1.bf16.msra.mxu0 %v8534_v26  ;;  %6995 = vmatpush1.bf16.msra.mxu1 %v8536_v27  ;;  %v754_v26 = vld [vmem:[%s9820_s1 + $0xee8] sm:$0xff]  ;;  %v8590_v27 = vcombine.low %v741_v14, %v745_v15  ;;  %v8639_v15 = vcombine.high %v789_v7, %v793_v8 }
 0x14b   : > { %6668 = vmatprep.subr.bf16.mxu0 %v8543_v28  ;;  %6996 = vmatprep.subr.bf16.mxu1 %v8545_v29  ;;  %v8592_v28 = vcombine.low %v742_v16, %v746_v17  ;;  %v8599_v29 = vcombine.high %v749_v22, %v753_v23  ;;  %v8601_v60 = vcombine.high %v750_v25, %v754_v26  ;;  %v797_v17 = vld [vmem:[%s9820_s1 + $0x1040] sm:$0xff] }
 0x14e   : > { %6669 = vmatpush1.bf16.msra.mxu0 %v8542_v34  ;;  %6997 = vmatpush1.bf16.msra.mxu1 %v8544_v35  ;;  %v762_v34 = vld [vmem:[%s9820_s1 + $0xf28] sm:$0xff]  ;;  %v8598_v35 = vcombine.low %v749_v22, %v753_v23  ;;  %v8638_v23 = vcombine.low %v789_v7, %v793_v8 }
 0x14f   : > { %6670 = vmatprep.subr.bf16.mxu0 %v8551_v36  ;;  %6998 = vmatprep.subr.bf16.mxu1 %v8553_v37  ;;  %v8600_v36 = vcombine.low %v750_v25, %v754_v26  ;;  %v8607_v37 = vcombine.high %v757_v31, %v761_v32  ;;  %v8609_v38 = vcombine.high %v758_v0, %v762_v34  ;;  %v802_v22 = vld [vmem:[%s9820_s1 + $0x1068] sm:$0xff] }
 0x150   : > { %v838_v7 = vld [vmem:[%s9820_s1 + $0x1188] sm:$0xff] }
 0x151   : > { %v842_v8 = vld [vmem:[%s9820_s1 + $0x11a8] sm:$0xff] }
 0x152   : > { %6671 = vmatpush1.bf16.msra.mxu0 %v8550_v43  ;;  %6999 = vmatpush1.bf16.msra.mxu1 %v8552_v44  ;;  %v770_v43 = vld [vmem:[%s9820_s1 + $0xf68] sm:$0xff]  ;;  %v8606_v44 = vcombine.low %v757_v31, %v761_v32 }
 0x153   : > { %6672 = vmatprep.subr.bf16.mxu0 %v8559_v46  ;;  %7000 = vmatprep.subr.bf16.mxu1 %v8561_v47  ;;  %v8608_v46 = vcombine.low %v758_v0, %v762_v34  ;;  %v8615_v47 = vcombine.high %v765_v40, %v769_v41  ;;  %v8617_v48 = vcombine.high %v766_v42, %v770_v43  ;;  %v806_v31 = vld [vmem:[%s9820_s1 + $0x1088] sm:$0xff] }
 0x154   : > { %v810_v32 = vld [vmem:[%s9820_s1 + $0x10a8] sm:$0xff] }
 0x156   : > { %6673 = vmatpush1.bf16.msra.mxu0 %v8558_v53  ;;  %7001 = vmatpush1.bf16.msra.mxu1 %v8560_v55  ;;  %v778_v53 = vld [vmem:[%s9820_s1 + $0xfa8] sm:$0xff]  ;;  %v8614_v55 = vcombine.low %v765_v40, %v769_v41 }
 0x157   : > { %6674 = vmatprep.subr.bf16.mxu0 %v8567_v56  ;;  %7002 = vmatprep.subr.bf16.mxu1 %v8569_v57  ;;  %v8616_v56 = vcombine.low %v766_v42, %v770_v43  ;;  %v8623_v57 = vcombine.high %v773_v50, %v777_v51  ;;  %v8625_v58 = vcombine.high %v774_v52, %v778_v53  ;;  %v814_v40 = vld [vmem:[%s9820_s1 + $0x10c8] sm:$0xff] }
 0x158   : > { %v818_v41 = vld [vmem:[%s9820_s1 + $0x10e8] sm:$0xff]  ;;  %v8656_v43 = vcombine.low %v806_v31, %v810_v32 }
 0x15a   : > { %6675 = vmatpush1.bf16.msra.mxu0 %v8566_v1  ;;  %7003 = vmatpush1.bf16.msra.mxu1 %v8568_v2  ;;  %v786_v1 = vld [vmem:[%s9820_s1 + $0xfe8] sm:$0xff]  ;;  %v10165_v2 = vld [vmem:[%s9842_s23 + $0x8] sm:$0xff] }
 0x15b   : > { %6676 = vmatprep.subr.bf16.mxu0 %v8575_v3  ;;  %7004 = vmatprep.subr.bf16.mxu1 %v8577_v4  ;;  %v8622_v3 = vcombine.low %v773_v50, %v777_v51  ;;  %v8624_v4 = vcombine.low %v774_v52, %v778_v53  ;;  %v8633_v30 = vcombine.high %v782_v63, %v786_v1  ;;  %v822_v50 = vld [vmem:[%s9820_s1 + $0x1108] sm:$0xff] }
 0x15c   : > { %v8632_v14 = vcombine.low %v782_v63, %v786_v1  ;;  %v826_v51 = vld [vmem:[%s9820_s1 + $0x1128] sm:$0xff]  ;;  %v8664_v53 = vcombine.low %v814_v40, %v818_v41 }
 0x15d   : > { %v8672_v1 = vcombine.low %v822_v50, %v826_v51 }
 0x15e   : > { %6677 = vmatpush1.bf16.msra.mxu0 %v8574_v9  ;;  %7005 = vmatpush1.bf16.msra.mxu1 %v8576_v11  ;;  %v10171_v9 = vrot.slane %v10165_v2, %v9876_v54  ;;  %v790_v11 = vld [vmem:[%s9820_s1 + $0x1008] sm:$0xff] }
 0x15f   : > { %6678 = vmatprep.subr.bf16.mxu0 %v8583_v12  ;;  %7006 = vmatprep.subr.bf16.mxu1 %v8585_v13  ;;  %v794_v12 = vld [vmem:[%s9820_s1 + $0x1028] sm:$0xff]  ;;  %v8630_v13 = vcombine.low %v781_v61, %v785_v62 }
 0x160   : > { %v8641_v16 = vcombine.high %v790_v11, %v794_v12  ;;  %v8640_v25 = vcombine.low %v790_v11, %v794_v12  ;;  %v830_v61 = vld [vmem:[%s9820_s1 + $0x1148] sm:$0xff] }
 0x161   : > { %v834_v62 = vld [vmem:[%s9820_s1 + $0x1168] sm:$0xff] }
 0x162   : > { %6679 = vmatpush1.bf16.msra.mxu0 %v8582_v18  ;;  %7007 = vmatpush1.bf16.msra.mxu1 %v8584_v19  ;;  %v801_v18 = vld [vmem:[%s9820_s1 + $0x1060] sm:$0xff]  ;;  %v1367_v19 = vcombine.high %v10171_v9, %v10171_v9  ;;  %v8680_v12 = vcombine.low %v830_v61, %v834_v62 }
 0x163   : > { %6680 = vmatprep.subr.bf16.mxu0 %v8591_v20  ;;  %7008 = vmatprep.subr.bf16.mxu1 %v8593_v21  ;;  %v10181_v20 = vcombine.high %v10096_v59, %v10096_v59  ;;  %v798_v21 = vld [vmem:[%s9820_s1 + $0x1048] sm:$0xff]  ;;  %v8647_v26 = vcombine.high %v797_v17, %v801_v18  ;;  %v8646_v0 = vcombine.low %v797_v17, %v801_v18 }
 0x164   : > { %v8648_v34 = vcombine.low %v798_v21, %v802_v22  ;;  %v846_v17 = vld [vmem:[%s9820_s1 + $0x11c8] sm:$0xff] }
 0x165   : > { %v850_v18 = vld [vmem:[%s9820_s1 + $0x11e8] sm:$0xff] }
 0x166   : > { %6681 = vmatpush1.bf16.msra.mxu0 %v8590_v27  ;;  %7009 = vmatpush1.bf16.msra.mxu1 %v8592_v28  ;;  %v8649_v27 = vcombine.high %v798_v21, %v802_v22  ;;  %v805_v28 = vld [vmem:[%s9820_s1 + $0x1080] sm:$0xff]  ;;  %v8688_v21 = vcombine.low %v838_v7, %v842_v8 }
 0x167   : > { %6682 = vmatprep.subr.bf16.mxu0 %v8599_v29  ;;  %7010 = vmatprep.subr.bf16.mxu1 %v8601_v60  ;;  %v809_v29 = vld [vmem:[%s9820_s1 + $0x10a0] sm:$0xff]  ;;  %v10188_v60 = vrot.slane %v1367_v19, %v9876_v54 }
 0x168   : > { %v8654_v42 = vcombine.low %v805_v28, %v809_v29 }
 0x16a   : > { %6683 = vmatpush1.bf16.msra.mxu0 %v8598_v35  ;;  %7011 = vmatpush1.bf16.msra.mxu1 %v8600_v36  ;;  %v8655_v35 = vcombine.high %v805_v28, %v809_v29  ;;  %v8657_v36 = vcombine.high %v806_v31, %v810_v32  ;;  %v858_v28 = vld [vmem:[%s9820_s1 + $0x1228] sm:$0xff]  ;;  %v8696_v31 = vcombine.low %v846_v17, %v850_v18 }
 0x16b   : > { %6684 = vmatprep.subr.bf16.mxu0 %v8607_v37  ;;  %7012 = vmatprep.subr.bf16.mxu1 %v8609_v38  ;;  %v813_v37 = vld [vmem:[%s9820_s1 + $0x10c0] sm:$0xff] }
 0x16c   : > { %v817_v38 = vld [vmem:[%s9820_s1 + $0x10e0] sm:$0xff] }
 0x16d   : > { %v8662_v52 = vcombine.low %v813_v37, %v817_v38 }
 0x16e   : > { %6685 = vmatpush1.bf16.msra.mxu0 %v8606_v44  ;;  %7013 = vmatpush1.bf16.msra.mxu1 %v8608_v46  ;;  %v8663_v44 = vcombine.high %v813_v37, %v817_v38  ;;  %v8665_v46 = vcombine.high %v814_v40, %v818_v41  ;;  %v866_v37 = vld [vmem:[%s9820_s1 + $0x1268] sm:$0xff] }
 0x16f   : > { %6686 = vmatprep.subr.bf16.mxu0 %v8615_v47  ;;  %7014 = vmatprep.subr.bf16.mxu1 %v8617_v48  ;;  %v821_v47 = vld [vmem:[%s9820_s1 + $0x1100] sm:$0xff] }
 0x170   : > { %v825_v48 = vld [vmem:[%s9820_s1 + $0x1120] sm:$0xff] }
 0x171   : > { %v8670_v63 = vcombine.low %v821_v47, %v825_v48 }
 0x172   : > { %6687 = vmatpush1.bf16.msra.mxu0 %v8614_v55  ;;  %7015 = vmatpush1.bf16.msra.mxu1 %v8616_v56  ;;  %v8671_v55 = vcombine.high %v821_v47, %v825_v48  ;;  %v8673_v56 = vcombine.high %v822_v50, %v826_v51  ;;  %v874_v47 = vld [vmem:[%s9820_s1 + $0x12a8] sm:$0xff] }
 0x173   : > { %6688 = vmatprep.subr.bf16.mxu0 %v8623_v57  ;;  %7016 = vmatprep.subr.bf16.mxu1 %v8625_v58  ;;  %v829_v57 = vld [vmem:[%s9820_s1 + $0x1140] sm:$0xff] }
 0x174   : > { %v833_v58 = vld [vmem:[%s9820_s1 + $0x1160] sm:$0xff] }
 0x175   : > { %v8678_v11 = vcombine.low %v829_v57, %v833_v58 }
 0x176   : > { %6689 = vmatpush1.bf16.msra.mxu0 %v8622_v3  ;;  %7017 = vmatpush1.bf16.msra.mxu1 %v8624_v4  ;;  %v8679_v3 = vcombine.high %v829_v57, %v833_v58  ;;  %v8681_v4 = vcombine.high %v830_v61, %v834_v62  ;;  %v882_v57 = vld [vmem:[%s9820_s1 + $0x12e8] sm:$0xff] }
 0x177   : > { %6690 = vmatprep.subr.bf16.mxu0 %v8631_v5  ;;  %7018 = vmatprep.subr.bf16.mxu1 %v8633_v30  ;;  %v837_v5 = vld [vmem:[%s9820_s1 + $0x1180] sm:$0xff] }
 0x178   : > { %v841_v30 = vld [vmem:[%s9820_s1 + $0x11a0] sm:$0xff] }
 0x179   : > { %v8686_v19 = vcombine.low %v837_v5, %v841_v30 }
 0x17a   : > { %6691 = vmatpush1.bf16.msra.mxu0 %v8630_v13  ;;  %7019 = vmatpush1.bf16.msra.mxu1 %v8632_v14  ;;  %v8687_v13 = vcombine.high %v837_v5, %v841_v30  ;;  %v8689_v14 = vcombine.high %v838_v7, %v842_v8  ;;  %v890_v5 = vld [vmem:[%s9820_s1 + $0x1328] sm:$0xff] }
 0x17b   : > { %6701 = vmatprep.subr.bf16.mxu0 %v8639_v15  ;;  %7029 = vmatprep.subr.bf16.mxu1 %v8641_v16  ;;  %v845_v15 = vld [vmem:[%s9820_s1 + $0x11c0] sm:$0xff] }
 0x17c   : > { %v849_v16 = vld [vmem:[%s9820_s1 + $0x11e0] sm:$0xff] }
 0x17d   : > { %6693 = vmatmul.mubr.bf16.vlgmr.msra.gmra.mrb[0].mxu0 %v10181_v20  ;;  %7021 = vmatmul.mubr.bf16.vlgmr.msra.gmra.mrb[0].mxu1 %v10181_v20  ;;  %v8695_v22 = vcombine.high %v845_v15, %v849_v16  ;;  %v8694_v29 = vcombine.low %v845_v15, %v849_v16  ;;  %v898_v15 = vld [vmem:[%s9820_s1 + $0x1368] sm:$0xff] }
 0x17e   : > { %6702 = vmatpush1.bf16.msra.mxu0 %v8638_v23  ;;  %7030 = vmatpush1.bf16.msra.mxu1 %v8640_v25  ;;  %v8697_v23 = vcombine.high %v846_v17, %v850_v18  ;;  %v853_v25 = vld [vmem:[%s9820_s1 + $0x1200] sm:$0xff] }
 0x17f   : > { %6703 = vmatprep.subr.bf16.mxu0 %v8647_v26  ;;  %7031 = vmatprep.subr.bf16.mxu1 %v8649_v27  ;;  %v857_v26 = vld [vmem:[%s9820_s1 + $0x1220] sm:$0xff]  ;;  %v854_v27 = vld [vmem:[%s9820_s1 + $0x1208] sm:$0xff] }
 0x180   : > { %6733 = vmatprep.mubr.bf16.mxu0 %v10188_v60  ;;  %7061 = vmatprep.mubr.bf16.mxu1 %v10188_v60  ;;  %v8703_v32 = vcombine.high %v853_v25, %v857_v26  ;;  %v8702_v38 = vcombine.low %v853_v25, %v857_v26  ;;  %v8704_v40 = vcombine.low %v854_v27, %v858_v28  ;;  %v906_v25 = vld [vmem:[%s9820_s1 + $0x13a8] sm:$0xff] }
 0x182   : > { %6704 = vmatpush1.bf16.msra.mxu0 %v8646_v0  ;;  %7032 = vmatpush1.bf16.msra.mxu1 %v8648_v34  ;;  %v8705_v0 = vcombine.high %v854_v27, %v858_v28  ;;  %v861_v34 = vld [vmem:[%s9820_s1 + $0x1240] sm:$0xff] }
 0x183   : > { %6705 = vmatprep.subr.bf16.mxu0 %v8655_v35  ;;  %7033 = vmatprep.subr.bf16.mxu1 %v8657_v36  ;;  %v865_v35 = vld [vmem:[%s9820_s1 + $0x1260] sm:$0xff]  ;;  %v862_v36 = vld [vmem:[%s9820_s1 + $0x1248] sm:$0xff] }
 0x184   : > { %v8711_v41 = vcombine.high %v861_v34, %v865_v35  ;;  %v8710_v48 = vcombine.low %v861_v34, %v865_v35  ;;  %v8712_v50 = vcombine.low %v862_v36, %v866_v37  ;;  %v914_v34 = vld [vmem:[%s9820_s1 + $0x13e8] sm:$0xff] }
 0x186   : > { %6706 = vmatpush1.bf16.msra.mxu0 %v8654_v42  ;;  %7034 = vmatpush1.bf16.msra.mxu1 %v8656_v43  ;;  %v8713_v42 = vcombine.high %v862_v36, %v866_v37  ;;  %v869_v43 = vld [vmem:[%s9820_s1 + $0x1280] sm:$0xff] }
 0x187   : > { %6707 = vmatprep.subr.bf16.mxu0 %v8663_v44  ;;  %7035 = vmatprep.subr.bf16.mxu1 %v8665_v46  ;;  %v873_v44 = vld [vmem:[%s9820_s1 + $0x12a0] sm:$0xff]  ;;  %v870_v46 = vld [vmem:[%s9820_s1 + $0x1288] sm:$0xff] }
 0x188   : > { %v8719_v51 = vcombine.high %v869_v43, %v873_v44  ;;  %v8718_v58 = vcombine.low %v869_v43, %v873_v44  ;;  %v8720_v61 = vcombine.low %v870_v46, %v874_v47  ;;  %v922_v43 = vld [vmem:[%s9820_s1 + $0x1428] sm:$0xff] }
 0x18a   : > { %6708 = vmatpush1.bf16.msra.mxu0 %v8662_v52  ;;  %7036 = vmatpush1.bf16.msra.mxu1 %v8664_v53  ;;  %v8721_v52 = vcombine.high %v870_v46, %v874_v47  ;;  %v877_v53 = vld [vmem:[%s9820_s1 + $0x12c0] sm:$0xff] }
 0x18b   : > { %6709 = vmatprep.subr.bf16.mxu0 %v8671_v55  ;;  %7037 = vmatprep.subr.bf16.mxu1 %v8673_v56  ;;  %v881_v55 = vld [vmem:[%s9820_s1 + $0x12e0] sm:$0xff]  ;;  %v878_v56 = vld [vmem:[%s9820_s1 + $0x12c8] sm:$0xff] }
 0x18c   : > { %v8727_v62 = vcombine.high %v877_v53, %v881_v55  ;;  %v8726_v30 = vcombine.low %v877_v53, %v881_v55  ;;  %v8728_v7 = vcombine.low %v878_v56, %v882_v57  ;;  %v926_v53 = vld [vmem:[%s9820_s1 + $0x1448] sm:$0xff] }
 0x18d   : > { %v930_v55 = vld [vmem:[%s9820_s1 + $0x1468] sm:$0xff] }
 0x18e   : > { %6710 = vmatpush1.bf16.msra.mxu0 %v8670_v63  ;;  %7038 = vmatpush1.bf16.msra.mxu1 %v8672_v1  ;;  %v8729_v63 = vcombine.high %v878_v56, %v882_v57  ;;  %v885_v1 = vld [vmem:[%s9820_s1 + $0x1300] sm:$0xff] }
 0x18f   : > { %6711 = vmatprep.subr.bf16.mxu0 %v8679_v3  ;;  %7039 = vmatprep.subr.bf16.mxu1 %v8681_v4  ;;  %v889_v3 = vld [vmem:[%s9820_s1 + $0x1320] sm:$0xff]  ;;  %v886_v4 = vld [vmem:[%s9820_s1 + $0x1308] sm:$0xff] }
 0x190   : > { %v8735_v8 = vcombine.high %v885_v1, %v889_v3  ;;  %v8734_v16 = vcombine.low %v885_v1, %v889_v3  ;;  %v8736_v17 = vcombine.low %v886_v4, %v890_v5  ;;  %v10264_v1 = vcombine.high %v10188_v60, %v10188_v60  ;;  %v938_v3 = vld [vmem:[%s9820_s1 + $0x14a8] sm:$0xff] }
 0x192   : > { %6712 = vmatpush1.bf16.msra.mxu0 %v8678_v11  ;;  %7040 = vmatpush1.bf16.msra.mxu1 %v8680_v12  ;;  %v8737_v11 = vcombine.high %v886_v4, %v890_v5  ;;  %v893_v12 = vld [vmem:[%s9820_s1 + $0x1340] sm:$0xff]  ;;  %v8776_v5 = vcombine.low %v926_v53, %v930_v55 }
 0x193   : > { %6713 = vmatprep.subr.bf16.mxu0 %v8687_v13  ;;  %7041 = vmatprep.subr.bf16.mxu1 %v8689_v14  ;;  %v897_v13 = vld [vmem:[%s9820_s1 + $0x1360] sm:$0xff]  ;;  %v894_v14 = vld [vmem:[%s9820_s1 + $0x1348] sm:$0xff] }
 0x194   : > { %v8743_v18 = vcombine.high %v893_v12, %v897_v13  ;;  %v8742_v26 = vcombine.low %v893_v12, %v897_v13  ;;  %v8744_v27 = vcombine.low %v894_v14, %v898_v15  ;;  %v942_v12 = vld [vmem:[%s9820_s1 + $0x14c8] sm:$0xff] }
 0x195   : > { %v946_v13 = vld [vmem:[%s9820_s1 + $0x14e8] sm:$0xff] }
 0x196   : > { %6714 = vmatpush1.bf16.msra.mxu0 %v8686_v19  ;;  %7042 = vmatpush1.bf16.msra.mxu1 %v8688_v21  ;;  %v8745_v19 = vcombine.high %v894_v14, %v898_v15  ;;  %v901_v21 = vld [vmem:[%s9820_s1 + $0x1380] sm:$0xff] }
 0x197   : > { %6715 = vmatprep.subr.bf16.mxu0 %v8695_v22  ;;  %7043 = vmatprep.subr.bf16.mxu1 %v8697_v23  ;;  %v905_v22 = vld [vmem:[%s9820_s1 + $0x13a0] sm:$0xff]  ;;  %v902_v23 = vld [vmem:[%s9820_s1 + $0x1388] sm:$0xff] }
 0x198   : > { %v8751_v28 = vcombine.high %v901_v21, %v905_v22  ;;  %v8750_v35 = vcombine.low %v901_v21, %v905_v22  ;;  %v8752_v36 = vcombine.low %v902_v23, %v906_v25  ;;  %v950_v21 = vld [vmem:[%s9820_s1 + $0x1508] sm:$0xff] }
 0x199   : > { %v954_v22 = vld [vmem:[%s9820_s1 + $0x1528] sm:$0xff] }
 0x19a   : > { %6716 = vmatpush1.bf16.msra.mxu0 %v8694_v29  ;;  %7044 = vmatpush1.bf16.msra.mxu1 %v8696_v31  ;;  %v8753_v29 = vcombine.high %v902_v23, %v906_v25  ;;  %v909_v31 = vld [vmem:[%s9820_s1 + $0x13c0] sm:$0xff]  ;;  %v8792_v25 = vcombine.low %v942_v12, %v946_v13 }
 0x19b   : > { %6717 = vmatprep.subr.bf16.mxu0 %v8703_v32  ;;  %7045 = vmatprep.subr.bf16.mxu1 %v8705_v0  ;;  %v913_v32 = vld [vmem:[%s9820_s1 + $0x13e0] sm:$0xff]  ;;  %v910_v0 = vld [vmem:[%s9820_s1 + $0x13c8] sm:$0xff] }
 0x19c   : > { %v8759_v37 = vcombine.high %v909_v31, %v913_v32  ;;  %v8758_v44 = vcombine.low %v909_v31, %v913_v32  ;;  %v8760_v46 = vcombine.low %v910_v0, %v914_v34  ;;  %v958_v31 = vld [vmem:[%s9820_s1 + $0x1548] sm:$0xff] }
 0x19d   : > { %v962_v32 = vld [vmem:[%s9820_s1 + $0x1568] sm:$0xff] }
 0x19e   : > { %6718 = vmatpush1.bf16.msra.mxu0 %v8702_v38  ;;  %7046 = vmatpush1.bf16.msra.mxu1 %v8704_v40  ;;  %v8761_v38 = vcombine.high %v910_v0, %v914_v34  ;;  %v917_v40 = vld [vmem:[%s9820_s1 + $0x1400] sm:$0xff]  ;;  %v8800_v34 = vcombine.low %v950_v21, %v954_v22 }
 0x19f   : > { %6719 = vmatprep.subr.bf16.mxu0 %v8711_v41  ;;  %7047 = vmatprep.subr.bf16.mxu1 %v8713_v42  ;;  %v921_v41 = vld [vmem:[%s9820_s1 + $0x1420] sm:$0xff]  ;;  %v918_v42 = vld [vmem:[%s9820_s1 + $0x1408] sm:$0xff] }
 0x1a0   : > { %v8767_v47 = vcombine.high %v917_v40, %v921_v41  ;;  %v8766_v56 = vcombine.low %v917_v40, %v921_v41  ;;  %v8768_v57 = vcombine.low %v918_v42, %v922_v43  ;;  %v966_v40 = vld [vmem:[%s9820_s1 + $0x1588] sm:$0xff] }
 0x1a1   : > { %v970_v41 = vld [vmem:[%s9820_s1 + $0x15a8] sm:$0xff] }
 0x1a2   : > { %6720 = vmatpush1.bf16.msra.mxu0 %v8710_v48  ;;  %7048 = vmatpush1.bf16.msra.mxu1 %v8712_v50  ;;  %v8769_v48 = vcombine.high %v918_v42, %v922_v43  ;;  %v925_v50 = vld [vmem:[%s9820_s1 + $0x1440] sm:$0xff]  ;;  %v8808_v43 = vcombine.low %v958_v31, %v962_v32 }
 0x1a3   : > { %6721 = vmatprep.subr.bf16.mxu0 %v8719_v51  ;;  %7049 = vmatprep.subr.bf16.mxu1 %v8721_v52  ;;  %v929_v51 = vld [vmem:[%s9820_s1 + $0x1460] sm:$0xff]  ;;  %v10256_v52 = vrot.slane %v10171_v9, %v9876_v54  ;;  %v934_v9 = vld [vmem:[%s9820_s1 + $0x1488] sm:$0xff] }
 0x1a4   : > { %v8774_v4 = vcombine.low %v925_v50, %v929_v51  ;;  %v8784_v15 = vcombine.low %v934_v9, %v938_v3 }
 0x1a6   : > { %6722 = vmatpush1.bf16.msra.mxu0 %v8718_v58  ;;  %7050 = vmatpush1.bf16.msra.mxu1 %v8720_v61  ;;  %v8775_v58 = vcombine.high %v925_v50, %v929_v51  ;;  %v8777_v61 = vcombine.high %v926_v53, %v930_v55  ;;  %v974_v50 = vld [vmem:[%s9820_s1 + $0x15c8] sm:$0xff]  ;;  %v8816_v55 = vcombine.low %v966_v40, %v970_v41 }
 0x1a7   : > { %6723 = vmatprep.subr.bf16.mxu0 %v8727_v62  ;;  %7051 = vmatprep.subr.bf16.mxu1 %v8729_v63  ;;  %v933_v62 = vld [vmem:[%s9820_s1 + $0x1480] sm:$0xff]  ;;  %v978_v51 = vld [vmem:[%s9820_s1 + $0x15e8] sm:$0xff] }
 0x1a8   : > { %v937_v63 = vld [vmem:[%s9820_s1 + $0x14a0] sm:$0xff] }
 0x1a9   : > { %v8782_v14 = vcombine.low %v933_v62, %v937_v63 }
 0x1aa   : > { %6724 = vmatpush1.bf16.msra.mxu0 %v8726_v30  ;;  %7052 = vmatpush1.bf16.msra.mxu1 %v8728_v7  ;;  %v8783_v30 = vcombine.high %v933_v62, %v937_v63  ;;  %v8785_v7 = vcombine.high %v934_v9, %v938_v3  ;;  %v982_v62 = vld [vmem:[%s9820_s1 + $0x1608] sm:$0xff]  ;;  %v8824_v3 = vcombine.low %v974_v50, %v978_v51 }
 0x1ab   : > { %6725 = vmatprep.subr.bf16.mxu0 %v8735_v8  ;;  %7053 = vmatprep.subr.bf16.mxu1 %v8737_v11  ;;  %v941_v8 = vld [vmem:[%s9820_s1 + $0x14c0] sm:$0xff]  ;;  %v986_v63 = vld [vmem:[%s9820_s1 + $0x1628] sm:$0xff] }
 0x1ac   : > { %v945_v11 = vld [vmem:[%s9820_s1 + $0x14e0] sm:$0xff] }
 0x1ad   : > { %v8790_v23 = vcombine.low %v941_v8, %v945_v11 }
 0x1ae   : > { %6726 = vmatpush1.bf16.msra.mxu0 %v8734_v16  ;;  %7054 = vmatpush1.bf16.msra.mxu1 %v8736_v17  ;;  %v8791_v16 = vcombine.high %v941_v8, %v945_v11  ;;  %v8793_v17 = vcombine.high %v942_v12, %v946_v13  ;;  %v990_v8 = vld [vmem:[%s9820_s1 + $0x1648] sm:$0xff]  ;;  %v8832_v13 = vcombine.low %v982_v62, %v986_v63 }
 0x1af   : > { %6727 = vmatprep.subr.bf16.mxu0 %v8743_v18  ;;  %7055 = vmatprep.subr.bf16.mxu1 %v8745_v19  ;;  %v949_v18 = vld [vmem:[%s9820_s1 + $0x1500] sm:$0xff]  ;;  %v994_v11 = vld [vmem:[%s9820_s1 + $0x1668] sm:$0xff] }
 0x1b0   : > { %v953_v19 = vld [vmem:[%s9820_s1 + $0x1520] sm:$0xff] }
 0x1b1   : > { %v8798_v0 = vcombine.low %v949_v18, %v953_v19 }
 0x1b2   : > { %6728 = vmatpush1.bf16.msra.mxu0 %v8742_v26  ;;  %7056 = vmatpush1.bf16.msra.mxu1 %v8744_v27  ;;  %v8799_v26 = vcombine.high %v949_v18, %v953_v19  ;;  %v8801_v27 = vcombine.high %v950_v21, %v954_v22  ;;  %v998_v18 = vld [vmem:[%s9820_s1 + $0x1688] sm:$0xff]  ;;  %v8840_v22 = vcombine.low %v990_v8, %v994_v11 }
 0x1b3   : > { %6729 = vmatprep.subr.bf16.mxu0 %v8751_v28  ;;  %7057 = vmatprep.subr.bf16.mxu1 %v8753_v29  ;;  %v957_v28 = vld [vmem:[%s9820_s1 + $0x1540] sm:$0xff]  ;;  %v1002_v19 = vld [vmem:[%s9820_s1 + $0x16a8] sm:$0xff] }
 0x1b4   : > { %v961_v29 = vld [vmem:[%s9820_s1 + $0x1560] sm:$0xff] }
 0x1b5   : > { %v8806_v42 = vcombine.low %v957_v28, %v961_v29 }
 0x1b6   : > { %6730 = vmatpush1.bf16.msra.mxu0 %v8750_v35  ;;  %7058 = vmatpush1.bf16.msra.mxu1 %v8752_v36  ;;  %v8807_v35 = vcombine.high %v957_v28, %v961_v29  ;;  %v8809_v36 = vcombine.high %v958_v31, %v962_v32  ;;  %v1006_v28 = vld [vmem:[%s9820_s1 + $0x16c8] sm:$0xff]  ;;  %v8848_v32 = vcombine.low %v998_v18, %v1002_v19 }
 0x1b7   : > { %6731 = vmatprep.subr.bf16.mxu0 %v8759_v37  ;;  %7059 = vmatprep.subr.bf16.mxu1 %v8761_v38  ;;  %v965_v37 = vld [vmem:[%s9820_s1 + $0x1580] sm:$0xff]  ;;  %v1010_v29 = vld [vmem:[%s9820_s1 + $0x16e8] sm:$0xff] }
 0x1b8   : > { %v969_v38 = vld [vmem:[%s9820_s1 + $0x15a0] sm:$0xff] }
 0x1b9   : > { %v8814_v53 = vcombine.low %v965_v37, %v969_v38 }
 0x1ba   : > { %6732 = vmatpush1.bf16.msra.mxu0 %v8758_v44  ;;  %7060 = vmatpush1.bf16.msra.mxu1 %v8760_v46  ;;  %v8815_v44 = vcombine.high %v965_v37, %v969_v38  ;;  %v8817_v46 = vcombine.high %v966_v40, %v970_v41  ;;  %v1014_v37 = vld [vmem:[%s9820_s1 + $0x1708] sm:$0xff]  ;;  %v8856_v41 = vcombine.low %v1006_v28, %v1010_v29 }
 0x1bb   : > { %6742 = vmatprep.subr.bf16.mxu0 %v8767_v47  ;;  %7070 = vmatprep.subr.bf16.mxu1 %v8769_v48  ;;  %v973_v47 = vld [vmem:[%s9820_s1 + $0x15c0] sm:$0xff]  ;;  %v1018_v38 = vld [vmem:[%s9820_s1 + $0x1728] sm:$0xff] }
 0x1bc   : > { %v977_v48 = vld [vmem:[%s9820_s1 + $0x15e0] sm:$0xff] }
 0x1bd   : > { %6734 = vmatmul.mubr.bf16.vlgmr.msra.gmra.mrb[0].mxu0 %v10256_v52  ;;  %7062 = vmatmul.mubr.bf16.vlgmr.msra.gmra.mrb[0].mxu1 %v10256_v52  ;;  %v8822_v9 = vcombine.low %v973_v47, %v977_v48 }
 0x1be   : > { %6743 = vmatpush1.bf16.msra.mxu0 %v8766_v56  ;;  %7071 = vmatpush1.bf16.msra.mxu1 %v8768_v57  ;;  %v8823_v56 = vcombine.high %v973_v47, %v977_v48  ;;  %v8825_v57 = vcombine.high %v974_v50, %v978_v51  ;;  %v1022_v47 = vld [vmem:[%s9820_s1 + $0x1748] sm:$0xff]  ;;  %v8864_v51 = vcombine.low %v1014_v37, %v1018_v38 }
 0x1bf   : > { %6744 = vmatprep.subr.bf16.mxu0 %v8775_v58  ;;  %7072 = vmatprep.subr.bf16.mxu1 %v8777_v61  ;;  %v981_v58 = vld [vmem:[%s9820_s1 + $0x1600] sm:$0xff]  ;;  %v1026_v48 = vld [vmem:[%s9820_s1 + $0x1768] sm:$0xff] }
 0x1c0   : > { %6774 = vmatprep.mubr.bf16.mxu0 %v10264_v1  ;;  %7102 = vmatprep.mubr.bf16.mxu1 %v10264_v1  ;;  %v985_v61 = vld [vmem:[%s9820_s1 + $0x1620] sm:$0xff] }
 0x1c1   : > { %v8830_v12 = vcombine.low %v981_v58, %v985_v61 }
 0x1c2   : > { %6745 = vmatpush1.bf16.msra.mxu0 %v8774_v4  ;;  %7073 = vmatpush1.bf16.msra.mxu1 %v8776_v5  ;;  %v8831_v4 = vcombine.high %v981_v58, %v985_v61  ;;  %v8833_v5 = vcombine.high %v982_v62, %v986_v63  ;;  %v1030_v58 = vld [vmem:[%s9820_s1 + $0x1788] sm:$0xff]  ;;  %v8872_v63 = vcombine.low %v1022_v47, %v1026_v48 }
 0x1c3   : > { %6746 = vmatprep.subr.bf16.mxu0 %v8783_v30  ;;  %7074 = vmatprep.subr.bf16.mxu1 %v8785_v7  ;;  %v989_v30 = vld [vmem:[%s9820_s1 + $0x1640] sm:$0xff]  ;;  %v1034_v61 = vld [vmem:[%s9820_s1 + $0x17a8] sm:$0xff] }
 0x1c4   : > { %v993_v7 = vld [vmem:[%s9820_s1 + $0x1660] sm:$0xff] }
 0x1c5   : > { %v8838_v21 = vcombine.low %v989_v30, %v993_v7 }
 0x1c6   : > { %6747 = vmatpush1.bf16.msra.mxu0 %v8782_v14  ;;  %7075 = vmatpush1.bf16.msra.mxu1 %v8784_v15  ;;  %v8839_v14 = vcombine.high %v989_v30, %v993_v7  ;;  %v8841_v15 = vcombine.high %v990_v8, %v994_v11  ;;  %v1352_v30 = vcombine.high %v10165_v2, %v10165_v2  ;;  %v1038_v7 = vld [vmem:[%s9820_s1 + $0x17c8] sm:$0xff] }
 0x1c7   : > { %6748 = vmatprep.subr.bf16.mxu0 %v8791_v16  ;;  %7076 = vmatprep.subr.bf16.mxu1 %v8793_v17  ;;  %v997_v16 = vld [vmem:[%s9820_s1 + $0x1680] sm:$0xff]  ;;  %v1042_v8 = vld [vmem:[%s9820_s1 + $0x17e8] sm:$0xff] }
 0x1c8   : > { %v1001_v17 = vld [vmem:[%s9820_s1 + $0x16a0] sm:$0xff]  ;;  %v1046_v2 = vld [vmem:[%s9820_s1 + $0x1808] sm:$0xff] }
 0x1c9   : > { %v8846_v31 = vcombine.low %v997_v16, %v1001_v17 }
 0x1ca   : > { %6749 = vmatpush1.bf16.msra.mxu0 %v8790_v23  ;;  %7077 = vmatpush1.bf16.msra.mxu1 %v8792_v25  ;;  %v8847_v23 = vcombine.high %v997_v16, %v1001_v17  ;;  %v8849_v25 = vcombine.high %v998_v18, %v1002_v19  ;;  %v1049_v16 = vld [vmem:[%s9820_s1 + $0x1820] sm:$0xff]  ;;  %v10329_v17 = vrot.slane %v1352_v30, %v9876_v54  ;;  %v1050_v18 = vld [vmem:[%s9820_s1 + $0x1828] sm:$0xff] }
 0x1cb   : > { %6750 = vmatprep.subr.bf16.mxu0 %v8799_v26  ;;  %7078 = vmatprep.subr.bf16.mxu1 %v8801_v27  ;;  %v1005_v26 = vld [vmem:[%s9820_s1 + $0x16c0] sm:$0xff] }
 0x1cc   : > { %v1009_v27 = vld [vmem:[%s9820_s1 + $0x16e0] sm:$0xff] }
 0x1cd   : > { %v8854_v40 = vcombine.low %v1005_v26, %v1009_v27  ;;  %v1085_v30 = vld [vmem:[%s9820_s1 + $0x1940] sm:$0xff] }
 0x1ce   : > { %6751 = vmatpush1.bf16.msra.mxu0 %v8798_v0  ;;  %7079 = vmatpush1.bf16.msra.mxu1 %v8800_v34  ;;  %v8855_v0 = vcombine.high %v1005_v26, %v1009_v27  ;;  %v8857_v34 = vcombine.high %v1006_v28, %v1010_v29  ;;  %v1057_v26 = vld [vmem:[%s9820_s1 + $0x1860] sm:$0xff]  ;;  %v1368_v27 = vcombine.high %v10329_v17, %v10329_v17  ;;  %v1054_v29 = vld [vmem:[%s9820_s1 + $0x1848] sm:$0xff] }
 0x1cf   : > { %6752 = vmatprep.subr.bf16.mxu0 %v8807_v35  ;;  %7080 = vmatprep.subr.bf16.mxu1 %v8809_v36  ;;  %v1013_v35 = vld [vmem:[%s9820_s1 + $0x1700] sm:$0xff]  ;;  %v10339_v28 = vcombine.high %v10256_v52, %v10256_v52 }
 0x1d0   : > { %v1017_v36 = vld [vmem:[%s9820_s1 + $0x1720] sm:$0xff] }
 0x1d1   : > { %v8862_v50 = vcombine.low %v1013_v35, %v1017_v36 }
 0x1d2   : > { %6753 = vmatpush1.bf16.msra.mxu0 %v8806_v42  ;;  %7081 = vmatpush1.bf16.msra.mxu1 %v8808_v43  ;;  %v8863_v42 = vcombine.high %v1013_v35, %v1017_v36  ;;  %v8865_v43 = vcombine.high %v1014_v37, %v1018_v38  ;;  %v1061_v36 = vld [vmem:[%s9820_s1 + $0x1880] sm:$0xff]  ;;  %v10346_v38 = vrot.slane %v1368_v27, %v9876_v54 }
 0x1d3   : > { %6754 = vmatprep.subr.bf16.mxu0 %v8815_v44  ;;  %7082 = vmatprep.subr.bf16.mxu1 %v8817_v46  ;;  %v1021_v44 = vld [vmem:[%s9820_s1 + $0x1740] sm:$0xff] }
 0x1d4   : > { %v1025_v46 = vld [vmem:[%s9820_s1 + $0x1760] sm:$0xff] }
 0x1d5   : > { %v8870_v62 = vcombine.low %v1021_v44, %v1025_v46  ;;  %v1065_v37 = vld [vmem:[%s9820_s1 + $0x18a0] sm:$0xff] }
 0x1d6   : > { %6755 = vmatpush1.bf16.msra.mxu0 %v8814_v53  ;;  %7083 = vmatpush1.bf16.msra.mxu1 %v8816_v55  ;;  %v8871_v53 = vcombine.high %v1021_v44, %v1025_v46  ;;  %v8873_v55 = vcombine.high %v1022_v47, %v1026_v48  ;;  %v8911_v44 = vcombine.high %v1061_v36, %v1065_v37  ;;  %v1069_v47 = vld [vmem:[%s9820_s1 + $0x18c0] sm:$0xff] }
 0x1d7   : > { %6756 = vmatprep.subr.bf16.mxu0 %v8823_v56  ;;  %7084 = vmatprep.subr.bf16.mxu1 %v8825_v57  ;;  %v1029_v56 = vld [vmem:[%s9820_s1 + $0x1780] sm:$0xff] }
 0x1d8   : > { %v1033_v57 = vld [vmem:[%s9820_s1 + $0x17a0] sm:$0xff] }
 0x1d9   : > { %v8878_v11 = vcombine.low %v1029_v56, %v1033_v57  ;;  %v1073_v48 = vld [vmem:[%s9820_s1 + $0x18e0] sm:$0xff] }
 0x1da   : > { %6757 = vmatpush1.bf16.msra.mxu0 %v8822_v9  ;;  %7085 = vmatpush1.bf16.msra.mxu1 %v8824_v3  ;;  %v8879_v9 = vcombine.high %v1029_v56, %v1033_v57  ;;  %v8881_v3 = vcombine.high %v1030_v58, %v1034_v61  ;;  %v8919_v56 = vcombine.high %v1069_v47, %v1073_v48  ;;  %v1105_v27 = vld [vmem:[%s9820_s1 + $0x19e0] sm:$0xff] }
 0x1db   : > { %6758 = vmatprep.subr.bf16.mxu0 %v8831_v4  ;;  %7086 = vmatprep.subr.bf16.mxu1 %v8833_v5  ;;  %v1037_v4 = vld [vmem:[%s9820_s1 + $0x17c0] sm:$0xff] }
 0x1dc   : > { %v1041_v5 = vld [vmem:[%s9820_s1 + $0x17e0] sm:$0xff] }
 0x1dd   : > { %v8886_v19 = vcombine.low %v1037_v4, %v1041_v5 }
 0x1de   : > { %6759 = vmatpush1.bf16.msra.mxu0 %v8830_v12  ;;  %7087 = vmatpush1.bf16.msra.mxu1 %v8832_v13  ;;  %v8880_v12 = vcombine.low %v1030_v58, %v1034_v61  ;;  %v8887_v13 = vcombine.high %v1037_v4, %v1041_v5  ;;  %v1077_v58 = vld [vmem:[%s9820_s1 + $0x1900] sm:$0xff] }
 0x1df   : > { %6760 = vmatprep.subr.bf16.mxu0 %v8839_v14  ;;  %7088 = vmatprep.subr.bf16.mxu1 %v8841_v15  ;;  %v8889_v14 = vcombine.high %v1038_v7, %v1042_v8  ;;  %v1045_v15 = vld [vmem:[%s9820_s1 + $0x1800] sm:$0xff] }
 0x1e0   : > { %v1081_v61 = vld [vmem:[%s9820_s1 + $0x1920] sm:$0xff] }
 0x1e1   : > { %v8927_v4 = vcombine.high %v1077_v58, %v1081_v61 }
 0x1e2   : > { %6761 = vmatpush1.bf16.msra.mxu0 %v8838_v21  ;;  %7089 = vmatpush1.bf16.msra.mxu1 %v8840_v22  ;;  %v8888_v21 = vcombine.low %v1038_v7, %v1042_v8  ;;  %v8895_v22 = vcombine.high %v1045_v15, %v1049_v16  ;;  %v1089_v7 = vld [vmem:[%s9820_s1 + $0x1960] sm:$0xff]  ;;  %v1086_v8 = vld [vmem:[%s9820_s1 + $0x1948] sm:$0xff] }
 0x1e3   : > { %6762 = vmatprep.subr.bf16.mxu0 %v8847_v23  ;;  %7090 = vmatprep.subr.bf16.mxu1 %v8849_v25  ;;  %v8897_v23 = vcombine.high %v1046_v2, %v1050_v18  ;;  %v1053_v25 = vld [vmem:[%s9820_s1 + $0x1840] sm:$0xff] }
 0x1e6   : > { %6763 = vmatpush1.bf16.msra.mxu0 %v8846_v31  ;;  %7091 = vmatpush1.bf16.msra.mxu1 %v8848_v32  ;;  %v1058_v31 = vld [vmem:[%s9820_s1 + $0x1868] sm:$0xff]  ;;  %v8894_v32 = vcombine.low %v1045_v15, %v1049_v16  ;;  %v1093_v16 = vld [vmem:[%s9820_s1 + $0x1980] sm:$0xff] }
 0x1e7   : > { %6764 = vmatprep.subr.bf16.mxu0 %v8855_v0  ;;  %7092 = vmatprep.subr.bf16.mxu1 %v8857_v34  ;;  %v8896_v0 = vcombine.low %v1046_v2, %v1050_v18  ;;  %v8903_v34 = vcombine.high %v1053_v25, %v1057_v26  ;;  %v8905_v35 = vcombine.high %v1054_v29, %v1058_v31  ;;  %v1097_v2 = vld [vmem:[%s9820_s1 + $0x19a0] sm:$0xff]  ;;  %v1094_v18 = vld [vmem:[%s9820_s1 + $0x1988] sm:$0xff] }
 0x1ea   : > { %6765 = vmatpush1.bf16.msra.mxu0 %v8854_v40  ;;  %7093 = vmatpush1.bf16.msra.mxu1 %v8856_v41  ;;  %v1062_v40 = vld [vmem:[%s9820_s1 + $0x1888] sm:$0xff] }
 0x1eb   : > { %6766 = vmatprep.subr.bf16.mxu0 %v8863_v42  ;;  %7094 = vmatprep.subr.bf16.mxu1 %v8865_v43  ;;  %v1066_v41 = vld [vmem:[%s9820_s1 + $0x18a8] sm:$0xff]  ;;  %v8902_v42 = vcombine.low %v1053_v25, %v1057_v26  ;;  %v8904_v43 = vcombine.low %v1054_v29, %v1058_v31  ;;  %v1101_v26 = vld [vmem:[%s9820_s1 + $0x19c0] sm:$0xff] }
 0x1ec   : > { %v8913_v46 = vcombine.high %v1062_v40, %v1066_v41  ;;  %v1102_v29 = vld [vmem:[%s9820_s1 + $0x19c8] sm:$0xff] }
 0x1ed   : > { %v1106_v31 = vld [vmem:[%s9820_s1 + $0x19e8] sm:$0xff] }
 0x1ee   : > { %6767 = vmatpush1.bf16.msra.mxu0 %v8862_v50  ;;  %7095 = vmatpush1.bf16.msra.mxu1 %v8864_v51  ;;  %v1070_v50 = vld [vmem:[%s9820_s1 + $0x18c8] sm:$0xff] }
 0x1ef   : > { %6768 = vmatprep.subr.bf16.mxu0 %v8871_v53  ;;  %7096 = vmatprep.subr.bf16.mxu1 %v8873_v55  ;;  %v1074_v51 = vld [vmem:[%s9820_s1 + $0x18e8] sm:$0xff]  ;;  %v8910_v53 = vcombine.low %v1061_v36, %v1065_v37  ;;  %v8912_v55 = vcombine.low %v1062_v40, %v1066_v41  ;;  %v1109_v36 = vld [vmem:[%s9820_s1 + $0x1a00] sm:$0xff] }
 0x1f0   : > { %v8921_v57 = vcombine.high %v1070_v50, %v1074_v51  ;;  %v1113_v37 = vld [vmem:[%s9820_s1 + $0x1a20] sm:$0xff]  ;;  %v1110_v40 = vld [vmem:[%s9820_s1 + $0x1a08] sm:$0xff] }
 0x1f1   : > { %v1114_v41 = vld [vmem:[%s9820_s1 + $0x1a28] sm:$0xff] }
 0x1f2   : > { %6769 = vmatpush1.bf16.msra.mxu0 %v8870_v62  ;;  %7097 = vmatpush1.bf16.msra.mxu1 %v8872_v63  ;;  %v1078_v62 = vld [vmem:[%s9820_s1 + $0x1908] sm:$0xff] }
 0x1f3   : > { %6770 = vmatprep.subr.bf16.mxu0 %v8879_v9  ;;  %7098 = vmatprep.subr.bf16.mxu1 %v8881_v3  ;;  %v1082_v63 = vld [vmem:[%s9820_s1 + $0x1928] sm:$0xff]  ;;  %v8918_v9 = vcombine.low %v1069_v47, %v1073_v48  ;;  %v8920_v3 = vcombine.low %v1070_v50, %v1074_v51  ;;  %v1117_v47 = vld [vmem:[%s9820_s1 + $0x1a40] sm:$0xff] }
 0x1f4   : > { %v8929_v5 = vcombine.high %v1078_v62, %v1082_v63  ;;  %v1121_v48 = vld [vmem:[%s9820_s1 + $0x1a60] sm:$0xff]  ;;  %v1118_v50 = vld [vmem:[%s9820_s1 + $0x1a48] sm:$0xff] }
 0x1f5   : > { %v1122_v51 = vld [vmem:[%s9820_s1 + $0x1a68] sm:$0xff] }
 0x1f6   : > { %6771 = vmatpush1.bf16.msra.mxu0 %v8878_v11  ;;  %7099 = vmatpush1.bf16.msra.mxu1 %v8880_v12  ;;  %v1090_v11 = vld [vmem:[%s9820_s1 + $0x1968] sm:$0xff]  ;;  %v8926_v12 = vcombine.low %v1077_v58, %v1081_v61  ;;  %v1125_v58 = vld [vmem:[%s9820_s1 + $0x1a80] sm:$0xff] }
 0x1f7   : > { %6772 = vmatprep.subr.bf16.mxu0 %v8887_v13  ;;  %7100 = vmatprep.subr.bf16.mxu1 %v8889_v14  ;;  %v8928_v13 = vcombine.low %v1078_v62, %v1082_v63  ;;  %v8935_v14 = vcombine.high %v1085_v30, %v1089_v7  ;;  %v8937_v15 = vcombine.high %v1086_v8, %v1090_v11  ;;  %v1129_v61 = vld [vmem:[%s9820_s1 + $0x1aa0] sm:$0xff]  ;;  %v1126_v62 = vld [vmem:[%s9820_s1 + $0x1a88] sm:$0xff] }
 0x1f8   : > { %v1130_v63 = vld [vmem:[%s9820_s1 + $0x1aa8] sm:$0xff] }
 0x1fa   : > { %6773 = vmatpush1.bf16.msra.mxu0 %v8886_v19  ;;  %7101 = vmatpush1.bf16.msra.mxu1 %v8888_v21  ;;  %v1098_v19 = vld [vmem:[%s9820_s1 + $0x19a8] sm:$0xff]  ;;  %v8934_v21 = vcombine.low %v1085_v30, %v1089_v7  ;;  %v1133_v30 = vld [vmem:[%s9820_s1 + $0x1ac0] sm:$0xff] }
 0x1fb   : > { %6783 = vmatprep.subr.bf16.mxu0 %v8895_v22  ;;  %7111 = vmatprep.subr.bf16.mxu1 %v8897_v23  ;;  %v8936_v22 = vcombine.low %v1086_v8, %v1090_v11  ;;  %v8943_v23 = vcombine.high %v1093_v16, %v1097_v2  ;;  %v8945_v25 = vcombine.high %v1094_v18, %v1098_v19  ;;  %v1137_v7 = vld [vmem:[%s9820_s1 + $0x1ae0] sm:$0xff]  ;;  %v1134_v8 = vld [vmem:[%s9820_s1 + $0x1ac8] sm:$0xff] }
 0x1fc   : > { %v1138_v11 = vld [vmem:[%s9820_s1 + $0x1ae8] sm:$0xff] }
 0x1fd   : > { %6775 = vmatmul.mubr.bf16.vlgmr.msra.gmra.mrb[0].mxu0 %v10339_v28  ;;  %7103 = vmatmul.mubr.bf16.vlgmr.msra.gmra.mrb[0].mxu1 %v10339_v28 }
 0x1fe   : > { %6784 = vmatpush1.bf16.msra.mxu0 %v8894_v32  ;;  %7112 = vmatpush1.bf16.msra.mxu1 %v8896_v0  ;;  %v8942_v32 = vcombine.low %v1093_v16, %v1097_v2  ;;  %v8944_v0 = vcombine.low %v1094_v18, %v1098_v19  ;;  %v1141_v16 = vld [vmem:[%s9820_s1 + $0x1b00] sm:$0xff]  ;;  %v1142_v18 = vld [vmem:[%s9820_s1 + $0x1b08] sm:$0xff] }
 0x1ff   : > { %6785 = vmatprep.subr.bf16.mxu0 %v8903_v34  ;;  %7113 = vmatprep.subr.bf16.mxu1 %v8905_v35  ;;  %v8951_v34 = vcombine.high %v1101_v26, %v1105_v27  ;;  %v8953_v35 = vcombine.high %v1102_v29, %v1106_v31  ;;  %v1145_v2 = vld [vmem:[%s9820_s1 + $0x1b20] sm:$0xff]  ;;  %v1146_v19 = vld [vmem:[%s9820_s1 + $0x1b28] sm:$0xff] }
 0x200   : > { %6815 = vmatprep.mubr.bf16.mxu0 %v10346_v38  ;;  %7143 = vmatprep.mubr.bf16.mxu1 %v10346_v38 }
 0x202   : > { %6786 = vmatpush1.bf16.msra.mxu0 %v8902_v42  ;;  %7114 = vmatpush1.bf16.msra.mxu1 %v8904_v43  ;;  %v8950_v42 = vcombine.low %v1101_v26, %v1105_v27  ;;  %v8952_v43 = vcombine.low %v1102_v29, %v1106_v31  ;;  %v1149_v26 = vld [vmem:[%s9820_s1 + $0x1b40] sm:$0xff]  ;;  %v1150_v29 = vld [vmem:[%s9820_s1 + $0x1b48] sm:$0xff] }
 0x203   : > { %6787 = vmatprep.subr.bf16.mxu0 %v8911_v44  ;;  %7115 = vmatprep.subr.bf16.mxu1 %v8913_v46  ;;  %v8959_v44 = vcombine.high %v1109_v36, %v1113_v37  ;;  %v8961_v46 = vcombine.high %v1110_v40, %v1114_v41  ;;  %v1153_v27 = vld [vmem:[%s9820_s1 + $0x1b60] sm:$0xff]  ;;  %v1154_v31 = vld [vmem:[%s9820_s1 + $0x1b68] sm:$0xff] }
 0x206   : > { %6788 = vmatpush1.bf16.msra.mxu0 %v8910_v53  ;;  %7116 = vmatpush1.bf16.msra.mxu1 %v8912_v55  ;;  %v8958_v53 = vcombine.low %v1109_v36, %v1113_v37  ;;  %v8960_v55 = vcombine.low %v1110_v40, %v1114_v41  ;;  %v1157_v36 = vld [vmem:[%s9820_s1 + $0x1b80] sm:$0xff]  ;;  %v1158_v40 = vld [vmem:[%s9820_s1 + $0x1b88] sm:$0xff] }
 0x207   : > { %6789 = vmatprep.subr.bf16.mxu0 %v8919_v56  ;;  %7117 = vmatprep.subr.bf16.mxu1 %v8921_v57  ;;  %v8967_v56 = vcombine.high %v1117_v47, %v1121_v48  ;;  %v8969_v57 = vcombine.high %v1118_v50, %v1122_v51  ;;  %v1161_v37 = vld [vmem:[%s9820_s1 + $0x1ba0] sm:$0xff]  ;;  %v1162_v41 = vld [vmem:[%s9820_s1 + $0x1ba8] sm:$0xff] }
 0x20a   : > { %6790 = vmatpush1.bf16.msra.mxu0 %v8918_v9  ;;  %7118 = vmatpush1.bf16.msra.mxu1 %v8920_v3  ;;  %v8966_v9 = vcombine.low %v1117_v47, %v1121_v48  ;;  %v8968_v3 = vcombine.low %v1118_v50, %v1122_v51  ;;  %v1165_v47 = vld [vmem:[%s9820_s1 + $0x1bc0] sm:$0xff]  ;;  %v1166_v50 = vld [vmem:[%s9820_s1 + $0x1bc8] sm:$0xff] }
 0x20b   : > { %6791 = vmatprep.subr.bf16.mxu0 %v8927_v4  ;;  %7119 = vmatprep.subr.bf16.mxu1 %v8929_v5  ;;  %v8975_v4 = vcombine.high %v1125_v58, %v1129_v61  ;;  %v8977_v5 = vcombine.high %v1126_v62, %v1130_v63  ;;  %v1169_v48 = vld [vmem:[%s9820_s1 + $0x1be0] sm:$0xff]  ;;  %v1170_v51 = vld [vmem:[%s9820_s1 + $0x1be8] sm:$0xff] }
 0x20e   : > { %6792 = vmatpush1.bf16.msra.mxu0 %v8926_v12  ;;  %7120 = vmatpush1.bf16.msra.mxu1 %v8928_v13  ;;  %v8974_v12 = vcombine.low %v1125_v58, %v1129_v61  ;;  %v8976_v13 = vcombine.low %v1126_v62, %v1130_v63  ;;  %v1173_v58 = vld [vmem:[%s9820_s1 + $0x1c00] sm:$0xff]  ;;  %v1174_v62 = vld [vmem:[%s9820_s1 + $0x1c08] sm:$0xff] }
 0x20f   : > { %6793 = vmatprep.subr.bf16.mxu0 %v8935_v14  ;;  %7121 = vmatprep.subr.bf16.mxu1 %v8937_v15  ;;  %v8983_v14 = vcombine.high %v1133_v30, %v1137_v7  ;;  %v8985_v15 = vcombine.high %v1134_v8, %v1138_v11  ;;  %v1177_v61 = vld [vmem:[%s9820_s1 + $0x1c20] sm:$0xff]  ;;  %v1178_v63 = vld [vmem:[%s9820_s1 + $0x1c28] sm:$0xff] }
 0x212   : > { %6794 = vmatpush1.bf16.msra.mxu0 %v8934_v21  ;;  %7122 = vmatpush1.bf16.msra.mxu1 %v8936_v22  ;;  %v8982_v21 = vcombine.low %v1133_v30, %v1137_v7  ;;  %v8984_v22 = vcombine.low %v1134_v8, %v1138_v11  ;;  %v1181_v30 = vld [vmem:[%s9820_s1 + $0x1c40] sm:$0xff]  ;;  %v10414_v8 = vrot.slane %v10329_v17, %v9876_v54  ;;  %v1182_v11 = vld [vmem:[%s9820_s1 + $0x1c48] sm:$0xff] }
 0x213   : > { %6795 = vmatprep.subr.bf16.mxu0 %v8943_v23  ;;  %7123 = vmatprep.subr.bf16.mxu1 %v8945_v25  ;;  %v8991_v23 = vcombine.high %v1141_v16, %v1145_v2  ;;  %v8993_v25 = vcombine.high %v1142_v18, %v1146_v19  ;;  %v1185_v7 = vld [vmem:[%s9820_s1 + $0x1c60] sm:$0xff]  ;;  %v1190_v54 = vld [vmem:[%s9820_s1 + $0x1c88] sm:$0xff] }
 0x214   : > { %v1194_v17 = vld [vmem:[%s9820_s1 + $0x1ca8] sm:$0xff] }
 0x216   : > { %6796 = vmatpush1.bf16.msra.mxu0 %v8942_v32  ;;  %7124 = vmatpush1.bf16.msra.mxu1 %v8944_v0  ;;  %v8990_v32 = vcombine.low %v1141_v16, %v1145_v2  ;;  %v8992_v0 = vcombine.low %v1142_v18, %v1146_v19  ;;  %v1189_v2 = vld [vmem:[%s9820_s1 + $0x1c80] sm:$0xff]  ;;  %v10422_v19 = vcombine.high %v10346_v38, %v10346_v38 }
 0x217   : > { %6797 = vmatprep.subr.bf16.mxu0 %v8951_v34  ;;  %7125 = vmatprep.subr.bf16.mxu1 %v8953_v35  ;;  %v8999_v34 = vcombine.high %v1149_v26, %v1153_v27  ;;  %v9001_v35 = vcombine.high %v1150_v29, %v1154_v31  ;;  %v1193_v18 = vld [vmem:[%s9820_s1 + $0x1ca0] sm:$0xff] }
 0x21a   : > { %6798 = vmatpush1.bf16.msra.mxu0 %v8950_v42  ;;  %7126 = vmatpush1.bf16.msra.mxu1 %v8952_v43  ;;  %v8998_v42 = vcombine.low %v1149_v26, %v1153_v27  ;;  %v9000_v43 = vcombine.low %v1150_v29, %v1154_v31  ;;  %v1197_v26 = vld [vmem:[%s9820_s1 + $0x1cc0] sm:$0xff]  ;;  %v1198_v29 = vld [vmem:[%s9820_s1 + $0x1cc8] sm:$0xff] }
 0x21b   : > { %6799 = vmatprep.subr.bf16.mxu0 %v8959_v44  ;;  %7127 = vmatprep.subr.bf16.mxu1 %v8961_v46  ;;  %v9007_v44 = vcombine.high %v1157_v36, %v1161_v37  ;;  %v9009_v46 = vcombine.high %v1158_v40, %v1162_v41  ;;  %v1201_v27 = vld [vmem:[%s9820_s1 + $0x1ce0] sm:$0xff]  ;;  %v1202_v31 = vld [vmem:[%s9820_s1 + $0x1ce8] sm:$0xff] }
 0x21e   : > { %6800 = vmatpush1.bf16.msra.mxu0 %v8958_v53  ;;  %7128 = vmatpush1.bf16.msra.mxu1 %v8960_v55  ;;  %v9006_v53 = vcombine.low %v1157_v36, %v1161_v37  ;;  %v9008_v55 = vcombine.low %v1158_v40, %v1162_v41  ;;  %v1205_v36 = vld [vmem:[%s9820_s1 + $0x1d00] sm:$0xff]  ;;  %v1206_v40 = vld [vmem:[%s9820_s1 + $0x1d08] sm:$0xff] }
 0x21f   : > { %6801 = vmatprep.subr.bf16.mxu0 %v8967_v56  ;;  %7129 = vmatprep.subr.bf16.mxu1 %v8969_v57  ;;  %v9015_v56 = vcombine.high %v1165_v47, %v1169_v48  ;;  %v9017_v57 = vcombine.high %v1166_v50, %v1170_v51  ;;  %v1209_v37 = vld [vmem:[%s9820_s1 + $0x1d20] sm:$0xff]  ;;  %v1210_v41 = vld [vmem:[%s9820_s1 + $0x1d28] sm:$0xff] }
 0x222   : > { %6802 = vmatpush1.bf16.msra.mxu0 %v8966_v9  ;;  %7130 = vmatpush1.bf16.msra.mxu1 %v8968_v3  ;;  %v9014_v9 = vcombine.low %v1165_v47, %v1169_v48  ;;  %v9016_v3 = vcombine.low %v1166_v50, %v1170_v51  ;;  %v1213_v47 = vld [vmem:[%s9820_s1 + $0x1d40] sm:$0xff]  ;;  %v1214_v50 = vld [vmem:[%s9820_s1 + $0x1d48] sm:$0xff] }
 0x223   : > { %6803 = vmatprep.subr.bf16.mxu0 %v8975_v4  ;;  %7131 = vmatprep.subr.bf16.mxu1 %v8977_v5  ;;  %v9023_v4 = vcombine.high %v1173_v58, %v1177_v61  ;;  %v9025_v5 = vcombine.high %v1174_v62, %v1178_v63  ;;  %v1217_v48 = vld [vmem:[%s9820_s1 + $0x1d60] sm:$0xff]  ;;  %v1218_v51 = vld [vmem:[%s9820_s1 + $0x1d68] sm:$0xff] }
 0x226   : > { %6804 = vmatpush1.bf16.msra.mxu0 %v8974_v12  ;;  %7132 = vmatpush1.bf16.msra.mxu1 %v8976_v13  ;;  %v1186_v12 = vld [vmem:[%s9820_s1 + $0x1c68] sm:$0xff]  ;;  %v9022_v13 = vcombine.low %v1173_v58, %v1177_v61  ;;  %v1221_v58 = vld [vmem:[%s9820_s1 + $0x1d80] sm:$0xff] }
 0x227   : > { %6805 = vmatprep.subr.bf16.mxu0 %v8983_v14  ;;  %7133 = vmatprep.subr.bf16.mxu1 %v8985_v15  ;;  %v9024_v14 = vcombine.low %v1174_v62, %v1178_v63  ;;  %v9031_v15 = vcombine.high %v1181_v30, %v1185_v7  ;;  %v9033_v16 = vcombine.high %v1182_v11, %v1186_v12  ;;  %v1225_v61 = vld [vmem:[%s9820_s1 + $0x1da0] sm:$0xff]  ;;  %v1222_v62 = vld [vmem:[%s9820_s1 + $0x1d88] sm:$0xff] }
 0x228   : > { %v1226_v63 = vld [vmem:[%s9820_s1 + $0x1da8] sm:$0xff] }
 0x22a   : > { %6806 = vmatpush1.bf16.msra.mxu0 %v8982_v21  ;;  %7134 = vmatpush1.bf16.msra.mxu1 %v8984_v22  ;;  %v9030_v21 = vcombine.low %v1181_v30, %v1185_v7  ;;  %v9032_v22 = vcombine.low %v1182_v11, %v1186_v12  ;;  %v1229_v30 = vld [vmem:[%s9820_s1 + $0x1dc0] sm:$0xff]  ;;  %v1230_v11 = vld [vmem:[%s9820_s1 + $0x1dc8] sm:$0xff] }
 0x22b   : > { %6807 = vmatprep.subr.bf16.mxu0 %v8991_v23  ;;  %7135 = vmatprep.subr.bf16.mxu1 %v8993_v25  ;;  %v9039_v23 = vcombine.high %v1189_v2, %v1193_v18  ;;  %v9041_v25 = vcombine.high %v1190_v54, %v1194_v17  ;;  %v1233_v7 = vld [vmem:[%s9820_s1 + $0x1de0] sm:$0xff]  ;;  %v1234_v12 = vld [vmem:[%s9820_s1 + $0x1de8] sm:$0xff] }
 0x22e   : > { %6808 = vmatpush1.bf16.msra.mxu0 %v8990_v32  ;;  %7136 = vmatpush1.bf16.msra.mxu1 %v8992_v0  ;;  %v9038_v32 = vcombine.low %v1189_v2, %v1193_v18  ;;  %v9040_v0 = vcombine.low %v1190_v54, %v1194_v17  ;;  %v1237_v2 = vld [vmem:[%s9820_s1 + $0x1e00] sm:$0xff]  ;;  %v1238_v54 = vld [vmem:[%s9820_s1 + $0x1e08] sm:$0xff] }
 0x22f   : > { %6809 = vmatprep.subr.bf16.mxu0 %v8999_v34  ;;  %7137 = vmatprep.subr.bf16.mxu1 %v9001_v35  ;;  %v9047_v34 = vcombine.high %v1197_v26, %v1201_v27  ;;  %v9049_v35 = vcombine.high %v1198_v29, %v1202_v31  ;;  %v1241_v18 = vld [vmem:[%s9820_s1 + $0x1e20] sm:$0xff]  ;;  %v1242_v17 = vld [vmem:[%s9820_s1 + $0x1e28] sm:$0xff] }
 0x232   : > { %6810 = vmatpush1.bf16.msra.mxu0 %v8998_v42  ;;  %7138 = vmatpush1.bf16.msra.mxu1 %v9000_v43  ;;  %v9046_v42 = vcombine.low %v1197_v26, %v1201_v27  ;;  %v9048_v43 = vcombine.low %v1198_v29, %v1202_v31  ;;  %v1245_v26 = vld [vmem:[%s9820_s1 + $0x1e40] sm:$0xff]  ;;  %v1246_v29 = vld [vmem:[%s9820_s1 + $0x1e48] sm:$0xff] }
 0x233   : > { %6811 = vmatprep.subr.bf16.mxu0 %v9007_v44  ;;  %7139 = vmatprep.subr.bf16.mxu1 %v9009_v46  ;;  %v9055_v44 = vcombine.high %v1205_v36, %v1209_v37  ;;  %v9057_v46 = vcombine.high %v1206_v40, %v1210_v41  ;;  %v1249_v27 = vld [vmem:[%s9820_s1 + $0x1e60] sm:$0xff]  ;;  %v1250_v31 = vld [vmem:[%s9820_s1 + $0x1e68] sm:$0xff] }
 0x236   : > { %6812 = vmatpush1.bf16.msra.mxu0 %v9006_v53  ;;  %7140 = vmatpush1.bf16.msra.mxu1 %v9008_v55  ;;  %v9054_v53 = vcombine.low %v1205_v36, %v1209_v37  ;;  %v9056_v55 = vcombine.low %v1206_v40, %v1210_v41  ;;  %v1253_v36 = vld [vmem:[%s9820_s1 + $0x1e80] sm:$0xff]  ;;  %v1254_v40 = vld [vmem:[%s9820_s1 + $0x1e88] sm:$0xff] }
 0x237   : > { %6813 = vmatprep.subr.bf16.mxu0 %v9015_v56  ;;  %7141 = vmatprep.subr.bf16.mxu1 %v9017_v57  ;;  %v9063_v56 = vcombine.high %v1213_v47, %v1217_v48  ;;  %v9065_v57 = vcombine.high %v1214_v50, %v1218_v51  ;;  %v1257_v37 = vld [vmem:[%s9820_s1 + $0x1ea0] sm:$0xff]  ;;  %v1258_v41 = vld [vmem:[%s9820_s1 + $0x1ea8] sm:$0xff] }
 0x23a   : > { %6814 = vmatpush1.bf16.msra.mxu0 %v9014_v9  ;;  %7142 = vmatpush1.bf16.msra.mxu1 %v9016_v3  ;;  %v9062_v9 = vcombine.low %v1213_v47, %v1217_v48  ;;  %v9064_v3 = vcombine.low %v1214_v50, %v1218_v51  ;;  %v1261_v47 = vld [vmem:[%s9820_s1 + $0x1ec0] sm:$0xff]  ;;  %v1262_v50 = vld [vmem:[%s9820_s1 + $0x1ec8] sm:$0xff] }
 0x23b   : > { %6824 = vmatprep.subr.bf16.mxu0 %v9023_v4  ;;  %7152 = vmatprep.subr.bf16.mxu1 %v9025_v5  ;;  %v9071_v4 = vcombine.high %v1221_v58, %v1225_v61  ;;  %v9073_v5 = vcombine.high %v1222_v62, %v1226_v63  ;;  %v1265_v48 = vld [vmem:[%s9820_s1 + $0x1ee0] sm:$0xff]  ;;  %v1266_v51 = vld [vmem:[%s9820_s1 + $0x1ee8] sm:$0xff] }
 0x23d   : > { %6816 = vmatmul.mubr.bf16.vlgmr.msra.gmra.mrb[0].mxu0 %v10414_v8  ;;  %7144 = vmatmul.mubr.bf16.vlgmr.msra.gmra.mrb[0].mxu1 %v10414_v8 }
 0x23e   : > { %6825 = vmatpush1.bf16.msra.mxu0 %v9022_v13  ;;  %7153 = vmatpush1.bf16.msra.mxu1 %v9024_v14  ;;  %v9070_v13 = vcombine.low %v1221_v58, %v1225_v61  ;;  %v9072_v14 = vcombine.low %v1222_v62, %v1226_v63  ;;  %v1269_v58 = vld [vmem:[%s9820_s1 + $0x1f00] sm:$0xff]  ;;  %v1270_v62 = vld [vmem:[%s9820_s1 + $0x1f08] sm:$0xff] }
 0x23f   : > { %6826 = vmatprep.subr.bf16.mxu0 %v9031_v15  ;;  %7154 = vmatprep.subr.bf16.mxu1 %v9033_v16  ;;  %v9079_v15 = vcombine.high %v1229_v30, %v1233_v7  ;;  %v9081_v16 = vcombine.high %v1230_v11, %v1234_v12  ;;  %v1273_v61 = vld [vmem:[%s9820_s1 + $0x1f20] sm:$0xff]  ;;  %v1274_v63 = vld [vmem:[%s9820_s1 + $0x1f28] sm:$0xff] }
 0x240   : > { %6856 = vmatprep.mubr.bf16.mxu0 %v10422_v19  ;;  %7184 = vmatprep.mubr.bf16.mxu1 %v10422_v19 }
 0x242   : > { %6827 = vmatpush1.bf16.msra.mxu0 %v9030_v21  ;;  %7155 = vmatpush1.bf16.msra.mxu1 %v9032_v22  ;;  %v9078_v21 = vcombine.low %v1229_v30, %v1233_v7  ;;  %v9080_v22 = vcombine.low %v1230_v11, %v1234_v12  ;;  %v1277_v30 = vld [vmem:[%s9820_s1 + $0x1f40] sm:$0xff]  ;;  %v1278_v11 = vld [vmem:[%s9820_s1 + $0x1f48] sm:$0xff] }
 0x243   : > { %6828 = vmatprep.subr.bf16.mxu0 %v9039_v23  ;;  %7156 = vmatprep.subr.bf16.mxu1 %v9041_v25  ;;  %v9087_v23 = vcombine.high %v1237_v2, %v1241_v18  ;;  %v9089_v25 = vcombine.high %v1238_v54, %v1242_v17  ;;  %v1281_v7 = vld [vmem:[%s9820_s1 + $0x1f60] sm:$0xff]  ;;  %v1282_v12 = vld [vmem:[%s9820_s1 + $0x1f68] sm:$0xff] }
 0x246   : > { %6829 = vmatpush1.bf16.msra.mxu0 %v9038_v32  ;;  %7157 = vmatpush1.bf16.msra.mxu1 %v9040_v0  ;;  %v9086_v32 = vcombine.low %v1237_v2, %v1241_v18  ;;  %v9088_v0 = vcombine.low %v1238_v54, %v1242_v17  ;;  %v1285_v2 = vld [vmem:[%s9820_s1 + $0x1f80] sm:$0xff]  ;;  %v1286_v54 = vld [vmem:[%s9820_s1 + $0x1f88] sm:$0xff] }
 0x247   : > { %6830 = vmatprep.subr.bf16.mxu0 %v9047_v34  ;;  %7158 = vmatprep.subr.bf16.mxu1 %v9049_v35  ;;  %v9095_v34 = vcombine.high %v1245_v26, %v1249_v27  ;;  %v9097_v35 = vcombine.high %v1246_v29, %v1250_v31  ;;  %v1289_v18 = vld [vmem:[%s9820_s1 + $0x1fa0] sm:$0xff]  ;;  %v1290_v17 = vld [vmem:[%s9820_s1 + $0x1fa8] sm:$0xff] }
 0x24a   : > { %6831 = vmatpush1.bf16.msra.mxu0 %v9046_v42  ;;  %7159 = vmatpush1.bf16.msra.mxu1 %v9048_v43  ;;  %v9094_v42 = vcombine.low %v1245_v26, %v1249_v27  ;;  %v9096_v43 = vcombine.low %v1246_v29, %v1250_v31  ;;  %v1293_v26 = vld [vmem:[%s9820_s1 + $0x1fc0] sm:$0xff]  ;;  %v1294_v29 = vld [vmem:[%s9820_s1 + $0x1fc8] sm:$0xff] }
 0x24b   : > { %6832 = vmatprep.subr.bf16.mxu0 %v9055_v44  ;;  %7160 = vmatprep.subr.bf16.mxu1 %v9057_v46  ;;  %v9103_v44 = vcombine.high %v1253_v36, %v1257_v37  ;;  %v9105_v46 = vcombine.high %v1254_v40, %v1258_v41  ;;  %v1297_v27 = vld [vmem:[%s9820_s1 + $0x1fe0] sm:$0xff]  ;;  %v1298_v31 = vld [vmem:[%s9820_s1 + $0x1fe8] sm:$0xff] }
 0x24e   : > { %6833 = vmatpush1.bf16.msra.mxu0 %v9054_v53  ;;  %7161 = vmatpush1.bf16.msra.mxu1 %v9056_v55  ;;  %v9102_v53 = vcombine.low %v1253_v36, %v1257_v37  ;;  %v9104_v55 = vcombine.low %v1254_v40, %v1258_v41  ;;  %v279_v36 = vld [vmem:[%s9820_s1 + $0x10] sm:$0xff]  ;;  %v280_v40 = vld [vmem:[%s9820_s1 + $0x18] sm:$0xff] }
 0x24f   : > { %6834 = vmatprep.subr.bf16.mxu0 %v9063_v56  ;;  %7162 = vmatprep.subr.bf16.mxu1 %v9065_v57  ;;  %v9111_v56 = vcombine.high %v1261_v47, %v1265_v48  ;;  %v9113_v57 = vcombine.high %v1262_v50, %v1266_v51  ;;  %v283_v37 = vld [vmem:[%s9820_s1 + $0x30] sm:$0xff]  ;;  %v284_v41 = vld [vmem:[%s9820_s1 + $0x38] sm:$0xff] }
 0x252   : > { %6835 = vmatpush1.bf16.msra.mxu0 %v9062_v9  ;;  %7163 = vmatpush1.bf16.msra.mxu1 %v9064_v3  ;;  %v9110_v9 = vcombine.low %v1261_v47, %v1265_v48  ;;  %v9112_v3 = vcombine.low %v1262_v50, %v1266_v51  ;;  %v287_v47 = vld [vmem:[%s9820_s1 + $0x50] sm:$0xff]  ;;  %v10490_v50 = vcombine.high %v10414_v8, %v10414_v8  ;;  %v288_v51 = vld [vmem:[%s9820_s1 + $0x58] sm:$0xff] }
 0x253   : > { %6836 = vmatprep.subr.bf16.mxu0 %v9071_v4  ;;  %7164 = vmatprep.subr.bf16.mxu1 %v9073_v5  ;;  %v9119_v4 = vcombine.high %v1269_v58, %v1273_v61  ;;  %v9121_v5 = vcombine.high %v1270_v62, %v1274_v63  ;;  %v291_v48 = vld [vmem:[%s9820_s1 + $0x70] sm:$0xff] }
 0x256   : > { %6837 = vmatpush1.bf16.msra.mxu0 %v9070_v13  ;;  %7165 = vmatpush1.bf16.msra.mxu1 %v9072_v14  ;;  %v9118_v13 = vcombine.low %v1269_v58, %v1273_v61  ;;  %v9120_v14 = vcombine.low %v1270_v62, %v1274_v63  ;;  %v295_v61 = vld [vmem:[%s9820_s1 + $0x90] sm:$0xff]  ;;  %v296_v63 = vld [vmem:[%s9820_s1 + $0x98] sm:$0xff] }
 0x257   : > { %6838 = vmatprep.subr.bf16.mxu0 %v9079_v15  ;;  %7166 = vmatprep.subr.bf16.mxu1 %v9081_v16  ;;  %v9127_v15 = vcombine.high %v1277_v30, %v1281_v7  ;;  %v9129_v16 = vcombine.high %v1278_v11, %v1282_v12  ;;  %v299_v62 = vld [vmem:[%s9820_s1 + $0xb0] sm:$0xff] }
 0x25a   : > { %6839 = vmatpush1.bf16.msra.mxu0 %v9078_v21  ;;  %7167 = vmatpush1.bf16.msra.mxu1 %v9080_v22  ;;  %v9126_v21 = vcombine.low %v1277_v30, %v1281_v7  ;;  %v9128_v22 = vcombine.low %v1278_v11, %v1282_v12  ;;  %v303_v7 = vld [vmem:[%s9820_s1 + $0xd0] sm:$0xff]  ;;  %v304_v12 = vld [vmem:[%s9820_s1 + $0xd8] sm:$0xff] }
 0x25b   : > { %6840 = vmatprep.subr.bf16.mxu0 %v9087_v23  ;;  %7168 = vmatprep.subr.bf16.mxu1 %v9089_v25  ;;  %v9135_v23 = vcombine.high %v1285_v2, %v1289_v18  ;;  %v9137_v25 = vcombine.high %v1286_v54, %v1290_v17  ;;  %v307_v11 = vld [vmem:[%s9820_s1 + $0xf0] sm:$0xff] }
 0x25e   : > { %6841 = vmatpush1.bf16.msra.mxu0 %v9086_v32  ;;  %7169 = vmatpush1.bf16.msra.mxu1 %v9088_v0  ;;  %v9134_v32 = vcombine.low %v1285_v2, %v1289_v18  ;;  %v9136_v0 = vcombine.low %v1286_v54, %v1290_v17  ;;  %v311_v18 = vld [vmem:[%s9820_s1 + $0x110] sm:$0xff]  ;;  %v312_v17 = vld [vmem:[%s9820_s1 + $0x118] sm:$0xff] }
 0x25f   : > { %6842 = vmatprep.subr.bf16.mxu0 %v9095_v34  ;;  %7170 = vmatprep.subr.bf16.mxu1 %v9097_v35  ;;  %v9143_v34 = vcombine.high %v1293_v26, %v1297_v27  ;;  %v9145_v35 = vcombine.high %v1294_v29, %v1298_v31  ;;  %v315_v54 = vld [vmem:[%s9820_s1 + $0x130] sm:$0xff] }
 0x262   : > { %6843 = vmatpush1.bf16.msra.mxu0 %v9094_v42  ;;  %7171 = vmatpush1.bf16.msra.mxu1 %v9096_v43  ;;  %v9142_v42 = vcombine.low %v1293_v26, %v1297_v27  ;;  %v9144_v43 = vcombine.low %v1294_v29, %v1298_v31  ;;  %v319_v26 = vld [vmem:[%s9820_s1 + $0x150] sm:$0xff]  ;;  %v320_v29 = vld [vmem:[%s9820_s1 + $0x158] sm:$0xff] }
 0x263   : > { %6844 = vmatprep.subr.bf16.mxu0 %v9103_v44  ;;  %7172 = vmatprep.subr.bf16.mxu1 %v9105_v46  ;;  %v8131_v44 = vcombine.high %v279_v36, %v283_v37  ;;  %v8133_v46 = vcombine.high %v280_v40, %v284_v41  ;;  %v323_v27 = vld [vmem:[%s9820_s1 + $0x170] sm:$0xff]  ;;  %v324_v31 = vld [vmem:[%s9820_s1 + $0x178] sm:$0xff] }
 0x266   : > { %6845 = vmatpush1.bf16.msra.mxu0 %v9102_v53  ;;  %7173 = vmatpush1.bf16.msra.mxu1 %v9104_v55  ;;  %v292_v53 = vld [vmem:[%s9820_s1 + $0x78] sm:$0xff]  ;;  %v8130_v55 = vcombine.low %v279_v36, %v283_v37  ;;  %v327_v36 = vld [vmem:[%s9820_s1 + $0x190] sm:$0xff] }
 0x267   : > { %6846 = vmatprep.subr.bf16.mxu0 %v9111_v56  ;;  %7174 = vmatprep.subr.bf16.mxu1 %v9113_v57  ;;  %v8132_v56 = vcombine.low %v280_v40, %v284_v41  ;;  %v8139_v57 = vcombine.high %v287_v47, %v291_v48  ;;  %v8141_v58 = vcombine.high %v288_v51, %v292_v53  ;;  %v331_v37 = vld [vmem:[%s9820_s1 + $0x1b0] sm:$0xff]  ;;  %v328_v40 = vld [vmem:[%s9820_s1 + $0x198] sm:$0xff] }
 0x268   : > { %v332_v41 = vld [vmem:[%s9820_s1 + $0x1b8] sm:$0xff] }
 0x26a   : > { %6847 = vmatpush1.bf16.msra.mxu0 %v9110_v9  ;;  %7175 = vmatpush1.bf16.msra.mxu1 %v9112_v3  ;;  %v300_v9 = vld [vmem:[%s9820_s1 + $0xb8] sm:$0xff]  ;;  %v8138_v3 = vcombine.low %v287_v47, %v291_v48  ;;  %v335_v47 = vld [vmem:[%s9820_s1 + $0x1d0] sm:$0xff] }
 0x26b   : > { %6848 = vmatprep.subr.bf16.mxu0 %v9119_v4  ;;  %7176 = vmatprep.subr.bf16.mxu1 %v9121_v5  ;;  %v8140_v4 = vcombine.low %v288_v51, %v292_v53  ;;  %v8147_v5 = vcombine.high %v295_v61, %v299_v62  ;;  %v8149_v30 = vcombine.high %v296_v63, %v300_v9  ;;  %v339_v48 = vld [vmem:[%s9820_s1 + $0x1f0] sm:$0xff]  ;;  %v336_v51 = vld [vmem:[%s9820_s1 + $0x1d8] sm:$0xff] }
 0x26c   : > { %v340_v53 = vld [vmem:[%s9820_s1 + $0x1f8] sm:$0xff] }
 0x26e   : > { %6849 = vmatpush1.bf16.msra.mxu0 %v9118_v13  ;;  %7177 = vmatpush1.bf16.msra.mxu1 %v9120_v14  ;;  %v308_v13 = vld [vmem:[%s9820_s1 + $0xf8] sm:$0xff]  ;;  %v8146_v14 = vcombine.low %v295_v61, %v299_v62  ;;  %v343_v61 = vld [vmem:[%s9820_s1 + $0x210] sm:$0xff] }
 0x26f   : > { %6850 = vmatprep.subr.bf16.mxu0 %v9127_v15  ;;  %7178 = vmatprep.subr.bf16.mxu1 %v9129_v16  ;;  %v8148_v15 = vcombine.low %v296_v63, %v300_v9  ;;  %v8155_v16 = vcombine.high %v303_v7, %v307_v11  ;;  %v8157_v2 = vcombine.high %v304_v12, %v308_v13  ;;  %v347_v62 = vld [vmem:[%s9820_s1 + $0x230] sm:$0xff]  ;;  %v344_v63 = vld [vmem:[%s9820_s1 + $0x218] sm:$0xff] }
 0x270   : > { %v348_v9 = vld [vmem:[%s9820_s1 + $0x238] sm:$0xff] }
 0x272   : > { %6851 = vmatpush1.bf16.msra.mxu0 %v9126_v21  ;;  %7179 = vmatpush1.bf16.msra.mxu1 %v9128_v22  ;;  %v316_v21 = vld [vmem:[%s9820_s1 + $0x138] sm:$0xff]  ;;  %v8154_v22 = vcombine.low %v303_v7, %v307_v11  ;;  %v351_v7 = vld [vmem:[%s9820_s1 + $0x250] sm:$0xff] }
 0x273   : > { %6852 = vmatprep.subr.bf16.mxu0 %v9135_v23  ;;  %7180 = vmatprep.subr.bf16.mxu1 %v9137_v25  ;;  %v8163_v23 = vcombine.high %v311_v18, %v315_v54  ;;  %v8165_v25 = vcombine.high %v312_v17, %v316_v21  ;;  %v355_v11 = vld [vmem:[%s9820_s1 + $0x270] sm:$0xff] }
 0x276   : > { %6853 = vmatpush1.bf16.msra.mxu0 %v9134_v32  ;;  %7181 = vmatpush1.bf16.msra.mxu1 %v9136_v0  ;;  %v8162_v32 = vcombine.low %v311_v18, %v315_v54  ;;  %v8164_v0 = vcombine.low %v312_v17, %v316_v21  ;;  %v359_v18 = vld [vmem:[%s9820_s1 + $0x290] sm:$0xff]  ;;  %v360_v17 = vld [vmem:[%s9820_s1 + $0x298] sm:$0xff] }
 0x277   : > { %6854 = vmatprep.subr.bf16.mxu0 %v9143_v34  ;;  %7182 = vmatprep.subr.bf16.mxu1 %v9145_v35  ;;  %v8171_v34 = vcombine.high %v319_v26, %v323_v27  ;;  %v8173_v35 = vcombine.high %v320_v29, %v324_v31  ;;  %v363_v54 = vld [vmem:[%s9820_s1 + $0x2b0] sm:$0xff]  ;;  %v364_v21 = vld [vmem:[%s9820_s1 + $0x2b8] sm:$0xff] }
 0x27a   : > { %6855 = vmatpush1.bf16.msra.mxu0 %v9142_v42  ;;  %7183 = vmatpush1.bf16.msra.mxu1 %v9144_v43  ;;  %v8170_v42 = vcombine.low %v319_v26, %v323_v27  ;;  %v8172_v43 = vcombine.low %v320_v29, %v324_v31  ;;  %v367_v26 = vld [vmem:[%s9820_s1 + $0x2d0] sm:$0xff]  ;;  %v368_v29 = vld [vmem:[%s9820_s1 + $0x2d8] sm:$0xff] }
 0x27b   : > { %7193 = vmatprep.subr.bf16.mxu0 %v8131_v44  ;;  %7521 = vmatprep.subr.bf16.mxu1 %v8133_v46  ;;  %v8179_v44 = vcombine.high %v327_v36, %v331_v37  ;;  %v8181_v46 = vcombine.high %v328_v40, %v332_v41  ;;  %v371_v27 = vld [vmem:[%s9820_s1 + $0x2f0] sm:$0xff]  ;;  %v372_v31 = vld [vmem:[%s9820_s1 + $0x2f8] sm:$0xff] }
 0x27d   : > { %6857 = vmatmul.mubr.bf16.vlgmr.msra.gmra.mrb[0].mxu0 %v10490_v50  ;;  %7185 = vmatmul.mubr.bf16.vlgmr.msra.gmra.mrb[0].mxu1 %v10490_v50 }
 0x27e   : > { %7194 = vmatpush1.bf16.msra.mxu0 %v8130_v55  ;;  %7522 = vmatpush1.bf16.msra.mxu1 %v8132_v56  ;;  %v8178_v55 = vcombine.low %v327_v36, %v331_v37  ;;  %v8180_v56 = vcombine.low %v328_v40, %v332_v41  ;;  %v375_v36 = vld [vmem:[%s9820_s1 + $0x310] sm:$0xff]  ;;  %v376_v40 = vld [vmem:[%s9820_s1 + $0x318] sm:$0xff] }
 0x27f   : > { %7195 = vmatprep.subr.bf16.mxu0 %v8139_v57  ;;  %7523 = vmatprep.subr.bf16.mxu1 %v8141_v58  ;;  %v8187_v57 = vcombine.high %v335_v47, %v339_v48  ;;  %v8189_v58 = vcombine.high %v336_v51, %v340_v53  ;;  %v379_v37 = vld [vmem:[%s9820_s1 + $0x330] sm:$0xff]  ;;  %v380_v41 = vld [vmem:[%s9820_s1 + $0x338] sm:$0xff] }
 0x280   : > { %7225 = vmatprep.mubr.bf16.mxu0 %v9896_v10  ;;  %7553 = vmatprep.mubr.bf16.mxu1 %v9896_v10  ;;  %v8156_v10 = vcombine.low %v304_v12, %v308_v13  ;;  %v352_v12 = vld [vmem:[%s9820_s1 + $0x258] sm:$0xff] }
 0x281   : > { %v356_v13 = vld [vmem:[%s9820_s1 + $0x278] sm:$0xff] }
 0x282   : > { %7196 = vmatpush1.bf16.msra.mxu0 %v8138_v3  ;;  %7524 = vmatpush1.bf16.msra.mxu1 %v8140_v4  ;;  %v8186_v3 = vcombine.low %v335_v47, %v339_v48  ;;  %v8188_v4 = vcombine.low %v336_v51, %v340_v53  ;;  %v383_v47 = vld [vmem:[%s9820_s1 + $0x350] sm:$0xff]  ;;  %v384_v51 = vld [vmem:[%s9820_s1 + $0x358] sm:$0xff] }
 0x283   : > { %7197 = vmatprep.subr.bf16.mxu0 %v8147_v5  ;;  %7525 = vmatprep.subr.bf16.mxu1 %v8149_v30  ;;  %v8195_v5 = vcombine.high %v343_v61, %v347_v62  ;;  %v8197_v30 = vcombine.high %v344_v63, %v348_v9  ;;  %v387_v48 = vld [vmem:[%s9820_s1 + $0x370] sm:$0xff]  ;;  %v388_v53 = vld [vmem:[%s9820_s1 + $0x378] sm:$0xff] }
 0x286   : > { %7198 = vmatpush1.bf16.msra.mxu0 %v8146_v14  ;;  %7526 = vmatpush1.bf16.msra.mxu1 %v8148_v15  ;;  %v8194_v14 = vcombine.low %v343_v61, %v347_v62  ;;  %v8196_v15 = vcombine.low %v344_v63, %v348_v9  ;;  %v391_v61 = vld [vmem:[%s9820_s1 + $0x390] sm:$0xff]  ;;  %v392_v63 = vld [vmem:[%s9820_s1 + $0x398] sm:$0xff] }
 0x287   : > { %7199 = vmatprep.subr.bf16.mxu0 %v8155_v16  ;;  %7527 = vmatprep.subr.bf16.mxu1 %v8157_v2  ;;  %v8203_v16 = vcombine.high %v351_v7, %v355_v11  ;;  %v8205_v2 = vcombine.high %v352_v12, %v356_v13  ;;  %v395_v62 = vld [vmem:[%s9820_s1 + $0x3b0] sm:$0xff]  ;;  %v396_v9 = vld [vmem:[%s9820_s1 + $0x3b8] sm:$0xff] }
 0x28a   : > { %7200 = vmatpush1.bf16.msra.mxu0 %v8154_v22  ;;  %7528 = vmatpush1.bf16.msra.mxu1 %v8156_v10  ;;  %v8202_v22 = vcombine.low %v351_v7, %v355_v11  ;;  %v8204_v10 = vcombine.low %v352_v12, %v356_v13  ;;  %v399_v7 = vld [vmem:[%s9820_s1 + $0x3d0] sm:$0xff]  ;;  %v400_v12 = vld [vmem:[%s9820_s1 + $0x3d8] sm:$0xff] }
 0x28b   : > { %7201 = vmatprep.subr.bf16.mxu0 %v8163_v23  ;;  %7529 = vmatprep.subr.bf16.mxu1 %v8165_v25  ;;  %v8211_v23 = vcombine.high %v359_v18, %v363_v54  ;;  %v8213_v25 = vcombine.high %v360_v17, %v364_v21  ;;  %v403_v11 = vld [vmem:[%s9820_s1 + $0x3f0] sm:$0xff]  ;;  %v404_v13 = vld [vmem:[%s9820_s1 + $0x3f8] sm:$0xff] }
 0x28e   : > { %7202 = vmatpush1.bf16.msra.mxu0 %v8162_v32  ;;  %7530 = vmatpush1.bf16.msra.mxu1 %v8164_v0  ;;  %v8210_v32 = vcombine.low %v359_v18, %v363_v54  ;;  %v8212_v0 = vcombine.low %v360_v17, %v364_v21  ;;  %v407_v18 = vld [vmem:[%s9820_s1 + $0x410] sm:$0xff]  ;;  %v408_v17 = vld [vmem:[%s9820_s1 + $0x418] sm:$0xff] }
 0x28f   : > { %7203 = vmatprep.subr.bf16.mxu0 %v8171_v34  ;;  %7531 = vmatprep.subr.bf16.mxu1 %v8173_v35  ;;  %v8219_v34 = vcombine.high %v367_v26, %v371_v27  ;;  %v8221_v35 = vcombine.high %v368_v29, %v372_v31  ;;  %v411_v54 = vld [vmem:[%s9820_s1 + $0x430] sm:$0xff]  ;;  %v412_v21 = vld [vmem:[%s9820_s1 + $0x438] sm:$0xff] }
 0x292   : > { %7204 = vmatpush1.bf16.msra.mxu0 %v8170_v42  ;;  %7532 = vmatpush1.bf16.msra.mxu1 %v8172_v43  ;;  %v8218_v42 = vcombine.low %v367_v26, %v371_v27  ;;  %v8220_v43 = vcombine.low %v368_v29, %v372_v31  ;;  %v415_v26 = vld [vmem:[%s9820_s1 + $0x450] sm:$0xff]  ;;  %v416_v29 = vld [vmem:[%s9820_s1 + $0x458] sm:$0xff] }
 0x293   : > { %7205 = vmatprep.subr.bf16.mxu0 %v8179_v44  ;;  %7533 = vmatprep.subr.bf16.mxu1 %v8181_v46  ;;  %v8227_v44 = vcombine.high %v375_v36, %v379_v37  ;;  %v8229_v46 = vcombine.high %v376_v40, %v380_v41  ;;  %v419_v27 = vld [vmem:[%s9820_s1 + $0x470] sm:$0xff]  ;;  %v420_v31 = vld [vmem:[%s9820_s1 + $0x478] sm:$0xff] }
 0x296   : > { %7206 = vmatpush1.bf16.msra.mxu0 %v8178_v55  ;;  %7534 = vmatpush1.bf16.msra.mxu1 %v8180_v56  ;;  %v8226_v55 = vcombine.low %v375_v36, %v379_v37  ;;  %v8228_v56 = vcombine.low %v376_v40, %v380_v41  ;;  %v423_v36 = vld [vmem:[%s9820_s1 + $0x490] sm:$0xff]  ;;  %v424_v40 = vld [vmem:[%s9820_s1 + $0x498] sm:$0xff] }
 0x297   : > { %7207 = vmatprep.subr.bf16.mxu0 %v8187_v57  ;;  %7535 = vmatprep.subr.bf16.mxu1 %v8189_v58  ;;  %v8235_v57 = vcombine.high %v383_v47, %v387_v48  ;;  %v8237_v58 = vcombine.high %v384_v51, %v388_v53  ;;  %v427_v37 = vld [vmem:[%s9820_s1 + $0x4b0] sm:$0xff]  ;;  %v428_v41 = vld [vmem:[%s9820_s1 + $0x4b8] sm:$0xff] }
 0x29a   : > { %7208 = vmatpush1.bf16.msra.mxu0 %v8186_v3  ;;  %7536 = vmatpush1.bf16.msra.mxu1 %v8188_v4  ;;  %v8234_v3 = vcombine.low %v383_v47, %v387_v48  ;;  %v8236_v4 = vcombine.low %v384_v51, %v388_v53  ;;  %v431_v47 = vld [vmem:[%s9820_s1 + $0x4d0] sm:$0xff]  ;;  %v432_v51 = vld [vmem:[%s9820_s1 + $0x4d8] sm:$0xff] }
 0x29b   : > { %7209 = vmatprep.subr.bf16.mxu0 %v8195_v5  ;;  %7537 = vmatprep.subr.bf16.mxu1 %v8197_v30  ;;  %v8243_v5 = vcombine.high %v391_v61, %v395_v62  ;;  %v8245_v30 = vcombine.high %v392_v63, %v396_v9  ;;  %v435_v48 = vld [vmem:[%s9820_s1 + $0x4f0] sm:$0xff]  ;;  %v436_v53 = vld [vmem:[%s9820_s1 + $0x4f8] sm:$0xff] }
 0x29e   : > { %7210 = vmatpush1.bf16.msra.mxu0 %v8194_v14  ;;  %7538 = vmatpush1.bf16.msra.mxu1 %v8196_v15  ;;  %v8242_v14 = vcombine.low %v391_v61, %v395_v62  ;;  %v8244_v15 = vcombine.low %v392_v63, %v396_v9  ;;  %v443_v61 = vld [vmem:[%s9820_s1 + $0x530] sm:$0xff]  ;;  %v440_v62 = vld [vmem:[%s9820_s1 + $0x518] sm:$0xff]  ;;  %v8282_v9 = vcombine.low %v431_v47, %v435_v48 }
 0x29f   : > { %7211 = vmatprep.subr.bf16.mxu0 %v8203_v16  ;;  %7539 = vmatprep.subr.bf16.mxu1 %v8205_v2  ;;  %v8251_v16 = vcombine.high %v399_v7, %v403_v11  ;;  %v8253_v2 = vcombine.high %v400_v12, %v404_v13  ;;  %v444_v63 = vld [vmem:[%s9820_s1 + $0x538] sm:$0xff] }
 0x2a2   : > { %7212 = vmatpush1.bf16.msra.mxu0 %v8202_v22  ;;  %7540 = vmatpush1.bf16.msra.mxu1 %v8204_v10  ;;  %v8250_v22 = vcombine.low %v399_v7, %v403_v11  ;;  %v8252_v10 = vcombine.low %v400_v12, %v404_v13  ;;  %v448_v7 = vld [vmem:[%s9820_s1 + $0x558] sm:$0xff]  ;;  %v8292_v13 = vcombine.low %v440_v62, %v444_v63 }
 0x2a3   : > { %7213 = vmatprep.subr.bf16.mxu0 %v8211_v23  ;;  %7541 = vmatprep.subr.bf16.mxu1 %v8213_v25  ;;  %v8259_v23 = vcombine.high %v407_v18, %v411_v54  ;;  %v8261_v25 = vcombine.high %v408_v17, %v412_v21  ;;  %v452_v11 = vld [vmem:[%s9820_s1 + $0x578] sm:$0xff] }
 0x2a6   : > { %7214 = vmatpush1.bf16.msra.mxu0 %v8210_v32  ;;  %7542 = vmatpush1.bf16.msra.mxu1 %v8212_v0  ;;  %v8258_v32 = vcombine.low %v407_v18, %v411_v54  ;;  %v8260_v0 = vcombine.low %v408_v17, %v412_v21  ;;  %v456_v18 = vld [vmem:[%s9820_s1 + $0x598] sm:$0xff]  ;;  %v8300_v21 = vcombine.low %v448_v7, %v452_v11 }
 0x2a7   : > { %7215 = vmatprep.subr.bf16.mxu0 %v8219_v34  ;;  %7543 = vmatprep.subr.bf16.mxu1 %v8221_v35  ;;  %v8267_v34 = vcombine.high %v415_v26, %v419_v27  ;;  %v8269_v35 = vcombine.high %v416_v29, %v420_v31  ;;  %v460_v54 = vld [vmem:[%s9820_s1 + $0x5b8] sm:$0xff] }
 0x2aa   : > { %7216 = vmatpush1.bf16.msra.mxu0 %v8218_v42  ;;  %7544 = vmatpush1.bf16.msra.mxu1 %v8220_v43  ;;  %v8266_v42 = vcombine.low %v415_v26, %v419_v27  ;;  %v8268_v43 = vcombine.low %v416_v29, %v420_v31  ;;  %v464_v26 = vld [vmem:[%s9820_s1 + $0x5d8] sm:$0xff]  ;;  %v8308_v31 = vcombine.low %v456_v18, %v460_v54 }
 0x2ab   : > { %7217 = vmatprep.subr.bf16.mxu0 %v8227_v44  ;;  %7545 = vmatprep.subr.bf16.mxu1 %v8229_v46  ;;  %v8275_v44 = vcombine.high %v423_v36, %v427_v37  ;;  %v8277_v46 = vcombine.high %v424_v40, %v428_v41  ;;  %v468_v27 = vld [vmem:[%s9820_s1 + $0x5f8] sm:$0xff] }
 0x2ae   : > { %7218 = vmatpush1.bf16.msra.mxu0 %v8226_v55  ;;  %7546 = vmatpush1.bf16.msra.mxu1 %v8228_v56  ;;  %v8276_v55 = vcombine.low %v424_v40, %v428_v41  ;;  %v8283_v56 = vcombine.high %v431_v47, %v435_v48  ;;  %v8316_v41 = vcombine.low %v464_v26, %v468_v27  ;;  %v480_v47 = vld [vmem:[%s9820_s1 + $0x658] sm:$0xff] }
 0x2af   : > { %7219 = vmatprep.subr.bf16.mxu0 %v8235_v57  ;;  %7547 = vmatprep.subr.bf16.mxu1 %v8237_v58  ;;  %v8285_v57 = vcombine.high %v432_v51, %v436_v53  ;;  %v439_v58 = vld [vmem:[%s9820_s1 + $0x510] sm:$0xff]  ;;  %v484_v48 = vld [vmem:[%s9820_s1 + $0x678] sm:$0xff] }
 0x2b0   : > { %v8290_v12 = vcombine.low %v439_v58, %v443_v61 }
 0x2b2   : > { %7220 = vmatpush1.bf16.msra.mxu0 %v8234_v3  ;;  %7548 = vmatpush1.bf16.msra.mxu1 %v8236_v4  ;;  %v8291_v3 = vcombine.high %v439_v58, %v443_v61  ;;  %v8293_v4 = vcombine.high %v440_v62, %v444_v63  ;;  %v488_v58 = vld [vmem:[%s9820_s1 + $0x698] sm:$0xff]  ;;  %v8332_v63 = vcombine.low %v480_v47, %v484_v48 }
 0x2b3   : > { %7221 = vmatprep.subr.bf16.mxu0 %v8243_v5  ;;  %7549 = vmatprep.subr.bf16.mxu1 %v8245_v30  ;;  %v447_v5 = vld [vmem:[%s9820_s1 + $0x550] sm:$0xff]  ;;  %v492_v61 = vld [vmem:[%s9820_s1 + $0x6b8] sm:$0xff] }
 0x2b4   : > { %v451_v30 = vld [vmem:[%s9820_s1 + $0x570] sm:$0xff] }
 0x2b5   : > { %v8298_v17 = vcombine.low %v447_v5, %v451_v30 }
 0x2b6   : > { %7222 = vmatpush1.bf16.msra.mxu0 %v8242_v14  ;;  %7550 = vmatpush1.bf16.msra.mxu1 %v8244_v15  ;;  %v8299_v14 = vcombine.high %v447_v5, %v451_v30  ;;  %v8301_v15 = vcombine.high %v448_v7, %v452_v11  ;;  %v496_v5 = vld [vmem:[%s9820_s1 + $0x6d8] sm:$0xff]  ;;  %v8340_v11 = vcombine.low %v488_v58, %v492_v61 }
 0x2b7   : > { %7223 = vmatprep.subr.bf16.mxu0 %v8251_v16  ;;  %7551 = vmatprep.subr.bf16.mxu1 %v8253_v2  ;;  %v455_v16 = vld [vmem:[%s9820_s1 + $0x590] sm:$0xff]  ;;  %v500_v30 = vld [vmem:[%s9820_s1 + $0x6f8] sm:$0xff] }
 0x2b8   : > { %v459_v2 = vld [vmem:[%s9820_s1 + $0x5b0] sm:$0xff] }
 0x2b9   : > { %v8306_v29 = vcombine.low %v455_v16, %v459_v2 }
 0x2ba   : > { %7224 = vmatpush1.bf16.msra.mxu0 %v8250_v22  ;;  %7552 = vmatpush1.bf16.msra.mxu1 %v8252_v10  ;;  %v8307_v22 = vcombine.high %v455_v16, %v459_v2  ;;  %v8309_v10 = vcombine.high %v456_v18, %v460_v54  ;;  %v504_v16 = vld [vmem:[%s9820_s1 + $0x718] sm:$0xff]  ;;  %v8348_v54 = vcombine.low %v496_v5, %v500_v30 }
 0x2bb   : > { %7234 = vmatprep.subr.bf16.mxu0 %v8259_v23  ;;  %7562 = vmatprep.subr.bf16.mxu1 %v8261_v25  ;;  %v463_v23 = vld [vmem:[%s9820_s1 + $0x5d0] sm:$0xff]  ;;  %v508_v2 = vld [vmem:[%s9820_s1 + $0x738] sm:$0xff] }
 0x2bc   : > { %v467_v25 = vld [vmem:[%s9820_s1 + $0x5f0] sm:$0xff] }
 0x2bd   : > { %7226 = vmatmul.mubr.bf16.vlgmr.msra.gmra.mrb[4].mxu0 %v9938_v24  ;;  %7554 = vmatmul.mubr.bf16.vlgmr.msra.gmra.mrb[4].mxu1 %v9938_v24  ;;  %v8274_v24 = vcombine.low %v423_v36, %v427_v37  ;;  %v472_v36 = vld [vmem:[%s9820_s1 + $0x618] sm:$0xff]  ;;  %v8314_v40 = vcombine.low %v463_v23, %v467_v25 }
 0x2be   : > { %7235 = vmatpush1.bf16.msra.mxu0 %v8258_v32  ;;  %7563 = vmatpush1.bf16.msra.mxu1 %v8260_v0  ;;  %v8315_v32 = vcombine.high %v463_v23, %v467_v25  ;;  %v8317_v0 = vcombine.high %v464_v26, %v468_v27  ;;  %v476_v37 = vld [vmem:[%s9820_s1 + $0x638] sm:$0xff]  ;;  %v8356_v27 = vcombine.low %v504_v16, %v508_v2 }
 0x2bf   : > { %7236 = vmatprep.subr.bf16.mxu0 %v8267_v34  ;;  %7564 = vmatprep.subr.bf16.mxu1 %v8269_v35  ;;  %v471_v34 = vld [vmem:[%s9820_s1 + $0x610] sm:$0xff]  ;;  %v512_v23 = vld [vmem:[%s9820_s1 + $0x758] sm:$0xff] }
 0x2c0   : > { %7266 = vmatprep.mubr.bf16.mxu0 %v9946_v33  ;;  %7594 = vmatprep.mubr.bf16.mxu1 %v9946_v33  ;;  %v8284_v33 = vcombine.low %v432_v51, %v436_v53  ;;  %v475_v35 = vld [vmem:[%s9820_s1 + $0x630] sm:$0xff]  ;;  %v8324_v53 = vcombine.low %v472_v36, %v476_v37  ;;  %v516_v25 = vld [vmem:[%s9820_s1 + $0x778] sm:$0xff] }
 0x2c1   : > { %v8322_v51 = vcombine.low %v471_v34, %v475_v35 }
 0x2c2   : > { %7237 = vmatpush1.bf16.msra.mxu0 %v8266_v42  ;;  %7565 = vmatpush1.bf16.msra.mxu1 %v8268_v43  ;;  %v8323_v42 = vcombine.high %v471_v34, %v475_v35  ;;  %v8325_v43 = vcombine.high %v472_v36, %v476_v37  ;;  %v520_v34 = vld [vmem:[%s9820_s1 + $0x798] sm:$0xff]  ;;  %v8364_v37 = vcombine.low %v512_v23, %v516_v25 }
 0x2c3   : > { %7238 = vmatprep.subr.bf16.mxu0 %v8275_v44  ;;  %7566 = vmatprep.subr.bf16.mxu1 %v8277_v46  ;;  %v479_v44 = vld [vmem:[%s9820_s1 + $0x650] sm:$0xff]  ;;  %v524_v35 = vld [vmem:[%s9820_s1 + $0x7b8] sm:$0xff] }
 0x2c4   : > { %v483_v46 = vld [vmem:[%s9820_s1 + $0x670] sm:$0xff] }
 0x2c5   : > { %v8330_v62 = vcombine.low %v479_v44, %v483_v46 }
 0x2c6   : > { %7239 = vmatpush1.bf16.msra.mxu0 %v8274_v24  ;;  %7567 = vmatpush1.bf16.msra.mxu1 %v8276_v55  ;;  %v8331_v24 = vcombine.high %v479_v44, %v483_v46  ;;  %v8333_v55 = vcombine.high %v480_v47, %v484_v48  ;;  %v528_v44 = vld [vmem:[%s9820_s1 + $0x7d8] sm:$0xff]  ;;  %v8372_v48 = vcombine.low %v520_v34, %v524_v35 }
 0x2c7   : > { %7240 = vmatprep.subr.bf16.mxu0 %v8283_v56  ;;  %7568 = vmatprep.subr.bf16.mxu1 %v8285_v57  ;;  %v487_v56 = vld [vmem:[%s9820_s1 + $0x690] sm:$0xff]  ;;  %v532_v46 = vld [vmem:[%s9820_s1 + $0x7f8] sm:$0xff] }
 0x2c8   : > { %v491_v57 = vld [vmem:[%s9820_s1 + $0x6b0] sm:$0xff] }
 0x2c9   : > { %v8338_v7 = vcombine.low %v487_v56, %v491_v57 }
 0x2ca   : > { %7241 = vmatpush1.bf16.msra.mxu0 %v8282_v9  ;;  %7569 = vmatpush1.bf16.msra.mxu1 %v8284_v33  ;;  %v8339_v9 = vcombine.high %v487_v56, %v491_v57  ;;  %v8341_v33 = vcombine.high %v488_v58, %v492_v61  ;;  %v536_v56 = vld [vmem:[%s9820_s1 + $0x818] sm:$0xff]  ;;  %v8380_v61 = vcombine.low %v528_v44, %v532_v46 }
 0x2cb   : > { %7242 = vmatprep.subr.bf16.mxu0 %v8291_v3  ;;  %7570 = vmatprep.subr.bf16.mxu1 %v8293_v4  ;;  %v495_v3 = vld [vmem:[%s9820_s1 + $0x6d0] sm:$0xff]  ;;  %v540_v57 = vld [vmem:[%s9820_s1 + $0x838] sm:$0xff] }
 0x2cc   : > { %v499_v4 = vld [vmem:[%s9820_s1 + $0x6f0] sm:$0xff] }
 0x2cd   : > { %v8346_v18 = vcombine.low %v495_v3, %v499_v4 }
 0x2ce   : > { %7243 = vmatpush1.bf16.msra.mxu0 %v8290_v12  ;;  %7571 = vmatpush1.bf16.msra.mxu1 %v8292_v13  ;;  %v8347_v12 = vcombine.high %v495_v3, %v499_v4  ;;  %v8349_v13 = vcombine.high %v496_v5, %v500_v30  ;;  %v544_v3 = vld [vmem:[%s9820_s1 + $0x858] sm:$0xff]  ;;  %v8388_v30 = vcombine.low %v536_v56, %v540_v57 }
 0x2cf   : > { %7244 = vmatprep.subr.bf16.mxu0 %v8299_v14  ;;  %7572 = vmatprep.subr.bf16.mxu1 %v8301_v15  ;;  %v503_v14 = vld [vmem:[%s9820_s1 + $0x710] sm:$0xff]  ;;  %v548_v4 = vld [vmem:[%s9820_s1 + $0x878] sm:$0xff] }
 0x2d0   : > { %v507_v15 = vld [vmem:[%s9820_s1 + $0x730] sm:$0xff] }
 0x2d1   : > { %v8354_v26 = vcombine.low %v503_v14, %v507_v15 }
 0x2d2   : > { %7245 = vmatpush1.bf16.msra.mxu0 %v8298_v17  ;;  %7573 = vmatpush1.bf16.msra.mxu1 %v8300_v21  ;;  %v8355_v17 = vcombine.high %v503_v14, %v507_v15  ;;  %v8357_v21 = vcombine.high %v504_v16, %v508_v2  ;;  %v552_v14 = vld [vmem:[%s9820_s1 + $0x898] sm:$0xff]  ;;  %v8396_v2 = vcombine.low %v544_v3, %v548_v4 }
 0x2d3   : > { %7246 = vmatprep.subr.bf16.mxu0 %v8307_v22  ;;  %7574 = vmatprep.subr.bf16.mxu1 %v8309_v10  ;;  %v511_v22 = vld [vmem:[%s9820_s1 + $0x750] sm:$0xff]  ;;  %v556_v15 = vld [vmem:[%s9820_s1 + $0x8b8] sm:$0xff] }
 0x2d4   : > { %v515_v10 = vld [vmem:[%s9820_s1 + $0x770] sm:$0xff] }
 0x2d5   : > { %v8362_v36 = vcombine.low %v511_v22, %v515_v10 }
 0x2d6   : > { %7247 = vmatpush1.bf16.msra.mxu0 %v8306_v29  ;;  %7575 = vmatpush1.bf16.msra.mxu1 %v8308_v31  ;;  %v8363_v29 = vcombine.high %v511_v22, %v515_v10  ;;  %v8365_v31 = vcombine.high %v512_v23, %v516_v25  ;;  %v560_v22 = vld [vmem:[%s9820_s1 + $0x8d8] sm:$0xff]  ;;  %v8404_v23 = vcombine.low %v552_v14, %v556_v15 }
 0x2d7   : > { %7248 = vmatprep.subr.bf16.mxu0 %v8315_v32  ;;  %7576 = vmatprep.subr.bf16.mxu1 %v8317_v0  ;;  %v519_v32 = vld [vmem:[%s9820_s1 + $0x790] sm:$0xff]  ;;  %v564_v10 = vld [vmem:[%s9820_s1 + $0x8f8] sm:$0xff] }
 0x2d8   : > { %v523_v0 = vld [vmem:[%s9820_s1 + $0x7b0] sm:$0xff] }
 0x2d9   : > { %v8370_v47 = vcombine.low %v519_v32, %v523_v0 }
 0x2da   : > { %7249 = vmatpush1.bf16.msra.mxu0 %v8314_v40  ;;  %7577 = vmatpush1.bf16.msra.mxu1 %v8316_v41  ;;  %v8371_v40 = vcombine.high %v519_v32, %v523_v0  ;;  %v8373_v41 = vcombine.high %v520_v34, %v524_v35  ;;  %v572_v32 = vld [vmem:[%s9820_s1 + $0x938] sm:$0xff] }
 0x2db   : > { %7250 = vmatprep.subr.bf16.mxu0 %v8323_v42  ;;  %7578 = vmatprep.subr.bf16.mxu1 %v8325_v43  ;;  %v527_v42 = vld [vmem:[%s9820_s1 + $0x7d0] sm:$0xff] }
 0x2dc   : > { %v531_v43 = vld [vmem:[%s9820_s1 + $0x7f0] sm:$0xff] }
 0x2dd   : > { %v8378_v58 = vcombine.low %v527_v42, %v531_v43 }
 0x2de   : > { %7251 = vmatpush1.bf16.msra.mxu0 %v8322_v51  ;;  %7579 = vmatpush1.bf16.msra.mxu1 %v8324_v53  ;;  %v8379_v51 = vcombine.high %v527_v42, %v531_v43  ;;  %v8381_v53 = vcombine.high %v528_v44, %v532_v46 }
 0x2df   : > { %7252 = vmatprep.subr.bf16.mxu0 %v8331_v24  ;;  %7580 = vmatprep.subr.bf16.mxu1 %v8333_v55  ;;  %v535_v24 = vld [vmem:[%s9820_s1 + $0x810] sm:$0xff] }
 0x2e0   : > { %v539_v55 = vld [vmem:[%s9820_s1 + $0x830] sm:$0xff] }
 0x2e1   : > { %v8386_v5 = vcombine.low %v535_v24, %v539_v55 }
 0x2e2   : > { %7253 = vmatpush1.bf16.msra.mxu0 %v8330_v62  ;;  %7581 = vmatpush1.bf16.msra.mxu1 %v8332_v63  ;;  %v8387_v62 = vcombine.high %v535_v24, %v539_v55  ;;  %v8389_v63 = vcombine.high %v536_v56, %v540_v57 }
 0x2e3   : > { %7254 = vmatprep.subr.bf16.mxu0 %v8339_v9  ;;  %7582 = vmatprep.subr.bf16.mxu1 %v8341_v33  ;;  %v543_v9 = vld [vmem:[%s9820_s1 + $0x850] sm:$0xff] }
 0x2e4   : > { %v547_v33 = vld [vmem:[%s9820_s1 + $0x870] sm:$0xff] }
 0x2e5   : > { %v8394_v16 = vcombine.low %v543_v9, %v547_v33 }
 0x2e6   : > { %7255 = vmatpush1.bf16.msra.mxu0 %v8338_v7  ;;  %7583 = vmatpush1.bf16.msra.mxu1 %v8340_v11  ;;  %v8395_v7 = vcombine.high %v543_v9, %v547_v33  ;;  %v8397_v11 = vcombine.high %v544_v3, %v548_v4 }
 0x2e7   : > { %7256 = vmatprep.subr.bf16.mxu0 %v8347_v12  ;;  %7584 = vmatprep.subr.bf16.mxu1 %v8349_v13  ;;  %v551_v12 = vld [vmem:[%s9820_s1 + $0x890] sm:$0xff] }
 0x2e8   : > { %v555_v13 = vld [vmem:[%s9820_s1 + $0x8b0] sm:$0xff] }
 0x2ea   : > { %7257 = vmatpush1.bf16.msra.mxu0 %v8346_v18  ;;  %7585 = vmatpush1.bf16.msra.mxu1 %v8348_v54  ;;  %v8403_v18 = vcombine.high %v551_v12, %v555_v13  ;;  %v8405_v54 = vcombine.high %v552_v14, %v556_v15 }
 0x2eb   : > { %7258 = vmatprep.subr.bf16.mxu0 %v8355_v17  ;;  %7586 = vmatprep.subr.bf16.mxu1 %v8357_v21  ;;  %v559_v17 = vld [vmem:[%s9820_s1 + $0x8d0] sm:$0xff] }
 0x2ec   : > { %v563_v21 = vld [vmem:[%s9820_s1 + $0x8f0] sm:$0xff] }
 0x2ed   : > { %v8411_v25 = vcombine.high %v559_v17, %v563_v21  ;;  %v8410_v0 = vcombine.low %v559_v17, %v563_v21 }
 0x2ee   : > { %7259 = vmatpush1.bf16.msra.mxu0 %v8354_v26  ;;  %7587 = vmatpush1.bf16.msra.mxu1 %v8356_v27  ;;  %v8413_v26 = vcombine.high %v560_v22, %v564_v10  ;;  %v567_v27 = vld [vmem:[%s9820_s1 + $0x910] sm:$0xff] }
 0x2ef   : > { %7260 = vmatprep.subr.bf16.mxu0 %v8363_v29  ;;  %7588 = vmatprep.subr.bf16.mxu1 %v8365_v31  ;;  %v571_v29 = vld [vmem:[%s9820_s1 + $0x930] sm:$0xff]  ;;  %v568_v31 = vld [vmem:[%s9820_s1 + $0x918] sm:$0xff] }
 0x2f0   : > { %v8419_v34 = vcombine.high %v567_v27, %v571_v29  ;;  %v8421_v35 = vcombine.high %v568_v31, %v572_v32  ;;  %v8418_v42 = vcombine.low %v567_v27, %v571_v29  ;;  %v8420_v43 = vcombine.low %v568_v31, %v572_v32 }
 0x2f2   : > { %7261 = vmatpush1.bf16.msra.mxu0 %v8362_v36  ;;  %7589 = vmatpush1.bf16.msra.mxu1 %v8364_v37  ;;  %v575_v36 = vld [vmem:[%s9820_s1 + $0x950] sm:$0xff] }
 0x2f3   : > { %7262 = vmatprep.subr.bf16.mxu0 %v8371_v40  ;;  %7590 = vmatprep.subr.bf16.mxu1 %v8373_v41  ;;  %v579_v37 = vld [vmem:[%s9820_s1 + $0x970] sm:$0xff]  ;;  %v576_v40 = vld [vmem:[%s9820_s1 + $0x958] sm:$0xff] }
 0x2f4   : > { %v580_v41 = vld [vmem:[%s9820_s1 + $0x978] sm:$0xff]  ;;  %v8427_v44 = vcombine.high %v575_v36, %v579_v37  ;;  %v8426_v24 = vcombine.low %v575_v36, %v579_v37 }
 0x2f5   : > { %v8429_v46 = vcombine.high %v576_v40, %v580_v41  ;;  %v8428_v55 = vcombine.low %v576_v40, %v580_v41 }
 0x2f6   : > { %7263 = vmatpush1.bf16.msra.mxu0 %v8370_v47  ;;  %7591 = vmatpush1.bf16.msra.mxu1 %v8372_v48  ;;  %v583_v47 = vld [vmem:[%s9820_s1 + $0x990] sm:$0xff] }
 0x2f7   : > { %7264 = vmatprep.subr.bf16.mxu0 %v8379_v51  ;;  %7592 = vmatprep.subr.bf16.mxu1 %v8381_v53  ;;  %v587_v48 = vld [vmem:[%s9820_s1 + $0x9b0] sm:$0xff]  ;;  %v584_v51 = vld [vmem:[%s9820_s1 + $0x998] sm:$0xff] }
 0x2f8   : > { %v588_v53 = vld [vmem:[%s9820_s1 + $0x9b8] sm:$0xff]  ;;  %v8435_v56 = vcombine.high %v583_v47, %v587_v48  ;;  %v8434_v9 = vcombine.low %v583_v47, %v587_v48 }
 0x2f9   : > { %v8437_v57 = vcombine.high %v584_v51, %v588_v53  ;;  %v8436_v33 = vcombine.low %v584_v51, %v588_v53 }
 0x2fa   : > { %7265 = vmatpush1.bf16.msra.mxu0 %v8378_v58  ;;  %7593 = vmatpush1.bf16.msra.mxu1 %v8380_v61  ;;  %v591_v58 = vld [vmem:[%s9820_s1 + $0x9d0] sm:$0xff] }
 0x2fb   : > { %7275 = vmatprep.subr.bf16.mxu0 %v8387_v62  ;;  %7603 = vmatprep.subr.bf16.mxu1 %v8389_v63  ;;  %v595_v61 = vld [vmem:[%s9820_s1 + $0x9f0] sm:$0xff]  ;;  %v592_v62 = vld [vmem:[%s9820_s1 + $0x9d8] sm:$0xff] }
 0x2fc   : > { %v596_v63 = vld [vmem:[%s9820_s1 + $0x9f8] sm:$0xff]  ;;  %v8443_v3 = vcombine.high %v591_v58, %v595_v61 }
 0x2fd   : > { %7267 = vmatmul.mubr.bf16.vlgmr.msra.gmra.mrb[4].mxu0 %v10021_v39  ;;  %7595 = vmatmul.mubr.bf16.vlgmr.msra.gmra.mrb[4].mxu1 %v10021_v39  ;;  %v8402_v39 = vcombine.low %v551_v12, %v555_v13  ;;  %v8445_v4 = vcombine.high %v592_v62, %v596_v63  ;;  %v8442_v12 = vcombine.low %v591_v58, %v595_v61 }
 0x2fe   : > { %7276 = vmatpush1.bf16.msra.mxu0 %v8386_v5  ;;  %7604 = vmatpush1.bf16.msra.mxu1 %v8388_v30  ;;  %v599_v5 = vld [vmem:[%s9820_s1 + $0xa10] sm:$0xff]  ;;  %v8444_v13 = vcombine.low %v592_v62, %v596_v63 }
 0x2ff   : > { %7277 = vmatprep.subr.bf16.mxu0 %v8395_v7  ;;  %7605 = vmatprep.subr.bf16.mxu1 %v8397_v11  ;;  %v603_v30 = vld [vmem:[%s9820_s1 + $0xa30] sm:$0xff]  ;;  %v600_v7 = vld [vmem:[%s9820_s1 + $0xa18] sm:$0xff] }
 0x300   : > { %7307 = vmatprep.mubr.bf16.mxu0 %v10028_v49  ;;  %7635 = vmatprep.mubr.bf16.mxu1 %v10028_v49  ;;  %v8412_v49 = vcombine.low %v560_v22, %v564_v10  ;;  %v604_v11 = vld [vmem:[%s9820_s1 + $0xa38] sm:$0xff]  ;;  %v8451_v14 = vcombine.high %v599_v5, %v603_v30  ;;  %v8450_v17 = vcombine.low %v599_v5, %v603_v30 }
 0x301   : > { %v8453_v15 = vcombine.high %v600_v7, %v604_v11  ;;  %v8452_v21 = vcombine.low %v600_v7, %v604_v11 }
 0x302   : > { %7278 = vmatpush1.bf16.msra.mxu0 %v8394_v16  ;;  %7606 = vmatpush1.bf16.msra.mxu1 %v8396_v2  ;;  %v607_v16 = vld [vmem:[%s9820_s1 + $0xa50] sm:$0xff] }
 0x303   : > { %7279 = vmatprep.subr.bf16.mxu0 %v8403_v18  ;;  %7607 = vmatprep.subr.bf16.mxu1 %v8405_v54  ;;  %v611_v2 = vld [vmem:[%s9820_s1 + $0xa70] sm:$0xff]  ;;  %v608_v18 = vld [vmem:[%s9820_s1 + $0xa58] sm:$0xff] }
 0x304   : > { %v612_v54 = vld [vmem:[%s9820_s1 + $0xa78] sm:$0xff]  ;;  %v8459_v22 = vcombine.high %v607_v16, %v611_v2  ;;  %v8458_v27 = vcombine.low %v607_v16, %v611_v2 }
 0x305   : > { %v8461_v10 = vcombine.high %v608_v18, %v612_v54  ;;  %v8460_v29 = vcombine.low %v608_v18, %v612_v54 }
 0x306   : > { %7280 = vmatpush1.bf16.msra.mxu0 %v8402_v39  ;;  %7608 = vmatpush1.bf16.msra.mxu1 %v8404_v23  ;;  %v615_v39 = vld [vmem:[%s9820_s1 + $0xa90] sm:$0xff] }
 0x307   : > { %7281 = vmatprep.subr.bf16.mxu0 %v8411_v25  ;;  %7609 = vmatprep.subr.bf16.mxu1 %v8413_v26  ;;  %v619_v23 = vld [vmem:[%s9820_s1 + $0xab0] sm:$0xff]  ;;  %v616_v25 = vld [vmem:[%s9820_s1 + $0xa98] sm:$0xff] }
 0x308   : > { %v620_v26 = vld [vmem:[%s9820_s1 + $0xab8] sm:$0xff]  ;;  %v8467_v31 = vcombine.high %v615_v39, %v619_v23  ;;  %v8466_v36 = vcombine.low %v615_v39, %v619_v23 }
 0x309   : > { %v8469_v32 = vcombine.high %v616_v25, %v620_v26  ;;  %v8468_v37 = vcombine.low %v616_v25, %v620_v26 }
 0x30a   : > { %7282 = vmatpush1.bf16.msra.mxu0 %v8410_v0  ;;  %7610 = vmatpush1.bf16.msra.mxu1 %v8412_v49  ;;  %v623_v0 = vld [vmem:[%s9820_s1 + $0xad0] sm:$0xff] }
 0x30b   : > { %7283 = vmatprep.subr.bf16.mxu0 %v8419_v34  ;;  %7611 = vmatprep.subr.bf16.mxu1 %v8421_v35  ;;  %v627_v49 = vld [vmem:[%s9820_s1 + $0xaf0] sm:$0xff]  ;;  %v624_v34 = vld [vmem:[%s9820_s1 + $0xad8] sm:$0xff] }
 0x30c   : > { %v628_v35 = vld [vmem:[%s9820_s1 + $0xaf8] sm:$0xff]  ;;  %v8475_v40 = vcombine.high %v623_v0, %v627_v49  ;;  %v8474_v47 = vcombine.low %v623_v0, %v627_v49 }
 0x30d   : > { %v8477_v41 = vcombine.high %v624_v34, %v628_v35  ;;  %v8476_v48 = vcombine.low %v624_v34, %v628_v35 }
 0x30e   : > { %7284 = vmatpush1.bf16.msra.mxu0 %v8418_v42  ;;  %7612 = vmatpush1.bf16.msra.mxu1 %v8420_v43  ;;  %v631_v42 = vld [vmem:[%s9820_s1 + $0xb10] sm:$0xff] }
 0x30f   : > { %7285 = vmatprep.subr.bf16.mxu0 %v8427_v44  ;;  %7613 = vmatprep.subr.bf16.mxu1 %v8429_v46  ;;  %v635_v43 = vld [vmem:[%s9820_s1 + $0xb30] sm:$0xff]  ;;  %v632_v44 = vld [vmem:[%s9820_s1 + $0xb18] sm:$0xff] }
 0x310   : > { %v636_v46 = vld [vmem:[%s9820_s1 + $0xb38] sm:$0xff]  ;;  %v8483_v51 = vcombine.high %v631_v42, %v635_v43  ;;  %v8482_v58 = vcombine.low %v631_v42, %v635_v43 }
 0x311   : > { %v8485_v53 = vcombine.high %v632_v44, %v636_v46  ;;  %v8484_v61 = vcombine.low %v632_v44, %v636_v46 }
 0x312   : > { %7286 = vmatpush1.bf16.msra.mxu0 %v8426_v24  ;;  %7614 = vmatpush1.bf16.msra.mxu1 %v8428_v55  ;;  %v639_v24 = vld [vmem:[%s9820_s1 + $0xb50] sm:$0xff] }
 0x313   : > { %7287 = vmatprep.subr.bf16.mxu0 %v8435_v56  ;;  %7615 = vmatprep.subr.bf16.mxu1 %v8437_v57  ;;  %v643_v55 = vld [vmem:[%s9820_s1 + $0xb70] sm:$0xff]  ;;  %v640_v56 = vld [vmem:[%s9820_s1 + $0xb58] sm:$0xff] }
 0x314   : > { %v644_v57 = vld [vmem:[%s9820_s1 + $0xb78] sm:$0xff]  ;;  %v8491_v62 = vcombine.high %v639_v24, %v643_v55  ;;  %v8490_v5 = vcombine.low %v639_v24, %v643_v55 }
 0x315   : > { %v8493_v63 = vcombine.high %v640_v56, %v644_v57  ;;  %v8492_v30 = vcombine.low %v640_v56, %v644_v57  ;;  %v695_v57 = vld [vmem:[%s9820_s1 + $0xd10] sm:$0xff] }
 0x316   : > { %7288 = vmatpush1.bf16.msra.mxu0 %v8434_v9  ;;  %7616 = vmatpush1.bf16.msra.mxu1 %v8436_v33  ;;  %v647_v9 = vld [vmem:[%s9820_s1 + $0xb90] sm:$0xff] }
 0x317   : > { %7289 = vmatprep.subr.bf16.mxu0 %v8443_v3  ;;  %7617 = vmatprep.subr.bf16.mxu1 %v8445_v4  ;;  %v651_v33 = vld [vmem:[%s9820_s1 + $0xbb0] sm:$0xff]  ;;  %v648_v3 = vld [vmem:[%s9820_s1 + $0xb98] sm:$0xff] }
 0x318   : > { %v652_v4 = vld [vmem:[%s9820_s1 + $0xbb8] sm:$0xff]  ;;  %v8499_v7 = vcombine.high %v647_v9, %v651_v33  ;;  %v8498_v16 = vcombine.low %v647_v9, %v651_v33 }
 0x319   : > { %v8501_v11 = vcombine.high %v648_v3, %v652_v4  ;;  %v8500_v2 = vcombine.low %v648_v3, %v652_v4  ;;  %v9581_v3 = vmov 1983009808  }
 0x31a   : > { %7290 = vmatpush1.bf16.msra.mxu0 %v8442_v12  ;;  %7618 = vmatpush1.bf16.msra.mxu1 %v8444_v13  ;;  %v655_v12 = vld [vmem:[%s9820_s1 + $0xbd0] sm:$0xff]  ;;  %v7860_v4 = vunpack.c.l.s4 %v9581_v3  ;;  %v740_v3 = vld [vmem:[%s9820_s1 + $0xe78] sm:$0xff] }
 0x31b   : > { %7291 = vmatprep.subr.bf16.mxu0 %v8451_v14  ;;  %7619 = vmatprep.subr.bf16.mxu1 %v8453_v15  ;;  %v659_v13 = vld [vmem:[%s9820_s1 + $0xbf0] sm:$0xff]  ;;  %v656_v14 = vld [vmem:[%s9820_s1 + $0xbd8] sm:$0xff] }
 0x31c   : > { %v660_v15 = vld [vmem:[%s9820_s1 + $0xbf8] sm:$0xff]  ;;  %v8507_v18 = vcombine.high %v655_v12, %v659_v13  ;;  %v8506_v39 = vcombine.low %v655_v12, %v659_v13 }
 0x31d   : > { %v8509_v54 = vcombine.high %v656_v14, %v660_v15  ;;  %v8508_v23 = vcombine.low %v656_v14, %v660_v15  ;;  %v7861_v15 = vunpack.c.0.s8 %v7860_v4 }
 0x31e   : > { %7292 = vmatpush1.bf16.msra.mxu0 %v8450_v17  ;;  %7620 = vmatpush1.bf16.msra.mxu1 %v8452_v21  ;;  %v663_v17 = vld [vmem:[%s9820_s1 + $0xc10] sm:$0xff] }
 0x31f   : > { %7293 = vmatprep.subr.bf16.mxu0 %v8459_v22  ;;  %7621 = vmatprep.subr.bf16.mxu1 %v8461_v10  ;;  %v667_v21 = vld [vmem:[%s9820_s1 + $0xc30] sm:$0xff]  ;;  %v664_v22 = vld [vmem:[%s9820_s1 + $0xc18] sm:$0xff] }
 0x320   : > { %v668_v10 = vld [vmem:[%s9820_s1 + $0xc38] sm:$0xff]  ;;  %v8515_v25 = vcombine.high %v663_v17, %v667_v21  ;;  %v8514_v0 = vcombine.low %v663_v17, %v667_v21 }
 0x321   : > { %v8517_v26 = vcombine.high %v664_v22, %v668_v10  ;;  %v8516_v49 = vcombine.low %v664_v22, %v668_v10  ;;  %v716_v17 = vld [vmem:[%s9820_s1 + $0xdb8] sm:$0xff] }
 0x322   : > { %7294 = vmatpush1.bf16.msra.mxu0 %v8458_v27  ;;  %7622 = vmatpush1.bf16.msra.mxu1 %v8460_v29  ;;  %v671_v27 = vld [vmem:[%s9820_s1 + $0xc50] sm:$0xff] }
 0x323   : > { %7295 = vmatprep.subr.bf16.mxu0 %v8467_v31  ;;  %7623 = vmatprep.subr.bf16.mxu1 %v8469_v32  ;;  %v675_v29 = vld [vmem:[%s9820_s1 + $0xc70] sm:$0xff]  ;;  %v672_v31 = vld [vmem:[%s9820_s1 + $0xc58] sm:$0xff] }
 0x324   : > { %v676_v32 = vld [vmem:[%s9820_s1 + $0xc78] sm:$0xff]  ;;  %v8523_v34 = vcombine.high %v671_v27, %v675_v29  ;;  %v8522_v42 = vcombine.low %v671_v27, %v675_v29  ;;  %v723_v27 = vld [vmem:[%s9820_s1 + $0xdf0] sm:$0xff] }
 0x325   : > { %v8525_v35 = vcombine.high %v672_v31, %v676_v32  ;;  %v8524_v43 = vcombine.low %v672_v31, %v676_v32  ;;  %v720_v32 = vld [vmem:[%s9820_s1 + $0xdd8] sm:$0xff] }
 0x326   : > { %7296 = vmatpush1.bf16.msra.mxu0 %v8466_v36  ;;  %7624 = vmatpush1.bf16.msra.mxu1 %v8468_v37  ;;  %v679_v36 = vld [vmem:[%s9820_s1 + $0xc90] sm:$0xff] }
 0x327   : > { %7297 = vmatprep.subr.bf16.mxu0 %v8475_v40  ;;  %7625 = vmatprep.subr.bf16.mxu1 %v8477_v41  ;;  %v683_v37 = vld [vmem:[%s9820_s1 + $0xcb0] sm:$0xff]  ;;  %v680_v40 = vld [vmem:[%s9820_s1 + $0xc98] sm:$0xff] }
 0x328   : > { %v684_v41 = vld [vmem:[%s9820_s1 + $0xcb8] sm:$0xff]  ;;  %v8531_v44 = vcombine.high %v679_v36, %v683_v37 }
 0x329   : > { %v8533_v46 = vcombine.high %v680_v40, %v684_v41  ;;  %v8532_v24 = vcombine.low %v680_v40, %v684_v41 }
 0x32a   : > { %7298 = vmatpush1.bf16.msra.mxu0 %v8474_v47  ;;  %7626 = vmatpush1.bf16.msra.mxu1 %v8476_v48  ;;  %v687_v47 = vld [vmem:[%s9820_s1 + $0xcd0] sm:$0xff] }
 0x32b   : > { %7299 = vmatprep.subr.bf16.mxu0 %v8483_v51  ;;  %7627 = vmatprep.subr.bf16.mxu1 %v8485_v53  ;;  %v691_v48 = vld [vmem:[%s9820_s1 + $0xcf0] sm:$0xff]  ;;  %v688_v51 = vld [vmem:[%s9820_s1 + $0xcd8] sm:$0xff] }
 0x32c   : > { %v692_v53 = vld [vmem:[%s9820_s1 + $0xcf8] sm:$0xff]  ;;  %v8539_v55 = vcombine.high %v687_v47, %v691_v48 }
 0x32d   : > { %v8541_v56 = vcombine.high %v688_v51, %v692_v53 }
 0x32e   : > { %7300 = vmatpush1.bf16.msra.mxu0 %v8482_v58  ;;  %7628 = vmatpush1.bf16.msra.mxu1 %v8484_v61  ;;  %v699_v58 = vld [vmem:[%s9820_s1 + $0xd30] sm:$0xff]  ;;  %v696_v61 = vld [vmem:[%s9820_s1 + $0xd18] sm:$0xff] }
 0x32f   : > { %7301 = vmatprep.subr.bf16.mxu0 %v8491_v62  ;;  %7629 = vmatprep.subr.bf16.mxu1 %v8493_v63  ;;  %v700_v62 = vld [vmem:[%s9820_s1 + $0xd38] sm:$0xff]  ;;  %v8538_v63 = vcombine.low %v687_v47, %v691_v48  ;;  %v8547_v9 = vcombine.high %v695_v57, %v699_v58  ;;  %v8546_v12 = vcombine.low %v695_v57, %v699_v58  ;;  %v727_v48 = vld [vmem:[%s9820_s1 + $0xe10] sm:$0xff] }
 0x330   : > { %v8549_v33 = vcombine.high %v696_v61, %v700_v62  ;;  %v8548_v13 = vcombine.low %v696_v61, %v700_v62 }
 0x332   : > { %7302 = vmatpush1.bf16.msra.mxu0 %v8490_v5  ;;  %7630 = vmatpush1.bf16.msra.mxu1 %v8492_v30  ;;  %v703_v5 = vld [vmem:[%s9820_s1 + $0xd50] sm:$0xff] }
 0x333   : > { %7303 = vmatprep.subr.bf16.mxu0 %v8499_v7  ;;  %7631 = vmatprep.subr.bf16.mxu1 %v8501_v11  ;;  %v707_v30 = vld [vmem:[%s9820_s1 + $0xd70] sm:$0xff]  ;;  %v704_v7 = vld [vmem:[%s9820_s1 + $0xd58] sm:$0xff] }
 0x334   : > { %v708_v11 = vld [vmem:[%s9820_s1 + $0xd78] sm:$0xff]  ;;  %v8555_v14 = vcombine.high %v703_v5, %v707_v30  ;;  %v8554_v21 = vcombine.low %v703_v5, %v707_v30 }
 0x335   : > { %v8556_v22 = vcombine.low %v704_v7, %v708_v11 }
 0x336   : > { %7304 = vmatpush1.bf16.msra.mxu0 %v8498_v16  ;;  %7632 = vmatpush1.bf16.msra.mxu1 %v8500_v2  ;;  %v8557_v16 = vcombine.high %v704_v7, %v708_v11  ;;  %v711_v2 = vld [vmem:[%s9820_s1 + $0xd90] sm:$0xff] }
 0x337   : > { %7305 = vmatprep.subr.bf16.mxu0 %v8507_v18  ;;  %7633 = vmatprep.subr.bf16.mxu1 %v8509_v54  ;;  %v715_v18 = vld [vmem:[%s9820_s1 + $0xdb0] sm:$0xff]  ;;  %v712_v54 = vld [vmem:[%s9820_s1 + $0xd98] sm:$0xff] }
 0x338   : > { %v8563_v10 = vcombine.high %v711_v2, %v715_v18  ;;  %v743_v11 = vld [vmem:[%s9820_s1 + $0xe90] sm:$0xff] }
 0x33a   : > { %7306 = vmatpush1.bf16.msra.mxu0 %v8506_v39  ;;  %7634 = vmatpush1.bf16.msra.mxu1 %v8508_v23  ;;  %v10723_v23 = vsub.s32 %v7861_v15, %v9869_v45 }
 0x33b   : > { %7316 = vmatprep.subr.bf16.mxu0 %v8515_v25  ;;  %7644 = vmatprep.subr.bf16.mxu1 %v8517_v26  ;;  %v8565_v25 = vcombine.high %v712_v54, %v716_v17  ;;  %v719_v26 = vld [vmem:[%s9820_s1 + $0xdd0] sm:$0xff] }
 0x33d   : > { %7308 = vmatmul.mubr.bf16.vlgmr.msra.gmra.mrb[4].mxu0 %v10096_v59  ;;  %7636 = vmatmul.mubr.bf16.vlgmr.msra.gmra.mrb[4].mxu1 %v10096_v59  ;;  %v8530_v59 = vcombine.low %v679_v36, %v683_v37  ;;  %v8562_v36 = vcombine.low %v711_v2, %v715_v18 }
 0x33e   : > { %7317 = vmatpush1.bf16.msra.mxu0 %v8514_v0  ;;  %7645 = vmatpush1.bf16.msra.mxu1 %v8516_v49  ;;  %v724_v0 = vld [vmem:[%s9820_s1 + $0xdf8] sm:$0xff] }
 0x33f   : > { %7318 = vmatprep.subr.bf16.mxu0 %v8523_v34  ;;  %7646 = vmatprep.subr.bf16.mxu1 %v8525_v35  ;;  %v8573_v47 = vcombine.high %v720_v32, %v724_v0  ;;  %v8572_v58 = vcombine.low %v720_v32, %v724_v0  ;;  %v764_v32 = vld [vmem:[%s9820_s1 + $0xf38] sm:$0xff] }
 0x340   : > { %7348 = vmatprep.mubr.bf16.mxu0 %v10104_v6  ;;  %7676 = vmatprep.mubr.bf16.mxu1 %v10104_v6  ;;  %v8540_v6 = vcombine.low %v688_v51, %v692_v53  ;;  %v731_v51 = vld [vmem:[%s9820_s1 + $0xe30] sm:$0xff] }
 0x341   : > { %v8579_v61 = vcombine.high %v727_v48, %v731_v51  ;;  %v8578_v4 = vcombine.low %v727_v48, %v731_v51  ;;  %v779_v48 = vld [vmem:[%s9820_s1 + $0xfb0] sm:$0xff]  ;;  %v776_v51 = vld [vmem:[%s9820_s1 + $0xf98] sm:$0xff] }
 0x342   : > { %7319 = vmatpush1.bf16.msra.mxu0 %v8522_v42  ;;  %7647 = vmatpush1.bf16.msra.mxu1 %v8524_v43  ;;  %v8564_v42 = vcombine.low %v712_v54, %v716_v17  ;;  %v8571_v43 = vcombine.high %v719_v26, %v723_v27  ;;  %v751_v54 = vld [vmem:[%s9820_s1 + $0xed0] sm:$0xff] }
 0x343   : > { %7320 = vmatprep.subr.bf16.mxu0 %v8531_v44  ;;  %7648 = vmatprep.subr.bf16.mxu1 %v8533_v46  ;;  %v755_v17 = vld [vmem:[%s9820_s1 + $0xef0] sm:$0xff] }
 0x344   : > { %v8602_v0 = vcombine.low %v751_v54, %v755_v17 }
 0x346   : > { %7321 = vmatpush1.bf16.msra.mxu0 %v8530_v59  ;;  %7649 = vmatpush1.bf16.msra.mxu1 %v8532_v24  ;;  %v728_v59 = vld [vmem:[%s9820_s1 + $0xe18] sm:$0xff] }
 0x347   : > { %7322 = vmatprep.subr.bf16.mxu0 %v8539_v55  ;;  %7650 = vmatprep.subr.bf16.mxu1 %v8541_v56  ;;  %v732_v24 = vld [vmem:[%s9820_s1 + $0xe38] sm:$0xff]  ;;  %v273_v55 = vld [vmem:[#allocation2] sm:$0xff]  ;;  %v8570_v56 = vcombine.low %v719_v26, %v723_v27 }
 0x348   : > { %v8581_v62 = vcombine.high %v728_v59, %v732_v24  ;;  %v8580_v5 = vcombine.low %v728_v59, %v732_v24  ;;  %v759_v27 = vld [vmem:[%s9820_s1 + $0xf10] sm:$0xff] }
 0x34a   : > { %7323 = vmatpush1.bf16.msra.mxu0 %v8538_v63  ;;  %7651 = vmatpush1.bf16.msra.mxu1 %v8540_v6  ;;  %v735_v63 = vld [vmem:[%s9820_s1 + $0xe50] sm:$0xff] }
 0x34b   : > { %7324 = vmatprep.subr.bf16.mxu0 %v8547_v9  ;;  %7652 = vmatprep.subr.bf16.mxu1 %v8549_v33  ;;  %v739_v6 = vld [vmem:[%s9820_s1 + $0xe70] sm:$0xff]  ;;  %v736_v33 = vld [vmem:[%s9820_s1 + $0xe58] sm:$0xff] }
 0x34c   : > { %v8587_v30 = vcombine.high %v735_v63, %v739_v6  ;;  %v8589_v7 = vcombine.high %v736_v33, %v740_v3  ;;  %v8586_v15 = vcombine.low %v735_v63, %v739_v6 }
 0x34e   : > { %7325 = vmatpush1.bf16.msra.mxu0 %v8546_v12  ;;  %7653 = vmatpush1.bf16.msra.mxu1 %v8548_v13  ;;  %v747_v12 = vld [vmem:[%s9820_s1 + $0xeb0] sm:$0xff]  ;;  %v744_v13 = vld [vmem:[%s9820_s1 + $0xe98] sm:$0xff] }
 0x34f   : > { %7326 = vmatprep.subr.bf16.mxu0 %v8555_v14  ;;  %7654 = vmatprep.subr.bf16.mxu1 %v8557_v16  ;;  %v748_v14 = vld [vmem:[%s9820_s1 + $0xeb8] sm:$0xff]  ;;  %v8588_v16 = vcombine.low %v736_v33, %v740_v3  ;;  %v8595_v2 = vcombine.high %v743_v11, %v747_v12  ;;  %v791_v3 = vld [vmem:[%s9820_s1 + $0x1010] sm:$0xff] }
 0x350   : > { %v6858_v39 = vpop.f32.mrb[0].mxu0  ;;  %v7186_v29 = vpop.f32.mrb[0].mxu1  ;;  %v8597_v18 = vcombine.high %v744_v13, %v748_v14 }
 0x351   : > { %v6860_v31 = vpop.f32.mrb[1].mxu0  ;;  %v7188_v34 = vpop.f32.mrb[1].mxu1 }
 0x352   : > { %v7857_v49 = vcombine.low %v6858_v39, %v6860_v31  ;;  %v6862_v35 = vpop.f32.mrb[2].mxu0  ;;  %7327 = vmatpush1.bf16.msra.mxu0 %v8554_v21  ;;  %v7858_v37 = vcombine.low %v7186_v29, %v7188_v34  ;;  %v7190_v40 = vpop.f32.mrb[2].mxu1  ;;  %7655 = vmatpush1.bf16.msra.mxu1 %v8556_v22  ;;  %v752_v21 = vld [vmem:[%s9820_s1 + $0xed8] sm:$0xff]  ;;  %v8596_v39 = vcombine.low %v744_v13, %v748_v14  ;;  %v763_v29 = vld [vmem:[%s9820_s1 + $0xf30] sm:$0xff] }
 0x353   : > { %v6863_v41 = vpop.f32.mrb[3].mxu0  ;;  %7328 = vmatprep.subr.bf16.mxu0 %v8563_v10  ;;  %v7191_v46 = vpop.f32.mrb[3].mxu1  ;;  %7656 = vmatprep.subr.bf16.mxu1 %v8565_v25  ;;  %v756_v22 = vld [vmem:[%s9820_s1 + $0xef8] sm:$0xff]  ;;  %v8594_v10 = vcombine.low %v743_v11, %v747_v12  ;;  %v8603_v25 = vcombine.high %v751_v54, %v755_v17  ;;  %v8611_v34 = vcombine.high %v759_v27, %v763_v29  ;;  %v799_v14 = vld [vmem:[%s9820_s1 + $0x1050] sm:$0xff] }
 0x354   : > { %v7865_v44 = vrot.slane %v7857_v49, %v10723_v23  ;;  %v7872_v53 = vrot.slane %v7858_v37, %v10723_v23  ;;  %v8605_v26 = vcombine.high %v752_v21, %v756_v22  ;;  %v760_v31 = vld [vmem:[%s9820_s1 + $0xf18] sm:$0xff]  ;;  %v8604_v49 = vcombine.low %v752_v21, %v756_v22  ;;  %v771_v37 = vld [vmem:[%s9820_s1 + $0xf70] sm:$0xff] }
 0x355   : > { %v8613_v35 = vcombine.high %v760_v31, %v764_v32  ;;  %v768_v40 = vld [vmem:[%s9820_s1 + $0xf58] sm:$0xff]  ;;  %v807_v22 = vld [vmem:[%s9820_s1 + $0x1090] sm:$0xff] }
 0x356   : > { %7329 = vmatpush1.bf16.msra.mxu0 %v8562_v36  ;;  %v7873_v57 = vcombine.low %v7865_v44, %v7872_v53  ;;  %7657 = vmatpush1.bf16.msra.mxu1 %v8564_v42  ;;  %v767_v36 = vld [vmem:[%s9820_s1 + $0xf50] sm:$0xff]  ;;  %v772_v41 = vld [vmem:[%s9820_s1 + $0xf78] sm:$0xff]  ;;  %v8610_v42 = vcombine.low %v759_v27, %v763_v29 }
 0x357   : > { %7330 = vmatprep.subr.bf16.mxu0 %v8571_v43  ;;  %7658 = vmatprep.subr.bf16.mxu1 %v8573_v47  ;;  %v8612_v43 = vcombine.low %v760_v31, %v764_v32  ;;  %v8619_v44 = vcombine.high %v767_v36, %v771_v37  ;;  %v8621_v46 = vcombine.high %v768_v40, %v772_v41  ;;  %v775_v47 = vld [vmem:[%s9820_s1 + $0xf90] sm:$0xff]  ;;  %v780_v53 = vld [vmem:[%s9820_s1 + $0xfb8] sm:$0xff] }
 0x358   : > { %v7893_v9 = vadd.f32 %v7873_v57, %v273_v55  ;;  %v8618_v59 = vcombine.low %v767_v36, %v771_v37  ;;  %v8620_v24 = vcombine.low %v768_v40, %v772_v41  ;;  %v8627_v55 = vcombine.high %v775_v47, %v779_v48  ;;  %v783_v57 = vld [vmem:[%s9820_s1 + $0xfd0] sm:$0xff] }
 0x359   : > { %v8626_v63 = vcombine.low %v775_v47, %v779_v48  ;;  %v8628_v6 = vcombine.low %v776_v51, %v780_v53  ;;  %v815_v32 = vld [vmem:[%s9820_s1 + $0x10d0] sm:$0xff] }
 0x35a   : > { %7331 = vmatpush1.bf16.msra.mxu0 %v8570_v56  ;;  %7895 = vst [vmem:[#allocation2] sm:$0xff] %v7893_v9  ;;  %7659 = vmatpush1.bf16.msra.mxu1 %v8572_v58  ;;  %v8629_v56 = vcombine.high %v776_v51, %v780_v53  ;;  %v787_v58 = vld [vmem:[%s9820_s1 + $0xff0] sm:$0xff]  ;;  %v832_v53 = vld [vmem:[%s9820_s1 + $0x1158] sm:$0xff] }
 0x35b   : > { %7332 = vmatprep.subr.bf16.mxu0 %v8579_v61  ;;  %7660 = vmatprep.subr.bf16.mxu1 %v8581_v62  ;;  %v784_v61 = vld [vmem:[%s9820_s1 + $0xfd8] sm:$0xff]  ;;  %v8635_v9 = vcombine.high %v783_v57, %v787_v58  ;;  %v823_v40 = vld [vmem:[%s9820_s1 + $0x1110] sm:$0xff] }
 0x35c   : > { %v788_v62 = vld [vmem:[%s9820_s1 + $0xff8] sm:$0xff]  ;;  %v827_v41 = vld [vmem:[%s9820_s1 + $0x1130] sm:$0xff] }
 0x35d   : > { %v8637_v33 = vcombine.high %v784_v61, %v788_v62  ;;  %v8636_v11 = vcombine.low %v784_v61, %v788_v62  ;;  %v831_v48 = vld [vmem:[%s9820_s1 + $0x1150] sm:$0xff]  ;;  %v840_v62 = vld [vmem:[%s9820_s1 + $0x1198] sm:$0xff] }
 0x35e   : > { %7333 = vmatpush1.bf16.msra.mxu0 %v8578_v4  ;;  %7661 = vmatpush1.bf16.msra.mxu1 %v8580_v5  ;;  %v795_v4 = vld [vmem:[%s9820_s1 + $0x1030] sm:$0xff]  ;;  %v792_v5 = vld [vmem:[%s9820_s1 + $0x1018] sm:$0xff] }
 0x35f   : > { %7334 = vmatprep.subr.bf16.mxu0 %v8587_v30  ;;  %7662 = vmatprep.subr.bf16.mxu1 %v8589_v7  ;;  %v796_v30 = vld [vmem:[%s9820_s1 + $0x1038] sm:$0xff]  ;;  %v8634_v7 = vcombine.low %v783_v57, %v787_v58  ;;  %v8643_v12 = vcombine.high %v791_v3, %v795_v4  ;;  %v835_v51 = vld [vmem:[%s9820_s1 + $0x1170] sm:$0xff] }
 0x360   : > { %v8645_v13 = vcombine.high %v792_v5, %v796_v30  ;;  %v8644_v54 = vcombine.low %v792_v5, %v796_v30  ;;  %v839_v58 = vld [vmem:[%s9820_s1 + $0x1190] sm:$0xff]  ;;  %v848_v30 = vld [vmem:[%s9820_s1 + $0x11d8] sm:$0xff] }
 0x361   : > { %v843_v61 = vld [vmem:[%s9820_s1 + $0x11b0] sm:$0xff] }
 0x362   : > { %7335 = vmatpush1.bf16.msra.mxu0 %v8586_v15  ;;  %7663 = vmatpush1.bf16.msra.mxu1 %v8588_v16  ;;  %v803_v15 = vld [vmem:[%s9820_s1 + $0x1070] sm:$0xff]  ;;  %v800_v16 = vld [vmem:[%s9820_s1 + $0x1058] sm:$0xff] }
 0x363   : > { %7336 = vmatprep.subr.bf16.mxu0 %v8595_v2  ;;  %7664 = vmatprep.subr.bf16.mxu1 %v8597_v18  ;;  %v804_v2 = vld [vmem:[%s9820_s1 + $0x1078] sm:$0xff]  ;;  %v8642_v18 = vcombine.low %v791_v3, %v795_v4  ;;  %v8651_v17 = vcombine.high %v799_v14, %v803_v15  ;;  %v847_v4 = vld [vmem:[%s9820_s1 + $0x11d0] sm:$0xff] }
 0x364   : > { %v8653_v21 = vcombine.high %v800_v16, %v804_v2  ;;  %v8652_v27 = vcombine.low %v800_v16, %v804_v2  ;;  %v851_v5 = vld [vmem:[%s9820_s1 + $0x11f0] sm:$0xff]  ;;  %v856_v2 = vld [vmem:[%s9820_s1 + $0x1218] sm:$0xff] }
 0x365   : > { %v859_v16 = vld [vmem:[%s9820_s1 + $0x1230] sm:$0xff] }
 0x366   : > { %7337 = vmatpush1.bf16.msra.mxu0 %v8594_v10  ;;  %7665 = vmatpush1.bf16.msra.mxu1 %v8596_v39  ;;  %v811_v10 = vld [vmem:[%s9820_s1 + $0x10b0] sm:$0xff]  ;;  %v808_v39 = vld [vmem:[%s9820_s1 + $0x1098] sm:$0xff] }
 0x367   : > { %7338 = vmatprep.subr.bf16.mxu0 %v8603_v25  ;;  %7666 = vmatprep.subr.bf16.mxu1 %v8605_v26  ;;  %v812_v25 = vld [vmem:[%s9820_s1 + $0x10b8] sm:$0xff]  ;;  %v8650_v26 = vcombine.low %v799_v14, %v803_v15  ;;  %v8659_v29 = vcombine.high %v807_v22, %v811_v10  ;;  %v855_v15 = vld [vmem:[%s9820_s1 + $0x1210] sm:$0xff] }
 0x368   : > { %v8661_v31 = vcombine.high %v808_v39, %v812_v25 }
 0x36a   : > { %7339 = vmatpush1.bf16.msra.mxu0 %v8602_v0  ;;  %7667 = vmatpush1.bf16.msra.mxu1 %v8604_v49  ;;  %v819_v0 = vld [vmem:[%s9820_s1 + $0x10f0] sm:$0xff]  ;;  %v816_v49 = vld [vmem:[%s9820_s1 + $0x10d8] sm:$0xff] }
 0x36b   : > { %7340 = vmatprep.subr.bf16.mxu0 %v8611_v34  ;;  %7668 = vmatprep.subr.bf16.mxu1 %v8613_v35  ;;  %v820_v34 = vld [vmem:[%s9820_s1 + $0x10f8] sm:$0xff]  ;;  %v8660_v35 = vcombine.low %v808_v39, %v812_v25  ;;  %v8667_v36 = vcombine.high %v815_v32, %v819_v0  ;;  %v867_v39 = vld [vmem:[%s9820_s1 + $0x1270] sm:$0xff] }
 0x36c   : > { %v8669_v37 = vcombine.high %v816_v49, %v820_v34  ;;  %v864_v25 = vld [vmem:[%s9820_s1 + $0x1258] sm:$0xff] }
 0x36e   : > { %7341 = vmatpush1.bf16.msra.mxu0 %v8610_v42  ;;  %7669 = vmatpush1.bf16.msra.mxu1 %v8612_v43  ;;  %v824_v42 = vld [vmem:[%s9820_s1 + $0x1118] sm:$0xff] }
 0x36f   : > { %7342 = vmatprep.subr.bf16.mxu0 %v8619_v44  ;;  %7670 = vmatprep.subr.bf16.mxu1 %v8621_v46  ;;  %v828_v43 = vld [vmem:[%s9820_s1 + $0x1138] sm:$0xff]  ;;  %v8666_v44 = vcombine.low %v815_v32, %v819_v0  ;;  %v8675_v46 = vcombine.high %v823_v40, %v827_v41  ;;  %v871_v0 = vld [vmem:[%s9820_s1 + $0x1290] sm:$0xff] }
 0x370   : > { %v8677_v47 = vcombine.high %v824_v42, %v828_v43 }
 0x372   : > { %7343 = vmatpush1.bf16.msra.mxu0 %v8618_v59  ;;  %7671 = vmatpush1.bf16.msra.mxu1 %v8620_v24  ;;  %v836_v59 = vld [vmem:[%s9820_s1 + $0x1178] sm:$0xff]  ;;  %v8674_v24 = vcombine.low %v823_v40, %v827_v41  ;;  %v879_v41 = vld [vmem:[%s9820_s1 + $0x12d0] sm:$0xff] }
 0x373   : > { %7344 = vmatprep.subr.bf16.mxu0 %v8627_v55  ;;  %7672 = vmatprep.subr.bf16.mxu1 %v8629_v56  ;;  %v8676_v55 = vcombine.low %v824_v42, %v828_v43  ;;  %v8683_v56 = vcombine.high %v831_v48, %v835_v51  ;;  %v8685_v57 = vcombine.high %v832_v53, %v836_v59  ;;  %v883_v42 = vld [vmem:[%s9820_s1 + $0x12f0] sm:$0xff]  ;;  %v880_v43 = vld [vmem:[%s9820_s1 + $0x12d8] sm:$0xff] }
 0x376   : > { %7345 = vmatpush1.bf16.msra.mxu0 %v8626_v63  ;;  %7673 = vmatpush1.bf16.msra.mxu1 %v8628_v6  ;;  %v844_v63 = vld [vmem:[%s9820_s1 + $0x11b8] sm:$0xff]  ;;  %v8682_v6 = vcombine.low %v831_v48, %v835_v51  ;;  %v887_v51 = vld [vmem:[%s9820_s1 + $0x1310] sm:$0xff] }
 0x377   : > { %7346 = vmatprep.subr.bf16.mxu0 %v8635_v9  ;;  %7674 = vmatprep.subr.bf16.mxu1 %v8637_v33  ;;  %v8684_v9 = vcombine.low %v832_v53, %v836_v59  ;;  %v8691_v33 = vcombine.high %v839_v58, %v843_v61  ;;  %v8693_v3 = vcombine.high %v840_v62, %v844_v63  ;;  %v891_v53 = vld [vmem:[%s9820_s1 + $0x1330] sm:$0xff]  ;;  %v888_v59 = vld [vmem:[%s9820_s1 + $0x1318] sm:$0xff] }
 0x37a   : > { %7347 = vmatpush1.bf16.msra.mxu0 %v8634_v7  ;;  %7675 = vmatpush1.bf16.msra.mxu1 %v8636_v11  ;;  %v852_v7 = vld [vmem:[%s9820_s1 + $0x11f8] sm:$0xff]  ;;  %v8690_v11 = vcombine.low %v839_v58, %v843_v61  ;;  %v895_v61 = vld [vmem:[%s9820_s1 + $0x1350] sm:$0xff] }
 0x37b   : > { %7357 = vmatprep.subr.bf16.mxu0 %v8643_v12  ;;  %7685 = vmatprep.subr.bf16.mxu1 %v8645_v13  ;;  %v8692_v12 = vcombine.low %v840_v62, %v844_v63  ;;  %v8699_v13 = vcombine.high %v847_v4, %v851_v5  ;;  %v8701_v14 = vcombine.high %v848_v30, %v852_v7  ;;  %v899_v62 = vld [vmem:[%s9820_s1 + $0x1370] sm:$0xff]  ;;  %v896_v63 = vld [vmem:[%s9820_s1 + $0x1358] sm:$0xff] }
 0x37d   : > { %7349 = vmatmul.mubr.bf16.vlgmr.msra.gmra.mrb[4].mxu0 %v10181_v20  ;;  %7677 = vmatmul.mubr.bf16.vlgmr.msra.gmra.mrb[4].mxu1 %v10181_v20  ;;  %v8658_v20 = vcombine.low %v807_v22, %v811_v10  ;;  %v863_v10 = vld [vmem:[%s9820_s1 + $0x1250] sm:$0xff] }
 0x37e   : > { %7358 = vmatpush1.bf16.msra.mxu0 %v8642_v18  ;;  %7686 = vmatpush1.bf16.msra.mxu1 %v8644_v54  ;;  %v860_v18 = vld [vmem:[%s9820_s1 + $0x1238] sm:$0xff]  ;;  %v8698_v54 = vcombine.low %v847_v4, %v851_v5  ;;  %v903_v5 = vld [vmem:[%s9820_s1 + $0x1390] sm:$0xff] }
 0x37f   : > { %7359 = vmatprep.subr.bf16.mxu0 %v8651_v17  ;;  %7687 = vmatprep.subr.bf16.mxu1 %v8653_v21  ;;  %v8700_v17 = vcombine.low %v848_v30, %v852_v7  ;;  %v8707_v21 = vcombine.high %v855_v15, %v859_v16  ;;  %v8709_v22 = vcombine.high %v856_v2, %v860_v18  ;;  %v907_v30 = vld [vmem:[%s9820_s1 + $0x13b0] sm:$0xff]  ;;  %v904_v7 = vld [vmem:[%s9820_s1 + $0x1398] sm:$0xff] }
 0x380   : > { %7389 = vmatprep.mubr.bf16.mxu0 %v10188_v60  ;;  %7717 = vmatprep.mubr.bf16.mxu1 %v10188_v60  ;;  %v8668_v60 = vcombine.low %v816_v49, %v820_v34  ;;  %v875_v49 = vld [vmem:[%s9820_s1 + $0x12b0] sm:$0xff]  ;;  %v872_v34 = vld [vmem:[%s9820_s1 + $0x1298] sm:$0xff] }
 0x382   : > { %7360 = vmatpush1.bf16.msra.mxu0 %v8650_v26  ;;  %7688 = vmatpush1.bf16.msra.mxu1 %v8652_v27  ;;  %v868_v26 = vld [vmem:[%s9820_s1 + $0x1278] sm:$0xff]  ;;  %v8706_v27 = vcombine.low %v855_v15, %v859_v16  ;;  %v911_v16 = vld [vmem:[%s9820_s1 + $0x13d0] sm:$0xff] }
 0x383   : > { %7361 = vmatprep.subr.bf16.mxu0 %v8659_v29  ;;  %7689 = vmatprep.subr.bf16.mxu1 %v8661_v31  ;;  %v8708_v29 = vcombine.low %v856_v2, %v860_v18  ;;  %v8715_v31 = vcombine.high %v863_v10, %v867_v39  ;;  %v8717_v32 = vcombine.high %v864_v25, %v868_v26  ;;  %v915_v2 = vld [vmem:[%s9820_s1 + $0x13f0] sm:$0xff]  ;;  %v912_v18 = vld [vmem:[%s9820_s1 + $0x13d8] sm:$0xff] }
 0x386   : > { %7362 = vmatpush1.bf16.msra.mxu0 %v8658_v20  ;;  %7690 = vmatpush1.bf16.msra.mxu1 %v8660_v35  ;;  %v876_v20 = vld [vmem:[%s9820_s1 + $0x12b8] sm:$0xff]  ;;  %v8714_v35 = vcombine.low %v863_v10, %v867_v39  ;;  %v919_v39 = vld [vmem:[%s9820_s1 + $0x1410] sm:$0xff] }
 0x387   : > { %7363 = vmatprep.subr.bf16.mxu0 %v8667_v36  ;;  %7691 = vmatprep.subr.bf16.mxu1 %v8669_v37  ;;  %v8716_v36 = vcombine.low %v864_v25, %v868_v26  ;;  %v8723_v37 = vcombine.high %v871_v0, %v875_v49  ;;  %v8725_v40 = vcombine.high %v872_v34, %v876_v20  ;;  %v923_v25 = vld [vmem:[%s9820_s1 + $0x1430] sm:$0xff]  ;;  %v920_v26 = vld [vmem:[%s9820_s1 + $0x1418] sm:$0xff] }
 0x38a   : > { %7364 = vmatpush1.bf16.msra.mxu0 %v8666_v44  ;;  %7692 = vmatpush1.bf16.msra.mxu1 %v8668_v60  ;;  %v884_v44 = vld [vmem:[%s9820_s1 + $0x12f8] sm:$0xff]  ;;  %v8722_v60 = vcombine.low %v871_v0, %v875_v49  ;;  %v927_v49 = vld [vmem:[%s9820_s1 + $0x1450] sm:$0xff] }
 0x38b   : > { %7365 = vmatprep.subr.bf16.mxu0 %v8675_v46  ;;  %7693 = vmatprep.subr.bf16.mxu1 %v8677_v47  ;;  %v8724_v46 = vcombine.low %v872_v34, %v876_v20  ;;  %v8731_v47 = vcombine.high %v879_v41, %v883_v42  ;;  %v8733_v48 = vcombine.high %v880_v43, %v884_v44  ;;  %v931_v34 = vld [vmem:[%s9820_s1 + $0x1470] sm:$0xff]  ;;  %v928_v20 = vld [vmem:[%s9820_s1 + $0x1458] sm:$0xff] }
 0x38e   : > { %7366 = vmatpush1.bf16.msra.mxu0 %v8674_v24  ;;  %7694 = vmatpush1.bf16.msra.mxu1 %v8676_v55  ;;  %v892_v24 = vld [vmem:[%s9820_s1 + $0x1338] sm:$0xff]  ;;  %v8730_v55 = vcombine.low %v879_v41, %v883_v42  ;;  %v935_v42 = vld [vmem:[%s9820_s1 + $0x1490] sm:$0xff] }
 0x38f   : > { %7367 = vmatprep.subr.bf16.mxu0 %v8683_v56  ;;  %7695 = vmatprep.subr.bf16.mxu1 %v8685_v57  ;;  %v8732_v56 = vcombine.low %v880_v43, %v884_v44  ;;  %v8739_v57 = vcombine.high %v887_v51, %v891_v53  ;;  %v8741_v58 = vcombine.high %v888_v59, %v892_v24  ;;  %v939_v43 = vld [vmem:[%s9820_s1 + $0x14b0] sm:$0xff]  ;;  %v936_v44 = vld [vmem:[%s9820_s1 + $0x1498] sm:$0xff] }
 0x392   : > { %7368 = vmatpush1.bf16.msra.mxu0 %v8682_v6  ;;  %7696 = vmatpush1.bf16.msra.mxu1 %v8684_v9  ;;  %v900_v6 = vld [vmem:[%s9820_s1 + $0x1378] sm:$0xff]  ;;  %v8738_v9 = vcombine.low %v887_v51, %v891_v53  ;;  %v943_v53 = vld [vmem:[%s9820_s1 + $0x14d0] sm:$0xff] }
 0x393   : > { %7369 = vmatprep.subr.bf16.mxu0 %v8691_v33  ;;  %7697 = vmatprep.subr.bf16.mxu1 %v8693_v3  ;;  %v8740_v33 = vcombine.low %v888_v59, %v892_v24  ;;  %v8747_v3 = vcombine.high %v895_v61, %v899_v62  ;;  %v8749_v4 = vcombine.high %v896_v63, %v900_v6  ;;  %v947_v59 = vld [vmem:[%s9820_s1 + $0x14f0] sm:$0xff]  ;;  %v944_v24 = vld [vmem:[%s9820_s1 + $0x14d8] sm:$0xff] }
 0x396   : > { %7370 = vmatpush1.bf16.msra.mxu0 %v8690_v11  ;;  %7698 = vmatpush1.bf16.msra.mxu1 %v8692_v12  ;;  %v908_v11 = vld [vmem:[%s9820_s1 + $0x13b8] sm:$0xff]  ;;  %v8746_v12 = vcombine.low %v895_v61, %v899_v62  ;;  %v951_v61 = vld [vmem:[%s9820_s1 + $0x1510] sm:$0xff] }
 0x397   : > { %7371 = vmatprep.subr.bf16.mxu0 %v8699_v13  ;;  %7699 = vmatprep.subr.bf16.mxu1 %v8701_v14  ;;  %v8748_v13 = vcombine.low %v896_v63, %v900_v6  ;;  %v8755_v14 = vcombine.high %v903_v5, %v907_v30  ;;  %v8757_v15 = vcombine.high %v904_v7, %v908_v11  ;;  %v955_v62 = vld [vmem:[%s9820_s1 + $0x1530] sm:$0xff]  ;;  %v952_v63 = vld [vmem:[%s9820_s1 + $0x1518] sm:$0xff] }
 0x398   : > { %v956_v6 = vld [vmem:[%s9820_s1 + $0x1538] sm:$0xff] }
 0x39a   : > { %7372 = vmatpush1.bf16.msra.mxu0 %v8698_v54  ;;  %7700 = vmatpush1.bf16.msra.mxu1 %v8700_v17  ;;  %v916_v54 = vld [vmem:[%s9820_s1 + $0x13f8] sm:$0xff]  ;;  %v8754_v17 = vcombine.low %v903_v5, %v907_v30  ;;  %v963_v5 = vld [vmem:[%s9820_s1 + $0x1570] sm:$0xff] }
 0x39b   : > { %7373 = vmatprep.subr.bf16.mxu0 %v8707_v21  ;;  %7701 = vmatprep.subr.bf16.mxu1 %v8709_v22  ;;  %v8756_v21 = vcombine.low %v904_v7, %v908_v11  ;;  %v8763_v22 = vcombine.high %v911_v16, %v915_v2  ;;  %v8765_v10 = vcombine.high %v912_v18, %v916_v54  ;;  %v960_v30 = vld [vmem:[%s9820_s1 + $0x1558] sm:$0xff] }
 0x39c   : > { %v964_v7 = vld [vmem:[%s9820_s1 + $0x1578] sm:$0xff]  ;;  %v8802_v11 = vcombine.low %v951_v61, %v955_v62 }
 0x39e   : > { %7374 = vmatpush1.bf16.msra.mxu0 %v8706_v27  ;;  %7702 = vmatpush1.bf16.msra.mxu1 %v8708_v29  ;;  %v924_v27 = vld [vmem:[%s9820_s1 + $0x1438] sm:$0xff]  ;;  %v8762_v29 = vcombine.low %v911_v16, %v915_v2  ;;  %v971_v16 = vld [vmem:[%s9820_s1 + $0x15b0] sm:$0xff] }
 0x39f   : > { %7375 = vmatprep.subr.bf16.mxu0 %v8715_v31  ;;  %7703 = vmatprep.subr.bf16.mxu1 %v8717_v32  ;;  %v8764_v31 = vcombine.low %v912_v18, %v916_v54  ;;  %v8771_v32 = vcombine.high %v919_v39, %v923_v25  ;;  %v8773_v0 = vcombine.high %v920_v26, %v924_v27  ;;  %v968_v2 = vld [vmem:[%s9820_s1 + $0x1598] sm:$0xff] }
 0x3a0   : > { %v972_v18 = vld [vmem:[%s9820_s1 + $0x15b8] sm:$0xff] }
 0x3a2   : > { %7376 = vmatpush1.bf16.msra.mxu0 %v8714_v35  ;;  %7704 = vmatpush1.bf16.msra.mxu1 %v8716_v36  ;;  %v932_v35 = vld [vmem:[%s9820_s1 + $0x1478] sm:$0xff]  ;;  %v8770_v36 = vcombine.low %v919_v39, %v923_v25  ;;  %v979_v39 = vld [vmem:[%s9820_s1 + $0x15f0] sm:$0xff] }
 0x3a3   : > { %7377 = vmatprep.subr.bf16.mxu0 %v8723_v37  ;;  %7705 = vmatprep.subr.bf16.mxu1 %v8725_v40  ;;  %v8772_v37 = vcombine.low %v920_v26, %v924_v27  ;;  %v8779_v40 = vcombine.high %v927_v49, %v931_v34  ;;  %v8781_v41 = vcombine.high %v928_v20, %v932_v35  ;;  %v976_v25 = vld [vmem:[%s9820_s1 + $0x15d8] sm:$0xff] }
 0x3a4   : > { %v980_v26 = vld [vmem:[%s9820_s1 + $0x15f8] sm:$0xff] }
 0x3a6   : > { %7378 = vmatpush1.bf16.msra.mxu0 %v8722_v60  ;;  %7706 = vmatpush1.bf16.msra.mxu1 %v8724_v46  ;;  %v940_v60 = vld [vmem:[%s9820_s1 + $0x14b8] sm:$0xff]  ;;  %v8778_v46 = vcombine.low %v927_v49, %v931_v34  ;;  %v987_v49 = vld [vmem:[%s9820_s1 + $0x1630] sm:$0xff] }
 0x3a7   : > { %7379 = vmatprep.subr.bf16.mxu0 %v8731_v47  ;;  %7707 = vmatprep.subr.bf16.mxu1 %v8733_v48  ;;  %v8780_v47 = vcombine.low %v928_v20, %v932_v35  ;;  %v8787_v48 = vcombine.high %v935_v42, %v939_v43  ;;  %v8789_v51 = vcombine.high %v936_v44, %v940_v60  ;;  %v984_v34 = vld [vmem:[%s9820_s1 + $0x1618] sm:$0xff] }
 0x3a8   : > { %v988_v20 = vld [vmem:[%s9820_s1 + $0x1638] sm:$0xff] }
 0x3aa   : > { %7380 = vmatpush1.bf16.msra.mxu0 %v8730_v55  ;;  %7708 = vmatpush1.bf16.msra.mxu1 %v8732_v56  ;;  %v948_v55 = vld [vmem:[%s9820_s1 + $0x14f8] sm:$0xff]  ;;  %v8788_v56 = vcombine.low %v936_v44, %v940_v60 }
 0x3ab   : > { %7381 = vmatprep.subr.bf16.mxu0 %v8739_v57  ;;  %7709 = vmatprep.subr.bf16.mxu1 %v8741_v58  ;;  %v8795_v57 = vcombine.high %v943_v53, %v947_v59  ;;  %v8797_v58 = vcombine.high %v944_v24, %v948_v55  ;;  %v996_v44 = vld [vmem:[%s9820_s1 + $0x1678] sm:$0xff] }
 0x3ae   : > { %7382 = vmatpush1.bf16.msra.mxu0 %v8738_v9  ;;  %7710 = vmatpush1.bf16.msra.mxu1 %v8740_v33  ;;  %v8794_v9 = vcombine.low %v943_v53, %v947_v59  ;;  %v8803_v33 = vcombine.high %v951_v61, %v955_v62  ;;  %v1003_v53 = vld [vmem:[%s9820_s1 + $0x16b0] sm:$0xff]  ;;  %v1000_v59 = vld [vmem:[%s9820_s1 + $0x1698] sm:$0xff] }
 0x3af   : > { %7383 = vmatprep.subr.bf16.mxu0 %v8747_v3  ;;  %7711 = vmatprep.subr.bf16.mxu1 %v8749_v4  ;;  %v8805_v3 = vcombine.high %v952_v63, %v956_v6  ;;  %v959_v4 = vld [vmem:[%s9820_s1 + $0x1550] sm:$0xff]  ;;  %v1008_v62 = vld [vmem:[%s9820_s1 + $0x16d8] sm:$0xff] }
 0x3b0   : > { %v8810_v54 = vcombine.low %v959_v4, %v963_v5  ;;  %v1011_v61 = vld [vmem:[%s9820_s1 + $0x16f0] sm:$0xff] }
 0x3b2   : > { %7384 = vmatpush1.bf16.msra.mxu0 %v8746_v12  ;;  %7712 = vmatpush1.bf16.msra.mxu1 %v8748_v13  ;;  %v8804_v12 = vcombine.low %v952_v63, %v956_v6  ;;  %v8811_v13 = vcombine.high %v959_v4, %v963_v5  ;;  %v1012_v63 = vld [vmem:[%s9820_s1 + $0x16f8] sm:$0xff]  ;;  %v1019_v4 = vld [vmem:[%s9820_s1 + $0x1730] sm:$0xff] }
 0x3b3   : > { %7385 = vmatprep.subr.bf16.mxu0 %v8755_v14  ;;  %7713 = vmatprep.subr.bf16.mxu1 %v8757_v15  ;;  %v8813_v14 = vcombine.high %v960_v30, %v964_v7  ;;  %v967_v15 = vld [vmem:[%s9820_s1 + $0x1590] sm:$0xff]  ;;  %v1016_v5 = vld [vmem:[%s9820_s1 + $0x1718] sm:$0xff] }
 0x3b4   : > { %v8818_v27 = vcombine.low %v967_v15, %v971_v16 }
 0x3b6   : > { %7386 = vmatpush1.bf16.msra.mxu0 %v8754_v17  ;;  %7714 = vmatpush1.bf16.msra.mxu1 %v8756_v21  ;;  %v8812_v17 = vcombine.low %v960_v30, %v964_v7  ;;  %v8819_v21 = vcombine.high %v967_v15, %v971_v16  ;;  %v1020_v30 = vld [vmem:[%s9820_s1 + $0x1738] sm:$0xff]  ;;  %v1027_v15 = vld [vmem:[%s9820_s1 + $0x1770] sm:$0xff] }
 0x3b7   : > { %7387 = vmatprep.subr.bf16.mxu0 %v8763_v22  ;;  %7715 = vmatprep.subr.bf16.mxu1 %v8765_v10  ;;  %v8821_v22 = vcombine.high %v968_v2, %v972_v18  ;;  %v975_v10 = vld [vmem:[%s9820_s1 + $0x15d0] sm:$0xff]  ;;  %v1024_v16 = vld [vmem:[%s9820_s1 + $0x1758] sm:$0xff] }
 0x3b8   : > { %v8826_v35 = vcombine.low %v975_v10, %v979_v39 }
 0x3ba   : > { %7388 = vmatpush1.bf16.msra.mxu0 %v8762_v29  ;;  %7716 = vmatpush1.bf16.msra.mxu1 %v8764_v31  ;;  %v8820_v29 = vcombine.low %v968_v2, %v972_v18  ;;  %v8827_v31 = vcombine.high %v975_v10, %v979_v39  ;;  %v1028_v2 = vld [vmem:[%s9820_s1 + $0x1778] sm:$0xff]  ;;  %v1035_v10 = vld [vmem:[%s9820_s1 + $0x17b0] sm:$0xff] }
 0x3bb   : > { %7398 = vmatprep.subr.bf16.mxu0 %v8771_v32  ;;  %7726 = vmatprep.subr.bf16.mxu1 %v8773_v0  ;;  %v8829_v32 = vcombine.high %v976_v25, %v980_v26  ;;  %v983_v0 = vld [vmem:[%s9820_s1 + $0x1610] sm:$0xff]  ;;  %v1032_v39 = vld [vmem:[%s9820_s1 + $0x1798] sm:$0xff] }
 0x3bc   : > { %v8834_v60 = vcombine.low %v983_v0, %v987_v49 }
 0x3bd   : > { %7390 = vmatmul.mubr.bf16.vlgmr.msra.gmra.mrb[4].mxu0 %v10256_v52  ;;  %7718 = vmatmul.mubr.bf16.vlgmr.msra.gmra.mrb[4].mxu1 %v10256_v52  ;;  %v8786_v52 = vcombine.low %v935_v42, %v939_v43  ;;  %v995_v42 = vld [vmem:[%s9820_s1 + $0x1670] sm:$0xff]  ;;  %v992_v43 = vld [vmem:[%s9820_s1 + $0x1658] sm:$0xff] }
 0x3be   : > { %7399 = vmatpush1.bf16.msra.mxu0 %v8770_v36  ;;  %7727 = vmatpush1.bf16.msra.mxu1 %v8772_v37  ;;  %v8828_v36 = vcombine.low %v976_v25, %v980_v26  ;;  %v8835_v37 = vcombine.high %v983_v0, %v987_v49  ;;  %v1036_v25 = vld [vmem:[%s9820_s1 + $0x17b8] sm:$0xff]  ;;  %v1043_v0 = vld [vmem:[%s9820_s1 + $0x17f0] sm:$0xff] }
 0x3bf   : > { %7400 = vmatprep.subr.bf16.mxu0 %v8779_v40  ;;  %7728 = vmatprep.subr.bf16.mxu1 %v8781_v41  ;;  %v8837_v40 = vcombine.high %v984_v34, %v988_v20  ;;  %v991_v41 = vld [vmem:[%s9820_s1 + $0x1650] sm:$0xff]  ;;  %v1040_v49 = vld [vmem:[%s9820_s1 + $0x17d8] sm:$0xff] }
 0x3c0   : > { %7430 = vmatprep.mubr.bf16.mxu0 %v10264_v1  ;;  %7758 = vmatprep.mubr.bf16.mxu1 %v10264_v1  ;;  %v8796_v1 = vcombine.low %v944_v24, %v948_v55  ;;  %v1004_v24 = vld [vmem:[%s9820_s1 + $0x16b8] sm:$0xff]  ;;  %v8842_v55 = vcombine.low %v991_v41, %v995_v42 }
 0x3c2   : > { %7401 = vmatpush1.bf16.msra.mxu0 %v8778_v46  ;;  %7729 = vmatpush1.bf16.msra.mxu1 %v8780_v47  ;;  %v8836_v46 = vcombine.low %v984_v34, %v988_v20  ;;  %v8843_v47 = vcombine.high %v991_v41, %v995_v42  ;;  %v1044_v34 = vld [vmem:[%s9820_s1 + $0x17f8] sm:$0xff]  ;;  %v1051_v41 = vld [vmem:[%s9820_s1 + $0x1830] sm:$0xff] }
 0x3c3   : > { %7402 = vmatprep.subr.bf16.mxu0 %v8787_v48  ;;  %7730 = vmatprep.subr.bf16.mxu1 %v8789_v51  ;;  %v8845_v48 = vcombine.high %v992_v43, %v996_v44  ;;  %v999_v51 = vld [vmem:[%s9820_s1 + $0x1690] sm:$0xff]  ;;  %v1048_v42 = vld [vmem:[%s9820_s1 + $0x1818] sm:$0xff] }
 0x3c4   : > { %v8850_v6 = vcombine.low %v999_v51, %v1003_v53 }
 0x3c6   : > { %7403 = vmatpush1.bf16.msra.mxu0 %v8786_v52  ;;  %7731 = vmatpush1.bf16.msra.mxu1 %v8788_v56  ;;  %v8844_v52 = vcombine.low %v992_v43, %v996_v44  ;;  %v8851_v56 = vcombine.high %v999_v51, %v1003_v53  ;;  %v1052_v43 = vld [vmem:[%s9820_s1 + $0x1838] sm:$0xff]  ;;  %v1059_v51 = vld [vmem:[%s9820_s1 + $0x1870] sm:$0xff] }
 0x3c7   : > { %7404 = vmatprep.subr.bf16.mxu0 %v8795_v57  ;;  %7732 = vmatprep.subr.bf16.mxu1 %v8797_v58  ;;  %v8853_v57 = vcombine.high %v1000_v59, %v1004_v24  ;;  %v1007_v58 = vld [vmem:[%s9820_s1 + $0x16d0] sm:$0xff]  ;;  %v1056_v53 = vld [vmem:[%s9820_s1 + $0x1858] sm:$0xff] }
 0x3c8   : > { %v8858_v7 = vcombine.low %v1007_v58, %v1011_v61 }
 0x3ca   : > { %7405 = vmatpush1.bf16.msra.mxu0 %v8794_v9  ;;  %7733 = vmatpush1.bf16.msra.mxu1 %v8796_v1  ;;  %v8852_v9 = vcombine.low %v1000_v59, %v1004_v24  ;;  %v8859_v1 = vcombine.high %v1007_v58, %v1011_v61  ;;  %v1060_v59 = vld [vmem:[%s9820_s1 + $0x1878] sm:$0xff]  ;;  %v1067_v58 = vld [vmem:[%s9820_s1 + $0x18b0] sm:$0xff] }
 0x3cb   : > { %7406 = vmatprep.subr.bf16.mxu0 %v8803_v33  ;;  %7734 = vmatprep.subr.bf16.mxu1 %v8805_v3  ;;  %v8861_v33 = vcombine.high %v1008_v62, %v1012_v63  ;;  %v1015_v3 = vld [vmem:[%s9820_s1 + $0x1710] sm:$0xff]  ;;  %v1064_v61 = vld [vmem:[%s9820_s1 + $0x1898] sm:$0xff] }
 0x3cc   : > { %v8866_v18 = vcombine.low %v1015_v3, %v1019_v4 }
 0x3ce   : > { %7407 = vmatpush1.bf16.msra.mxu0 %v8802_v11  ;;  %7735 = vmatpush1.bf16.msra.mxu1 %v8804_v12  ;;  %v8860_v11 = vcombine.low %v1008_v62, %v1012_v63  ;;  %v8867_v12 = vcombine.high %v1015_v3, %v1019_v4  ;;  %v1068_v62 = vld [vmem:[%s9820_s1 + $0x18b8] sm:$0xff]  ;;  %v1075_v3 = vld [vmem:[%s9820_s1 + $0x18f0] sm:$0xff] }
 0x3cf   : > { %7408 = vmatprep.subr.bf16.mxu0 %v8811_v13  ;;  %7736 = vmatprep.subr.bf16.mxu1 %v8813_v14  ;;  %v8869_v13 = vcombine.high %v1016_v5, %v1020_v30  ;;  %v1023_v14 = vld [vmem:[%s9820_s1 + $0x1750] sm:$0xff]  ;;  %v1072_v4 = vld [vmem:[%s9820_s1 + $0x18d8] sm:$0xff] }
 0x3d0   : > { %v8874_v26 = vcombine.low %v1023_v14, %v1027_v15 }
 0x3d2   : > { %7409 = vmatpush1.bf16.msra.mxu0 %v8810_v54  ;;  %7737 = vmatpush1.bf16.msra.mxu1 %v8812_v17  ;;  %v8868_v54 = vcombine.low %v1016_v5, %v1020_v30  ;;  %v8875_v17 = vcombine.high %v1023_v14, %v1027_v15  ;;  %v1076_v5 = vld [vmem:[%s9820_s1 + $0x18f8] sm:$0xff]  ;;  %v8916_v30 = vcombine.low %v1064_v61, %v1068_v62 }
 0x3d3   : > { %7410 = vmatprep.subr.bf16.mxu0 %v8819_v21  ;;  %7738 = vmatprep.subr.bf16.mxu1 %v8821_v22  ;;  %v8877_v21 = vcombine.high %v1024_v16, %v1028_v2  ;;  %v1031_v22 = vld [vmem:[%s9820_s1 + $0x1790] sm:$0xff]  ;;  %v1080_v14 = vld [vmem:[%s9820_s1 + $0x1918] sm:$0xff] }
 0x3d4   : > { %v8882_v20 = vcombine.low %v1031_v22, %v1035_v10  ;;  %v1084_v15 = vld [vmem:[%s9820_s1 + $0x1938] sm:$0xff] }
 0x3d6   : > { %7411 = vmatpush1.bf16.msra.mxu0 %v8818_v27  ;;  %7739 = vmatpush1.bf16.msra.mxu1 %v8820_v29  ;;  %v8876_v27 = vcombine.low %v1024_v16, %v1028_v2  ;;  %v8883_v29 = vcombine.high %v1031_v22, %v1035_v10  ;;  %v1092_v22 = vld [vmem:[%s9820_s1 + $0x1978] sm:$0xff] }
 0x3d7   : > { %7412 = vmatprep.subr.bf16.mxu0 %v8827_v31  ;;  %7740 = vmatprep.subr.bf16.mxu1 %v8829_v32  ;;  %v8885_v31 = vcombine.high %v1032_v39, %v1036_v25  ;;  %v1039_v32 = vld [vmem:[%s9820_s1 + $0x17d0] sm:$0xff] }
 0x3d8   : > { %v8890_v44 = vcombine.low %v1039_v32, %v1043_v0 }
 0x3da   : > { %7413 = vmatpush1.bf16.msra.mxu0 %v8826_v35  ;;  %7741 = vmatpush1.bf16.msra.mxu1 %v8828_v36  ;;  %v8884_v35 = vcombine.low %v1032_v39, %v1036_v25  ;;  %v8891_v36 = vcombine.high %v1039_v32, %v1043_v0  ;;  %v8932_v39 = vcombine.low %v1080_v14, %v1084_v15  ;;  %v1100_v32 = vld [vmem:[%s9820_s1 + $0x19b8] sm:$0xff] }
 0x3db   : > { %7414 = vmatprep.subr.bf16.mxu0 %v8835_v37  ;;  %7742 = vmatprep.subr.bf16.mxu1 %v8837_v40  ;;  %v8893_v37 = vcombine.high %v1040_v49, %v1044_v34  ;;  %v1047_v40 = vld [vmem:[%s9820_s1 + $0x1810] sm:$0xff] }
 0x3dc   : > { %v8898_v24 = vcombine.low %v1047_v40, %v1051_v41 }
 0x3de   : > { %7415 = vmatpush1.bf16.msra.mxu0 %v8834_v60  ;;  %7743 = vmatpush1.bf16.msra.mxu1 %v8836_v46  ;;  %v8892_v60 = vcombine.low %v1040_v49, %v1044_v34  ;;  %v8899_v46 = vcombine.high %v1047_v40, %v1051_v41  ;;  %v1108_v40 = vld [vmem:[%s9820_s1 + $0x19f8] sm:$0xff] }
 0x3df   : > { %7416 = vmatprep.subr.bf16.mxu0 %v8843_v47  ;;  %7744 = vmatprep.subr.bf16.mxu1 %v8845_v48  ;;  %v8901_v47 = vcombine.high %v1048_v42, %v1052_v43  ;;  %v1055_v48 = vld [vmem:[%s9820_s1 + $0x1850] sm:$0xff] }
 0x3e0   : > { %v8906_v63 = vcombine.low %v1055_v48, %v1059_v51 }
 0x3e2   : > { %7417 = vmatpush1.bf16.msra.mxu0 %v8842_v55  ;;  %7745 = vmatpush1.bf16.msra.mxu1 %v8844_v52  ;;  %v8900_v55 = vcombine.low %v1048_v42, %v1052_v43  ;;  %v8907_v52 = vcombine.high %v1055_v48, %v1059_v51  ;;  %v1116_v48 = vld [vmem:[%s9820_s1 + $0x1a38] sm:$0xff] }
 0x3e3   : > { %7418 = vmatprep.subr.bf16.mxu0 %v8851_v56  ;;  %7746 = vmatprep.subr.bf16.mxu1 %v8853_v57  ;;  %v8909_v56 = vcombine.high %v1056_v53, %v1060_v59  ;;  %v1063_v57 = vld [vmem:[%s9820_s1 + $0x1890] sm:$0xff] }
 0x3e6   : > { %7419 = vmatpush1.bf16.msra.mxu0 %v8850_v6  ;;  %7747 = vmatpush1.bf16.msra.mxu1 %v8852_v9  ;;  %v8908_v6 = vcombine.low %v1056_v53, %v1060_v59  ;;  %v8915_v9 = vcombine.high %v1063_v57, %v1067_v58 }
 0x3e7   : > { %7420 = vmatprep.subr.bf16.mxu0 %v8859_v1  ;;  %7748 = vmatprep.subr.bf16.mxu1 %v8861_v33  ;;  %v8917_v1 = vcombine.high %v1064_v61, %v1068_v62  ;;  %v1071_v33 = vld [vmem:[%s9820_s1 + $0x18d0] sm:$0xff] }
 0x3e8   : > { %v8922_v16 = vcombine.low %v1071_v33, %v1075_v3 }
 0x3ea   : > { %7421 = vmatpush1.bf16.msra.mxu0 %v8858_v7  ;;  %7749 = vmatpush1.bf16.msra.mxu1 %v8860_v11  ;;  %v8923_v7 = vcombine.high %v1071_v33, %v1075_v3  ;;  %v8925_v11 = vcombine.high %v1072_v4, %v1076_v5  ;;  %v1132_v33 = vld [vmem:[%s9820_s1 + $0x1ab8] sm:$0xff] }
 0x3eb   : > { %7422 = vmatprep.subr.bf16.mxu0 %v8867_v12  ;;  %7750 = vmatprep.subr.bf16.mxu1 %v8869_v13  ;;  %v1079_v12 = vld [vmem:[%s9820_s1 + $0x1910] sm:$0xff] }
 0x3ec   : > { %v1083_v13 = vld [vmem:[%s9820_s1 + $0x1930] sm:$0xff] }
 0x3ed   : > { %v8931_v2 = vcombine.high %v1079_v12, %v1083_v13  ;;  %v8930_v10 = vcombine.low %v1079_v12, %v1083_v13  ;;  %v1140_v12 = vld [vmem:[%s9820_s1 + $0x1af8] sm:$0xff] }
 0x3ee   : > { %7423 = vmatpush1.bf16.msra.mxu0 %v8866_v18  ;;  %7751 = vmatpush1.bf16.msra.mxu1 %v8868_v54  ;;  %v8933_v18 = vcombine.high %v1080_v14, %v1084_v15  ;;  %v1087_v54 = vld [vmem:[%s9820_s1 + $0x1950] sm:$0xff] }
 0x3ef   : > { %7424 = vmatprep.subr.bf16.mxu0 %v8875_v17  ;;  %7752 = vmatprep.subr.bf16.mxu1 %v8877_v21  ;;  %v1091_v17 = vld [vmem:[%s9820_s1 + $0x1970] sm:$0xff]  ;;  %v1088_v21 = vld [vmem:[%s9820_s1 + $0x1958] sm:$0xff] }
 0x3f0   : > { %v8939_v25 = vcombine.high %v1087_v54, %v1091_v17  ;;  %v8938_v0 = vcombine.low %v1087_v54, %v1091_v17  ;;  %v8940_v49 = vcombine.low %v1088_v21, %v1092_v22  ;;  %v1148_v54 = vld [vmem:[%s9820_s1 + $0x1b38] sm:$0xff] }
 0x3f2   : > { %7425 = vmatpush1.bf16.msra.mxu0 %v8874_v26  ;;  %7753 = vmatpush1.bf16.msra.mxu1 %v8876_v27  ;;  %v8941_v26 = vcombine.high %v1088_v21, %v1092_v22  ;;  %v1095_v27 = vld [vmem:[%s9820_s1 + $0x1990] sm:$0xff] }
 0x3f3   : > { %7426 = vmatprep.subr.bf16.mxu0 %v8883_v29  ;;  %7754 = vmatprep.subr.bf16.mxu1 %v8885_v31  ;;  %v1099_v29 = vld [vmem:[%s9820_s1 + $0x19b0] sm:$0xff]  ;;  %v1096_v31 = vld [vmem:[%s9820_s1 + $0x1998] sm:$0xff] }
 0x3f4   : > { %v8947_v34 = vcombine.high %v1095_v27, %v1099_v29  ;;  %v8946_v41 = vcombine.low %v1095_v27, %v1099_v29  ;;  %v8948_v42 = vcombine.low %v1096_v31, %v1100_v32  ;;  %v1156_v27 = vld [vmem:[%s9820_s1 + $0x1b78] sm:$0xff] }
 0x3f6   : > { %7427 = vmatpush1.bf16.msra.mxu0 %v8882_v20  ;;  %7755 = vmatpush1.bf16.msra.mxu1 %v8884_v35  ;;  %v8949_v20 = vcombine.high %v1096_v31, %v1100_v32  ;;  %v1103_v35 = vld [vmem:[%s9820_s1 + $0x19d0] sm:$0xff] }
 0x3f7   : > { %7428 = vmatprep.subr.bf16.mxu0 %v8891_v36  ;;  %7756 = vmatprep.subr.bf16.mxu1 %v8893_v37  ;;  %v1107_v36 = vld [vmem:[%s9820_s1 + $0x19f0] sm:$0xff]  ;;  %v1104_v37 = vld [vmem:[%s9820_s1 + $0x19d8] sm:$0xff] }
 0x3f8   : > { %v8955_v43 = vcombine.high %v1103_v35, %v1107_v36  ;;  %v8954_v51 = vcombine.low %v1103_v35, %v1107_v36  ;;  %v8956_v53 = vcombine.low %v1104_v37, %v1108_v40  ;;  %v1164_v35 = vld [vmem:[%s9820_s1 + $0x1bb8] sm:$0xff] }
 0x3fa   : > { %7429 = vmatpush1.bf16.msra.mxu0 %v8890_v44  ;;  %7757 = vmatpush1.bf16.msra.mxu1 %v8892_v60  ;;  %v8957_v44 = vcombine.high %v1104_v37, %v1108_v40  ;;  %v1111_v60 = vld [vmem:[%s9820_s1 + $0x1a10] sm:$0xff] }
 0x3fb   : > { %7439 = vmatprep.subr.bf16.mxu0 %v8899_v46  ;;  %7767 = vmatprep.subr.bf16.mxu1 %v8901_v47  ;;  %v1115_v46 = vld [vmem:[%s9820_s1 + $0x1a30] sm:$0xff]  ;;  %v1112_v47 = vld [vmem:[%s9820_s1 + $0x1a18] sm:$0xff] }
 0x3fc   : > { %v8963_v59 = vcombine.high %v1111_v60, %v1115_v46  ;;  %v8964_v61 = vcombine.low %v1112_v47, %v1116_v48 }
 0x3fd   : > { %7431 = vmatmul.mubr.bf16.vlgmr.msra.gmra.mrb[4].mxu0 %v10339_v28  ;;  %7759 = vmatmul.mubr.bf16.vlgmr.msra.gmra.mrb[4].mxu1 %v10339_v28  ;;  %v8914_v28 = vcombine.low %v1063_v57, %v1067_v58  ;;  %v1124_v57 = vld [vmem:[%s9820_s1 + $0x1a78] sm:$0xff]  ;;  %v8962_v58 = vcombine.low %v1111_v60, %v1115_v46 }
 0x3fe   : > { %7440 = vmatpush1.bf16.msra.mxu0 %v8898_v24  ;;  %7768 = vmatpush1.bf16.msra.mxu1 %v8900_v55  ;;  %v8965_v24 = vcombine.high %v1112_v47, %v1116_v48  ;;  %v1119_v55 = vld [vmem:[%s9820_s1 + $0x1a50] sm:$0xff]  ;;  %v1172_v60 = vld [vmem:[%s9820_s1 + $0x1bf8] sm:$0xff] }
 0x3ff   : > { %7441 = vmatprep.subr.bf16.mxu0 %v8907_v52  ;;  %7769 = vmatprep.subr.bf16.mxu1 %v8909_v56  ;;  %v1123_v52 = vld [vmem:[%s9820_s1 + $0x1a70] sm:$0xff]  ;;  %v1120_v56 = vld [vmem:[%s9820_s1 + $0x1a58] sm:$0xff] }
 0x400   : > { %7471 = vmatprep.mubr.bf16.mxu0 %v10346_v38  ;;  %7799 = vmatprep.mubr.bf16.mxu1 %v10346_v38  ;;  %v8924_v38 = vcombine.low %v1072_v4, %v1076_v5  ;;  %v8971_v62 = vcombine.high %v1119_v55, %v1123_v52  ;;  %v8970_v3 = vcombine.low %v1119_v55, %v1123_v52  ;;  %v1180_v55 = vld [vmem:[%s9820_s1 + $0x1c38] sm:$0xff] }
 0x401   : > { %v8972_v4 = vcombine.low %v1120_v56, %v1124_v57 }
 0x402   : > { %7442 = vmatpush1.bf16.msra.mxu0 %v8906_v63  ;;  %7770 = vmatpush1.bf16.msra.mxu1 %v8908_v6  ;;  %v8973_v63 = vcombine.high %v1120_v56, %v1124_v57  ;;  %v1127_v6 = vld [vmem:[%s9820_s1 + $0x1a90] sm:$0xff] }
 0x403   : > { %7443 = vmatprep.subr.bf16.mxu0 %v8915_v9  ;;  %7771 = vmatprep.subr.bf16.mxu1 %v8917_v1  ;;  %v1131_v9 = vld [vmem:[%s9820_s1 + $0x1ab0] sm:$0xff]  ;;  %v1128_v1 = vld [vmem:[%s9820_s1 + $0x1a98] sm:$0xff] }
 0x404   : > { %v8979_v5 = vcombine.high %v1127_v6, %v1131_v9  ;;  %v8978_v13 = vcombine.low %v1127_v6, %v1131_v9  ;;  %v8980_v14 = vcombine.low %v1128_v1, %v1132_v33  ;;  %v1188_v6 = vld [vmem:[%s9820_s1 + $0x1c78] sm:$0xff] }
 0x406   : > { %7444 = vmatpush1.bf16.msra.mxu0 %v8914_v28  ;;  %7772 = vmatpush1.bf16.msra.mxu1 %v8916_v30  ;;  %v8981_v28 = vcombine.high %v1128_v1, %v1132_v33  ;;  %v1135_v30 = vld [vmem:[%s9820_s1 + $0x1ad0] sm:$0xff] }
 0x407   : > { %7445 = vmatprep.subr.bf16.mxu0 %v8923_v7  ;;  %7773 = vmatprep.subr.bf16.mxu1 %v8925_v11  ;;  %v1139_v7 = vld [vmem:[%s9820_s1 + $0x1af0] sm:$0xff]  ;;  %v1136_v11 = vld [vmem:[%s9820_s1 + $0x1ad8] sm:$0xff] }
 0x408   : > { %v8987_v15 = vcombine.high %v1135_v30, %v1139_v7  ;;  %v8986_v17 = vcombine.low %v1135_v30, %v1139_v7  ;;  %v8988_v21 = vcombine.low %v1136_v11, %v1140_v12  ;;  %v1196_v30 = vld [vmem:[%s9820_s1 + $0x1cb8] sm:$0xff] }
 0x40a   : > { %7446 = vmatpush1.bf16.msra.mxu0 %v8922_v16  ;;  %7774 = vmatpush1.bf16.msra.mxu1 %v8924_v38  ;;  %v8989_v16 = vcombine.high %v1136_v11, %v1140_v12  ;;  %v1143_v38 = vld [vmem:[%s9820_s1 + $0x1b10] sm:$0xff] }
 0x40b   : > { %7447 = vmatprep.subr.bf16.mxu0 %v8931_v2  ;;  %7775 = vmatprep.subr.bf16.mxu1 %v8933_v18  ;;  %v1147_v2 = vld [vmem:[%s9820_s1 + $0x1b30] sm:$0xff]  ;;  %v1144_v18 = vld [vmem:[%s9820_s1 + $0x1b18] sm:$0xff] }
 0x40c   : > { %v8995_v22 = vcombine.high %v1143_v38, %v1147_v2  ;;  %v8994_v29 = vcombine.low %v1143_v38, %v1147_v2  ;;  %v8996_v31 = vcombine.low %v1144_v18, %v1148_v54  ;;  %v1204_v38 = vld [vmem:[%s9820_s1 + $0x1cf8] sm:$0xff] }
 0x40e   : > { %7448 = vmatpush1.bf16.msra.mxu0 %v8930_v10  ;;  %7776 = vmatpush1.bf16.msra.mxu1 %v8932_v39  ;;  %v8997_v10 = vcombine.high %v1144_v18, %v1148_v54  ;;  %v1151_v39 = vld [vmem:[%s9820_s1 + $0x1b50] sm:$0xff] }
 0x40f   : > { %7449 = vmatprep.subr.bf16.mxu0 %v8939_v25  ;;  %7777 = vmatprep.subr.bf16.mxu1 %v8941_v26  ;;  %v1155_v25 = vld [vmem:[%s9820_s1 + $0x1b70] sm:$0xff]  ;;  %v1152_v26 = vld [vmem:[%s9820_s1 + $0x1b58] sm:$0xff] }
 0x410   : > { %v9003_v32 = vcombine.high %v1151_v39, %v1155_v25  ;;  %v9002_v36 = vcombine.low %v1151_v39, %v1155_v25  ;;  %v9004_v37 = vcombine.low %v1152_v26, %v1156_v27 }
 0x412   : > { %7450 = vmatpush1.bf16.msra.mxu0 %v8938_v0  ;;  %7778 = vmatpush1.bf16.msra.mxu1 %v8940_v49  ;;  %v9005_v0 = vcombine.high %v1152_v26, %v1156_v27  ;;  %v1159_v49 = vld [vmem:[%s9820_s1 + $0x1b90] sm:$0xff] }
 0x413   : > { %7451 = vmatprep.subr.bf16.mxu0 %v8947_v34  ;;  %7779 = vmatprep.subr.bf16.mxu1 %v8949_v20  ;;  %v1163_v34 = vld [vmem:[%s9820_s1 + $0x1bb0] sm:$0xff]  ;;  %v1160_v20 = vld [vmem:[%s9820_s1 + $0x1b98] sm:$0xff] }
 0x414   : > { %v9011_v40 = vcombine.high %v1159_v49, %v1163_v34  ;;  %v9010_v46 = vcombine.low %v1159_v49, %v1163_v34  ;;  %v9012_v47 = vcombine.low %v1160_v20, %v1164_v35  ;;  %v1215_v27 = vld [vmem:[%s9820_s1 + $0x1d50] sm:$0xff] }
 0x416   : > { %7452 = vmatpush1.bf16.msra.mxu0 %v8946_v41  ;;  %7780 = vmatpush1.bf16.msra.mxu1 %v8948_v42  ;;  %v9013_v41 = vcombine.high %v1160_v20, %v1164_v35  ;;  %v1167_v42 = vld [vmem:[%s9820_s1 + $0x1bd0] sm:$0xff] }
 0x417   : > { %7453 = vmatprep.subr.bf16.mxu0 %v8955_v43  ;;  %7781 = vmatprep.subr.bf16.mxu1 %v8957_v44  ;;  %v1171_v43 = vld [vmem:[%s9820_s1 + $0x1bf0] sm:$0xff]  ;;  %v1168_v44 = vld [vmem:[%s9820_s1 + $0x1bd8] sm:$0xff] }
 0x418   : > { %v9019_v48 = vcombine.high %v1167_v42, %v1171_v43  ;;  %v9018_v52 = vcombine.low %v1167_v42, %v1171_v43  ;;  %v9020_v56 = vcombine.low %v1168_v44, %v1172_v60  ;;  %v1223_v35 = vld [vmem:[%s9820_s1 + $0x1d90] sm:$0xff] }
 0x41a   : > { %7454 = vmatpush1.bf16.msra.mxu0 %v8954_v51  ;;  %7782 = vmatpush1.bf16.msra.mxu1 %v8956_v53  ;;  %v9021_v51 = vcombine.high %v1168_v44, %v1172_v60  ;;  %v1175_v53 = vld [vmem:[%s9820_s1 + $0x1c10] sm:$0xff] }
 0x41b   : > { %7455 = vmatprep.subr.bf16.mxu0 %v8963_v59  ;;  %7783 = vmatprep.subr.bf16.mxu1 %v8965_v24  ;;  %v1179_v59 = vld [vmem:[%s9820_s1 + $0x1c30] sm:$0xff]  ;;  %v1176_v24 = vld [vmem:[%s9820_s1 + $0x1c18] sm:$0xff] }
 0x41c   : > { %v9027_v57 = vcombine.high %v1175_v53, %v1179_v59  ;;  %v9026_v9 = vcombine.low %v1175_v53, %v1179_v59  ;;  %v9028_v1 = vcombine.low %v1176_v24, %v1180_v55  ;;  %v1231_v60 = vld [vmem:[%s9820_s1 + $0x1dd0] sm:$0xff] }
 0x41e   : > { %7456 = vmatpush1.bf16.msra.mxu0 %v8962_v58  ;;  %7784 = vmatpush1.bf16.msra.mxu1 %v8964_v61  ;;  %v9029_v58 = vcombine.high %v1176_v24, %v1180_v55  ;;  %v1183_v61 = vld [vmem:[%s9820_s1 + $0x1c50] sm:$0xff] }
 0x41f   : > { %7457 = vmatprep.subr.bf16.mxu0 %v8971_v62  ;;  %7785 = vmatprep.subr.bf16.mxu1 %v8973_v63  ;;  %v1187_v62 = vld [vmem:[%s9820_s1 + $0x1c70] sm:$0xff]  ;;  %v1184_v63 = vld [vmem:[%s9820_s1 + $0x1c58] sm:$0xff] }
 0x420   : > { %v9035_v33 = vcombine.high %v1183_v61, %v1187_v62  ;;  %v9034_v7 = vcombine.low %v1183_v61, %v1187_v62  ;;  %v9036_v11 = vcombine.low %v1184_v63, %v1188_v6  ;;  %v1239_v55 = vld [vmem:[%s9820_s1 + $0x1e10] sm:$0xff] }
 0x422   : > { %7458 = vmatpush1.bf16.msra.mxu0 %v8970_v3  ;;  %7786 = vmatpush1.bf16.msra.mxu1 %v8972_v4  ;;  %v9037_v3 = vcombine.high %v1184_v63, %v1188_v6  ;;  %v1191_v4 = vld [vmem:[%s9820_s1 + $0x1c90] sm:$0xff] }
 0x423   : > { %7459 = vmatprep.subr.bf16.mxu0 %v8979_v5  ;;  %7787 = vmatprep.subr.bf16.mxu1 %v8981_v28  ;;  %v1195_v5 = vld [vmem:[%s9820_s1 + $0x1cb0] sm:$0xff]  ;;  %v1192_v28 = vld [vmem:[%s9820_s1 + $0x1c98] sm:$0xff] }
 0x424   : > { %v9043_v12 = vcombine.high %v1191_v4, %v1195_v5  ;;  %v9044_v2 = vcombine.low %v1192_v28, %v1196_v30  ;;  %v1247_v6 = vld [vmem:[%s9820_s1 + $0x1e50] sm:$0xff] }
 0x426   : > { %7460 = vmatpush1.bf16.msra.mxu0 %v8978_v13  ;;  %7788 = vmatpush1.bf16.msra.mxu1 %v8980_v14  ;;  %v9045_v13 = vcombine.high %v1192_v28, %v1196_v30  ;;  %v1199_v14 = vld [vmem:[%s9820_s1 + $0x1cd0] sm:$0xff] }
 0x427   : > { %7461 = vmatprep.subr.bf16.mxu0 %v8987_v15  ;;  %7789 = vmatprep.subr.bf16.mxu1 %v8989_v16  ;;  %v1203_v15 = vld [vmem:[%s9820_s1 + $0x1cf0] sm:$0xff]  ;;  %v1200_v16 = vld [vmem:[%s9820_s1 + $0x1cd8] sm:$0xff] }
 0x428   : > { %v9051_v18 = vcombine.high %v1199_v14, %v1203_v15  ;;  %v9053_v54 = vcombine.high %v1200_v16, %v1204_v38  ;;  %v9050_v39 = vcombine.low %v1199_v14, %v1203_v15  ;;  %v1255_v30 = vld [vmem:[%s9820_s1 + $0x1e90] sm:$0xff] }
 0x42a   : > { %7462 = vmatpush1.bf16.msra.mxu0 %v8986_v17  ;;  %7790 = vmatpush1.bf16.msra.mxu1 %v8988_v21  ;;  %v1207_v17 = vld [vmem:[%s9820_s1 + $0x1d10] sm:$0xff] }
 0x42b   : > { %7463 = vmatprep.subr.bf16.mxu0 %v8995_v22  ;;  %7791 = vmatprep.subr.bf16.mxu1 %v8997_v10  ;;  %v1211_v21 = vld [vmem:[%s9820_s1 + $0x1d30] sm:$0xff]  ;;  %v1208_v22 = vld [vmem:[%s9820_s1 + $0x1d18] sm:$0xff] }
 0x42c   : > { %v1212_v10 = vld [vmem:[%s9820_s1 + $0x1d38] sm:$0xff]  ;;  %v9059_v25 = vcombine.high %v1207_v17, %v1211_v21 }
 0x42d   : > { %v9061_v26 = vcombine.high %v1208_v22, %v1212_v10  ;;  %v9060_v49 = vcombine.low %v1208_v22, %v1212_v10  ;;  %v1271_v10 = vld [vmem:[%s9820_s1 + $0x1f10] sm:$0xff] }
 0x42e   : > { %7464 = vmatpush1.bf16.msra.mxu0 %v8994_v29  ;;  %7792 = vmatpush1.bf16.msra.mxu1 %v8996_v31  ;;  %v1219_v29 = vld [vmem:[%s9820_s1 + $0x1d70] sm:$0xff]  ;;  %v1216_v31 = vld [vmem:[%s9820_s1 + $0x1d58] sm:$0xff] }
 0x42f   : > { %7465 = vmatprep.subr.bf16.mxu0 %v9003_v32  ;;  %7793 = vmatprep.subr.bf16.mxu1 %v9005_v0  ;;  %v1220_v32 = vld [vmem:[%s9820_s1 + $0x1d78] sm:$0xff]  ;;  %v9058_v0 = vcombine.low %v1207_v17, %v1211_v21  ;;  %v9067_v34 = vcombine.high %v1215_v27, %v1219_v29 }
 0x430   : > { %v9069_v20 = vcombine.high %v1216_v31, %v1220_v32  ;;  %v9068_v42 = vcombine.low %v1216_v31, %v1220_v32  ;;  %v1279_v32 = vld [vmem:[%s9820_s1 + $0x1f50] sm:$0xff] }
 0x432   : > { %7466 = vmatpush1.bf16.msra.mxu0 %v9002_v36  ;;  %7794 = vmatpush1.bf16.msra.mxu1 %v9004_v37  ;;  %v1227_v36 = vld [vmem:[%s9820_s1 + $0x1db0] sm:$0xff]  ;;  %v1224_v37 = vld [vmem:[%s9820_s1 + $0x1d98] sm:$0xff] }
 0x433   : > { %7467 = vmatprep.subr.bf16.mxu0 %v9011_v40  ;;  %7795 = vmatprep.subr.bf16.mxu1 %v9013_v41  ;;  %v1228_v40 = vld [vmem:[%s9820_s1 + $0x1db8] sm:$0xff]  ;;  %v9066_v41 = vcombine.low %v1215_v27, %v1219_v29  ;;  %v9075_v43 = vcombine.high %v1223_v35, %v1227_v36 }
 0x434   : > { %v9077_v44 = vcombine.high %v1224_v37, %v1228_v40  ;;  %v9076_v53 = vcombine.low %v1224_v37, %v1228_v40  ;;  %v1287_v40 = vld [vmem:[%s9820_s1 + $0x1f90] sm:$0xff] }
 0x436   : > { %7468 = vmatpush1.bf16.msra.mxu0 %v9010_v46  ;;  %7796 = vmatpush1.bf16.msra.mxu1 %v9012_v47  ;;  %v1235_v46 = vld [vmem:[%s9820_s1 + $0x1df0] sm:$0xff]  ;;  %v1232_v47 = vld [vmem:[%s9820_s1 + $0x1dd8] sm:$0xff] }
 0x437   : > { %7469 = vmatprep.subr.bf16.mxu0 %v9019_v48  ;;  %7797 = vmatprep.subr.bf16.mxu1 %v9021_v51  ;;  %v1236_v48 = vld [vmem:[%s9820_s1 + $0x1df8] sm:$0xff]  ;;  %v9074_v51 = vcombine.low %v1223_v35, %v1227_v36  ;;  %v9083_v59 = vcombine.high %v1231_v60, %v1235_v46 }
 0x438   : > { %v9085_v24 = vcombine.high %v1232_v47, %v1236_v48  ;;  %v9084_v61 = vcombine.low %v1232_v47, %v1236_v48  ;;  %v1295_v48 = vld [vmem:[%s9820_s1 + $0x1fd0] sm:$0xff] }
 0x43a   : > { %7470 = vmatpush1.bf16.msra.mxu0 %v9018_v52  ;;  %7798 = vmatpush1.bf16.msra.mxu1 %v9020_v56  ;;  %v1243_v52 = vld [vmem:[%s9820_s1 + $0x1e30] sm:$0xff]  ;;  %v1240_v56 = vld [vmem:[%s9820_s1 + $0x1e18] sm:$0xff] }
 0x43b   : > { %7480 = vmatprep.subr.bf16.mxu0 %v9027_v57  ;;  %7808 = vmatprep.subr.bf16.mxu1 %v9029_v58  ;;  %v1244_v57 = vld [vmem:[%s9820_s1 + $0x1e38] sm:$0xff]  ;;  %v9082_v58 = vcombine.low %v1231_v60, %v1235_v46  ;;  %v9091_v62 = vcombine.high %v1239_v55, %v1243_v52 }
 0x43c   : > { %v9093_v63 = vcombine.high %v1240_v56, %v1244_v57 }
 0x43d   : > { %7472 = vmatmul.mubr.bf16.vlgmr.msra.gmra.mrb[4].mxu0 %v10414_v8  ;;  %7800 = vmatmul.mubr.bf16.vlgmr.msra.gmra.mrb[4].mxu1 %v10414_v8  ;;  %v9042_v8 = vcombine.low %v1191_v4, %v1195_v5  ;;  %v9092_v4 = vcombine.low %v1240_v56, %v1244_v57 }
 0x43e   : > { %7481 = vmatpush1.bf16.msra.mxu0 %v9026_v9  ;;  %7809 = vmatpush1.bf16.msra.mxu1 %v9028_v1  ;;  %v1251_v9 = vld [vmem:[%s9820_s1 + $0x1e70] sm:$0xff]  ;;  %v1248_v1 = vld [vmem:[%s9820_s1 + $0x1e58] sm:$0xff] }
 0x43f   : > { %7482 = vmatprep.subr.bf16.mxu0 %v9035_v33  ;;  %7810 = vmatprep.subr.bf16.mxu1 %v9037_v3  ;;  %v1252_v33 = vld [vmem:[%s9820_s1 + $0x1e78] sm:$0xff]  ;;  %v9090_v3 = vcombine.low %v1239_v55, %v1243_v52  ;;  %v9099_v5 = vcombine.high %v1247_v6, %v1251_v9 }
 0x440   : > { %7512 = vmatprep.mubr.bf16.mxu0 %v10422_v19  ;;  %7840 = vmatprep.mubr.bf16.mxu1 %v10422_v19  ;;  %v9052_v19 = vcombine.low %v1200_v16, %v1204_v38  ;;  %v9101_v28 = vcombine.high %v1248_v1, %v1252_v33  ;;  %v9100_v14 = vcombine.low %v1248_v1, %v1252_v33  ;;  %v1263_v38 = vld [vmem:[%s9820_s1 + $0x1ed0] sm:$0xff] }
 0x442   : > { %7483 = vmatpush1.bf16.msra.mxu0 %v9034_v7  ;;  %7811 = vmatpush1.bf16.msra.mxu1 %v9036_v11  ;;  %v1259_v7 = vld [vmem:[%s9820_s1 + $0x1eb0] sm:$0xff]  ;;  %v1256_v11 = vld [vmem:[%s9820_s1 + $0x1e98] sm:$0xff] }
 0x443   : > { %7484 = vmatprep.subr.bf16.mxu0 %v9043_v12  ;;  %7812 = vmatprep.subr.bf16.mxu1 %v9045_v13  ;;  %v1260_v12 = vld [vmem:[%s9820_s1 + $0x1eb8] sm:$0xff]  ;;  %v9098_v13 = vcombine.low %v1247_v6, %v1251_v9  ;;  %v9107_v15 = vcombine.high %v1255_v30, %v1259_v7 }
 0x444   : > { %v9109_v16 = vcombine.high %v1256_v11, %v1260_v12  ;;  %v9108_v17 = vcombine.low %v1256_v11, %v1260_v12 }
 0x446   : > { %7485 = vmatpush1.bf16.msra.mxu0 %v9042_v8  ;;  %7813 = vmatpush1.bf16.msra.mxu1 %v9044_v2  ;;  %v1267_v8 = vld [vmem:[%s9820_s1 + $0x1ef0] sm:$0xff]  ;;  %v1264_v2 = vld [vmem:[%s9820_s1 + $0x1ed8] sm:$0xff] }
 0x447   : > { %7486 = vmatprep.subr.bf16.mxu0 %v9051_v18  ;;  %7814 = vmatprep.subr.bf16.mxu1 %v9053_v54  ;;  %v1268_v18 = vld [vmem:[%s9820_s1 + $0x1ef8] sm:$0xff]  ;;  %v9106_v54 = vcombine.low %v1255_v30, %v1259_v7  ;;  %v9115_v21 = vcombine.high %v1263_v38, %v1267_v8 }
 0x448   : > { %v9117_v22 = vcombine.high %v1264_v2, %v1268_v18  ;;  %v9116_v27 = vcombine.low %v1264_v2, %v1268_v18  ;;  %v274_v7 = vld [vmem:[#allocation2 + $0x8] sm:$0xff]  ;;  %v7931_v2 = vsub.s32 (!%p9150_p5), 6, %v9869_v45  ;;  %v7935_v18 = vsub.s32 (!%p9150_p5), 7, %v9869_v45 }
 0x44a   : > { %7487 = vmatpush1.bf16.msra.mxu0 %v9050_v39  ;;  %7815 = vmatpush1.bf16.msra.mxu1 %v9052_v19  ;;  %v1275_v39 = vld [vmem:[%s9820_s1 + $0x1f30] sm:$0xff]  ;;  %v1272_v19 = vld [vmem:[%s9820_s1 + $0x1f18] sm:$0xff] }
 0x44b   : > { %7488 = vmatprep.subr.bf16.mxu0 %v9059_v25  ;;  %7816 = vmatprep.subr.bf16.mxu1 %v9061_v26  ;;  %v1276_v25 = vld [vmem:[%s9820_s1 + $0x1f38] sm:$0xff]  ;;  %v9114_v26 = vcombine.low %v1263_v38, %v1267_v8  ;;  %v9123_v29 = vcombine.high %v1271_v10, %v1275_v39  ;;  %v7923_v38 = vsub.s32 (!%p9150_p5), 4, %v9869_v45  ;;  %v7927_v8 = vsub.s32 (!%p9150_p5), 5, %v9869_v45 }
 0x44c   : > { %v9125_v31 = vcombine.high %v1272_v19, %v1276_v25  ;;  %v9124_v35 = vcombine.low %v1272_v19, %v1276_v25 }
 0x44e   : > { %7489 = vmatpush1.bf16.msra.mxu0 %v9058_v0  ;;  %7817 = vmatpush1.bf16.msra.mxu1 %v9060_v49  ;;  %v1283_v0 = vld [vmem:[%s9820_s1 + $0x1f70] sm:$0xff]  ;;  %v1280_v49 = vld [vmem:[%s9820_s1 + $0x1f58] sm:$0xff] }
 0x44f   : > { %7490 = vmatprep.subr.bf16.mxu0 %v9067_v34  ;;  %7818 = vmatprep.subr.bf16.mxu1 %v9069_v20  ;;  %v1284_v34 = vld [vmem:[%s9820_s1 + $0x1f78] sm:$0xff]  ;;  %v9122_v20 = vcombine.low %v1271_v10, %v1275_v39  ;;  %v9131_v36 = vcombine.high %v1279_v32, %v1283_v0 }
 0x450   : > { %v9133_v37 = vcombine.high %v1280_v49, %v1284_v34  ;;  %v9132_v60 = vcombine.low %v1280_v49, %v1284_v34  ;;  %v7901_v49 = vld [vmem:[#allocation2] sm:$0xff] (!%p9150_p5) }
 0x452   : > { %7491 = vmatpush1.bf16.msra.mxu0 %v9066_v41  ;;  %7819 = vmatpush1.bf16.msra.mxu1 %v9068_v42  ;;  %v1291_v41 = vld [vmem:[%s9820_s1 + $0x1fb0] sm:$0xff]  ;;  %v1288_v42 = vld [vmem:[%s9820_s1 + $0x1f98] sm:$0xff] }
 0x453   : > { %7492 = vmatprep.subr.bf16.mxu0 %v9075_v43  ;;  %7820 = vmatprep.subr.bf16.mxu1 %v9077_v44  ;;  %v1292_v43 = vld [vmem:[%s9820_s1 + $0x1fb8] sm:$0xff]  ;;  %v9130_v44 = vcombine.low %v1279_v32, %v1283_v0  ;;  %v9139_v46 = vcombine.high %v1287_v40, %v1291_v41 }
 0x454   : > { %v9141_v47 = vcombine.high %v1288_v42, %v1292_v43  ;;  %v9140_v55 = vcombine.low %v1288_v42, %v1292_v43 }
 0x456   : > { %7493 = vmatpush1.bf16.msra.mxu0 %v9074_v51  ;;  %7821 = vmatpush1.bf16.msra.mxu1 %v9076_v53  ;;  %v1299_v51 = vld [vmem:[%s9820_s1 + $0x1ff0] sm:$0xff]  ;;  %v1296_v53 = vld [vmem:[%s9820_s1 + $0x1fd8] sm:$0xff] }
 0x457   : > { %7494 = vmatprep.subr.bf16.mxu0 %v9083_v59  ;;  %7822 = vmatprep.subr.bf16.mxu1 %v9085_v24  ;;  %v1300_v59 = vld [vmem:[%s9820_s1 + $0x1ff8] sm:$0xff]  ;;  %v9138_v24 = vcombine.low %v1287_v40, %v1291_v41  ;;  %v9147_v52 = vcombine.high %v1295_v48, %v1299_v51  ;;  %v9146_v57 = vcombine.low %v1295_v48, %v1299_v51 }
 0x458   : > { %v9149_v56 = vcombine.high %v1296_v53, %v1300_v59 }
 0x45a   : > { %7495 = vmatpush1.bf16.msra.mxu0 %v9082_v58  ;;  %7823 = vmatpush1.bf16.msra.mxu1 %v9084_v61  ;;  %v9148_v58 = vcombine.low %v1296_v53, %v1300_v59 }
 0x45b   : > { %7496 = vmatprep.subr.bf16.mxu0 %v9091_v62  ;;  %7824 = vmatprep.subr.bf16.mxu1 %v9093_v63 }
 0x45e   : > { %7497 = vmatpush1.bf16.msra.mxu0 %v9090_v3  ;;  %7825 = vmatpush1.bf16.msra.mxu1 %v9092_v4 }
 0x45f   : > { %7498 = vmatprep.subr.bf16.mxu0 %v9099_v5  ;;  %7826 = vmatprep.subr.bf16.mxu1 %v9101_v28 }
 0x462   : > { %7499 = vmatpush1.bf16.msra.mxu0 %v9098_v13  ;;  %7827 = vmatpush1.bf16.msra.mxu1 %v9100_v14  ;;  %v7907_v13 = vsub.s32 (!%p9150_p5), 0, %v9869_v45  ;;  %v7911_v14 = vsub.s32 (!%p9150_p5), 1, %v9869_v45 }
 0x463   : > { %7500 = vmatprep.subr.bf16.mxu0 %v9107_v15  ;;  %7828 = vmatprep.subr.bf16.mxu1 %v9109_v16  ;;  %v7915_v15 = vsub.s32 (!%p9150_p5), 2, %v9869_v45  ;;  %v7919_v16 = vsub.s32 (!%p9150_p5), 3, %v9869_v45 }
 0x466   : > { %7501 = vmatpush1.bf16.msra.mxu0 %v9106_v54  ;;  %7829 = vmatpush1.bf16.msra.mxu1 %v9108_v17 }
 0x467   : > { %7502 = vmatprep.subr.bf16.mxu0 %v9115_v21  ;;  %7830 = vmatprep.subr.bf16.mxu1 %v9117_v22 }
 0x46a   : > { %7503 = vmatpush1.bf16.msra.mxu0 %v9114_v26  ;;  %7831 = vmatpush1.bf16.msra.mxu1 %v9116_v27 }
 0x46b   : > { %7504 = vmatprep.subr.bf16.mxu0 %v9123_v29  ;;  %7832 = vmatprep.subr.bf16.mxu1 %v9125_v31 }
 0x46e   : > { %7505 = vmatpush1.bf16.msra.mxu0 %v9122_v20  ;;  %7833 = vmatpush1.bf16.msra.mxu1 %v9124_v35 }
 0x46f   : > { %7506 = vmatprep.subr.bf16.mxu0 %v9131_v36  ;;  %7834 = vmatprep.subr.bf16.mxu1 %v9133_v37 }
 0x472   : > { %7507 = vmatpush1.bf16.msra.mxu0 %v9130_v44  ;;  %7835 = vmatpush1.bf16.msra.mxu1 %v9132_v60 }
 0x473   : > { %7508 = vmatprep.subr.bf16.mxu0 %v9139_v46  ;;  %7836 = vmatprep.subr.bf16.mxu1 %v9141_v47 }
 0x476   : > { %7509 = vmatpush1.bf16.msra.mxu0 %v9138_v24  ;;  %7837 = vmatpush1.bf16.msra.mxu1 %v9140_v55 }
 0x477   : > { %7510 = vmatprep.subr.bf16.mxu0 %v9147_v52  ;;  %7838 = vmatprep.subr.bf16.mxu1 %v9149_v56 }
 0x47a   : > { %7511 = vmatpush1.bf16.msra.mxu0 %v9146_v57  ;;  %7839 = vmatpush1.bf16.msra.mxu1 %v9148_v58 }
 0x47d   : > { %7513 = vmatmul.mubr.bf16.vlgmr.msra.gmra.mrb[4].mxu0 %v10490_v50  ;;  %7841 = vmatmul.mubr.bf16.vlgmr.msra.gmra.mrb[4].mxu1 %v10490_v50  ;;  %v7903_v50 = vld [vmem:[%s9831_s4] sm:$0xff] (!%p9150_p5) }
 0x47e   : > { %v7908_v54 = vrot.slane (!%p9150_p5), %v7903_v50, %v7907_v13  ;;  %v7912_v17 = vrot.slane (!%p9150_p5), %v7903_v50, %v7911_v14  ;;  %v7916_v21 = vrot.slane (!%p9150_p5), %v7903_v50, %v7915_v15  ;;  %v7920_v22 = vrot.slane (!%p9150_p5), %v7903_v50, %v7919_v16 }
 0x47f   : > { %v7924_v10 = vrot.slane (!%p9150_p5), %v7903_v50, %v7923_v38  ;;  %v7928_v39 = vrot.slane (!%p9150_p5), %v7903_v50, %v7927_v8  ;;  %v7932_v19 = vrot.slane (!%p9150_p5), %v7903_v50, %v7931_v2  ;;  %v7936_v25 = vrot.slane (!%p9150_p5), %v7903_v50, %v7935_v18 }
 0x480   : > { %v7937_v26 = vcombine.low (!%p9150_p5), %v7908_v54, %v7912_v17  ;;  %v7938_v27 = vcombine.low (!%p9150_p5), %v7916_v21, %v7920_v22 }
 0x481   : > { %v7954_v29 = vcombine.low (!%p9150_p5), %v7924_v10, %v7928_v39  ;;  %v7955_v31 = vcombine.low (!%p9150_p5), %v7932_v19, %v7936_v25 }
 0x482   : > { %v7945_v32 = vrot.slane (!%p9150_p5), %v7937_v26, %v10723_v23  ;;  %v7952_v0 = vrot.slane (!%p9150_p5), %v7938_v27, %v10723_v23 }
 0x483   : > { %v7962_v45 = vrot.slane (!%p9150_p5), %v7954_v29, %v10723_v23  ;;  %v7969_v34 = vrot.slane (!%p9150_p5), %v7955_v31, %v10723_v23 }
 0x484   : > { %v7953_v20 = vcombine.low (!%p9150_p5), %v7945_v32, %v7952_v0 }
 0x485   : > { %v7970_v36 = vcombine.low (!%p9150_p5), %v7962_v45, %v7969_v34 }
 0x486   : > { %v7973_v37 = vadd.f32 (!%p9150_p5), %v7953_v20, %v7901_v49 }
 0x488   : > { %7975 = vst [vmem:[%s9844_s30] sm:$0xff] (!%p9150_p5), %v7973_v37 }
 0x550   : > { %v7514_v61 = vpop.f32.mrb[4].mxu0  ;;  %v7842_v62 = vpop.f32.mrb[4].mxu1 }
 0x551   : > { %v7516_v63 = vpop.f32.mrb[5].mxu0  ;;  %v7844_v9 = vpop.f32.mrb[5].mxu1 }
 0x552   : > { %v7874_v6 = vcombine.low %v7514_v61, %v7516_v63  ;;  %v7518_v1 = vpop.f32.mrb[6].mxu0  ;;  %v7875_v33 = vcombine.low %v7842_v62, %v7844_v9  ;;  %v7846_v3 = vpop.f32.mrb[6].mxu1 }
 0x553   : > { %v7519_v4 = vpop.f32.mrb[7].mxu0  ;;  %v7847_v28 = vpop.f32.mrb[7].mxu1 }
 0x554   : > { %v7882_v5 = vrot.slane %v7874_v6, %v10723_v23  ;;  %v7889_v30 = vrot.slane %v7875_v33, %v10723_v23  ;;  %7900 = sbr.rel (%p9150_p5) target bundleno = 1381 (0x565), region = 48 }
 0x556   : > { %v7890_v11 = vcombine.low %v7882_v5, %v7889_v30 }
 0x558   : > { %v7894_v12 = vadd.f32 %v7890_v11, %v274_v7 }
 0x55a   : > { %7896 = vst [vmem:[#allocation2 + $0x8] sm:$0xff] %v7894_v12 }
 0x561   : > { %v7902_v35 = vld [vmem:[#allocation2 + $0x8] sm:$0xff] }
 0x562   : > { %v7974_v40 = vadd.f32 %v7970_v36, %v7902_v35 }
 0x564   : > { %7976 = vst [vmem:[%s9844_s30 + $0x8] sm:$0xff] %v7974_v40 }
 0x565 PF: > { %s9158_s18 = sshll.u32 %s9560_s19, 8  ;;  %s7992_s1 = sshll.u32 %s9844_s30, 4  ;;  %s7993_s1 = int_to_ptr.vmem [resolvable:$true] %s7992_s1 }
 0x566   : > { %s11059_s24 = scalar_lea.hbm %s11120_s3, %s9158_s18  ;;  %s7978_s5 = scalar_lea.sflag [#allocation5], %s9827_s25 }
 0x567   : > { %s9446_s11 = scalar_lea.vmem %s7993_s1, 256  ;;  %p11145_p9 = scmp.ne.s32.totalorder %s11138_s9, 0 }
 0x568   : > { %p9447_p0 = scmp.ne.s32.totalorder %s7993_s1, %s9446_s11  ;;  %s9582_s4 = smov [#allocation8]  }
 0x569   : > { %s9450_s7 = sshll.u32 %s9582_s4, 4  ;;  %s9451_s7 = int_to_ptr.vmem [resolvable:$false] %s9450_s7 }
 0x56a   : > { %p9448_p12 = pnand %p9447_p0, %p11145_p9  ;;  %s9452_s10 = scalar_lea.vmem %s9451_s7, 512 }
 0x56b   : > { %p9453_p3 = scmp.lt.s32.totalorder %s7993_s1, %s9451_s7  ;;  %p9454_p11 = scmp.lt.s32.totalorder %s9452_s10, %s9446_s11 }
 0x56c   : > { %p9449_p10 = pneg %p9448_p12 }
 0x56d   : > { %p9455_p2 = por %p9454_p11, %p9453_p3 }
 0x56f   : > { %p9456_p4 = pnand %p9455_p2, %p9449_p10 }
 0x571   : > { %9459 = shalt.err (!%p9456_p4)
}
 0x572   : > { %s9460_s19 = scalar_lea.hbm %s11059_s24, 256  ;;  %s9464_s8 = scalar_lea.hbm %s11120_s3, 1024 }
 0x573   : > { %p9461_p8 = scmp.ne.s32.totalorder %s11059_s24, %s9460_s19  ;;  %p9465_p1 = scmp.lt.u32.totalorder %s11059_s24, %s11120_s3 }
 0x574   : > { %p9466_p7 = scmp.lt.u32.totalorder %s9464_s8, %s9460_s19  ;;  %p9468_p0 = scmp.lt.u32.totalorder %s9460_s19, %s11059_s24 }
 0x575   : > { %p9462_p13 = pnand %p9461_p8, %p11145_p9 }
 0x576   : > { %p9467_p5 = por %p9466_p7, %p9465_p1 }
 0x577   : > { %p9463_p6 = pneg %p9462_p13 }
 0x578   : > { %p9469_p12 = por %p9468_p0, %p9467_p5 }
 0x57a   : > { %p9470_p10 = pnand %p9469_p12, %p9463_p6 }
 0x57c   : > { %9473 = shalt.err (!%p9470_p10)
}
 0x57d   : > { %9275 = dma.vmem_to_hbm [thread:$0]  (%p11145_p9), %s7993_s1, 256, %s11059_s24, %s7978_s5  }
 0x57e PF: > { %p9289_p3 = scmp.ge.s32.totalorder %s9572_s22, 2  ;;  %s8004_s18 = sand.u32 1, %s9532_s12  }
 0x57f   : > { %p11146_p11 = scmp.ne.s32.totalorder %s11140_s6, 0  ;;  %s8005_s15 = scalar_lea.sflag [#allocation5], %s8004_s18 }
 0x581   : > { %p9285_p2 = pnand %p9289_p3, %p11146_p11 }
 0x583   : > { %9527 = dma.done.wait (!%p9285_p2), %s8005_s15, 256  }
 0x584   : > { %9529 = vsyncadd (!%p9285_p2), %s8005_s15, 4294967040  ;;  %s22_s22 = sadd.s32 1, %s9572_s22   ;;  %s11147_s9 = sld [smem:[#allocation12_spill]] }
 0x585   : > { %p19_p4 = scmp.ge.s32.totalorder %s22_s22, 18   ;;  %s11148_s26 = sld [smem:[#allocation13_spill]] }
 0x586   : > { %s11149_s12 = smov %s9536_s13  ;;  %s11150_s13 = smov %s9540_s14 }
 0x587   : > { %s11151_s14 = smov %s9761_s28  ;;  %s11152_s15 = smov %s9548_s16 }
 0x588   : > { %s11153_s16 = smov %s9552_s17  ;;  %s11154_s17 = smov %s9766_s27 }
 0x589   : > { %s11155_s18 = smov %s9564_s20  ;;  %s11156_s19 = smov %s9568_s21 }
 0x58a   : > { %s11157_s20 = smov %s11147_s9  ;;  %21 = sbr.rel (!%p19_p4) target bundleno = 13 (0xd), region = 101 }
 0x58b   : > { %s11158_s21 = smov %s11148_s26 }
 0x591   :  { %8010 = vsyncpa [#allocation4], 1 }
 0x592   :  { %8012 = vsyncpa [#allocation4 + $0x1], 1 }
 0x593   :  { %8013 = vsyncpa [#allocation7], 1 }
 0x594   :  { %8015 = vsyncpa [#allocation7 + $0x1], 1 }
 0x595   :  { %8016 = vsyncpa [#allocation5], 1 }
 0x596   :  { %8018 = vsyncpa [#allocation5 + $0x1], 1 }

</bundles_post_ra>
